<compile_context>
chip_gen: v7x
topology: tpu7x:2x2x1
jax: 0.10.0
libtpu: 0.0.40
codegen_flags: <defaults>
</compile_context>

<pallas_src>
import functools

import jax
import jax.numpy as jnp
from jax import lax
from jax.experimental import pallas as pl
from jax.experimental.pallas import tpu as pltpu

_LANE = 128   # per-sample lane block used for every conv activation buffer
_ROW = 11     # flat row stride of the per-sample spatial geometry (11x11 planes)


# ----------------------------------------------------------------------------
# helpers
# ----------------------------------------------------------------------------
def _round_up(x, m):
    return (x + m - 1) // m * m


def _choose_tile(m, unit, max_tile):
    """Pick (tile, padded_m): tile % unit == 0, padded_m % tile == 0, and the
    padding stays small (review fix: no more rounding up to a full max_tile)."""
    m_pad = _round_up(m, unit)
    if m_pad <= max_tile:
        return m_pad, m_pad
    num = pl.cdiv(m_pad, max_tile)
    tile = unit * pl.cdiv(pl.cdiv(m_pad, num), unit)
    return tile, tile * num


def _compiler_params():
    return pltpu.CompilerParams(
        dimension_semantics=("parallel",),     # batch tiles shard across TCs (v7x)
        vmem_limit_bytes=32 * 1024 * 1024,     # explicit budget, safe on v5e..v7x
    )


# ----------------------------------------------------------------------------
# fused conv1 -> conv2 -> conv3 Pallas kernel (in-kernel im2col)
# ----------------------------------------------------------------------------
def _shift_left(x, s):
    """shifted[:, q] = x[:, q + s]; the wrapped tail only ever lands in junk
    columns (validity checked in the layout derivation)."""
    if s == 0:
        return x
    return jnp.concatenate([x[:, s:], x[:, :s]], axis=1)


def _phase_segments(p):
    """Kernel-index segments of [0, 8) grouped by (4*p + k) // 8 -> (d, k0, klen)."""
    return [(0, 0, 8)] if p == 0 else [(0, 0, 4), (1, 4, 4)]


def _conv_stack_kernel(x_ref, w1_ref, b1_ref, w2_ref, b2_ref, w3_ref, b3_ref, o_ref):
    """Per batch tile: x_ref is the 8x8 space-to-depth input, rows ordered
    (plane_row, plane_col, channel), columns = sample*128 + 11*a + b.  Every
    conv is accumulated from contiguous row slices + static lane shifts."""
    width = x_ref.shape[-1]                 # nb * 128
    c_in = w1_ref.shape[-1] // 8
    o1 = w1_ref.shape[1]

    # ---- conv1 (8x8, stride 4): emit four stride-2 phase buffers for conv2 ----
    def conv1_phase(ph, pw):
        acc = jnp.zeros((o1, width), jnp.float32)
        for dh, kh0, khn in _phase_segments(ph):
            for dw, kw0, kwn in _phase_segments(pw):
                part = jnp.zeros((o1, width), jnp.float32)
                s0 = 4 * pw + kw0 - 8 * dw                 # first plane-column
                for t in range(khn):
                    kh = kh0 + t
                    pr = 4 * ph + kh - 8 * dh              # plane-row
                    row0 = (pr * 8 + s0) * c_in
                    rhs = x_ref[row0:row0 + kwn * c_in, :]                # (kwn*C, W)
                    lhs = w1_ref[kh][:, kw0 * c_in:(kw0 + kwn) * c_in]    # (O1, kwn*C)
                    part = part + jnp.dot(lhs, rhs,
                                          preferred_element_type=jnp.float32)
                acc = acc + _shift_left(part, _ROW * dh + dw)
        return jnp.maximum(acc + b1_ref[...], 0.0).astype(jnp.bfloat16)

    buf1 = [[conv1_phase(ph, pw) for pw in range(2)] for ph in range(2)]

    # ---- conv2 (4x4, stride 2): valid 9x9 grid stored with row stride 11 ----
    o2 = w2_ref.shape[2]
    acc2 = jnp.zeros((o2, width), jnp.float32)
    for dh in range(2):
        for dw in range(2):
            part = jnp.zeros((o2, width), jnp.float32)
            for rh in range(2):
                for rw in range(2):
                    part = part + jnp.dot(w2_ref[2 * dh + rh, 2 * dw + rw],
                                          buf1[rh][rw],
                                          preferred_element_type=jnp.float32)
            acc2 = acc2 + _shift_left(part, _ROW * dh + dw)
    buf2 = jnp.maximum(acc2 + b2_ref[...], 0.0).astype(jnp.bfloat16)

    # ---- conv3 (3x3, stride 1): valid 7x7 grid, same row stride 11 ----
    o3 = w3_ref.shape[2]
    acc3 = jnp.zeros((o3, width), jnp.float32)
    for kh in range(3):
        for kw in range(3):
            d = jnp.dot(w3_ref[kh, kw], buf2, preferred_element_type=jnp.float32)
            acc3 = acc3 + _shift_left(d, _ROW * kh + kw)
    o_ref[...] = jnp.maximum(acc3 + b3_ref[...], 0.0).astype(o_ref.dtype)


def _conv_stack(xp, p, nb):
    rows, total = xp.shape
    o3 = p["c3_w"].shape[2]
    grid = total // (nb * _LANE)
    return pl.pallas_call(
        _conv_stack_kernel,
        out_shape=jax.ShapeDtypeStruct((o3, total), jnp.bfloat16),
        grid=(grid,),
        in_specs=[
            pl.BlockSpec((rows, nb * _LANE), lambda i: (0, i)),      # streamed input
            pl.BlockSpec(p["c1_w"].shape, lambda i: (0, 0, 0)),      # resident weights
            pl.BlockSpec(p["c1_b"].shape, lambda i: (0, 0)),
            pl.BlockSpec(p["c2_w"].shape, lambda i: (0, 0, 0, 0)),
            pl.BlockSpec(p["c2_b"].shape, lambda i: (0, 0)),
            pl.BlockSpec(p["c3_w"].shape, lambda i: (0, 0, 0, 0)),
            pl.BlockSpec(p["c3_b"].shape, lambda i: (0, 0)),
        ],
        out_specs=pl.BlockSpec((o3, nb * _LANE), lambda i: (0, i)),   # lane-dense
        compiler_params=_compiler_params(),
    )(xp, p["c1_w"], p["c1_b"], p["c2_w"], p["c2_b"], p["c3_w"], p["c3_b"])


# ----------------------------------------------------------------------------
# fused FC head (fc1 + ReLU + fc2) Pallas kernel
# ----------------------------------------------------------------------------
def _fc_head_kernel(x_ref, w1_ref, b1_ref, w2_ref, b2_ref, o_ref):
    h = jnp.dot(x_ref[...], w1_ref[...], preferred_element_type=jnp.float32)
    h = jnp.maximum(h + b1_ref[...], 0.0)
    out = jnp.dot(h.astype(jnp.bfloat16), w2_ref[...],
                  preferred_element_type=jnp.float32)
    o_ref[...] = (out + b2_ref[...]).astype(o_ref.dtype)


def _fc_head(flat_bf16, w1t, b1_row, w2t_pad, b2_row_pad, *, max_tile_b=256):
    b, k1 = flat_bf16.shape
    n1 = w1t.shape[1]
    n2 = w2t_pad.shape[1]
    tile_b, b_pad = _choose_tile(b, 16, max_tile_b)
    x = flat_bf16
    if b_pad != b:
        x = jnp.pad(x, ((0, b_pad - b), (0, 0)))
    out = pl.pallas_call(
        _fc_head_kernel,
        out_shape=jax.ShapeDtypeStruct((b_pad, n2), jnp.float32),
        grid=(b_pad // tile_b,),
        in_specs=[
            pl.BlockSpec((tile_b, k1), lambda i: (i, 0)),
            pl.BlockSpec((k1, n1), lambda i: (0, 0)),
            pl.BlockSpec((1, n1), lambda i: (0, 0)),
            pl.BlockSpec((n1, n2), lambda i: (0, 0)),
            pl.BlockSpec((1, n2), lambda i: (0, 0)),
        ],
        out_specs=pl.BlockSpec((tile_b, n2), lambda i: (i, 0)),
        compiler_params=_compiler_params(),
    )(x, w1t, b1_row, w2t_pad, b2_row_pad)
    return out[:b] if b_pad != b else out


# ----------------------------------------------------------------------------
# parameters
# ----------------------------------------------------------------------------
def init_mario_params(key, c, output_dim):
    """PyTorch-layout f32 parameters (Conv2d OIHW, Linear (out, in))."""
    def uniform(k, shape, fan_in):
        bound = 1.0 / jnp.sqrt(jnp.float32(fan_in))
        return jax.random.uniform(k, shape, jnp.float32, -bound, bound)

    ks = jax.random.split(key, 10)
    return {
        "conv1_w": uniform(ks[0], (32, c, 8, 8), c * 8 * 8),
        "conv1_b": uniform(ks[1], (32,), c * 8 * 8),
        "conv2_w": uniform(ks[2], (64, 32, 4, 4), 32 * 4 * 4),
        "conv2_b": uniform(ks[3], (64,), 32 * 4 * 4),
        "conv3_w": uniform(ks[4], (64, 64, 3, 3), 64 * 3 * 3),
        "conv3_b": uniform(ks[5], (64,), 64 * 3 * 3),
        "fc1_w": uniform(ks[6], (512, 3136), 3136),
        "fc1_b": uniform(ks[7], (512,), 3136),
        "fc2_w": uniform(ks[8], (output_dim, 512), 512),
        "fc2_b": uniform(ks[9], (output_dim,), 512),
    }


def prepare_fast_params(raw, output_dim):
    """One-time relayout into kernel-friendly bf16 weights / f32 biases."""
    c = raw["conv1_w"].shape[1]
    n2 = _round_up(output_dim, 128)                        # lane-dense fc2 output
    w2t = jnp.zeros((512, n2), jnp.float32).at[:, :output_dim].set(raw["fc2_w"].T)
    b2 = jnp.zeros((n2,), jnp.float32).at[:output_dim].set(raw["fc2_b"])
    return {
        # conv1: (kh, O, kw*C) with the last dim ordered (kw, c) -> matches the
        # (plane_col, channel) ordering of the space-to-depth input rows.
        "c1_w": raw["conv1_w"].transpose(2, 0, 3, 1).reshape(8, 32, 8 * c)
                              .astype(jnp.bfloat16),
        "c1_b": raw["conv1_b"].reshape(-1, 1).astype(jnp.float32),
        "c2_w": raw["conv2_w"].transpose(2, 3, 0, 1).astype(jnp.bfloat16),  # (kh,kw,O,C)
        "c2_b": raw["conv2_b"].reshape(-1, 1).astype(jnp.float32),
        "c3_w": raw["conv3_w"].transpose(2, 3, 0, 1).astype(jnp.bfloat16),  # (kh,kw,O,C)
        "c3_b": raw["conv3_b"].reshape(-1, 1).astype(jnp.float32),
        "fc1_w": raw["fc1_w"].T.astype(jnp.bfloat16),      # (3136, 512)
        "fc1_b": raw["fc1_b"].reshape(1, -1).astype(jnp.float32),
        "fc2_w": w2t.astype(jnp.bfloat16),                 # (512, n2) zero-padded
        "fc2_b": b2.reshape(1, -1).astype(jnp.float32),
    }


# ----------------------------------------------------------------------------
# forward
# ----------------------------------------------------------------------------
def _prep_input(x, n_pad):
    """(N, C, 84, 84) f32 -> (64*C, n_pad*128) bf16 space-to-depth layout.

    Row (r*8 + s)*C + c, column n*128 + 11*a + b  holds  x[n, c, 8a + r, 8b + s]
    (spatial zero-padded 84 -> 88).  One XLA pass over the raw input; it replaces
    the old NCHW->CNHW transpose and every HBM im2col buffer."""
    n, c, h, w = x.shape
    xb = x.astype(jnp.bfloat16)
    xb = jnp.pad(xb, ((0, n_pad - n), (0, 0), (0, 88 - h), (0, 88 - w)))
    xb = xb.reshape(n_pad, c, 11, 8, 11, 8)
    xb = xb.transpose(3, 5, 1, 0, 2, 4)                    # (8, 8, C, N, 11, 11)
    xb = xb.reshape(64 * c, n_pad, 121)
    xb = jnp.pad(xb, ((0, 0), (0, 0), (0, _LANE - 121)))
    return xb.reshape(64 * c, n_pad * _LANE)


@functools.partial(jax.jit, static_argnums=(2,))
def mario_forward(params, x, out_dim):
    """x: (N, C, 84, 84) f32 -> (N, out_dim) f32."""
    n, c, h, w = x.shape
    if h != 84:
        raise ValueError(f"Expecting input height: 84, got: {h}")
    if w != 84:
        raise ValueError(f"Expecting input width: 84, got: {w}")

    # Batch tile: keep >= 2 grid steps whenever N >= 2 (both v7x TensorCores busy);
    # cap at 8 samples/step (a few hundred KB of VMEM activations per step).
    nb = max(1, min(8, pl.cdiv(n, 2)))
    n_pad = _round_up(n, nb)

    xp = _prep_input(x, n_pad)                             # (64*C, n_pad*128) bf16
    conv_out = _conv_stack(xp, params, nb)                 # (64,   n_pad*128) bf16

    # Restore PyTorch's NCHW flatten order (c*49 + h*7 + w): reshapes/slices only.
    feat = conv_out.reshape(64, n_pad, _LANE).transpose(1, 0, 2)
    feat = feat[:, :, :121].reshape(n_pad, 64, 11, 11)[:, :, :7, :7]
    flat = feat.reshape(n_pad, 64 * 49)                    # (n_pad, 3136) bf16

    out = _fc_head(flat, params["fc1_w"], params["fc1_b"],
                   params["fc2_w"], params["fc2_b"])       # (n_pad, n2) f32
    return out[:n, :out_dim]


class MarioNetPallas:
    """Mirrors MarioNet: online + target nets (target is a frozen copy)."""

    def __init__(self, input_dim, output_dim, key):
        c, h, w = input_dim
        if h != 84:
            raise ValueError(f"Expecting input height: 84, got: {h}")
        if w != 84:
            raise ValueError(f"Expecting input width: 84, got: {w}")
        self.output_dim = int(output_dim)
        self.online = init_mario_params(key, c, output_dim)      # raw torch layout
        self.target = jax.tree_util.tree_map(jnp.array, self.online)
        self._online_fast = prepare_fast_params(self.online, self.output_dim)
        self._target_fast = prepare_fast_params(self.target, self.output_dim)

    def __call__(self, x, model):
        if model == "online":
            return mario_forward(self._online_fast, x, self.output_dim)
        elif model == "target":
            return mario_forward(self._target_fast, x, self.output_dim)


# ----------------------------------------------------------------------------
# Pure-JAX references for correctness checks
# ----------------------------------------------------------------------------
def reference_forward(params, x, compute_dtype=jnp.float32):
    """compute_dtype=bfloat16 mirrors the kernel's bf16-operand / f32-accumulate
    numerics; float32 is the exact reference."""
    dn = ("NCHW", "OIHW", "NCHW")

    def conv(y, w, b, s):
        y = lax.conv_general_dilated(
            y.astype(compute_dtype), w.astype(compute_dtype), (s, s), "VALID",
            dimension_numbers=dn, preferred_element_type=jnp.float32)
        y = jnp.maximum(y + b[None, :, None, None], 0.0)
        return y.astype(compute_dtype)

    y = conv(x, params["conv1_w"], params["conv1_b"], 4)
    y = conv(y, params["conv2_w"], params["conv2_b"], 2)
    y = conv(y, params["conv3_w"], params["conv3_b"], 1)
    flat = y.reshape(y.shape[0], -1)
    h1 = jnp.dot(flat, params["fc1_w"].T.astype(compute_dtype),
                 preferred_element_type=jnp.float32) + params["fc1_b"]
    h1 = jnp.maximum(h1, 0.0).astype(compute_dtype)
    return jnp.dot(h1, params["fc2_w"].T.astype(compute_dtype),
                   preferred_element_type=jnp.float32) + params["fc2_b"]


if __name__ == "__main__":
    key = jax.random.PRNGKey(0)
    k_param, k_input = jax.random.split(key)

    batch, channels, output_dim = 2, 4, 6
    net = MarioNetPallas((channels, 84, 84), output_dim, k_param)

    x = jax.random.normal(k_input, (batch, channels, 84, 84), jnp.float32)

    out_online = jax.block_until_ready(net(x, "online"))
    out_target = jax.block_until_ready(net(x, "target"))

    assert out_online.shape == (batch, output_dim)
    assert out_target.shape == (batch, output_dim)

    # strict check vs a reference that uses the same bf16-operand / f32-accumulate
    # numerics (catches any layout / indexing bug in the Pallas path)
    ref_bf16 = reference_forward(net.online, x, compute_dtype=jnp.bfloat16)
    assert jnp.allclose(out_online, ref_bf16, atol=1e-3, rtol=1e-2), \
        "mismatch vs bf16-matched reference"

    # loose check vs the pure-f32 reference (documents bf16 operand fidelity)
    ref_f32 = reference_forward(net.online, x)
    assert jnp.allclose(out_online, ref_f32, atol=2e-2, rtol=5e-2), \
        "mismatch vs f32 reference"

    assert jnp.allclose(out_online, out_target), "target copy mismatch"

    print("KERNEL_OK")
</pallas_src>

<mosaic_0001>
module attributes {stable_mosaic.version = 11 : i64} {
  func.func @_conv_stack_kernel(%arg0: i32, %arg1: memref<256x128xbf16, #tpu.memory_space<vmem>>, %arg2: memref<8x32x32xbf16, #tpu.memory_space<vmem>>, %arg3: memref<32x1xf32, #tpu.memory_space<vmem>>, %arg4: memref<4x4x64x32xbf16, #tpu.memory_space<vmem>>, %arg5: memref<64x1xf32, #tpu.memory_space<vmem>>, %arg6: memref<3x3x64x64xbf16, #tpu.memory_space<vmem>>, %arg7: memref<64x1xf32, #tpu.memory_space<vmem>>, %arg8: memref<64x128xbf16, #tpu.memory_space<vmem>>) attributes {dimension_semantics = [#tpu.dimension_semantics<parallel>], iteration_bounds = array<i64: 2>, scalar_prefetch = 0 : i64, scratch_operands = 0 : i64, tpu.core_type = #tpu.core_type<tc>, window_params = [{transform_indices = @transform_0, window_bounds = array<i64: 256, 128>}, {pipeline_mode = #tpu.pipeline_mode<synchronous>, transform_indices = @transform_1, window_bounds = array<i64: 8, 32, 32>}, {pipeline_mode = #tpu.pipeline_mode<synchronous>, transform_indices = @transform_2, window_bounds = array<i64: 32, 1>}, {pipeline_mode = #tpu.pipeline_mode<synchronous>, transform_indices = @transform_3, window_bounds = array<i64: 4, 4, 64, 32>}, {pipeline_mode = #tpu.pipeline_mode<synchronous>, transform_indices = @transform_4, window_bounds = array<i64: 64, 1>}, {pipeline_mode = #tpu.pipeline_mode<synchronous>, transform_indices = @transform_5, window_bounds = array<i64: 3, 3, 64, 64>}, {pipeline_mode = #tpu.pipeline_mode<synchronous>, transform_indices = @transform_6, window_bounds = array<i64: 64, 1>}, {transform_indices = @transform_7, window_bounds = array<i64: 64, 128>}]} {
    %cst = arith.constant 0.000000e+00 : f32
    %0 = vector.broadcast %cst : f32 to vector<32x128xf32>
    %cst_0 = arith.constant 0.000000e+00 : f32
    %1 = vector.broadcast %cst_0 : f32 to vector<32x128xf32>
    %c0 = arith.constant 0 : index
    %c0_1 = arith.constant 0 : index
    %2 = vector.load %arg1[%c0, %c0_1] : memref<256x128xbf16, #tpu.memory_space<vmem>>, vector<32x128xbf16>
    %c0_2 = arith.constant 0 : index
    %c0_3 = arith.constant 0 : index
    %c0_4 = arith.constant 0 : index
    %3 = vector.load %arg2[%c0_2, %c0_3, %c0_4] : memref<8x32x32xbf16, #tpu.memory_space<vmem>>, vector<1x32x32xbf16>
    %4 = vector.shape_cast %3 : vector<1x32x32xbf16> to vector<32x32xbf16>
    %cst_5 = arith.constant dense<0.000000e+00> : vector<32x128xf32>
    %5 = tpu.matmul %4, %2, %cst_5 {dimension_numbers = #tpu.dot_dimension_numbers<[1], [0], [0], [1], [0, 0, 1, 1], [], []>} : vector<32x32xbf16>, vector<32x128xbf16>, vector<32x128xf32> -> vector<32x128xf32>
    %6 = arith.addf %1, %5 : vector<32x128xf32>
    %c32 = arith.constant 32 : index
    %c0_6 = arith.constant 0 : index
    %7 = vector.load %arg1[%c32, %c0_6] : memref<256x128xbf16, #tpu.memory_space<vmem>>, vector<32x128xbf16>
    %c1 = arith.constant 1 : index
    %c0_7 = arith.constant 0 : index
    %c0_8 = arith.constant 0 : index
    %8 = vector.load %arg2[%c1, %c0_7, %c0_8] : memref<8x32x32xbf16, #tpu.memory_space<vmem>>, vector<1x32x32xbf16>
    %9 = vector.shape_cast %8 : vector<1x32x32xbf16> to vector<32x32xbf16>
    %cst_9 = arith.constant dense<0.000000e+00> : vector<32x128xf32>
    %10 = tpu.matmul %9, %7, %cst_9 {dimension_numbers = #tpu.dot_dimension_numbers<[1], [0], [0], [1], [0, 0, 1, 1], [], []>} : vector<32x32xbf16>, vector<32x128xbf16>, vector<32x128xf32> -> vector<32x128xf32>
    %11 = arith.addf %6, %10 : vector<32x128xf32>
    %c64 = arith.constant 64 : index
    %c0_10 = arith.constant 0 : index
    %12 = vector.load %arg1[%c64, %c0_10] : memref<256x128xbf16, #tpu.memory_space<vmem>>, vector<32x128xbf16>
    %c2 = arith.constant 2 : index
    %c0_11 = arith.constant 0 : index
    %c0_12 = arith.constant 0 : index
    %13 = vector.load %arg2[%c2, %c0_11, %c0_12] : memref<8x32x32xbf16, #tpu.memory_space<vmem>>, vector<1x32x32xbf16>
    %14 = vector.shape_cast %13 : vector<1x32x32xbf16> to vector<32x32xbf16>
    %cst_13 = arith.constant dense<0.000000e+00> : vector<32x128xf32>
    %15 = tpu.matmul %14, %12, %cst_13 {dimension_numbers = #tpu.dot_dimension_numbers<[1], [0], [0], [1], [0, 0, 1, 1], [], []>} : vector<32x32xbf16>, vector<32x128xbf16>, vector<32x128xf32> -> vector<32x128xf32>
    %16 = arith.addf %11, %15 : vector<32x128xf32>
    %c96 = arith.constant 96 : index
    %c0_14 = arith.constant 0 : index
    %17 = vector.load %arg1[%c96, %c0_14] : memref<256x128xbf16, #tpu.memory_space<vmem>>, vector<32x128xbf16>
    %c3 = arith.constant 3 : index
    %c0_15 = arith.constant 0 : index
    %c0_16 = arith.constant 0 : index
    %18 = vector.load %arg2[%c3, %c0_15, %c0_16] : memref<8x32x32xbf16, #tpu.memory_space<vmem>>, vector<1x32x32xbf16>
    %19 = vector.shape_cast %18 : vector<1x32x32xbf16> to vector<32x32xbf16>
    %cst_17 = arith.constant dense<0.000000e+00> : vector<32x128xf32>
    %20 = tpu.matmul %19, %17, %cst_17 {dimension_numbers = #tpu.dot_dimension_numbers<[1], [0], [0], [1], [0, 0, 1, 1], [], []>} : vector<32x32xbf16>, vector<32x128xbf16>, vector<32x128xf32> -> vector<32x128xf32>
    %21 = arith.addf %16, %20 : vector<32x128xf32>
    %c128 = arith.constant 128 : index
    %c0_18 = arith.constant 0 : index
    %22 = vector.load %arg1[%c128, %c0_18] : memref<256x128xbf16, #tpu.memory_space<vmem>>, vector<32x128xbf16>
    %c4 = arith.constant 4 : index
    %c0_19 = arith.constant 0 : index
    %c0_20 = arith.constant 0 : index
    %23 = vector.load %arg2[%c4, %c0_19, %c0_20] : memref<8x32x32xbf16, #tpu.memory_space<vmem>>, vector<1x32x32xbf16>
    %24 = vector.shape_cast %23 : vector<1x32x32xbf16> to vector<32x32xbf16>
    %cst_21 = arith.constant dense<0.000000e+00> : vector<32x128xf32>
    %25 = tpu.matmul %24, %22, %cst_21 {dimension_numbers = #tpu.dot_dimension_numbers<[1], [0], [0], [1], [0, 0, 1, 1], [], []>} : vector<32x32xbf16>, vector<32x128xbf16>, vector<32x128xf32> -> vector<32x128xf32>
    %26 = arith.addf %21, %25 : vector<32x128xf32>
    %c160 = arith.constant 160 : index
    %c0_22 = arith.constant 0 : index
    %27 = vector.load %arg1[%c160, %c0_22] : memref<256x128xbf16, #tpu.memory_space<vmem>>, vector<32x128xbf16>
    %c5 = arith.constant 5 : index
    %c0_23 = arith.constant 0 : index
    %c0_24 = arith.constant 0 : index
    %28 = vector.load %arg2[%c5, %c0_23, %c0_24] : memref<8x32x32xbf16, #tpu.memory_space<vmem>>, vector<1x32x32xbf16>
    %29 = vector.shape_cast %28 : vector<1x32x32xbf16> to vector<32x32xbf16>
    %cst_25 = arith.constant dense<0.000000e+00> : vector<32x128xf32>
    %30 = tpu.matmul %29, %27, %cst_25 {dimension_numbers = #tpu.dot_dimension_numbers<[1], [0], [0], [1], [0, 0, 1, 1], [], []>} : vector<32x32xbf16>, vector<32x128xbf16>, vector<32x128xf32> -> vector<32x128xf32>
    %31 = arith.addf %26, %30 : vector<32x128xf32>
    %c192 = arith.constant 192 : index
    %c0_26 = arith.constant 0 : index
    %32 = vector.load %arg1[%c192, %c0_26] : memref<256x128xbf16, #tpu.memory_space<vmem>>, vector<32x128xbf16>
    %c6 = arith.constant 6 : index
    %c0_27 = arith.constant 0 : index
    %c0_28 = arith.constant 0 : index
    %33 = vector.load %arg2[%c6, %c0_27, %c0_28] : memref<8x32x32xbf16, #tpu.memory_space<vmem>>, vector<1x32x32xbf16>
    %34 = vector.shape_cast %33 : vector<1x32x32xbf16> to vector<32x32xbf16>
    %cst_29 = arith.constant dense<0.000000e+00> : vector<32x128xf32>
    %35 = tpu.matmul %34, %32, %cst_29 {dimension_numbers = #tpu.dot_dimension_numbers<[1], [0], [0], [1], [0, 0, 1, 1], [], []>} : vector<32x32xbf16>, vector<32x128xbf16>, vector<32x128xf32> -> vector<32x128xf32>
    %36 = arith.addf %31, %35 : vector<32x128xf32>
    %c224 = arith.constant 224 : index
    %c0_30 = arith.constant 0 : index
    %37 = vector.load %arg1[%c224, %c0_30] : memref<256x128xbf16, #tpu.memory_space<vmem>>, vector<32x128xbf16>
    %c7 = arith.constant 7 : index
    %c0_31 = arith.constant 0 : index
    %c0_32 = arith.constant 0 : index
    %38 = vector.load %arg2[%c7, %c0_31, %c0_32] : memref<8x32x32xbf16, #tpu.memory_space<vmem>>, vector<1x32x32xbf16>
    %39 = vector.shape_cast %38 : vector<1x32x32xbf16> to vector<32x32xbf16>
    %cst_33 = arith.constant dense<0.000000e+00> : vector<32x128xf32>
    %40 = tpu.matmul %39, %37, %cst_33 {dimension_numbers = #tpu.dot_dimension_numbers<[1], [0], [0], [1], [0, 0, 1, 1], [], []>} : vector<32x32xbf16>, vector<32x128xbf16>, vector<32x128xf32> -> vector<32x128xf32>
    %41 = arith.addf %36, %40 : vector<32x128xf32>
    %42 = arith.addf %0, %41 : vector<32x128xf32>
    %c0_34 = arith.constant 0 : index
    %c0_35 = arith.constant 0 : index
    %43 = vector.load %arg3[%c0_34, %c0_35] : memref<32x1xf32, #tpu.memory_space<vmem>>, vector<32x1xf32>
    %44 = vector.broadcast %43 : vector<32x1xf32> to vector<32x128xf32>
    %45 = arith.addf %42, %44 : vector<32x128xf32>
    %cst_36 = arith.constant 0.000000e+00 : f32
    %46 = vector.broadcast %cst_36 : f32 to vector<32x128xf32>
    %47 = arith.maximumf %45, %46 : vector<32x128xf32>
    %48 = arith.truncf %47 : vector<32x128xf32> to vector<32x128xbf16>
    %cst_37 = arith.constant 0.000000e+00 : f32
    %49 = vector.broadcast %cst_37 : f32 to vector<32x128xf32>
    %cst_38 = arith.constant 0.000000e+00 : f32
    %50 = vector.broadcast %cst_38 : f32 to vector<32x128xf32>
    %c16 = arith.constant 16 : index
    %c0_39 = arith.constant 0 : index
    %51 = vector.load %arg1[%c16, %c0_39] : memref<256x128xbf16, #tpu.memory_space<vmem>>, vector<16x128xbf16>
    %c0_40 = arith.constant 0 : index
    %c0_41 = arith.constant 0 : index
    %c0_42 = arith.constant 0 : index
    %52 = vector.load %arg2[%c0_40, %c0_41, %c0_42] : memref<8x32x32xbf16, #tpu.memory_space<vmem>>, vector<1x32x32xbf16>
    %53 = vector.shape_cast %52 : vector<1x32x32xbf16> to vector<32x32xbf16>
    %54 = vector.extract_strided_slice %53 {offsets = [0, 0], sizes = [32, 16], strides = [1, 1]} : vector<32x32xbf16> to vector<32x16xbf16>
    %cst_43 = arith.constant dense<0.000000e+00> : vector<32x128xf32>
    %55 = tpu.matmul %54, %51, %cst_43 {dimension_numbers = #tpu.dot_dimension_numbers<[1], [0], [0], [1], [0, 0, 1, 1], [], []>} : vector<32x16xbf16>, vector<16x128xbf16>, vector<32x128xf32> -> vector<32x128xf32>
    %56 = arith.addf %50, %55 : vector<32x128xf32>
    %c48 = arith.constant 48 : index
    %c0_44 = arith.constant 0 : index
    %57 = vector.load %arg1[%c48, %c0_44] : memref<256x128xbf16, #tpu.memory_space<vmem>>, vector<16x128xbf16>
    %c1_45 = arith.constant 1 : index
    %c0_46 = arith.constant 0 : index
    %c0_47 = arith.constant 0 : index
    %58 = vector.load %arg2[%c1_45, %c0_46, %c0_47] : memref<8x32x32xbf16, #tpu.memory_space<vmem>>, vector<1x32x32xbf16>
    %59 = vector.shape_cast %58 : vector<1x32x32xbf16> to vector<32x32xbf16>
    %60 = vector.extract_strided_slice %59 {offsets = [0, 0], sizes = [32, 16], strides = [1, 1]} : vector<32x32xbf16> to vector<32x16xbf16>
    %cst_48 = arith.constant dense<0.000000e+00> : vector<32x128xf32>
    %61 = tpu.matmul %60, %57, %cst_48 {dimension_numbers = #tpu.dot_dimension_numbers<[1], [0], [0], [1], [0, 0, 1, 1], [], []>} : vector<32x16xbf16>, vector<16x128xbf16>, vector<32x128xf32> -> vector<32x128xf32>
    %62 = arith.addf %56, %61 : vector<32x128xf32>
    %c80 = arith.constant 80 : index
    %c0_49 = arith.constant 0 : index
    %63 = vector.load %arg1[%c80, %c0_49] : memref<256x128xbf16, #tpu.memory_space<vmem>>, vector<16x128xbf16>
    %c2_50 = arith.constant 2 : index
    %c0_51 = arith.constant 0 : index
    %c0_52 = arith.constant 0 : index
    %64 = vector.load %arg2[%c2_50, %c0_51, %c0_52] : memref<8x32x32xbf16, #tpu.memory_space<vmem>>, vector<1x32x32xbf16>
    %65 = vector.shape_cast %64 : vector<1x32x32xbf16> to vector<32x32xbf16>
    %66 = vector.extract_strided_slice %65 {offsets = [0, 0], sizes = [32, 16], strides = [1, 1]} : vector<32x32xbf16> to vector<32x16xbf16>
    %cst_53 = arith.constant dense<0.000000e+00> : vector<32x128xf32>
    %67 = tpu.matmul %66, %63, %cst_53 {dimension_numbers = #tpu.dot_dimension_numbers<[1], [0], [0], [1], [0, 0, 1, 1], [], []>} : vector<32x16xbf16>, vector<16x128xbf16>, vector<32x128xf32> -> vector<32x128xf32>
    %68 = arith.addf %62, %67 : vector<32x128xf32>
    %c112 = arith.constant 112 : index
    %c0_54 = arith.constant 0 : index
    %69 = vector.load %arg1[%c112, %c0_54] : memref<256x128xbf16, #tpu.memory_space<vmem>>, vector<16x128xbf16>
    %c3_55 = arith.constant 3 : index
    %c0_56 = arith.constant 0 : index
    %c0_57 = arith.constant 0 : index
    %70 = vector.load %arg2[%c3_55, %c0_56, %c0_57] : memref<8x32x32xbf16, #tpu.memory_space<vmem>>, vector<1x32x32xbf16>
    %71 = vector.shape_cast %70 : vector<1x32x32xbf16> to vector<32x32xbf16>
    %72 = vector.extract_strided_slice %71 {offsets = [0, 0], sizes = [32, 16], strides = [1, 1]} : vector<32x32xbf16> to vector<32x16xbf16>
    %cst_58 = arith.constant dense<0.000000e+00> : vector<32x128xf32>
    %73 = tpu.matmul %72, %69, %cst_58 {dimension_numbers = #tpu.dot_dimension_numbers<[1], [0], [0], [1], [0, 0, 1, 1], [], []>} : vector<32x16xbf16>, vector<16x128xbf16>, vector<32x128xf32> -> vector<32x128xf32>
    %74 = arith.addf %68, %73 : vector<32x128xf32>
    %c144 = arith.constant 144 : index
    %c0_59 = arith.constant 0 : index
    %75 = vector.load %arg1[%c144, %c0_59] : memref<256x128xbf16, #tpu.memory_space<vmem>>, vector<16x128xbf16>
    %c4_60 = arith.constant 4 : index
    %c0_61 = arith.constant 0 : index
    %c0_62 = arith.constant 0 : index
    %76 = vector.load %arg2[%c4_60, %c0_61, %c0_62] : memref<8x32x32xbf16, #tpu.memory_space<vmem>>, vector<1x32x32xbf16>
    %77 = vector.shape_cast %76 : vector<1x32x32xbf16> to vector<32x32xbf16>
    %78 = vector.extract_strided_slice %77 {offsets = [0, 0], sizes = [32, 16], strides = [1, 1]} : vector<32x32xbf16> to vector<32x16xbf16>
    %cst_63 = arith.constant dense<0.000000e+00> : vector<32x128xf32>
    %79 = tpu.matmul %78, %75, %cst_63 {dimension_numbers = #tpu.dot_dimension_numbers<[1], [0], [0], [1], [0, 0, 1, 1], [], []>} : vector<32x16xbf16>, vector<16x128xbf16>, vector<32x128xf32> -> vector<32x128xf32>
    %80 = arith.addf %74, %79 : vector<32x128xf32>
    %c176 = arith.constant 176 : index
    %c0_64 = arith.constant 0 : index
    %81 = vector.load %arg1[%c176, %c0_64] : memref<256x128xbf16, #tpu.memory_space<vmem>>, vector<16x128xbf16>
    %c5_65 = arith.constant 5 : index
    %c0_66 = arith.constant 0 : index
    %c0_67 = arith.constant 0 : index
    %82 = vector.load %arg2[%c5_65, %c0_66, %c0_67] : memref<8x32x32xbf16, #tpu.memory_space<vmem>>, vector<1x32x32xbf16>
    %83 = vector.shape_cast %82 : vector<1x32x32xbf16> to vector<32x32xbf16>
    %84 = vector.extract_strided_slice %83 {offsets = [0, 0], sizes = [32, 16], strides = [1, 1]} : vector<32x32xbf16> to vector<32x16xbf16>
    %cst_68 = arith.constant dense<0.000000e+00> : vector<32x128xf32>
    %85 = tpu.matmul %84, %81, %cst_68 {dimension_numbers = #tpu.dot_dimension_numbers<[1], [0], [0], [1], [0, 0, 1, 1], [], []>} : vector<32x16xbf16>, vector<16x128xbf16>, vector<32x128xf32> -> vector<32x128xf32>
    %86 = arith.addf %80, %85 : vector<32x128xf32>
    %c208 = arith.constant 208 : index
    %c0_69 = arith.constant 0 : index
    %87 = vector.load %arg1[%c208, %c0_69] : memref<256x128xbf16, #tpu.memory_space<vmem>>, vector<16x128xbf16>
    %c6_70 = arith.constant 6 : index
    %c0_71 = arith.constant 0 : index
    %c0_72 = arith.constant 0 : index
    %88 = vector.load %arg2[%c6_70, %c0_71, %c0_72] : memref<8x32x32xbf16, #tpu.memory_space<vmem>>, vector<1x32x32xbf16>
    %89 = vector.shape_cast %88 : vector<1x32x32xbf16> to vector<32x32xbf16>
    %90 = vector.extract_strided_slice %89 {offsets = [0, 0], sizes = [32, 16], strides = [1, 1]} : vector<32x32xbf16> to vector<32x16xbf16>
    %cst_73 = arith.constant dense<0.000000e+00> : vector<32x128xf32>
    %91 = tpu.matmul %90, %87, %cst_73 {dimension_numbers = #tpu.dot_dimension_numbers<[1], [0], [0], [1], [0, 0, 1, 1], [], []>} : vector<32x16xbf16>, vector<16x128xbf16>, vector<32x128xf32> -> vector<32x128xf32>
    %92 = arith.addf %86, %91 : vector<32x128xf32>
    %c240 = arith.constant 240 : index
    %c0_74 = arith.constant 0 : index
    %93 = vector.load %arg1[%c240, %c0_74] : memref<256x128xbf16, #tpu.memory_space<vmem>>, vector<16x128xbf16>
    %c7_75 = arith.constant 7 : index
    %c0_76 = arith.constant 0 : index
    %c0_77 = arith.constant 0 : index
    %94 = vector.load %arg2[%c7_75, %c0_76, %c0_77] : memref<8x32x32xbf16, #tpu.memory_space<vmem>>, vector<1x32x32xbf16>
    %95 = vector.shape_cast %94 : vector<1x32x32xbf16> to vector<32x32xbf16>
    %96 = vector.extract_strided_slice %95 {offsets = [0, 0], sizes = [32, 16], strides = [1, 1]} : vector<32x32xbf16> to vector<32x16xbf16>
    %cst_78 = arith.constant dense<0.000000e+00> : vector<32x128xf32>
    %97 = tpu.matmul %96, %93, %cst_78 {dimension_numbers = #tpu.dot_dimension_numbers<[1], [0], [0], [1], [0, 0, 1, 1], [], []>} : vector<32x16xbf16>, vector<16x128xbf16>, vector<32x128xf32> -> vector<32x128xf32>
    %98 = arith.addf %92, %97 : vector<32x128xf32>
    %99 = arith.addf %49, %98 : vector<32x128xf32>
    %cst_79 = arith.constant 0.000000e+00 : f32
    %100 = vector.broadcast %cst_79 : f32 to vector<32x128xf32>
    %c0_80 = arith.constant 0 : index
    %c0_81 = arith.constant 0 : index
    %101 = vector.load %arg1[%c0_80, %c0_81] : memref<256x128xbf16, #tpu.memory_space<vmem>>, vector<16x128xbf16>
    %c0_82 = arith.constant 0 : index
    %c0_83 = arith.constant 0 : index
    %c0_84 = arith.constant 0 : index
    %102 = vector.load %arg2[%c0_82, %c0_83, %c0_84] : memref<8x32x32xbf16, #tpu.memory_space<vmem>>, vector<1x32x32xbf16>
    %103 = vector.shape_cast %102 : vector<1x32x32xbf16> to vector<32x32xbf16>
    %104 = vector.extract_strided_slice %103 {offsets = [0, 16], sizes = [32, 16], strides = [1, 1]} : vector<32x32xbf16> to vector<32x16xbf16>
    %cst_85 = arith.constant dense<0.000000e+00> : vector<32x128xf32>
    %105 = tpu.matmul %104, %101, %cst_85 {dimension_numbers = #tpu.dot_dimension_numbers<[1], [0], [0], [1], [0, 0, 1, 1], [], []>} : vector<32x16xbf16>, vector<16x128xbf16>, vector<32x128xf32> -> vector<32x128xf32>
    %106 = arith.addf %100, %105 : vector<32x128xf32>
    %c32_86 = arith.constant 32 : index
    %c0_87 = arith.constant 0 : index
    %107 = vector.load %arg1[%c32_86, %c0_87] : memref<256x128xbf16, #tpu.memory_space<vmem>>, vector<16x128xbf16>
    %c1_88 = arith.constant 1 : index
    %c0_89 = arith.constant 0 : index
    %c0_90 = arith.constant 0 : index
    %108 = vector.load %arg2[%c1_88, %c0_89, %c0_90] : memref<8x32x32xbf16, #tpu.memory_space<vmem>>, vector<1x32x32xbf16>
    %109 = vector.shape_cast %108 : vector<1x32x32xbf16> to vector<32x32xbf16>
    %110 = vector.extract_strided_slice %109 {offsets = [0, 16], sizes = [32, 16], strides = [1, 1]} : vector<32x32xbf16> to vector<32x16xbf16>
    %cst_91 = arith.constant dense<0.000000e+00> : vector<32x128xf32>
    %111 = tpu.matmul %110, %107, %cst_91 {dimension_numbers = #tpu.dot_dimension_numbers<[1], [0], [0], [1], [0, 0, 1, 1], [], []>} : vector<32x16xbf16>, vector<16x128xbf16>, vector<32x128xf32> -> vector<32x128xf32>
    %112 = arith.addf %106, %111 : vector<32x128xf32>
    %c64_92 = arith.constant 64 : index
    %c0_93 = arith.constant 0 : index
    %113 = vector.load %arg1[%c64_92, %c0_93] : memref<256x128xbf16, #tpu.memory_space<vmem>>, vector<16x128xbf16>
    %c2_94 = arith.constant 2 : index
    %c0_95 = arith.constant 0 : index
    %c0_96 = arith.constant 0 : index
    %114 = vector.load %arg2[%c2_94, %c0_95, %c0_96] : memref<8x32x32xbf16, #tpu.memory_space<vmem>>, vector<1x32x32xbf16>
    %115 = vector.shape_cast %114 : vector<1x32x32xbf16> to vector<32x32xbf16>
    %116 = vector.extract_strided_slice %115 {offsets = [0, 16], sizes = [32, 16], strides = [1, 1]} : vector<32x32xbf16> to vector<32x16xbf16>
    %cst_97 = arith.constant dense<0.000000e+00> : vector<32x128xf32>
    %117 = tpu.matmul %116, %113, %cst_97 {dimension_numbers = #tpu.dot_dimension_numbers<[1], [0], [0], [1], [0, 0, 1, 1], [], []>} : vector<32x16xbf16>, vector<16x128xbf16>, vector<32x128xf32> -> vector<32x128xf32>
    %118 = arith.addf %112, %117 : vector<32x128xf32>
    %c96_98 = arith.constant 96 : index
    %c0_99 = arith.constant 0 : index
    %119 = vector.load %arg1[%c96_98, %c0_99] : memref<256x128xbf16, #tpu.memory_space<vmem>>, vector<16x128xbf16>
    %c3_100 = arith.constant 3 : index
    %c0_101 = arith.constant 0 : index
    %c0_102 = arith.constant 0 : index
    %120 = vector.load %arg2[%c3_100, %c0_101, %c0_102] : memref<8x32x32xbf16, #tpu.memory_space<vmem>>, vector<1x32x32xbf16>
    %121 = vector.shape_cast %120 : vector<1x32x32xbf16> to vector<32x32xbf16>
    %122 = vector.extract_strided_slice %121 {offsets = [0, 16], sizes = [32, 16], strides = [1, 1]} : vector<32x32xbf16> to vector<32x16xbf16>
    %cst_103 = arith.constant dense<0.000000e+00> : vector<32x128xf32>
    %123 = tpu.matmul %122, %119, %cst_103 {dimension_numbers = #tpu.dot_dimension_numbers<[1], [0], [0], [1], [0, 0, 1, 1], [], []>} : vector<32x16xbf16>, vector<16x128xbf16>, vector<32x128xf32> -> vector<32x128xf32>
    %124 = arith.addf %118, %123 : vector<32x128xf32>
    %c128_104 = arith.constant 128 : index
    %c0_105 = arith.constant 0 : index
    %125 = vector.load %arg1[%c128_104, %c0_105] : memref<256x128xbf16, #tpu.memory_space<vmem>>, vector<16x128xbf16>
    %c4_106 = arith.constant 4 : index
    %c0_107 = arith.constant 0 : index
    %c0_108 = arith.constant 0 : index
    %126 = vector.load %arg2[%c4_106, %c0_107, %c0_108] : memref<8x32x32xbf16, #tpu.memory_space<vmem>>, vector<1x32x32xbf16>
    %127 = vector.shape_cast %126 : vector<1x32x32xbf16> to vector<32x32xbf16>
    %128 = vector.extract_strided_slice %127 {offsets = [0, 16], sizes = [32, 16], strides = [1, 1]} : vector<32x32xbf16> to vector<32x16xbf16>
    %cst_109 = arith.constant dense<0.000000e+00> : vector<32x128xf32>
    %129 = tpu.matmul %128, %125, %cst_109 {dimension_numbers = #tpu.dot_dimension_numbers<[1], [0], [0], [1], [0, 0, 1, 1], [], []>} : vector<32x16xbf16>, vector<16x128xbf16>, vector<32x128xf32> -> vector<32x128xf32>
    %130 = arith.addf %124, %129 : vector<32x128xf32>
    %c160_110 = arith.constant 160 : index
    %c0_111 = arith.constant 0 : index
    %131 = vector.load %arg1[%c160_110, %c0_111] : memref<256x128xbf16, #tpu.memory_space<vmem>>, vector<16x128xbf16>
    %c5_112 = arith.constant 5 : index
    %c0_113 = arith.constant 0 : index
    %c0_114 = arith.constant 0 : index
    %132 = vector.load %arg2[%c5_112, %c0_113, %c0_114] : memref<8x32x32xbf16, #tpu.memory_space<vmem>>, vector<1x32x32xbf16>
    %133 = vector.shape_cast %132 : vector<1x32x32xbf16> to vector<32x32xbf16>
    %134 = vector.extract_strided_slice %133 {offsets = [0, 16], sizes = [32, 16], strides = [1, 1]} : vector<32x32xbf16> to vector<32x16xbf16>
    %cst_115 = arith.constant dense<0.000000e+00> : vector<32x128xf32>
    %135 = tpu.matmul %134, %131, %cst_115 {dimension_numbers = #tpu.dot_dimension_numbers<[1], [0], [0], [1], [0, 0, 1, 1], [], []>} : vector<32x16xbf16>, vector<16x128xbf16>, vector<32x128xf32> -> vector<32x128xf32>
    %136 = arith.addf %130, %135 : vector<32x128xf32>
    %c192_116 = arith.constant 192 : index
    %c0_117 = arith.constant 0 : index
    %137 = vector.load %arg1[%c192_116, %c0_117] : memref<256x128xbf16, #tpu.memory_space<vmem>>, vector<16x128xbf16>
    %c6_118 = arith.constant 6 : index
    %c0_119 = arith.constant 0 : index
    %c0_120 = arith.constant 0 : index
    %138 = vector.load %arg2[%c6_118, %c0_119, %c0_120] : memref<8x32x32xbf16, #tpu.memory_space<vmem>>, vector<1x32x32xbf16>
    %139 = vector.shape_cast %138 : vector<1x32x32xbf16> to vector<32x32xbf16>
    %140 = vector.extract_strided_slice %139 {offsets = [0, 16], sizes = [32, 16], strides = [1, 1]} : vector<32x32xbf16> to vector<32x16xbf16>
    %cst_121 = arith.constant dense<0.000000e+00> : vector<32x128xf32>
    %141 = tpu.matmul %140, %137, %cst_121 {dimension_numbers = #tpu.dot_dimension_numbers<[1], [0], [0], [1], [0, 0, 1, 1], [], []>} : vector<32x16xbf16>, vector<16x128xbf16>, vector<32x128xf32> -> vector<32x128xf32>
    %142 = arith.addf %136, %141 : vector<32x128xf32>
    %c224_122 = arith.constant 224 : index
    %c0_123 = arith.constant 0 : index
    %143 = vector.load %arg1[%c224_122, %c0_123] : memref<256x128xbf16, #tpu.memory_space<vmem>>, vector<16x128xbf16>
    %c7_124 = arith.constant 7 : index
    %c0_125 = arith.constant 0 : index
    %c0_126 = arith.constant 0 : index
    %144 = vector.load %arg2[%c7_124, %c0_125, %c0_126] : memref<8x32x32xbf16, #tpu.memory_space<vmem>>, vector<1x32x32xbf16>
    %145 = vector.shape_cast %144 : vector<1x32x32xbf16> to vector<32x32xbf16>
    %146 = vector.extract_strided_slice %145 {offsets = [0, 16], sizes = [32, 16], strides = [1, 1]} : vector<32x32xbf16> to vector<32x16xbf16>
    %cst_127 = arith.constant dense<0.000000e+00> : vector<32x128xf32>
    %147 = tpu.matmul %146, %143, %cst_127 {dimension_numbers = #tpu.dot_dimension_numbers<[1], [0], [0], [1], [0, 0, 1, 1], [], []>} : vector<32x16xbf16>, vector<16x128xbf16>, vector<32x128xf32> -> vector<32x128xf32>
    %148 = arith.addf %142, %147 : vector<32x128xf32>
    %149 = vector.extract_strided_slice %148 {offsets = [0, 1], sizes = [32, 127], strides = [1, 1]} : vector<32x128xf32> to vector<32x127xf32>
    %150 = vector.extract_strided_slice %148 {offsets = [0, 0], sizes = [32, 1], strides = [1, 1]} : vector<32x128xf32> to vector<32x1xf32>
    %151 = tpu.concatenate %149, %150 in 1 : vector<32x127xf32>, vector<32x1xf32> -> vector<32x128xf32>
    %152 = arith.addf %99, %151 : vector<32x128xf32>
    %c0_128 = arith.constant 0 : index
    %c0_129 = arith.constant 0 : index
    %153 = vector.load %arg3[%c0_128, %c0_129] : memref<32x1xf32, #tpu.memory_space<vmem>>, vector<32x1xf32>
    %154 = vector.broadcast %153 : vector<32x1xf32> to vector<32x128xf32>
    %155 = arith.addf %152, %154 : vector<32x128xf32>
    %cst_130 = arith.constant 0.000000e+00 : f32
    %156 = vector.broadcast %cst_130 : f32 to vector<32x128xf32>
    %157 = arith.maximumf %155, %156 : vector<32x128xf32>
    %158 = arith.truncf %157 : vector<32x128xf32> to vector<32x128xbf16>
    %cst_131 = arith.constant 0.000000e+00 : f32
    %159 = vector.broadcast %cst_131 : f32 to vector<32x128xf32>
    %cst_132 = arith.constant 0.000000e+00 : f32
    %160 = vector.broadcast %cst_132 : f32 to vector<32x128xf32>
    %c128_133 = arith.constant 128 : index
    %c0_134 = arith.constant 0 : index
    %161 = vector.load %arg1[%c128_133, %c0_134] : memref<256x128xbf16, #tpu.memory_space<vmem>>, vector<32x128xbf16>
    %c0_135 = arith.constant 0 : index
    %c0_136 = arith.constant 0 : index
    %c0_137 = arith.constant 0 : index
    %162 = vector.load %arg2[%c0_135, %c0_136, %c0_137] : memref<8x32x32xbf16, #tpu.memory_space<vmem>>, vector<1x32x32xbf16>
    %163 = vector.shape_cast %162 : vector<1x32x32xbf16> to vector<32x32xbf16>
    %cst_138 = arith.constant dense<0.000000e+00> : vector<32x128xf32>
    %164 = tpu.matmul %163, %161, %cst_138 {dimension_numbers = #tpu.dot_dimension_numbers<[1], [0], [0], [1], [0, 0, 1, 1], [], []>} : vector<32x32xbf16>, vector<32x128xbf16>, vector<32x128xf32> -> vector<32x128xf32>
    %165 = arith.addf %160, %164 : vector<32x128xf32>
    %c160_139 = arith.constant 160 : index
    %c0_140 = arith.constant 0 : index
    %166 = vector.load %arg1[%c160_139, %c0_140] : memref<256x128xbf16, #tpu.memory_space<vmem>>, vector<32x128xbf16>
    %c1_141 = arith.constant 1 : index
    %c0_142 = arith.constant 0 : index
    %c0_143 = arith.constant 0 : index
    %167 = vector.load %arg2[%c1_141, %c0_142, %c0_143] : memref<8x32x32xbf16, #tpu.memory_space<vmem>>, vector<1x32x32xbf16>
    %168 = vector.shape_cast %167 : vector<1x32x32xbf16> to vector<32x32xbf16>
    %cst_144 = arith.constant dense<0.000000e+00> : vector<32x128xf32>
    %169 = tpu.matmul %168, %166, %cst_144 {dimension_numbers = #tpu.dot_dimension_numbers<[1], [0], [0], [1], [0, 0, 1, 1], [], []>} : vector<32x32xbf16>, vector<32x128xbf16>, vector<32x128xf32> -> vector<32x128xf32>
    %170 = arith.addf %165, %169 : vector<32x128xf32>
    %c192_145 = arith.constant 192 : index
    %c0_146 = arith.constant 0 : index
    %171 = vector.load %arg1[%c192_145, %c0_146] : memref<256x128xbf16, #tpu.memory_space<vmem>>, vector<32x128xbf16>
    %c2_147 = arith.constant 2 : index
    %c0_148 = arith.constant 0 : index
    %c0_149 = arith.constant 0 : index
    %172 = vector.load %arg2[%c2_147, %c0_148, %c0_149] : memref<8x32x32xbf16, #tpu.memory_space<vmem>>, vector<1x32x32xbf16>
    %173 = vector.shape_cast %172 : vector<1x32x32xbf16> to vector<32x32xbf16>
    %cst_150 = arith.constant dense<0.000000e+00> : vector<32x128xf32>
    %174 = tpu.matmul %173, %171, %cst_150 {dimension_numbers = #tpu.dot_dimension_numbers<[1], [0], [0], [1], [0, 0, 1, 1], [], []>} : vector<32x32xbf16>, vector<32x128xbf16>, vector<32x128xf32> -> vector<32x128xf32>
    %175 = arith.addf %170, %174 : vector<32x128xf32>
    %c224_151 = arith.constant 224 : index
    %c0_152 = arith.constant 0 : index
    %176 = vector.load %arg1[%c224_151, %c0_152] : memref<256x128xbf16, #tpu.memory_space<vmem>>, vector<32x128xbf16>
    %c3_153 = arith.constant 3 : index
    %c0_154 = arith.constant 0 : index
    %c0_155 = arith.constant 0 : index
    %177 = vector.load %arg2[%c3_153, %c0_154, %c0_155] : memref<8x32x32xbf16, #tpu.memory_space<vmem>>, vector<1x32x32xbf16>
    %178 = vector.shape_cast %177 : vector<1x32x32xbf16> to vector<32x32xbf16>
    %cst_156 = arith.constant dense<0.000000e+00> : vector<32x128xf32>
    %179 = tpu.matmul %178, %176, %cst_156 {dimension_numbers = #tpu.dot_dimension_numbers<[1], [0], [0], [1], [0, 0, 1, 1], [], []>} : vector<32x32xbf16>, vector<32x128xbf16>, vector<32x128xf32> -> vector<32x128xf32>
    %180 = arith.addf %175, %179 : vector<32x128xf32>
    %181 = arith.addf %159, %180 : vector<32x128xf32>
    %cst_157 = arith.constant 0.000000e+00 : f32
    %182 = vector.broadcast %cst_157 : f32 to vector<32x128xf32>
    %c0_158 = arith.constant 0 : index
    %c0_159 = arith.constant 0 : index
    %183 = vector.load %arg1[%c0_158, %c0_159] : memref<256x128xbf16, #tpu.memory_space<vmem>>, vector<32x128xbf16>
    %c4_160 = arith.constant 4 : index
    %c0_161 = arith.constant 0 : index
    %c0_162 = arith.constant 0 : index
    %184 = vector.load %arg2[%c4_160, %c0_161, %c0_162] : memref<8x32x32xbf16, #tpu.memory_space<vmem>>, vector<1x32x32xbf16>
    %185 = vector.shape_cast %184 : vector<1x32x32xbf16> to vector<32x32xbf16>
    %cst_163 = arith.constant dense<0.000000e+00> : vector<32x128xf32>
    %186 = tpu.matmul %185, %183, %cst_163 {dimension_numbers = #tpu.dot_dimension_numbers<[1], [0], [0], [1], [0, 0, 1, 1], [], []>} : vector<32x32xbf16>, vector<32x128xbf16>, vector<32x128xf32> -> vector<32x128xf32>
    %187 = arith.addf %182, %186 : vector<32x128xf32>
    %c32_164 = arith.constant 32 : index
    %c0_165 = arith.constant 0 : index
    %188 = vector.load %arg1[%c32_164, %c0_165] : memref<256x128xbf16, #tpu.memory_space<vmem>>, vector<32x128xbf16>
    %c5_166 = arith.constant 5 : index
    %c0_167 = arith.constant 0 : index
    %c0_168 = arith.constant 0 : index
    %189 = vector.load %arg2[%c5_166, %c0_167, %c0_168] : memref<8x32x32xbf16, #tpu.memory_space<vmem>>, vector<1x32x32xbf16>
    %190 = vector.shape_cast %189 : vector<1x32x32xbf16> to vector<32x32xbf16>
    %cst_169 = arith.constant dense<0.000000e+00> : vector<32x128xf32>
    %191 = tpu.matmul %190, %188, %cst_169 {dimension_numbers = #tpu.dot_dimension_numbers<[1], [0], [0], [1], [0, 0, 1, 1], [], []>} : vector<32x32xbf16>, vector<32x128xbf16>, vector<32x128xf32> -> vector<32x128xf32>
    %192 = arith.addf %187, %191 : vector<32x128xf32>
    %c64_170 = arith.constant 64 : index
    %c0_171 = arith.constant 0 : index
    %193 = vector.load %arg1[%c64_170, %c0_171] : memref<256x128xbf16, #tpu.memory_space<vmem>>, vector<32x128xbf16>
    %c6_172 = arith.constant 6 : index
    %c0_173 = arith.constant 0 : index
    %c0_174 = arith.constant 0 : index
    %194 = vector.load %arg2[%c6_172, %c0_173, %c0_174] : memref<8x32x32xbf16, #tpu.memory_space<vmem>>, vector<1x32x32xbf16>
    %195 = vector.shape_cast %194 : vector<1x32x32xbf16> to vector<32x32xbf16>
    %cst_175 = arith.constant dense<0.000000e+00> : vector<32x128xf32>
    %196 = tpu.matmul %195, %193, %cst_175 {dimension_numbers = #tpu.dot_dimension_numbers<[1], [0], [0], [1], [0, 0, 1, 1], [], []>} : vector<32x32xbf16>, vector<32x128xbf16>, vector<32x128xf32> -> vector<32x128xf32>
    %197 = arith.addf %192, %196 : vector<32x128xf32>
    %c96_176 = arith.constant 96 : index
    %c0_177 = arith.constant 0 : index
    %198 = vector.load %arg1[%c96_176, %c0_177] : memref<256x128xbf16, #tpu.memory_space<vmem>>, vector<32x128xbf16>
    %c7_178 = arith.constant 7 : index
    %c0_179 = arith.constant 0 : index
    %c0_180 = arith.constant 0 : index
    %199 = vector.load %arg2[%c7_178, %c0_179, %c0_180] : memref<8x32x32xbf16, #tpu.memory_space<vmem>>, vector<1x32x32xbf16>
    %200 = vector.shape_cast %199 : vector<1x32x32xbf16> to vector<32x32xbf16>
    %cst_181 = arith.constant dense<0.000000e+00> : vector<32x128xf32>
    %201 = tpu.matmul %200, %198, %cst_181 {dimension_numbers = #tpu.dot_dimension_numbers<[1], [0], [0], [1], [0, 0, 1, 1], [], []>} : vector<32x32xbf16>, vector<32x128xbf16>, vector<32x128xf32> -> vector<32x128xf32>
    %202 = arith.addf %197, %201 : vector<32x128xf32>
    %203 = vector.extract_strided_slice %202 {offsets = [0, 11], sizes = [32, 117], strides = [1, 1]} : vector<32x128xf32> to vector<32x117xf32>
    %204 = vector.extract_strided_slice %202 {offsets = [0, 0], sizes = [32, 11], strides = [1, 1]} : vector<32x128xf32> to vector<32x11xf32>
    %205 = tpu.concatenate %203, %204 in 1 : vector<32x117xf32>, vector<32x11xf32> -> vector<32x128xf32>
    %206 = arith.addf %181, %205 : vector<32x128xf32>
    %c0_182 = arith.constant 0 : index
    %c0_183 = arith.constant 0 : index
    %207 = vector.load %arg3[%c0_182, %c0_183] : memref<32x1xf32, #tpu.memory_space<vmem>>, vector<32x1xf32>
    %208 = vector.broadcast %207 : vector<32x1xf32> to vector<32x128xf32>
    %209 = arith.addf %206, %208 : vector<32x128xf32>
    %cst_184 = arith.constant 0.000000e+00 : f32
    %210 = vector.broadcast %cst_184 : f32 to vector<32x128xf32>
    %211 = arith.maximumf %209, %210 : vector<32x128xf32>
    %212 = arith.truncf %211 : vector<32x128xf32> to vector<32x128xbf16>
    %cst_185 = arith.constant 0.000000e+00 : f32
    %213 = vector.broadcast %cst_185 : f32 to vector<32x128xf32>
    %cst_186 = arith.constant 0.000000e+00 : f32
    %214 = vector.broadcast %cst_186 : f32 to vector<32x128xf32>
    %c144_187 = arith.constant 144 : index
    %c0_188 = arith.constant 0 : index
    %215 = vector.load %arg1[%c144_187, %c0_188] : memref<256x128xbf16, #tpu.memory_space<vmem>>, vector<16x128xbf16>
    %c0_189 = arith.constant 0 : index
    %c0_190 = arith.constant 0 : index
    %c0_191 = arith.constant 0 : index
    %216 = vector.load %arg2[%c0_189, %c0_190, %c0_191] : memref<8x32x32xbf16, #tpu.memory_space<vmem>>, vector<1x32x32xbf16>
    %217 = vector.shape_cast %216 : vector<1x32x32xbf16> to vector<32x32xbf16>
    %218 = vector.extract_strided_slice %217 {offsets = [0, 0], sizes = [32, 16], strides = [1, 1]} : vector<32x32xbf16> to vector<32x16xbf16>
    %cst_192 = arith.constant dense<0.000000e+00> : vector<32x128xf32>
    %219 = tpu.matmul %218, %215, %cst_192 {dimension_numbers = #tpu.dot_dimension_numbers<[1], [0], [0], [1], [0, 0, 1, 1], [], []>} : vector<32x16xbf16>, vector<16x128xbf16>, vector<32x128xf32> -> vector<32x128xf32>
    %220 = arith.addf %214, %219 : vector<32x128xf32>
    %c176_193 = arith.constant 176 : index
    %c0_194 = arith.constant 0 : index
    %221 = vector.load %arg1[%c176_193, %c0_194] : memref<256x128xbf16, #tpu.memory_space<vmem>>, vector<16x128xbf16>
    %c1_195 = arith.constant 1 : index
    %c0_196 = arith.constant 0 : index
    %c0_197 = arith.constant 0 : index
    %222 = vector.load %arg2[%c1_195, %c0_196, %c0_197] : memref<8x32x32xbf16, #tpu.memory_space<vmem>>, vector<1x32x32xbf16>
    %223 = vector.shape_cast %222 : vector<1x32x32xbf16> to vector<32x32xbf16>
    %224 = vector.extract_strided_slice %223 {offsets = [0, 0], sizes = [32, 16], strides = [1, 1]} : vector<32x32xbf16> to vector<32x16xbf16>
    %cst_198 = arith.constant dense<0.000000e+00> : vector<32x128xf32>
    %225 = tpu.matmul %224, %221, %cst_198 {dimension_numbers = #tpu.dot_dimension_numbers<[1], [0], [0], [1], [0, 0, 1, 1], [], []>} : vector<32x16xbf16>, vector<16x128xbf16>, vector<32x128xf32> -> vector<32x128xf32>
    %226 = arith.addf %220, %225 : vector<32x128xf32>
    %c208_199 = arith.constant 208 : index
    %c0_200 = arith.constant 0 : index
    %227 = vector.load %arg1[%c208_199, %c0_200] : memref<256x128xbf16, #tpu.memory_space<vmem>>, vector<16x128xbf16>
    %c2_201 = arith.constant 2 : index
    %c0_202 = arith.constant 0 : index
    %c0_203 = arith.constant 0 : index
    %228 = vector.load %arg2[%c2_201, %c0_202, %c0_203] : memref<8x32x32xbf16, #tpu.memory_space<vmem>>, vector<1x32x32xbf16>
    %229 = vector.shape_cast %228 : vector<1x32x32xbf16> to vector<32x32xbf16>
    %230 = vector.extract_strided_slice %229 {offsets = [0, 0], sizes = [32, 16], strides = [1, 1]} : vector<32x32xbf16> to vector<32x16xbf16>
    %cst_204 = arith.constant dense<0.000000e+00> : vector<32x128xf32>
    %231 = tpu.matmul %230, %227, %cst_204 {dimension_numbers = #tpu.dot_dimension_numbers<[1], [0], [0], [1], [0, 0, 1, 1], [], []>} : vector<32x16xbf16>, vector<16x128xbf16>, vector<32x128xf32> -> vector<32x128xf32>
    %232 = arith.addf %226, %231 : vector<32x128xf32>
    %c240_205 = arith.constant 240 : index
    %c0_206 = arith.constant 0 : index
    %233 = vector.load %arg1[%c240_205, %c0_206] : memref<256x128xbf16, #tpu.memory_space<vmem>>, vector<16x128xbf16>
    %c3_207 = arith.constant 3 : index
    %c0_208 = arith.constant 0 : index
    %c0_209 = arith.constant 0 : index
    %234 = vector.load %arg2[%c3_207, %c0_208, %c0_209] : memref<8x32x32xbf16, #tpu.memory_space<vmem>>, vector<1x32x32xbf16>
    %235 = vector.shape_cast %234 : vector<1x32x32xbf16> to vector<32x32xbf16>
    %236 = vector.extract_strided_slice %235 {offsets = [0, 0], sizes = [32, 16], strides = [1, 1]} : vector<32x32xbf16> to vector<32x16xbf16>
    %cst_210 = arith.constant dense<0.000000e+00> : vector<32x128xf32>
    %237 = tpu.matmul %236, %233, %cst_210 {dimension_numbers = #tpu.dot_dimension_numbers<[1], [0], [0], [1], [0, 0, 1, 1], [], []>} : vector<32x16xbf16>, vector<16x128xbf16>, vector<32x128xf32> -> vector<32x128xf32>
    %238 = arith.addf %232, %237 : vector<32x128xf32>
    %239 = arith.addf %213, %238 : vector<32x128xf32>
    %cst_211 = arith.constant 0.000000e+00 : f32
    %240 = vector.broadcast %cst_211 : f32 to vector<32x128xf32>
    %c128_212 = arith.constant 128 : index
    %c0_213 = arith.constant 0 : index
    %241 = vector.load %arg1[%c128_212, %c0_213] : memref<256x128xbf16, #tpu.memory_space<vmem>>, vector<16x128xbf16>
    %c0_214 = arith.constant 0 : index
    %c0_215 = arith.constant 0 : index
    %c0_216 = arith.constant 0 : index
    %242 = vector.load %arg2[%c0_214, %c0_215, %c0_216] : memref<8x32x32xbf16, #tpu.memory_space<vmem>>, vector<1x32x32xbf16>
    %243 = vector.shape_cast %242 : vector<1x32x32xbf16> to vector<32x32xbf16>
    %244 = vector.extract_strided_slice %243 {offsets = [0, 16], sizes = [32, 16], strides = [1, 1]} : vector<32x32xbf16> to vector<32x16xbf16>
    %cst_217 = arith.constant dense<0.000000e+00> : vector<32x128xf32>
    %245 = tpu.matmul %244, %241, %cst_217 {dimension_numbers = #tpu.dot_dimension_numbers<[1], [0], [0], [1], [0, 0, 1, 1], [], []>} : vector<32x16xbf16>, vector<16x128xbf16>, vector<32x128xf32> -> vector<32x128xf32>
    %246 = arith.addf %240, %245 : vector<32x128xf32>
    %c160_218 = arith.constant 160 : index
    %c0_219 = arith.constant 0 : index
    %247 = vector.load %arg1[%c160_218, %c0_219] : memref<256x128xbf16, #tpu.memory_space<vmem>>, vector<16x128xbf16>
    %c1_220 = arith.constant 1 : index
    %c0_221 = arith.constant 0 : index
    %c0_222 = arith.constant 0 : index
    %248 = vector.load %arg2[%c1_220, %c0_221, %c0_222] : memref<8x32x32xbf16, #tpu.memory_space<vmem>>, vector<1x32x32xbf16>
    %249 = vector.shape_cast %248 : vector<1x32x32xbf16> to vector<32x32xbf16>
    %250 = vector.extract_strided_slice %249 {offsets = [0, 16], sizes = [32, 16], strides = [1, 1]} : vector<32x32xbf16> to vector<32x16xbf16>
    %cst_223 = arith.constant dense<0.000000e+00> : vector<32x128xf32>
    %251 = tpu.matmul %250, %247, %cst_223 {dimension_numbers = #tpu.dot_dimension_numbers<[1], [0], [0], [1], [0, 0, 1, 1], [], []>} : vector<32x16xbf16>, vector<16x128xbf16>, vector<32x128xf32> -> vector<32x128xf32>
    %252 = arith.addf %246, %251 : vector<32x128xf32>
    %c192_224 = arith.constant 192 : index
    %c0_225 = arith.constant 0 : index
    %253 = vector.load %arg1[%c192_224, %c0_225] : memref<256x128xbf16, #tpu.memory_space<vmem>>, vector<16x128xbf16>
    %c2_226 = arith.constant 2 : index
    %c0_227 = arith.constant 0 : index
    %c0_228 = arith.constant 0 : index
    %254 = vector.load %arg2[%c2_226, %c0_227, %c0_228] : memref<8x32x32xbf16, #tpu.memory_space<vmem>>, vector<1x32x32xbf16>
    %255 = vector.shape_cast %254 : vector<1x32x32xbf16> to vector<32x32xbf16>
    %256 = vector.extract_strided_slice %255 {offsets = [0, 16], sizes = [32, 16], strides = [1, 1]} : vector<32x32xbf16> to vector<32x16xbf16>
    %cst_229 = arith.constant dense<0.000000e+00> : vector<32x128xf32>
    %257 = tpu.matmul %256, %253, %cst_229 {dimension_numbers = #tpu.dot_dimension_numbers<[1], [0], [0], [1], [0, 0, 1, 1], [], []>} : vector<32x16xbf16>, vector<16x128xbf16>, vector<32x128xf32> -> vector<32x128xf32>
    %258 = arith.addf %252, %257 : vector<32x128xf32>
    %c224_230 = arith.constant 224 : index
    %c0_231 = arith.constant 0 : index
    %259 = vector.load %arg1[%c224_230, %c0_231] : memref<256x128xbf16, #tpu.memory_space<vmem>>, vector<16x128xbf16>
    %c3_232 = arith.constant 3 : index
    %c0_233 = arith.constant 0 : index
    %c0_234 = arith.constant 0 : index
    %260 = vector.load %arg2[%c3_232, %c0_233, %c0_234] : memref<8x32x32xbf16, #tpu.memory_space<vmem>>, vector<1x32x32xbf16>
    %261 = vector.shape_cast %260 : vector<1x32x32xbf16> to vector<32x32xbf16>
    %262 = vector.extract_strided_slice %261 {offsets = [0, 16], sizes = [32, 16], strides = [1, 1]} : vector<32x32xbf16> to vector<32x16xbf16>
    %cst_235 = arith.constant dense<0.000000e+00> : vector<32x128xf32>
    %263 = tpu.matmul %262, %259, %cst_235 {dimension_numbers = #tpu.dot_dimension_numbers<[1], [0], [0], [1], [0, 0, 1, 1], [], []>} : vector<32x16xbf16>, vector<16x128xbf16>, vector<32x128xf32> -> vector<32x128xf32>
    %264 = arith.addf %258, %263 : vector<32x128xf32>
    %265 = vector.extract_strided_slice %264 {offsets = [0, 1], sizes = [32, 127], strides = [1, 1]} : vector<32x128xf32> to vector<32x127xf32>
    %266 = vector.extract_strided_slice %264 {offsets = [0, 0], sizes = [32, 1], strides = [1, 1]} : vector<32x128xf32> to vector<32x1xf32>
    %267 = tpu.concatenate %265, %266 in 1 : vector<32x127xf32>, vector<32x1xf32> -> vector<32x128xf32>
    %268 = arith.addf %239, %267 : vector<32x128xf32>
    %cst_236 = arith.constant 0.000000e+00 : f32
    %269 = vector.broadcast %cst_236 : f32 to vector<32x128xf32>
    %c16_237 = arith.constant 16 : index
    %c0_238 = arith.constant 0 : index
    %270 = vector.load %arg1[%c16_237, %c0_238] : memref<256x128xbf16, #tpu.memory_space<vmem>>, vector<16x128xbf16>
    %c4_239 = arith.constant 4 : index
    %c0_240 = arith.constant 0 : index
    %c0_241 = arith.constant 0 : index
    %271 = vector.load %arg2[%c4_239, %c0_240, %c0_241] : memref<8x32x32xbf16, #tpu.memory_space<vmem>>, vector<1x32x32xbf16>
    %272 = vector.shape_cast %271 : vector<1x32x32xbf16> to vector<32x32xbf16>
    %273 = vector.extract_strided_slice %272 {offsets = [0, 0], sizes = [32, 16], strides = [1, 1]} : vector<32x32xbf16> to vector<32x16xbf16>
    %cst_242 = arith.constant dense<0.000000e+00> : vector<32x128xf32>
    %274 = tpu.matmul %273, %270, %cst_242 {dimension_numbers = #tpu.dot_dimension_numbers<[1], [0], [0], [1], [0, 0, 1, 1], [], []>} : vector<32x16xbf16>, vector<16x128xbf16>, vector<32x128xf32> -> vector<32x128xf32>
    %275 = arith.addf %269, %274 : vector<32x128xf32>
    %c48_243 = arith.constant 48 : index
    %c0_244 = arith.constant 0 : index
    %276 = vector.load %arg1[%c48_243, %c0_244] : memref<256x128xbf16, #tpu.memory_space<vmem>>, vector<16x128xbf16>
    %c5_245 = arith.constant 5 : index
    %c0_246 = arith.constant 0 : index
    %c0_247 = arith.constant 0 : index
    %277 = vector.load %arg2[%c5_245, %c0_246, %c0_247] : memref<8x32x32xbf16, #tpu.memory_space<vmem>>, vector<1x32x32xbf16>
    %278 = vector.shape_cast %277 : vector<1x32x32xbf16> to vector<32x32xbf16>
    %279 = vector.extract_strided_slice %278 {offsets = [0, 0], sizes = [32, 16], strides = [1, 1]} : vector<32x32xbf16> to vector<32x16xbf16>
    %cst_248 = arith.constant dense<0.000000e+00> : vector<32x128xf32>
    %280 = tpu.matmul %279, %276, %cst_248 {dimension_numbers = #tpu.dot_dimension_numbers<[1], [0], [0], [1], [0, 0, 1, 1], [], []>} : vector<32x16xbf16>, vector<16x128xbf16>, vector<32x128xf32> -> vector<32x128xf32>
    %281 = arith.addf %275, %280 : vector<32x128xf32>
    %c80_249 = arith.constant 80 : index
    %c0_250 = arith.constant 0 : index
    %282 = vector.load %arg1[%c80_249, %c0_250] : memref<256x128xbf16, #tpu.memory_space<vmem>>, vector<16x128xbf16>
    %c6_251 = arith.constant 6 : index
    %c0_252 = arith.constant 0 : index
    %c0_253 = arith.constant 0 : index
    %283 = vector.load %arg2[%c6_251, %c0_252, %c0_253] : memref<8x32x32xbf16, #tpu.memory_space<vmem>>, vector<1x32x32xbf16>
    %284 = vector.shape_cast %283 : vector<1x32x32xbf16> to vector<32x32xbf16>
    %285 = vector.extract_strided_slice %284 {offsets = [0, 0], sizes = [32, 16], strides = [1, 1]} : vector<32x32xbf16> to vector<32x16xbf16>
    %cst_254 = arith.constant dense<0.000000e+00> : vector<32x128xf32>
    %286 = tpu.matmul %285, %282, %cst_254 {dimension_numbers = #tpu.dot_dimension_numbers<[1], [0], [0], [1], [0, 0, 1, 1], [], []>} : vector<32x16xbf16>, vector<16x128xbf16>, vector<32x128xf32> -> vector<32x128xf32>
    %287 = arith.addf %281, %286 : vector<32x128xf32>
    %c112_255 = arith.constant 112 : index
    %c0_256 = arith.constant 0 : index
    %288 = vector.load %arg1[%c112_255, %c0_256] : memref<256x128xbf16, #tpu.memory_space<vmem>>, vector<16x128xbf16>
    %c7_257 = arith.constant 7 : index
    %c0_258 = arith.constant 0 : index
    %c0_259 = arith.constant 0 : index
    %289 = vector.load %arg2[%c7_257, %c0_258, %c0_259] : memref<8x32x32xbf16, #tpu.memory_space<vmem>>, vector<1x32x32xbf16>
    %290 = vector.shape_cast %289 : vector<1x32x32xbf16> to vector<32x32xbf16>
    %291 = vector.extract_strided_slice %290 {offsets = [0, 0], sizes = [32, 16], strides = [1, 1]} : vector<32x32xbf16> to vector<32x16xbf16>
    %cst_260 = arith.constant dense<0.000000e+00> : vector<32x128xf32>
    %292 = tpu.matmul %291, %288, %cst_260 {dimension_numbers = #tpu.dot_dimension_numbers<[1], [0], [0], [1], [0, 0, 1, 1], [], []>} : vector<32x16xbf16>, vector<16x128xbf16>, vector<32x128xf32> -> vector<32x128xf32>
    %293 = arith.addf %287, %292 : vector<32x128xf32>
    %294 = vector.extract_strided_slice %293 {offsets = [0, 11], sizes = [32, 117], strides = [1, 1]} : vector<32x128xf32> to vector<32x117xf32>
    %295 = vector.extract_strided_slice %293 {offsets = [0, 0], sizes = [32, 11], strides = [1, 1]} : vector<32x128xf32> to vector<32x11xf32>
    %296 = tpu.concatenate %294, %295 in 1 : vector<32x117xf32>, vector<32x11xf32> -> vector<32x128xf32>
    %297 = arith.addf %268, %296 : vector<32x128xf32>
    %cst_261 = arith.constant 0.000000e+00 : f32
    %298 = vector.broadcast %cst_261 : f32 to vector<32x128xf32>
    %c0_262 = arith.constant 0 : index
    %c0_263 = arith.constant 0 : index
    %299 = vector.load %arg1[%c0_262, %c0_263] : memref<256x128xbf16, #tpu.memory_space<vmem>>, vector<16x128xbf16>
    %c4_264 = arith.constant 4 : index
    %c0_265 = arith.constant 0 : index
    %c0_266 = arith.constant 0 : index
    %300 = vector.load %arg2[%c4_264, %c0_265, %c0_266] : memref<8x32x32xbf16, #tpu.memory_space<vmem>>, vector<1x32x32xbf16>
    %301 = vector.shape_cast %300 : vector<1x32x32xbf16> to vector<32x32xbf16>
    %302 = vector.extract_strided_slice %301 {offsets = [0, 16], sizes = [32, 16], strides = [1, 1]} : vector<32x32xbf16> to vector<32x16xbf16>
    %cst_267 = arith.constant dense<0.000000e+00> : vector<32x128xf32>
    %303 = tpu.matmul %302, %299, %cst_267 {dimension_numbers = #tpu.dot_dimension_numbers<[1], [0], [0], [1], [0, 0, 1, 1], [], []>} : vector<32x16xbf16>, vector<16x128xbf16>, vector<32x128xf32> -> vector<32x128xf32>
    %304 = arith.addf %298, %303 : vector<32x128xf32>
    %c32_268 = arith.constant 32 : index
    %c0_269 = arith.constant 0 : index
    %305 = vector.load %arg1[%c32_268, %c0_269] : memref<256x128xbf16, #tpu.memory_space<vmem>>, vector<16x128xbf16>
    %c5_270 = arith.constant 5 : index
    %c0_271 = arith.constant 0 : index
    %c0_272 = arith.constant 0 : index
    %306 = vector.load %arg2[%c5_270, %c0_271, %c0_272] : memref<8x32x32xbf16, #tpu.memory_space<vmem>>, vector<1x32x32xbf16>
    %307 = vector.shape_cast %306 : vector<1x32x32xbf16> to vector<32x32xbf16>
    %308 = vector.extract_strided_slice %307 {offsets = [0, 16], sizes = [32, 16], strides = [1, 1]} : vector<32x32xbf16> to vector<32x16xbf16>
    %cst_273 = arith.constant dense<0.000000e+00> : vector<32x128xf32>
    %309 = tpu.matmul %308, %305, %cst_273 {dimension_numbers = #tpu.dot_dimension_numbers<[1], [0], [0], [1], [0, 0, 1, 1], [], []>} : vector<32x16xbf16>, vector<16x128xbf16>, vector<32x128xf32> -> vector<32x128xf32>
    %310 = arith.addf %304, %309 : vector<32x128xf32>
    %c64_274 = arith.constant 64 : index
    %c0_275 = arith.constant 0 : index
    %311 = vector.load %arg1[%c64_274, %c0_275] : memref<256x128xbf16, #tpu.memory_space<vmem>>, vector<16x128xbf16>
    %c6_276 = arith.constant 6 : index
    %c0_277 = arith.constant 0 : index
    %c0_278 = arith.constant 0 : index
    %312 = vector.load %arg2[%c6_276, %c0_277, %c0_278] : memref<8x32x32xbf16, #tpu.memory_space<vmem>>, vector<1x32x32xbf16>
    %313 = vector.shape_cast %312 : vector<1x32x32xbf16> to vector<32x32xbf16>
    %314 = vector.extract_strided_slice %313 {offsets = [0, 16], sizes = [32, 16], strides = [1, 1]} : vector<32x32xbf16> to vector<32x16xbf16>
    %cst_279 = arith.constant dense<0.000000e+00> : vector<32x128xf32>
    %315 = tpu.matmul %314, %311, %cst_279 {dimension_numbers = #tpu.dot_dimension_numbers<[1], [0], [0], [1], [0, 0, 1, 1], [], []>} : vector<32x16xbf16>, vector<16x128xbf16>, vector<32x128xf32> -> vector<32x128xf32>
    %316 = arith.addf %310, %315 : vector<32x128xf32>
    %c96_280 = arith.constant 96 : index
    %c0_281 = arith.constant 0 : index
    %317 = vector.load %arg1[%c96_280, %c0_281] : memref<256x128xbf16, #tpu.memory_space<vmem>>, vector<16x128xbf16>
    %c7_282 = arith.constant 7 : index
    %c0_283 = arith.constant 0 : index
    %c0_284 = arith.constant 0 : index
    %318 = vector.load %arg2[%c7_282, %c0_283, %c0_284] : memref<8x32x32xbf16, #tpu.memory_space<vmem>>, vector<1x32x32xbf16>
    %319 = vector.shape_cast %318 : vector<1x32x32xbf16> to vector<32x32xbf16>
    %320 = vector.extract_strided_slice %319 {offsets = [0, 16], sizes = [32, 16], strides = [1, 1]} : vector<32x32xbf16> to vector<32x16xbf16>
    %cst_285 = arith.constant dense<0.000000e+00> : vector<32x128xf32>
    %321 = tpu.matmul %320, %317, %cst_285 {dimension_numbers = #tpu.dot_dimension_numbers<[1], [0], [0], [1], [0, 0, 1, 1], [], []>} : vector<32x16xbf16>, vector<16x128xbf16>, vector<32x128xf32> -> vector<32x128xf32>
    %322 = arith.addf %316, %321 : vector<32x128xf32>
    %323 = vector.extract_strided_slice %322 {offsets = [0, 12], sizes = [32, 116], strides = [1, 1]} : vector<32x128xf32> to vector<32x116xf32>
    %324 = vector.extract_strided_slice %322 {offsets = [0, 0], sizes = [32, 12], strides = [1, 1]} : vector<32x128xf32> to vector<32x12xf32>
    %325 = tpu.concatenate %323, %324 in 1 : vector<32x116xf32>, vector<32x12xf32> -> vector<32x128xf32>
    %326 = arith.addf %297, %325 : vector<32x128xf32>
    %c0_286 = arith.constant 0 : index
    %c0_287 = arith.constant 0 : index
    %327 = vector.load %arg3[%c0_286, %c0_287] : memref<32x1xf32, #tpu.memory_space<vmem>>, vector<32x1xf32>
    %328 = vector.broadcast %327 : vector<32x1xf32> to vector<32x128xf32>
    %329 = arith.addf %326, %328 : vector<32x128xf32>
    %cst_288 = arith.constant 0.000000e+00 : f32
    %330 = vector.broadcast %cst_288 : f32 to vector<32x128xf32>
    %331 = arith.maximumf %329, %330 : vector<32x128xf32>
    %332 = arith.truncf %331 : vector<32x128xf32> to vector<32x128xbf16>
    %cst_289 = arith.constant 0.000000e+00 : f32
    %333 = vector.broadcast %cst_289 : f32 to vector<64x128xf32>
    %cst_290 = arith.constant 0.000000e+00 : f32
    %334 = vector.broadcast %cst_290 : f32 to vector<64x128xf32>
    %c0_291 = arith.constant 0 : index
    %c0_292 = arith.constant 0 : index
    %c0_293 = arith.constant 0 : index
    %c0_294 = arith.constant 0 : index
    %335 = vector.load %arg4[%c0_291, %c0_292, %c0_293, %c0_294] : memref<4x4x64x32xbf16, #tpu.memory_space<vmem>>, vector<1x1x64x32xbf16>
    %336 = vector.shape_cast %335 : vector<1x1x64x32xbf16> to vector<64x32xbf16>
    %cst_295 = arith.constant dense<0.000000e+00> : vector<64x128xf32>
    %337 = tpu.matmul %336, %48, %cst_295 {dimension_numbers = #tpu.dot_dimension_numbers<[1], [0], [0], [1], [0, 0, 1, 1], [], []>} : vector<64x32xbf16>, vector<32x128xbf16>, vector<64x128xf32> -> vector<64x128xf32>
    %338 = arith.addf %334, %337 : vector<64x128xf32>
    %c0_296 = arith.constant 0 : index
    %c1_297 = arith.constant 1 : index
    %c0_298 = arith.constant 0 : index
    %c0_299 = arith.constant 0 : index
    %339 = vector.load %arg4[%c0_296, %c1_297, %c0_298, %c0_299] : memref<4x4x64x32xbf16, #tpu.memory_space<vmem>>, vector<1x1x64x32xbf16>
    %340 = vector.shape_cast %339 : vector<1x1x64x32xbf16> to vector<64x32xbf16>
    %cst_300 = arith.constant dense<0.000000e+00> : vector<64x128xf32>
    %341 = tpu.matmul %340, %158, %cst_300 {dimension_numbers = #tpu.dot_dimension_numbers<[1], [0], [0], [1], [0, 0, 1, 1], [], []>} : vector<64x32xbf16>, vector<32x128xbf16>, vector<64x128xf32> -> vector<64x128xf32>
    %342 = arith.addf %338, %341 : vector<64x128xf32>
    %c1_301 = arith.constant 1 : index
    %c0_302 = arith.constant 0 : index
    %c0_303 = arith.constant 0 : index
    %c0_304 = arith.constant 0 : index
    %343 = vector.load %arg4[%c1_301, %c0_302, %c0_303, %c0_304] : memref<4x4x64x32xbf16, #tpu.memory_space<vmem>>, vector<1x1x64x32xbf16>
    %344 = vector.shape_cast %343 : vector<1x1x64x32xbf16> to vector<64x32xbf16>
    %cst_305 = arith.constant dense<0.000000e+00> : vector<64x128xf32>
    %345 = tpu.matmul %344, %212, %cst_305 {dimension_numbers = #tpu.dot_dimension_numbers<[1], [0], [0], [1], [0, 0, 1, 1], [], []>} : vector<64x32xbf16>, vector<32x128xbf16>, vector<64x128xf32> -> vector<64x128xf32>
    %346 = arith.addf %342, %345 : vector<64x128xf32>
    %c1_306 = arith.constant 1 : index
    %c1_307 = arith.constant 1 : index
    %c0_308 = arith.constant 0 : index
    %c0_309 = arith.constant 0 : index
    %347 = vector.load %arg4[%c1_306, %c1_307, %c0_308, %c0_309] : memref<4x4x64x32xbf16, #tpu.memory_space<vmem>>, vector<1x1x64x32xbf16>
    %348 = vector.shape_cast %347 : vector<1x1x64x32xbf16> to vector<64x32xbf16>
    %cst_310 = arith.constant dense<0.000000e+00> : vector<64x128xf32>
    %349 = tpu.matmul %348, %332, %cst_310 {dimension_numbers = #tpu.dot_dimension_numbers<[1], [0], [0], [1], [0, 0, 1, 1], [], []>} : vector<64x32xbf16>, vector<32x128xbf16>, vector<64x128xf32> -> vector<64x128xf32>
    %350 = arith.addf %346, %349 : vector<64x128xf32>
    %351 = arith.addf %333, %350 : vector<64x128xf32>
    %cst_311 = arith.constant 0.000000e+00 : f32
    %352 = vector.broadcast %cst_311 : f32 to vector<64x128xf32>
    %c0_312 = arith.constant 0 : index
    %c2_313 = arith.constant 2 : index
    %c0_314 = arith.constant 0 : index
    %c0_315 = arith.constant 0 : index
    %353 = vector.load %arg4[%c0_312, %c2_313, %c0_314, %c0_315] : memref<4x4x64x32xbf16, #tpu.memory_space<vmem>>, vector<1x1x64x32xbf16>
    %354 = vector.shape_cast %353 : vector<1x1x64x32xbf16> to vector<64x32xbf16>
    %cst_316 = arith.constant dense<0.000000e+00> : vector<64x128xf32>
    %355 = tpu.matmul %354, %48, %cst_316 {dimension_numbers = #tpu.dot_dimension_numbers<[1], [0], [0], [1], [0, 0, 1, 1], [], []>} : vector<64x32xbf16>, vector<32x128xbf16>, vector<64x128xf32> -> vector<64x128xf32>
    %356 = arith.addf %352, %355 : vector<64x128xf32>
    %c0_317 = arith.constant 0 : index
    %c3_318 = arith.constant 3 : index
    %c0_319 = arith.constant 0 : index
    %c0_320 = arith.constant 0 : index
    %357 = vector.load %arg4[%c0_317, %c3_318, %c0_319, %c0_320] : memref<4x4x64x32xbf16, #tpu.memory_space<vmem>>, vector<1x1x64x32xbf16>
    %358 = vector.shape_cast %357 : vector<1x1x64x32xbf16> to vector<64x32xbf16>
    %cst_321 = arith.constant dense<0.000000e+00> : vector<64x128xf32>
    %359 = tpu.matmul %358, %158, %cst_321 {dimension_numbers = #tpu.dot_dimension_numbers<[1], [0], [0], [1], [0, 0, 1, 1], [], []>} : vector<64x32xbf16>, vector<32x128xbf16>, vector<64x128xf32> -> vector<64x128xf32>
    %360 = arith.addf %356, %359 : vector<64x128xf32>
    %c1_322 = arith.constant 1 : index
    %c2_323 = arith.constant 2 : index
    %c0_324 = arith.constant 0 : index
    %c0_325 = arith.constant 0 : index
    %361 = vector.load %arg4[%c1_322, %c2_323, %c0_324, %c0_325] : memref<4x4x64x32xbf16, #tpu.memory_space<vmem>>, vector<1x1x64x32xbf16>
    %362 = vector.shape_cast %361 : vector<1x1x64x32xbf16> to vector<64x32xbf16>
    %cst_326 = arith.constant dense<0.000000e+00> : vector<64x128xf32>
    %363 = tpu.matmul %362, %212, %cst_326 {dimension_numbers = #tpu.dot_dimension_numbers<[1], [0], [0], [1], [0, 0, 1, 1], [], []>} : vector<64x32xbf16>, vector<32x128xbf16>, vector<64x128xf32> -> vector<64x128xf32>
    %364 = arith.addf %360, %363 : vector<64x128xf32>
    %c1_327 = arith.constant 1 : index
    %c3_328 = arith.constant 3 : index
    %c0_329 = arith.constant 0 : index
    %c0_330 = arith.constant 0 : index
    %365 = vector.load %arg4[%c1_327, %c3_328, %c0_329, %c0_330] : memref<4x4x64x32xbf16, #tpu.memory_space<vmem>>, vector<1x1x64x32xbf16>
    %366 = vector.shape_cast %365 : vector<1x1x64x32xbf16> to vector<64x32xbf16>
    %cst_331 = arith.constant dense<0.000000e+00> : vector<64x128xf32>
    %367 = tpu.matmul %366, %332, %cst_331 {dimension_numbers = #tpu.dot_dimension_numbers<[1], [0], [0], [1], [0, 0, 1, 1], [], []>} : vector<64x32xbf16>, vector<32x128xbf16>, vector<64x128xf32> -> vector<64x128xf32>
    %368 = arith.addf %364, %367 : vector<64x128xf32>
    %369 = vector.extract_strided_slice %368 {offsets = [0, 1], sizes = [64, 127], strides = [1, 1]} : vector<64x128xf32> to vector<64x127xf32>
    %370 = vector.extract_strided_slice %368 {offsets = [0, 0], sizes = [64, 1], strides = [1, 1]} : vector<64x128xf32> to vector<64x1xf32>
    %371 = tpu.concatenate %369, %370 in 1 : vector<64x127xf32>, vector<64x1xf32> -> vector<64x128xf32>
    %372 = arith.addf %351, %371 : vector<64x128xf32>
    %cst_332 = arith.constant 0.000000e+00 : f32
    %373 = vector.broadcast %cst_332 : f32 to vector<64x128xf32>
    %c2_333 = arith.constant 2 : index
    %c0_334 = arith.constant 0 : index
    %c0_335 = arith.constant 0 : index
    %c0_336 = arith.constant 0 : index
    %374 = vector.load %arg4[%c2_333, %c0_334, %c0_335, %c0_336] : memref<4x4x64x32xbf16, #tpu.memory_space<vmem>>, vector<1x1x64x32xbf16>
    %375 = vector.shape_cast %374 : vector<1x1x64x32xbf16> to vector<64x32xbf16>
    %cst_337 = arith.constant dense<0.000000e+00> : vector<64x128xf32>
    %376 = tpu.matmul %375, %48, %cst_337 {dimension_numbers = #tpu.dot_dimension_numbers<[1], [0], [0], [1], [0, 0, 1, 1], [], []>} : vector<64x32xbf16>, vector<32x128xbf16>, vector<64x128xf32> -> vector<64x128xf32>
    %377 = arith.addf %373, %376 : vector<64x128xf32>
    %c2_338 = arith.constant 2 : index
    %c1_339 = arith.constant 1 : index
    %c0_340 = arith.constant 0 : index
    %c0_341 = arith.constant 0 : index
    %378 = vector.load %arg4[%c2_338, %c1_339, %c0_340, %c0_341] : memref<4x4x64x32xbf16, #tpu.memory_space<vmem>>, vector<1x1x64x32xbf16>
    %379 = vector.shape_cast %378 : vector<1x1x64x32xbf16> to vector<64x32xbf16>
    %cst_342 = arith.constant dense<0.000000e+00> : vector<64x128xf32>
    %380 = tpu.matmul %379, %158, %cst_342 {dimension_numbers = #tpu.dot_dimension_numbers<[1], [0], [0], [1], [0, 0, 1, 1], [], []>} : vector<64x32xbf16>, vector<32x128xbf16>, vector<64x128xf32> -> vector<64x128xf32>
    %381 = arith.addf %377, %380 : vector<64x128xf32>
    %c3_343 = arith.constant 3 : index
    %c0_344 = arith.constant 0 : index
    %c0_345 = arith.constant 0 : index
    %c0_346 = arith.constant 0 : index
    %382 = vector.load %arg4[%c3_343, %c0_344, %c0_345, %c0_346] : memref<4x4x64x32xbf16, #tpu.memory_space<vmem>>, vector<1x1x64x32xbf16>
    %383 = vector.shape_cast %382 : vector<1x1x64x32xbf16> to vector<64x32xbf16>
    %cst_347 = arith.constant dense<0.000000e+00> : vector<64x128xf32>
    %384 = tpu.matmul %383, %212, %cst_347 {dimension_numbers = #tpu.dot_dimension_numbers<[1], [0], [0], [1], [0, 0, 1, 1], [], []>} : vector<64x32xbf16>, vector<32x128xbf16>, vector<64x128xf32> -> vector<64x128xf32>
    %385 = arith.addf %381, %384 : vector<64x128xf32>
    %c3_348 = arith.constant 3 : index
    %c1_349 = arith.constant 1 : index
    %c0_350 = arith.constant 0 : index
    %c0_351 = arith.constant 0 : index
    %386 = vector.load %arg4[%c3_348, %c1_349, %c0_350, %c0_351] : memref<4x4x64x32xbf16, #tpu.memory_space<vmem>>, vector<1x1x64x32xbf16>
    %387 = vector.shape_cast %386 : vector<1x1x64x32xbf16> to vector<64x32xbf16>
    %cst_352 = arith.constant dense<0.000000e+00> : vector<64x128xf32>
    %388 = tpu.matmul %387, %332, %cst_352 {dimension_numbers = #tpu.dot_dimension_numbers<[1], [0], [0], [1], [0, 0, 1, 1], [], []>} : vector<64x32xbf16>, vector<32x128xbf16>, vector<64x128xf32> -> vector<64x128xf32>
    %389 = arith.addf %385, %388 : vector<64x128xf32>
    %390 = vector.extract_strided_slice %389 {offsets = [0, 11], sizes = [64, 117], strides = [1, 1]} : vector<64x128xf32> to vector<64x117xf32>
    %391 = vector.extract_strided_slice %389 {offsets = [0, 0], sizes = [64, 11], strides = [1, 1]} : vector<64x128xf32> to vector<64x11xf32>
    %392 = tpu.concatenate %390, %391 in 1 : vector<64x117xf32>, vector<64x11xf32> -> vector<64x128xf32>
    %393 = arith.addf %372, %392 : vector<64x128xf32>
    %cst_353 = arith.constant 0.000000e+00 : f32
    %394 = vector.broadcast %cst_353 : f32 to vector<64x128xf32>
    %c2_354 = arith.constant 2 : index
    %c2_355 = arith.constant 2 : index
    %c0_356 = arith.constant 0 : index
    %c0_357 = arith.constant 0 : index
    %395 = vector.load %arg4[%c2_354, %c2_355, %c0_356, %c0_357] : memref<4x4x64x32xbf16, #tpu.memory_space<vmem>>, vector<1x1x64x32xbf16>
    %396 = vector.shape_cast %395 : vector<1x1x64x32xbf16> to vector<64x32xbf16>
    %cst_358 = arith.constant dense<0.000000e+00> : vector<64x128xf32>
    %397 = tpu.matmul %396, %48, %cst_358 {dimension_numbers = #tpu.dot_dimension_numbers<[1], [0], [0], [1], [0, 0, 1, 1], [], []>} : vector<64x32xbf16>, vector<32x128xbf16>, vector<64x128xf32> -> vector<64x128xf32>
    %398 = arith.addf %394, %397 : vector<64x128xf32>
    %c2_359 = arith.constant 2 : index
    %c3_360 = arith.constant 3 : index
    %c0_361 = arith.constant 0 : index
    %c0_362 = arith.constant 0 : index
    %399 = vector.load %arg4[%c2_359, %c3_360, %c0_361, %c0_362] : memref<4x4x64x32xbf16, #tpu.memory_space<vmem>>, vector<1x1x64x32xbf16>
    %400 = vector.shape_cast %399 : vector<1x1x64x32xbf16> to vector<64x32xbf16>
    %cst_363 = arith.constant dense<0.000000e+00> : vector<64x128xf32>
    %401 = tpu.matmul %400, %158, %cst_363 {dimension_numbers = #tpu.dot_dimension_numbers<[1], [0], [0], [1], [0, 0, 1, 1], [], []>} : vector<64x32xbf16>, vector<32x128xbf16>, vector<64x128xf32> -> vector<64x128xf32>
    %402 = arith.addf %398, %401 : vector<64x128xf32>
    %c3_364 = arith.constant 3 : index
    %c2_365 = arith.constant 2 : index
    %c0_366 = arith.constant 0 : index
    %c0_367 = arith.constant 0 : index
    %403 = vector.load %arg4[%c3_364, %c2_365, %c0_366, %c0_367] : memref<4x4x64x32xbf16, #tpu.memory_space<vmem>>, vector<1x1x64x32xbf16>
    %404 = vector.shape_cast %403 : vector<1x1x64x32xbf16> to vector<64x32xbf16>
    %cst_368 = arith.constant dense<0.000000e+00> : vector<64x128xf32>
    %405 = tpu.matmul %404, %212, %cst_368 {dimension_numbers = #tpu.dot_dimension_numbers<[1], [0], [0], [1], [0, 0, 1, 1], [], []>} : vector<64x32xbf16>, vector<32x128xbf16>, vector<64x128xf32> -> vector<64x128xf32>
    %406 = arith.addf %402, %405 : vector<64x128xf32>
    %c3_369 = arith.constant 3 : index
    %c3_370 = arith.constant 3 : index
    %c0_371 = arith.constant 0 : index
    %c0_372 = arith.constant 0 : index
    %407 = vector.load %arg4[%c3_369, %c3_370, %c0_371, %c0_372] : memref<4x4x64x32xbf16, #tpu.memory_space<vmem>>, vector<1x1x64x32xbf16>
    %408 = vector.shape_cast %407 : vector<1x1x64x32xbf16> to vector<64x32xbf16>
    %cst_373 = arith.constant dense<0.000000e+00> : vector<64x128xf32>
    %409 = tpu.matmul %408, %332, %cst_373 {dimension_numbers = #tpu.dot_dimension_numbers<[1], [0], [0], [1], [0, 0, 1, 1], [], []>} : vector<64x32xbf16>, vector<32x128xbf16>, vector<64x128xf32> -> vector<64x128xf32>
    %410 = arith.addf %406, %409 : vector<64x128xf32>
    %411 = vector.extract_strided_slice %410 {offsets = [0, 12], sizes = [64, 116], strides = [1, 1]} : vector<64x128xf32> to vector<64x116xf32>
    %412 = vector.extract_strided_slice %410 {offsets = [0, 0], sizes = [64, 12], strides = [1, 1]} : vector<64x128xf32> to vector<64x12xf32>
    %413 = tpu.concatenate %411, %412 in 1 : vector<64x116xf32>, vector<64x12xf32> -> vector<64x128xf32>
    %414 = arith.addf %393, %413 : vector<64x128xf32>
    %c0_374 = arith.constant 0 : index
    %c0_375 = arith.constant 0 : index
    %415 = vector.load %arg5[%c0_374, %c0_375] : memref<64x1xf32, #tpu.memory_space<vmem>>, vector<64x1xf32>
    %416 = vector.broadcast %415 : vector<64x1xf32> to vector<64x128xf32>
    %417 = arith.addf %414, %416 : vector<64x128xf32>
    %cst_376 = arith.constant 0.000000e+00 : f32
    %418 = vector.broadcast %cst_376 : f32 to vector<64x128xf32>
    %419 = arith.maximumf %417, %418 : vector<64x128xf32>
    %420 = arith.truncf %419 : vector<64x128xf32> to vector<64x128xbf16>
    %cst_377 = arith.constant 0.000000e+00 : f32
    %421 = vector.broadcast %cst_377 : f32 to vector<64x128xf32>
    %c0_378 = arith.constant 0 : index
    %c0_379 = arith.constant 0 : index
    %c0_380 = arith.constant 0 : index
    %c0_381 = arith.constant 0 : index
    %422 = vector.load %arg6[%c0_378, %c0_379, %c0_380, %c0_381] : memref<3x3x64x64xbf16, #tpu.memory_space<vmem>>, vector<1x1x64x64xbf16>
    %423 = vector.shape_cast %422 : vector<1x1x64x64xbf16> to vector<64x64xbf16>
    %cst_382 = arith.constant dense<0.000000e+00> : vector<64x128xf32>
    %424 = tpu.matmul %423, %420, %cst_382 {dimension_numbers = #tpu.dot_dimension_numbers<[1], [0], [0], [1], [0, 0, 1, 1], [], []>} : vector<64x64xbf16>, vector<64x128xbf16>, vector<64x128xf32> -> vector<64x128xf32>
    %425 = arith.addf %421, %424 : vector<64x128xf32>
    %c0_383 = arith.constant 0 : index
    %c1_384 = arith.constant 1 : index
    %c0_385 = arith.constant 0 : index
    %c0_386 = arith.constant 0 : index
    %426 = vector.load %arg6[%c0_383, %c1_384, %c0_385, %c0_386] : memref<3x3x64x64xbf16, #tpu.memory_space<vmem>>, vector<1x1x64x64xbf16>
    %427 = vector.shape_cast %426 : vector<1x1x64x64xbf16> to vector<64x64xbf16>
    %cst_387 = arith.constant dense<0.000000e+00> : vector<64x128xf32>
    %428 = tpu.matmul %427, %420, %cst_387 {dimension_numbers = #tpu.dot_dimension_numbers<[1], [0], [0], [1], [0, 0, 1, 1], [], []>} : vector<64x64xbf16>, vector<64x128xbf16>, vector<64x128xf32> -> vector<64x128xf32>
    %429 = vector.extract_strided_slice %428 {offsets = [0, 1], sizes = [64, 127], strides = [1, 1]} : vector<64x128xf32> to vector<64x127xf32>
    %430 = vector.extract_strided_slice %428 {offsets = [0, 0], sizes = [64, 1], strides = [1, 1]} : vector<64x128xf32> to vector<64x1xf32>
    %431 = tpu.concatenate %429, %430 in 1 : vector<64x127xf32>, vector<64x1xf32> -> vector<64x128xf32>
    %432 = arith.addf %425, %431 : vector<64x128xf32>
    %c0_388 = arith.constant 0 : index
    %c2_389 = arith.constant 2 : index
    %c0_390 = arith.constant 0 : index
    %c0_391 = arith.constant 0 : index
    %433 = vector.load %arg6[%c0_388, %c2_389, %c0_390, %c0_391] : memref<3x3x64x64xbf16, #tpu.memory_space<vmem>>, vector<1x1x64x64xbf16>
    %434 = vector.shape_cast %433 : vector<1x1x64x64xbf16> to vector<64x64xbf16>
    %cst_392 = arith.constant dense<0.000000e+00> : vector<64x128xf32>
    %435 = tpu.matmul %434, %420, %cst_392 {dimension_numbers = #tpu.dot_dimension_numbers<[1], [0], [0], [1], [0, 0, 1, 1], [], []>} : vector<64x64xbf16>, vector<64x128xbf16>, vector<64x128xf32> -> vector<64x128xf32>
    %436 = vector.extract_strided_slice %435 {offsets = [0, 2], sizes = [64, 126], strides = [1, 1]} : vector<64x128xf32> to vector<64x126xf32>
    %437 = vector.extract_strided_slice %435 {offsets = [0, 0], sizes = [64, 2], strides = [1, 1]} : vector<64x128xf32> to vector<64x2xf32>
    %438 = tpu.concatenate %436, %437 in 1 : vector<64x126xf32>, vector<64x2xf32> -> vector<64x128xf32>
    %439 = arith.addf %432, %438 : vector<64x128xf32>
    %c1_393 = arith.constant 1 : index
    %c0_394 = arith.constant 0 : index
    %c0_395 = arith.constant 0 : index
    %c0_396 = arith.constant 0 : index
    %440 = vector.load %arg6[%c1_393, %c0_394, %c0_395, %c0_396] : memref<3x3x64x64xbf16, #tpu.memory_space<vmem>>, vector<1x1x64x64xbf16>
    %441 = vector.shape_cast %440 : vector<1x1x64x64xbf16> to vector<64x64xbf16>
    %cst_397 = arith.constant dense<0.000000e+00> : vector<64x128xf32>
    %442 = tpu.matmul %441, %420, %cst_397 {dimension_numbers = #tpu.dot_dimension_numbers<[1], [0], [0], [1], [0, 0, 1, 1], [], []>} : vector<64x64xbf16>, vector<64x128xbf16>, vector<64x128xf32> -> vector<64x128xf32>
    %443 = vector.extract_strided_slice %442 {offsets = [0, 11], sizes = [64, 117], strides = [1, 1]} : vector<64x128xf32> to vector<64x117xf32>
    %444 = vector.extract_strided_slice %442 {offsets = [0, 0], sizes = [64, 11], strides = [1, 1]} : vector<64x128xf32> to vector<64x11xf32>
    %445 = tpu.concatenate %443, %444 in 1 : vector<64x117xf32>, vector<64x11xf32> -> vector<64x128xf32>
    %446 = arith.addf %439, %445 : vector<64x128xf32>
    %c1_398 = arith.constant 1 : index
    %c1_399 = arith.constant 1 : index
    %c0_400 = arith.constant 0 : index
    %c0_401 = arith.constant 0 : index
    %447 = vector.load %arg6[%c1_398, %c1_399, %c0_400, %c0_401] : memref<3x3x64x64xbf16, #tpu.memory_space<vmem>>, vector<1x1x64x64xbf16>
    %448 = vector.shape_cast %447 : vector<1x1x64x64xbf16> to vector<64x64xbf16>
    %cst_402 = arith.constant dense<0.000000e+00> : vector<64x128xf32>
    %449 = tpu.matmul %448, %420, %cst_402 {dimension_numbers = #tpu.dot_dimension_numbers<[1], [0], [0], [1], [0, 0, 1, 1], [], []>} : vector<64x64xbf16>, vector<64x128xbf16>, vector<64x128xf32> -> vector<64x128xf32>
    %450 = vector.extract_strided_slice %449 {offsets = [0, 12], sizes = [64, 116], strides = [1, 1]} : vector<64x128xf32> to vector<64x116xf32>
    %451 = vector.extract_strided_slice %449 {offsets = [0, 0], sizes = [64, 12], strides = [1, 1]} : vector<64x128xf32> to vector<64x12xf32>
    %452 = tpu.concatenate %450, %451 in 1 : vector<64x116xf32>, vector<64x12xf32> -> vector<64x128xf32>
    %453 = arith.addf %446, %452 : vector<64x128xf32>
    %c1_403 = arith.constant 1 : index
    %c2_404 = arith.constant 2 : index
    %c0_405 = arith.constant 0 : index
    %c0_406 = arith.constant 0 : index
    %454 = vector.load %arg6[%c1_403, %c2_404, %c0_405, %c0_406] : memref<3x3x64x64xbf16, #tpu.memory_space<vmem>>, vector<1x1x64x64xbf16>
    %455 = vector.shape_cast %454 : vector<1x1x64x64xbf16> to vector<64x64xbf16>
    %cst_407 = arith.constant dense<0.000000e+00> : vector<64x128xf32>
    %456 = tpu.matmul %455, %420, %cst_407 {dimension_numbers = #tpu.dot_dimension_numbers<[1], [0], [0], [1], [0, 0, 1, 1], [], []>} : vector<64x64xbf16>, vector<64x128xbf16>, vector<64x128xf32> -> vector<64x128xf32>
    %457 = vector.extract_strided_slice %456 {offsets = [0, 13], sizes = [64, 115], strides = [1, 1]} : vector<64x128xf32> to vector<64x115xf32>
    %458 = vector.extract_strided_slice %456 {offsets = [0, 0], sizes = [64, 13], strides = [1, 1]} : vector<64x128xf32> to vector<64x13xf32>
    %459 = tpu.concatenate %457, %458 in 1 : vector<64x115xf32>, vector<64x13xf32> -> vector<64x128xf32>
    %460 = arith.addf %453, %459 : vector<64x128xf32>
    %c2_408 = arith.constant 2 : index
    %c0_409 = arith.constant 0 : index
    %c0_410 = arith.constant 0 : index
    %c0_411 = arith.constant 0 : index
    %461 = vector.load %arg6[%c2_408, %c0_409, %c0_410, %c0_411] : memref<3x3x64x64xbf16, #tpu.memory_space<vmem>>, vector<1x1x64x64xbf16>
    %462 = vector.shape_cast %461 : vector<1x1x64x64xbf16> to vector<64x64xbf16>
    %cst_412 = arith.constant dense<0.000000e+00> : vector<64x128xf32>
    %463 = tpu.matmul %462, %420, %cst_412 {dimension_numbers = #tpu.dot_dimension_numbers<[1], [0], [0], [1], [0, 0, 1, 1], [], []>} : vector<64x64xbf16>, vector<64x128xbf16>, vector<64x128xf32> -> vector<64x128xf32>
    %464 = vector.extract_strided_slice %463 {offsets = [0, 22], sizes = [64, 106], strides = [1, 1]} : vector<64x128xf32> to vector<64x106xf32>
    %465 = vector.extract_strided_slice %463 {offsets = [0, 0], sizes = [64, 22], strides = [1, 1]} : vector<64x128xf32> to vector<64x22xf32>
    %466 = tpu.concatenate %464, %465 in 1 : vector<64x106xf32>, vector<64x22xf32> -> vector<64x128xf32>
    %467 = arith.addf %460, %466 : vector<64x128xf32>
    %c2_413 = arith.constant 2 : index
    %c1_414 = arith.constant 1 : index
    %c0_415 = arith.constant 0 : index
    %c0_416 = arith.constant 0 : index
    %468 = vector.load %arg6[%c2_413, %c1_414, %c0_415, %c0_416] : memref<3x3x64x64xbf16, #tpu.memory_space<vmem>>, vector<1x1x64x64xbf16>
    %469 = vector.shape_cast %468 : vector<1x1x64x64xbf16> to vector<64x64xbf16>
    %cst_417 = arith.constant dense<0.000000e+00> : vector<64x128xf32>
    %470 = tpu.matmul %469, %420, %cst_417 {dimension_numbers = #tpu.dot_dimension_numbers<[1], [0], [0], [1], [0, 0, 1, 1], [], []>} : vector<64x64xbf16>, vector<64x128xbf16>, vector<64x128xf32> -> vector<64x128xf32>
    %471 = vector.extract_strided_slice %470 {offsets = [0, 23], sizes = [64, 105], strides = [1, 1]} : vector<64x128xf32> to vector<64x105xf32>
    %472 = vector.extract_strided_slice %470 {offsets = [0, 0], sizes = [64, 23], strides = [1, 1]} : vector<64x128xf32> to vector<64x23xf32>
    %473 = tpu.concatenate %471, %472 in 1 : vector<64x105xf32>, vector<64x23xf32> -> vector<64x128xf32>
    %474 = arith.addf %467, %473 : vector<64x128xf32>
    %c2_418 = arith.constant 2 : index
    %c2_419 = arith.constant 2 : index
    %c0_420 = arith.constant 0 : index
    %c0_421 = arith.constant 0 : index
    %475 = vector.load %arg6[%c2_418, %c2_419, %c0_420, %c0_421] : memref<3x3x64x64xbf16, #tpu.memory_space<vmem>>, vector<1x1x64x64xbf16>
    %476 = vector.shape_cast %475 : vector<1x1x64x64xbf16> to vector<64x64xbf16>
    %cst_422 = arith.constant dense<0.000000e+00> : vector<64x128xf32>
    %477 = tpu.matmul %476, %420, %cst_422 {dimension_numbers = #tpu.dot_dimension_numbers<[1], [0], [0], [1], [0, 0, 1, 1], [], []>} : vector<64x64xbf16>, vector<64x128xbf16>, vector<64x128xf32> -> vector<64x128xf32>
    %478 = vector.extract_strided_slice %477 {offsets = [0, 24], sizes = [64, 104], strides = [1, 1]} : vector<64x128xf32> to vector<64x104xf32>
    %479 = vector.extract_strided_slice %477 {offsets = [0, 0], sizes = [64, 24], strides = [1, 1]} : vector<64x128xf32> to vector<64x24xf32>
    %480 = tpu.concatenate %478, %479 in 1 : vector<64x104xf32>, vector<64x24xf32> -> vector<64x128xf32>
    %481 = arith.addf %474, %480 : vector<64x128xf32>
    %c0_423 = arith.constant 0 : index
    %c0_424 = arith.constant 0 : index
    %482 = vector.load %arg7[%c0_423, %c0_424] : memref<64x1xf32, #tpu.memory_space<vmem>>, vector<64x1xf32>
    %483 = vector.broadcast %482 : vector<64x1xf32> to vector<64x128xf32>
    %484 = arith.addf %481, %483 : vector<64x128xf32>
    %cst_425 = arith.constant 0.000000e+00 : f32
    %485 = vector.broadcast %cst_425 : f32 to vector<64x128xf32>
    %486 = arith.maximumf %484, %485 : vector<64x128xf32>
    %487 = arith.truncf %486 : vector<64x128xf32> to vector<64x128xbf16>
    %c0_426 = arith.constant 0 : index
    %c0_427 = arith.constant 0 : index
    %488 = vector.load %arg8[%c0_426, %c0_427] : memref<64x128xbf16, #tpu.memory_space<vmem>>, vector<64x128xbf16>
    tpu.vector_store %arg8[%c0_426, %c0_427], %487 {strides = array<i32>} : memref<64x128xbf16, #tpu.memory_space<vmem>>, vector<64x128xbf16>,
    return
  }
  func.func @transform_0(%arg0: i32) -> (i32, i32) {
    %c0_i32 = arith.constant 0 : i32
    %c0_i32_0 = arith.constant 0 : i32
    return %c0_i32, %arg0 : i32, i32
  }
  func.func @transform_1(%arg0: i32) -> (i32, i32, i32) {
    %c0_i32 = arith.constant 0 : i32
    %c0_i32_0 = arith.constant 0 : i32
    %c0_i32_1 = arith.constant 0 : i32
    %c0_i32_2 = arith.constant 0 : i32
    return %c0_i32, %c0_i32_0, %c0_i32_1 : i32, i32, i32
  }
  func.func @transform_2(%arg0: i32) -> (i32, i32) {
    %c0_i32 = arith.constant 0 : i32
    %c0_i32_0 = arith.constant 0 : i32
    %c0_i32_1 = arith.constant 0 : i32
    return %c0_i32, %c0_i32_0 : i32, i32
  }
  func.func @transform_3(%arg0: i32) -> (i32, i32, i32, i32) {
    %c0_i32 = arith.constant 0 : i32
    %c0_i32_0 = arith.constant 0 : i32
    %c0_i32_1 = arith.constant 0 : i32
    %c0_i32_2 = arith.constant 0 : i32
    %c0_i32_3 = arith.constant 0 : i32
    return %c0_i32, %c0_i32_0, %c0_i32_1, %c0_i32_2 : i32, i32, i32, i32
  }
  func.func @transform_4(%arg0: i32) -> (i32, i32) {
    %c0_i32 = arith.constant 0 : i32
    %c0_i32_0 = arith.constant 0 : i32
    %c0_i32_1 = arith.constant 0 : i32
    return %c0_i32, %c0_i32_0 : i32, i32
  }
  func.func @transform_5(%arg0: i32) -> (i32, i32, i32, i32) {
    %c0_i32 = arith.constant 0 : i32
    %c0_i32_0 = arith.constant 0 : i32
    %c0_i32_1 = arith.constant 0 : i32
    %c0_i32_2 = arith.constant 0 : i32
    %c0_i32_3 = arith.constant 0 : i32
    return %c0_i32, %c0_i32_0, %c0_i32_1, %c0_i32_2 : i32, i32, i32, i32
  }
  func.func @transform_6(%arg0: i32) -> (i32, i32) {
    %c0_i32 = arith.constant 0 : i32
    %c0_i32_0 = arith.constant 0 : i32
    %c0_i32_1 = arith.constant 0 : i32
    return %c0_i32, %c0_i32_0 : i32, i32
  }
  func.func @transform_7(%arg0: i32) -> (i32, i32) {
    %c0_i32 = arith.constant 0 : i32
    %c0_i32_0 = arith.constant 0 : i32
    return %c0_i32, %arg0 : i32, i32
  }
}

module attributes {stable_mosaic.version = 11 : i64} {
  func.func @_fc_head_kernel(%arg0: i32, %arg1: memref<16x3136xbf16, #tpu.memory_space<vmem>>, %arg2: memref<3136x512xbf16, #tpu.memory_space<vmem>>, %arg3: memref<1x512xf32, #tpu.memory_space<vmem>>, %arg4: memref<512x128xbf16, #tpu.memory_space<vmem>>, %arg5: memref<1x128xf32, #tpu.memory_space<vmem>>, %arg6: memref<16x128xf32, #tpu.memory_space<vmem>>) attributes {dimension_semantics = [#tpu.dimension_semantics<parallel>], iteration_bounds = array<i64: 1>, scalar_prefetch = 0 : i64, scratch_operands = 0 : i64, tpu.core_type = #tpu.core_type<tc>, window_params = [{transform_indices = @transform_0, window_bounds = array<i64: 16, 3136>}, {pipeline_mode = #tpu.pipeline_mode<synchronous>, transform_indices = @transform_1, window_bounds = array<i64: 3136, 512>}, {pipeline_mode = #tpu.pipeline_mode<synchronous>, transform_indices = @transform_2, window_bounds = array<i64: 1, 512>}, {pipeline_mode = #tpu.pipeline_mode<synchronous>, transform_indices = @transform_3, window_bounds = array<i64: 512, 128>}, {pipeline_mode = #tpu.pipeline_mode<synchronous>, transform_indices = @transform_4, window_bounds = array<i64: 1, 128>}, {transform_indices = @transform_5, window_bounds = array<i64: 16, 128>}]} {
    %c0 = arith.constant 0 : index
    %c0_0 = arith.constant 0 : index
    %0 = vector.load %arg1[%c0, %c0_0] : memref<16x3136xbf16, #tpu.memory_space<vmem>>, vector<16x3136xbf16>
    %c0_1 = arith.constant 0 : index
    %c0_2 = arith.constant 0 : index
    %1 = vector.load %arg2[%c0_1, %c0_2] : memref<3136x512xbf16, #tpu.memory_space<vmem>>, vector<3136x512xbf16>
    %cst = arith.constant dense<0.000000e+00> : vector<16x512xf32>
    %2 = tpu.matmul %0, %1, %cst {dimension_numbers = #tpu.dot_dimension_numbers<[1], [0], [0], [1], [0, 0, 1, 1], [], []>} : vector<16x3136xbf16>, vector<3136x512xbf16>, vector<16x512xf32> -> vector<16x512xf32>
    %c0_3 = arith.constant 0 : index
    %c0_4 = arith.constant 0 : index
    %3 = vector.load %arg3[%c0_3, %c0_4] : memref<1x512xf32, #tpu.memory_space<vmem>>, vector<1x512xf32>
    %4 = vector.broadcast %3 : vector<1x512xf32> to vector<16x512xf32>
    %5 = arith.addf %2, %4 : vector<16x512xf32>
    %cst_5 = arith.constant 0.000000e+00 : f32
    %6 = vector.broadcast %cst_5 : f32 to vector<16x512xf32>
    %7 = arith.maximumf %5, %6 : vector<16x512xf32>
    %8 = arith.truncf %7 : vector<16x512xf32> to vector<16x512xbf16>
    %c0_6 = arith.constant 0 : index
    %c0_7 = arith.constant 0 : index
    %9 = vector.load %arg4[%c0_6, %c0_7] : memref<512x128xbf16, #tpu.memory_space<vmem>>, vector<512x128xbf16>
    %cst_8 = arith.constant dense<0.000000e+00> : vector<16x128xf32>
    %10 = tpu.matmul %8, %9, %cst_8 {dimension_numbers = #tpu.dot_dimension_numbers<[1], [0], [0], [1], [0, 0, 1, 1], [], []>} : vector<16x512xbf16>, vector<512x128xbf16>, vector<16x128xf32> -> vector<16x128xf32>
    %c0_9 = arith.constant 0 : index
    %c0_10 = arith.constant 0 : index
    %11 = vector.load %arg5[%c0_9, %c0_10] : memref<1x128xf32, #tpu.memory_space<vmem>>, vector<1x128xf32>
    %12 = vector.broadcast %11 : vector<1x128xf32> to vector<16x128xf32>
    %13 = arith.addf %10, %12 : vector<16x128xf32>
    %c0_11 = arith.constant 0 : index
    %c0_12 = arith.constant 0 : index
    %14 = vector.load %arg6[%c0_11, %c0_12] : memref<16x128xf32, #tpu.memory_space<vmem>>, vector<16x128xf32>
    tpu.vector_store %arg6[%c0_11, %c0_12], %13 {strides = array<i32>} : memref<16x128xf32, #tpu.memory_space<vmem>>, vector<16x128xf32>,
    return
  }
  func.func @transform_0(%arg0: i32) -> (i32, i32) {
    %c0_i32 = arith.constant 0 : i32
    %c0_i32_0 = arith.constant 0 : i32
    return %arg0, %c0_i32 : i32, i32
  }
  func.func @transform_1(%arg0: i32) -> (i32, i32) {
    %c0_i32 = arith.constant 0 : i32
    %c0_i32_0 = arith.constant 0 : i32
    %c0_i32_1 = arith.constant 0 : i32
    return %c0_i32, %c0_i32_0 : i32, i32
  }
  func.func @transform_2(%arg0: i32) -> (i32, i32) {
    %c0_i32 = arith.constant 0 : i32
    %c0_i32_0 = arith.constant 0 : i32
    %c0_i32_1 = arith.constant 0 : i32
    return %c0_i32, %c0_i32_0 : i32, i32
  }
  func.func @transform_3(%arg0: i32) -> (i32, i32) {
    %c0_i32 = arith.constant 0 : i32
    %c0_i32_0 = arith.constant 0 : i32
    %c0_i32_1 = arith.constant 0 : i32
    return %c0_i32, %c0_i32_0 : i32, i32
  }
  func.func @transform_4(%arg0: i32) -> (i32, i32) {
    %c0_i32 = arith.constant 0 : i32
    %c0_i32_0 = arith.constant 0 : i32
    %c0_i32_1 = arith.constant 0 : i32
    return %c0_i32, %c0_i32_0 : i32, i32
  }
  func.func @transform_5(%arg0: i32) -> (i32, i32) {
    %c0_i32 = arith.constant 0 : i32
    %c0_i32_0 = arith.constant 0 : i32
    return %arg0, %c0_i32 : i32, i32
  }
}

</mosaic_0001>

<bundles_post_ra>
// kernel: mario_forward.2
= control target key start
LH: loop header
LB: loop body
LE: loop exit
PB: predicated region body
PF: predicated region fallthrough
CT: control target
= control target key end

     0   :  { %s9115_s24 = smov 0   ;;  %s9117_s25 = smov 0   ;;  %s10606_s0 = inlined_call_operand.vmem [shape: bf16[256,256], index: 0, kind: input, shape index: {}]   ;;  %s10607_s1 = inlined_call_operand.vmem [shape: bf16[8,32,32], index: 1, kind: input, shape index: {}]   ;;  %s10608_s2 = inlined_call_operand.vmem [shape: f32[32,1], index: 2, kind: input, shape index: {}]   ;;  %s10609_s3 = inlined_call_operand.vmem [shape: bf16[4,4,64,32], index: 3, kind: input, shape index: {}]   ;;  %s10610_s4 = inlined_call_operand.vmem [shape: f32[64,1], index: 4, kind: input, shape index: {}]   ;;  %s10611_s5 = inlined_call_operand.vmem [shape: bf16[3,3,64,64], index: 5, kind: input, shape index: {}]   ;;  %s10612_s6 = inlined_call_operand.vmem [shape: f32[64,1], index: 6, kind: input, shape index: {}]   ;;  %s10613_s7 = inlined_call_operand.vmem [shape: bf16[64,256], index: 7, kind: output, shape index: {}]  }
   0x1   :  { %s9119_s26 = smov 0  }
   0x2 LB: > { %s7021_s27 = sadd.s32 4294967295, %s9063_s26   ;;  %s9132_s28 = sadd.s32 1, %s9063_s26   ;;  %s9063_s26 = sphi %s9119_s26, %s10617_s26   ;;  %s9059_s25 = sphi %s9117_s25, %s10616_s25   ;;  %s9055_s24 = sphi %s9115_s24, %s10615_s24  }
   0x3   : > { %s21_s29 = ssub.s32 %s9063_s26, %s9132_s28  ;;  %s24_s30 = sadd.s32 1, %s9059_s25 }
   0x4   : > { %p22_p0 = scmp.eq.s32.totalorder %s21_s29, 0  ;;  %p31_p1 = scmp.ne.s32.totalorder %s9059_s25, %s9055_s24 }
   0x5   : > { %p32_p2 = scmp.eq.s32.totalorder %s9063_s26, 0  ;;  %p187_p3 = scmp.eq.s32.totalorder %s7021_s27, 1 }
   0x6   : > { %s9143_s8 = scalar_select %p22_p0, %s9059_s25, %s24_s30  }
   0x7   : > { %p33_p4 = por %p32_p2, %p31_p1  ;;  %p9145_p5 = por %p187_p3, %p31_p1 }
   0x8   : > { %p7024_p6 = scmp.ge.s32.totalorder %s9063_s26, 2 }
   0xa   : > { %227 = sbr.rel (%p7024_p6) target bundleno = 42 (0x2a), region = 40 }
  0x11   : > { %230 = sbr.rel (!%p33_p4) target bundleno = 42 (0x2a), region = 44  ;;  %s232_s10 = sand.u32 (%p33_p4), 1, %s9059_s25  }
  0x12   : > { %s7026_s11 = sshll.u32 (%p33_p4), %s9063_s26, 2  ;;  %s7025_s12 = sshll.u32 (%p33_p4), %s232_s10, 7 }
  0x13   : > { %s9155_s15 = scalar_lea.vmem (%p33_p4), %s10606_s0, %s7026_s11  ;;  %s9159_s16 = scalar_lea.vmem (%p33_p4), [#allocation2], %s7025_s12 }
  0x14   : > { %v252_v0 = vld [vmem:[%s9155_s15] sm:$0xf] (%p33_p4)  ;;  %v254_v1 = vld [vmem:[%s9155_s15 + $0x8] sm:$0xf] (%p33_p4)  ;;  %v256_v2 = vld [vmem:[%s9155_s15 + $0x10] sm:$0xf] (%p33_p4) }
  0x15   : > { %253 = vst [vmem:[%s9159_s16] sm:$0xf] (%p33_p4), %v252_v0  ;;  %255 = vst [vmem:[%s9159_s16 + $0x4] sm:$0xf] (%p33_p4), %v254_v1  ;;  %v258_v3 = vld [vmem:[%s9155_s15 + $0x18] sm:$0xf] (%p33_p4) }
  0x16   : > { %v260_v4 = vld [vmem:[%s9155_s15 + $0x20] sm:$0xf] (%p33_p4)  ;;  %257 = vst [vmem:[%s9159_s16 + $0x8] sm:$0xf] (%p33_p4), %v256_v2  ;;  %259 = vst [vmem:[%s9159_s16 + $0xc] sm:$0xf] (%p33_p4), %v258_v3 }
  0x17   : > { %261 = vst [vmem:[%s9159_s16 + $0x10] sm:$0xf] (%p33_p4), %v260_v4  ;;  %v262_v5 = vld [vmem:[%s9155_s15 + $0x28] sm:$0xf] (%p33_p4)  ;;  %v264_v6 = vld [vmem:[%s9155_s15 + $0x30] sm:$0xf] (%p33_p4) }
  0x18   : > { %v266_v7 = vld [vmem:[%s9155_s15 + $0x38] sm:$0xf]  ;;  %263 = vst [vmem:[%s9159_s16 + $0x14] sm:$0xf] %v262_v5  ;;  %265 = vst [vmem:[%s9159_s16 + $0x18] sm:$0xf] %v264_v6 }
  0x19   : > { %267 = vst [vmem:[%s9159_s16 + $0x1c] sm:$0xf] %v266_v7  ;;  %v268_v8 = vld [vmem:[%s9155_s15 + $0x40] sm:$0xf]  ;;  %v270_v9 = vld [vmem:[%s9155_s15 + $0x48] sm:$0xf] }
  0x1a   : > { %v272_v10 = vld [vmem:[%s9155_s15 + $0x50] sm:$0xf]  ;;  %269 = vst [vmem:[%s9159_s16 + $0x20] sm:$0xf] %v268_v8  ;;  %271 = vst [vmem:[%s9159_s16 + $0x24] sm:$0xf] %v270_v9 }
  0x1b   : > { %273 = vst [vmem:[%s9159_s16 + $0x28] sm:$0xf] %v272_v10  ;;  %v274_v11 = vld [vmem:[%s9155_s15 + $0x58] sm:$0xf]  ;;  %v276_v12 = vld [vmem:[%s9155_s15 + $0x60] sm:$0xf] }
  0x1c   : > { %v278_v13 = vld [vmem:[%s9155_s15 + $0x68] sm:$0xf]  ;;  %275 = vst [vmem:[%s9159_s16 + $0x2c] sm:$0xf] %v274_v11  ;;  %277 = vst [vmem:[%s9159_s16 + $0x30] sm:$0xf] %v276_v12 }
  0x1d   : > { %279 = vst [vmem:[%s9159_s16 + $0x34] sm:$0xf] %v278_v13  ;;  %v280_v14 = vld [vmem:[%s9155_s15 + $0x70] sm:$0xf]  ;;  %v282_v15 = vld [vmem:[%s9155_s15 + $0x78] sm:$0xf] }
  0x1e   : > { %v284_v16 = vld [vmem:[%s9155_s15 + $0x80] sm:$0xf]  ;;  %281 = vst [vmem:[%s9159_s16 + $0x38] sm:$0xf] %v280_v14  ;;  %283 = vst [vmem:[%s9159_s16 + $0x3c] sm:$0xf] %v282_v15 }
  0x1f   : > { %285 = vst [vmem:[%s9159_s16 + $0x40] sm:$0xf] %v284_v16  ;;  %v286_v17 = vld [vmem:[%s9155_s15 + $0x88] sm:$0xf]  ;;  %v288_v18 = vld [vmem:[%s9155_s15 + $0x90] sm:$0xf] }
  0x20   : > { %v290_v19 = vld [vmem:[%s9155_s15 + $0x98] sm:$0xf]  ;;  %287 = vst [vmem:[%s9159_s16 + $0x44] sm:$0xf] %v286_v17  ;;  %289 = vst [vmem:[%s9159_s16 + $0x48] sm:$0xf] %v288_v18 }
  0x21   : > { %291 = vst [vmem:[%s9159_s16 + $0x4c] sm:$0xf] %v290_v19  ;;  %v292_v20 = vld [vmem:[%s9155_s15 + $0xa0] sm:$0xf]  ;;  %v294_v21 = vld [vmem:[%s9155_s15 + $0xa8] sm:$0xf] }
  0x22   : > { %v296_v22 = vld [vmem:[%s9155_s15 + $0xb0] sm:$0xf]  ;;  %293 = vst [vmem:[%s9159_s16 + $0x50] sm:$0xf] %v292_v20  ;;  %295 = vst [vmem:[%s9159_s16 + $0x54] sm:$0xf] %v294_v21 }
  0x23   : > { %297 = vst [vmem:[%s9159_s16 + $0x58] sm:$0xf] %v296_v22  ;;  %v298_v23 = vld [vmem:[%s9155_s15 + $0xb8] sm:$0xf]  ;;  %v300_v24 = vld [vmem:[%s9155_s15 + $0xc0] sm:$0xf] }
  0x24   : > { %v302_v25 = vld [vmem:[%s9155_s15 + $0xc8] sm:$0xf]  ;;  %299 = vst [vmem:[%s9159_s16 + $0x5c] sm:$0xf] %v298_v23  ;;  %301 = vst [vmem:[%s9159_s16 + $0x60] sm:$0xf] %v300_v24 }
  0x25   : > { %303 = vst [vmem:[%s9159_s16 + $0x64] sm:$0xf] %v302_v25  ;;  %v304_v26 = vld [vmem:[%s9155_s15 + $0xd0] sm:$0xf]  ;;  %v306_v27 = vld [vmem:[%s9155_s15 + $0xd8] sm:$0xf] }
  0x26   : > { %v308_v28 = vld [vmem:[%s9155_s15 + $0xe0] sm:$0xf]  ;;  %305 = vst [vmem:[%s9159_s16 + $0x68] sm:$0xf] %v304_v26  ;;  %307 = vst [vmem:[%s9159_s16 + $0x6c] sm:$0xf] %v306_v27 }
  0x27   : > { %309 = vst [vmem:[%s9159_s16 + $0x70] sm:$0xf] %v308_v28  ;;  %v310_v29 = vld [vmem:[%s9155_s15 + $0xe8] sm:$0xf]  ;;  %v312_v30 = vld [vmem:[%s9155_s15 + $0xf0] sm:$0xf] }
  0x28   : > { %v314_v31 = vld [vmem:[%s9155_s15 + $0xf8] sm:$0xf]  ;;  %311 = vst [vmem:[%s9159_s16 + $0x74] sm:$0xf] %v310_v29  ;;  %313 = vst [vmem:[%s9159_s16 + $0x78] sm:$0xf] %v312_v30 }
  0x29   : > { %315 = vst [vmem:[%s9159_s16 + $0x7c] sm:$0xf] %v314_v31 }
  0x2a PF: > { %p7027_p7 = scmp.ge.s32.totalorder %s9063_s26, 1  ;;  %p401_p8 = scmp.lt.s32.totalorder %s9063_s26, 3 }
  0x2c   : > { %p402_p9 = pnand %p7027_p7, %p401_p8 }
  0x2d   : > { %v9228_v32 = vld [vmem:[%s10607_s1 + $0x10] sm:$0xff] (!%p402_p9)   ;;  %s408_s19 = sand.u32 (!%p402_p9), 1, %s9055_s24   ;;  %v9234_v33 = vld [vmem:[%s10607_s1 + $0x18] sm:$0xff] (!%p402_p9)   ;;  %s9065_s22 = smov (!%p402_p9), 112   ;;  %v9243_v34 = vld [vmem:[%s10607_s1] sm:$0xff] (!%p402_p9)   ;;  %vm1189_vm0 = vcmask (!%p402_p9), 130048  }
  0x2e   : > { %405 = sbr.rel (%p402_p9) target bundleno = 1590 (0x636), region = 85  ;;  %1646 = vrot.lane.b32.xlu0 (!%p402_p9), %v9228_v32, %s9065_s22  ;;  %s7028_s23 = sshll.u32 (!%p402_p9), %s408_s19, 7  ;;  %8021 = vmatprep.mubr.msk.bf16.mxu1 (!%p402_p9), %vm1189_vm0, %v9243_v34  ;;  %vm478_vm1 = vcmask (!%p402_p9), 261120   ;;  %v9270_v38 = vld [vmem:[%s10607_s1 + $0x8] sm:$0xff] (!%p402_p9)   ;;  %v9285_v41 = vld [vmem:[%s10607_s1 + $0x20] sm:$0xff] (!%p402_p9)   ;;  %v9318_v45 = vld [vmem:[%s10607_s1 + $0x30] sm:$0xff] (!%p402_p9)  }
  0x2f   : > { %s9245_s10 = scalar_lea.vmem (!%p402_p9), [#allocation2], %s7028_s23  ;;  %1711 = vrot.lane.b32.xlu1 (!%p402_p9), %v9243_v34, %s9065_s22  ;;  %7953 = vmatprep.mubr.msk.bf16.mxu0 (!%p402_p9), %vm478_vm1, %v9228_v32  ;;  %v9303_v43 = vld [vmem:[%s10607_s1 + $0x28] sm:$0xff] (!%p402_p9)   ;;  %v9328_v46 = vld [vmem:[%s10607_s1 + $0x38] sm:$0xff] (!%p402_p9)   ;;  %v9334_v47 = vld [vmem:[%s10607_s1 + $0x40] sm:$0xff] (!%p402_p9)   ;;  %v9066_v61 = vmov (!%p402_p9), 0   ;;  %s9068_s16 = smov (!%p402_p9), 117  }
  0x30   : > { %v9248_v35 = vld [vmem:[%s9245_s10 + $0x10] sm:$0xff] (!%p402_p9)   ;;  %v9255_v36 = vld [vmem:[%s9245_s10 + $0x8] sm:$0xff] (!%p402_p9)   ;;  %v9263_v37 = vld [vmem:[%s9245_s10 + $0x18] sm:$0xff] (!%p402_p9)   ;;  %8892 = vset.pattern.permute.xlu1 (!%p402_p9), %v9066_v61  ;;  %8891 = vset.pattern.permute.xlu0 (!%p402_p9), %v9066_v61  ;;  %s9069_s17 = smov (!%p402_p9), 116   ;;  %vm5556_vm2 = vcmask (!%p402_p9), 523264   ;;  %s9070_s18 = smov (!%p402_p9), 126  }
  0x31   : > { %7949 = vmatprep.subr.bf16.mxu0 (!%p402_p9), %v9248_v35  ;;  %8019 = vmatprep.subr.bf16.mxu1 (!%p402_p9), %v9255_v36  ;;  %v9275_v39 = vld [vmem:[%s9245_s10] sm:$0xff] (!%p402_p9)   ;;  %v9278_v40 = vld [vmem:[%s9245_s10 + $0x28] sm:$0xff] (!%p402_p9)   ;;  %v9296_v42 = vld [vmem:[%s9245_s10 + $0x38] sm:$0xff] (!%p402_p9)   ;;  %s9073_s20 = smov (!%p402_p9), 105   ;;  %s7029_s21 = sshll.u32 (!%p402_p9), %s408_s19, 5 }
  0x32   : > { %1648 = vrot.lane.b32.xlu0 (!%p402_p9), %v9234_v33, %s9065_s22  ;;  %7950 = vmatpush3.bf16.msra.mxu0 (!%p402_p9), %v9248_v35  ;;  %v9311_v44 = vld [vmem:[%s9245_s10 + $0x20] sm:$0xff] (!%p402_p9)   ;;  %v9337_v48 = vld [vmem:[%s9245_s10 + $0x48] sm:$0xff] (!%p402_p9)   ;;  %v9356_v50 = vld [vmem:[%s10607_s1 + $0x50] sm:$0xff] (!%p402_p9)   ;;  %s10571_s24 = scalar_lea.vmem (!%p402_p9), [#allocation3], %s7029_s21 }
  0x33   : > { %8020 = vmatpush3.bf16.msra.mxu1 (!%p402_p9), %v9255_v36  ;;  %7951 = vmatprep.subr.bf16.mxu0 (!%p402_p9), %v9263_v37  ;;  %v9348_v49 = vld [vmem:[%s10607_s1 + $0x48] sm:$0xff] (!%p402_p9)   ;;  %v9364_v51 = vld [vmem:[%s9245_s10 + $0x30] sm:$0xff] (!%p402_p9)   ;;  %v9374_v52 = vld [vmem:[%s10607_s1 + $0x58] sm:$0xff] (!%p402_p9)  }
  0x34   : > { %1713 = vrot.lane.b32.xlu1 (!%p402_p9), %v9270_v38, %s9065_s22  ;;  %8025 = vmatprep.subr.bf16.mxu1 (!%p402_p9), %v9278_v40  ;;  %v9380_v53 = vld [vmem:[%s10607_s1 + $0x60] sm:$0xff] (!%p402_p9)   ;;  %v9390_v54 = vld [vmem:[%s10607_s1 + $0x68] sm:$0xff] (!%p402_p9)   ;;  %v9396_v55 = vld [vmem:[%s10607_s1 + $0x70] sm:$0xff] (!%p402_p9)  }
  0x35   : > { %v9399_v56 = vld [vmem:[%s9245_s10 + $0x58] sm:$0xff]   ;;  %v9421_v58 = vld [vmem:[%s9245_s10 + $0x40] sm:$0xff]   ;;  %v9429_v59 = vld [vmem:[%s9245_s10 + $0x68] sm:$0xff]   ;;  %s7587_s19 = sshll.u32 (%p9145_p5), %s7021_s27, 2 }
  0x36   : > { %8022 = vmatmul.mubr.msk.bf16.vlgmr.msra.gmra.mrb[0].mxu1 %vm1189_vm0, %v9270_v38  ;;  %7952 = vmatpush3.bf16.msra.mxu0 %v9263_v37  ;;  %v9410_v57 = vld [vmem:[%s10607_s1 + $0x78] sm:$0xff]   ;;  %v1156_v60 = vld [vmem:[%s10608_s2 + $0x8] sm:$0xff]  ;;  %v1155_v62 = vld [vmem:[%s10608_s2] sm:$0xff]  ;;  %s6897_s30 = scalar_lea.vmem (%p9145_p5), %s10613_s7, %s7587_s19 }
  0x37   : > { %7957 = vmatprep.subr.bf16.mxu0 %v9275_v39  ;;  %8026 = vmatpush3.bf16.msra.mxu1 %v9278_v40  ;;  %v1157_v63 = vld [vmem:[%s10608_s2 + $0x10] sm:$0xff]  ;;  %v1158_v1 = vld [vmem:[%s10608_s2 + $0x18] sm:$0xff]  ;;  %v8920_v3 = vld [vmem:[%s9245_s10 + $0x60] sm:$0xff]  }
  0x38   : > { %8027 = vmatprep.mubr.msk.bf16.mxu1 %vm1189_vm0, %v9285_v41  ;;  %1778 = vrot.lane.b32.xlu0 %v9285_v41, %s9065_s22  ;;  %v8916_v0 = vld [vmem:[%s9245_s10 + $0x50] sm:$0xff]   ;;  %v9459_v2 = vld [vmem:[%s9245_s10 + $0x78] sm:$0xff]   ;;  %v9491_v6 = vld [vmem:[%s9245_s10] sm:$0xff]  }
  0x39   : > { %7954 = vmatmul.mubr.msk.bf16.vlgmr.msra.gmra.mrb[0].mxu0 %vm478_vm1, %v9234_v33  ;;  %8031 = vmatprep.subr.bf16.mxu1 %v9296_v42  ;;  %v9475_v4 = vld [vmem:[%s9245_s10 + $0x10] sm:$0xff]   ;;  %v9530_v9 = vld [vmem:[%s9245_s10 + $0x20] sm:$0xff]   ;;  %v9034_v30 = vld [vmem:[%s10607_s1 + $0x18] sm:$0xff]  }
  0x3a   : > { %7958 = vmatpush3.bf16.msra.mxu0 %v9275_v39  ;;  %7961 = vmatprep.mubr.msk.bf16.mxu0 %vm478_vm1, %v9243_v34  ;;  %v8924_v5 = vld [vmem:[%s9245_s10 + $0x70] sm:$0xff]   ;;  %v9570_v16 = vld [vmem:[%s9245_s10 + $0x40] sm:$0xff]  }
  0x3b   : > { %7959 = vmatprep.subr.bf16.mxu0 %v9255_v36  ;;  %1780 = vrot.lane.b32.xlu1 %v9303_v43, %s9065_s22  ;;  %v9551_v13 = vld [vmem:[%s9245_s10 + $0x30] sm:$0xff]   ;;  %v8931_v22 = vld [vmem:[%s9245_s10 + $0x60] sm:$0xff]  }
  0x3c   : > { %1849 = vrot.lane.b32.xlu0 %v9318_v45, %s9065_s22  ;;  %v8930_v19 = vld [vmem:[%s9245_s10 + $0x50] sm:$0xff]   ;;  %v9035_v31 = vld [vmem:[%s10607_s1] sm:$0xff]  }
  0x3d   : > { %v8932_v25 = vld [vmem:[%s9245_s10 + $0x70] sm:$0xff]  }
  0x3e   : > { %7960 = vmatpush3.bf16.msra.mxu0 %v9255_v36  ;;  %v9033_v29 = vld [vmem:[%s10607_s1 + $0x10] sm:$0xff]  }
  0x3f   : > { %7965 = vmatprep.subr.bf16.mxu0 %v9311_v44  ;;  %1851 = vrot.lane.b32.xlu1 %v9328_v46, %s9065_s22 }
  0x40   : > { %1920 = vrot.lane.b32.xlu0 %v9334_v47, %s9065_s22 }
  0x42   : > { %8028 = vmatmul.mubr.msk.bf16.vlgmr.msra.gmra.mrb[0].mxu1 %vm1189_vm0, %v9303_v43 }
  0x43   : > { %8032 = vmatpush3.bf16.msra.mxu1 %v9296_v42  ;;  %8033 = vmatprep.mubr.msk.bf16.mxu1 %vm1189_vm0, %v9318_v45 }
  0x44   : > { %8037 = vmatprep.subr.bf16.mxu1 %v9337_v48  ;;  %1922 = vrot.lane.b32.xlu1 %v9348_v49, %s9065_s22 }
  0x45   : > { %7962 = vmatmul.mubr.msk.bf16.vlgmr.msra.gmra.mrb[0].mxu0 %vm478_vm1, %v9270_v38  ;;  %1991 = vrot.lane.b32.xlu0 %v9356_v50, %s9065_s22 }
  0x46   : > { %7966 = vmatpush3.bf16.msra.mxu0 %v9311_v44  ;;  %7969 = vmatprep.mubr.msk.bf16.mxu0 %vm478_vm1, %v9285_v41 }
  0x47   : > { %7967 = vmatprep.subr.bf16.mxu0 %v9278_v40 }
  0x48   : > { %1993 = vrot.lane.b32.xlu1 %v9374_v52, %s9065_s22 }
  0x49   : > { %2062 = vrot.lane.b32.xlu0 %v9380_v53, %s9065_s22 }
  0x4a   : > { %7968 = vmatpush3.bf16.msra.mxu0 %v9278_v40 }
  0x4b   : > { %7973 = vmatprep.subr.bf16.mxu0 %v9364_v51 }
  0x4c   : > { %2064 = vrot.lane.b32.xlu1 %v9390_v54, %s9065_s22 }
  0x4d   : > { %2133 = vrot.lane.b32.xlu0 %v9396_v55, %s9065_s22 }
  0x4e   : > { %8034 = vmatmul.mubr.msk.bf16.vlgmr.msra.gmra.mrb[0].mxu1 %vm1189_vm0, %v9328_v46 }
  0x4f   : > { %8038 = vmatpush3.bf16.msra.mxu1 %v9337_v48  ;;  %8039 = vmatprep.mubr.msk.bf16.mxu1 %vm1189_vm0, %v9334_v47 }
  0x50   : > { %8043 = vmatprep.subr.bf16.mxu1 %v9399_v56  ;;  %2135 = vrot.lane.b32.xlu1 %v9410_v57, %s9065_s22 }
  0x51   : > { %7970 = vmatmul.mubr.msk.bf16.vlgmr.msra.gmra.mrb[0].mxu0 %vm478_vm1, %v9303_v43  ;;  %1161 = vperm.xlu0 %8891, %v1155_v62  }
  0x52   : > { %7974 = vmatpush3.bf16.msra.mxu0 %v9364_v51  ;;  %7977 = vmatprep.mubr.msk.bf16.mxu0 %vm478_vm1, %v9318_v45 }
  0x53   : > { %7975 = vmatprep.subr.bf16.mxu0 %v9296_v42 }
  0x54   : > { %1166 = vperm.xlu1 %8892, %v1156_v60  }
  0x55   : > { %1176 = vperm.xlu0 %8891, %v1158_v1  }
  0x56   : > { %7976 = vmatpush3.bf16.msra.mxu0 %v9296_v42 }
  0x57   : > { %7981 = vmatprep.subr.bf16.mxu0 %v9421_v58 }
  0x58   : > { %1171 = vperm.xlu1 %8892, %v1157_v63  }
  0x5a   : > { %8040 = vmatmul.mubr.msk.bf16.vlgmr.msra.gmra.mrb[0].mxu1 %vm1189_vm0, %v9348_v49 }
  0x5b   : > { %8044 = vmatpush3.bf16.msra.mxu1 %v9399_v56  ;;  %8045 = vmatprep.mubr.msk.bf16.mxu1 %vm1189_vm0, %v9356_v50 }
  0x5c   : > { %8049 = vmatprep.subr.bf16.mxu1 %v9429_v59 }
  0x5d   : > { %7978 = vmatmul.mubr.msk.bf16.vlgmr.msra.gmra.mrb[0].mxu0 %vm478_vm1, %v9328_v46 }
  0x5e   : > { %7982 = vmatpush3.bf16.msra.mxu0 %v9421_v58  ;;  %7985 = vmatprep.mubr.msk.bf16.mxu0 %vm478_vm1, %v9334_v47 }
  0x5f   : > { %7983 = vmatprep.subr.bf16.mxu0 %v9337_v48 }
  0x62   : > { %7984 = vmatpush3.bf16.msra.mxu0 %v9337_v48 }
  0x63   : > { %7989 = vmatprep.subr.bf16.mxu0 %v8916_v0 }
  0x66   : > { %8046 = vmatmul.mubr.msk.bf16.vlgmr.msra.gmra.mrb[0].mxu1 %vm1189_vm0, %v9374_v52 }
  0x67   : > { %8050 = vmatpush3.bf16.msra.mxu1 %v9429_v59  ;;  %8051 = vmatprep.mubr.msk.bf16.mxu1 %vm1189_vm0, %v9380_v53 }
  0x68   : > { %8055 = vmatprep.subr.bf16.mxu1 %v9459_v2 }
  0x69   : > { %7986 = vmatmul.mubr.msk.bf16.vlgmr.msra.gmra.mrb[0].mxu0 %vm478_vm1, %v9348_v49 }
  0x6a   : > { %7990 = vmatpush3.bf16.msra.mxu0 %v8916_v0  ;;  %7993 = vmatprep.mubr.msk.bf16.mxu0 %vm478_vm1, %v9356_v50 }
  0x6b   : > { %7991 = vmatprep.subr.bf16.mxu0 %v9399_v56 }
  0x6e   : > { %7992 = vmatpush3.bf16.msra.mxu0 %v9399_v56 }
  0x6f   : > { %7997 = vmatprep.subr.bf16.mxu0 %v8920_v3 }
  0x72   : > { %8052 = vmatmul.mubr.msk.bf16.vlgmr.msra.gmra.mrb[0].mxu1 %vm1189_vm0, %v9390_v54 }
  0x73   : > { %8056 = vmatpush3.bf16.msra.mxu1 %v9459_v2  ;;  %8057 = vmatprep.mubr.msk.bf16.mxu1 %vm1189_vm0, %v9396_v55 }
  0x74   : > { %8061 = vmatprep.subr.bf16.mxu1 %v9475_v4 }
  0x75   : > { %7994 = vmatmul.mubr.msk.bf16.vlgmr.msra.gmra.mrb[0].mxu0 %vm478_vm1, %v9374_v52 }
  0x76   : > { %7998 = vmatpush3.bf16.msra.mxu0 %v8920_v3  ;;  %8001 = vmatprep.mubr.msk.bf16.mxu0 %vm478_vm1, %v9380_v53 }
  0x77   : > { %7999 = vmatprep.subr.bf16.mxu0 %v9429_v59 }
  0x7a   : > { %8000 = vmatpush3.bf16.msra.mxu0 %v9429_v59 }
  0x7b   : > { %8005 = vmatprep.subr.bf16.mxu0 %v8924_v5 }
  0x7e   : > { %8058 = vmatmul.mubr.msk.bf16.vlgmr.msra.gmra.mrb[0].mxu1 %vm1189_vm0, %v9410_v57 }
  0x7f   : > { %8062 = vmatpush3.bf16.msra.mxu1 %v9475_v4 }
  0x80   : > { %8067 = vmatprep.subr.bf16.mxu1 %v9491_v6 }
  0x81   : > { %8002 = vmatmul.mubr.msk.bf16.vlgmr.msra.gmra.mrb[0].mxu0 %vm478_vm1, %v9390_v54 }
  0x82   : > { %8006 = vmatpush3.bf16.msra.mxu0 %v8924_v5  ;;  %8009 = vmatprep.mubr.msk.bf16.mxu0 %vm478_vm1, %v9396_v55 }
  0x83   : > { %8007 = vmatprep.subr.bf16.mxu0 %v9459_v2 }
  0x86   : > { %8008 = vmatpush3.bf16.msra.mxu0 %v9459_v2 }
  0x87   : > { %8013 = vmatprep.subr.bf16.mxu0 %v9263_v37 }
  0x8d   : > { %8010 = vmatmul.mubr.msk.bf16.vlgmr.msra.gmra.mrb[0].mxu0 %vm478_vm1, %v9410_v57 }
  0x8e   : > { %8014 = vmatpush3.bf16.msra.mxu0 %v9263_v37  ;;  %8015 = vmatprep.mubr.msk.bf16.mxu0 %vm1189_vm0, %v9228_v32 }
  0x8f   : > { %8109 = vmatprep.subr.bf16.mxu0 %v8916_v0 }
  0x95   : > { %8016 = vmatmul.mubr.msk.bf16.vlgmr.msra.gmra.mrb[4].mxu0 %vm1189_vm0, %v9234_v33 }
  0x96   : > { %8110 = vmatpush3.bf16.msra.mxu0 %v8916_v0  ;;  %8113 = vmatprep.mubr.msk.bf16.mxu0 %vm478_vm1, %v9228_v32  ;;  %v9036_v32 = vld [vmem:[%s10607_s1 + $0x8] sm:$0xff]  }
  0x97   : > { %8111 = vmatprep.subr.bf16.mxu0 %v9399_v56 }
  0x9a   : > { %8112 = vmatpush3.bf16.msra.mxu0 %v9399_v56 }
  0x9b   : > { %8117 = vmatprep.subr.bf16.mxu0 %v9421_v58 }
  0x9d   : > { %8114 = vmatmul.mubr.msk.bf16.vlgmr.msra.gmra.mrb[8].mxu0 %vm478_vm1, %v9234_v33  ;;  %v9037_v33 = vld [vmem:[%s9245_s10 + $0x18] sm:$0xff]  }
  0x9e   : > { %8118 = vmatpush3.bf16.msra.mxu0 %v9421_v58  ;;  %8121 = vmatprep.mubr.msk.bf16.mxu0 %vm478_vm1, %v9243_v34  ;;  %v9038_v34 = vld [vmem:[%s9245_s10 + $0x8] sm:$0xff]  }
  0x9f   : > { %8119 = vmatprep.subr.bf16.mxu0 %v9337_v48 }
  0xa0   : > { %v9521_v7 = vpop.permute.xlu0 %1646 }
  0xa1   : > { %8063 = vmatprep.mubr.msk.bf16.mxu1 %vm1189_vm0, %v9521_v7  ;;  %v9527_v8 = vpop.permute.xlu1 %1711 }
  0xa2   : > { %8120 = vmatpush3.bf16.msra.mxu0 %v9337_v48 }
  0xa3   : > { %8125 = vmatprep.subr.bf16.mxu0 %v8920_v3 }
  0xa4   : > { %v9532_v10 = vpop.permute.xlu0 %1648 }
  0xa5   : > { %8064 = vmatmul.mubr.msk.bf16.vlgmr.msra.gmra.mrb[4].mxu1 %vm1189_vm0, %v9532_v10 }
  0xa6   : > { %8068 = vmatpush3.bf16.msra.mxu1 %v9491_v6  ;;  %8069 = vmatprep.mubr.msk.bf16.mxu1 %vm1189_vm0, %v9527_v8  ;;  %v9545_v11 = vpop.permute.xlu1 %1713 }
  0xa7   : > { %8073 = vmatprep.subr.bf16.mxu1 %v9530_v9 }
  0xa9   : > { %8122 = vmatmul.mubr.msk.bf16.vlgmr.msra.gmra.mrb[8].mxu0 %vm478_vm1, %v9270_v38 }
  0xaa   : > { %8126 = vmatpush3.bf16.msra.mxu0 %v8920_v3  ;;  %8129 = vmatprep.mubr.msk.bf16.mxu0 %vm478_vm1, %v9285_v41  ;;  %v9548_v12 = vpop.permute.xlu0 %1778 }
  0xab   : > { %8127 = vmatprep.subr.bf16.mxu0 %v9429_v59 }
  0xad   : > { %v9564_v14 = vpop.permute.xlu1 %1780 }
  0xae   : > { %8128 = vmatpush3.bf16.msra.mxu0 %v9429_v59  ;;  %v9567_v15 = vpop.permute.xlu0 %1849 }
  0xaf   : > { %8133 = vmatprep.subr.bf16.mxu0 %v8924_v5 }
  0xb1   : > { %8070 = vmatmul.mubr.msk.bf16.vlgmr.msra.gmra.mrb[4].mxu1 %vm1189_vm0, %v9545_v11  ;;  %v9585_v17 = vpop.permute.xlu1 %1851 }
  0xb2   : > { %8074 = vmatpush3.bf16.msra.mxu1 %v9530_v9  ;;  %8075 = vmatprep.mubr.msk.bf16.mxu1 %vm1189_vm0, %v9548_v12  ;;  %v9589_v18 = vpop.permute.xlu0 %1920 }
  0xb3   : > { %8079 = vmatprep.subr.bf16.mxu1 %v9551_v13 }
  0xb5   : > { %8130 = vmatmul.mubr.msk.bf16.vlgmr.msra.gmra.mrb[8].mxu0 %vm478_vm1, %v9303_v43 }
  0xb6   : > { %8134 = vmatpush3.bf16.msra.mxu0 %v8924_v5  ;;  %8137 = vmatprep.mubr.msk.bf16.mxu0 %vm478_vm1, %v9318_v45  ;;  %v9605_v20 = vpop.permute.xlu1 %1922 }
  0xb7   : > { %8135 = vmatprep.subr.bf16.mxu0 %v9459_v2  ;;  %v9607_v21 = vpop.permute.xlu0 %1991 }
  0xba   : > { %8136 = vmatpush3.bf16.msra.mxu0 %v9459_v2  ;;  %v1994_v23 = vpop.permute.xlu1 %1993 }
  0xbb   : > { %8141 = vmatprep.subr.bf16.mxu0 %v9248_v35  ;;  %v9622_v24 = vpop.permute.xlu0 %2062 }
  0xbd   : > { %8076 = vmatmul.mubr.msk.bf16.vlgmr.msra.gmra.mrb[4].mxu1 %vm1189_vm0, %v9564_v14 }
  0xbe   : > { %8080 = vmatpush3.bf16.msra.mxu1 %v9551_v13  ;;  %8081 = vmatprep.mubr.msk.bf16.mxu1 %vm1189_vm0, %v9567_v15  ;;  %v9635_v26 = vpop.permute.xlu1 %2064 }
  0xbf   : > { %8085 = vmatprep.subr.bf16.mxu1 %v9570_v16  ;;  %v9639_v27 = vpop.permute.xlu0 %2133 }
  0xc1   : > { %8138 = vmatmul.mubr.msk.bf16.vlgmr.msra.gmra.mrb[8].mxu0 %vm478_vm1, %v9328_v46 }
  0xc2   : > { %8142 = vmatpush3.bf16.msra.mxu0 %v9248_v35  ;;  %8145 = vmatprep.mubr.msk.bf16.mxu0 %vm478_vm1, %v9356_v50  ;;  %v9651_v28 = vpop.permute.xlu1 %2135  ;;  %v9039_v35 = vld [vmem:[%s9245_s10 + $0x28] sm:$0xff]  }
  0xc3   : > { %8143 = vmatprep.subr.bf16.mxu0 %v9263_v37 }
  0xc6   : > { %8144 = vmatpush3.bf16.msra.mxu0 %v9263_v37 }
  0xc7   : > { %8149 = vmatprep.subr.bf16.mxu0 %v9275_v39 }
  0xc9   : > { %8082 = vmatmul.mubr.msk.bf16.vlgmr.msra.gmra.mrb[4].mxu1 %vm1189_vm0, %v9585_v17  ;;  %8146 = vmatmul.mubr.msk.bf16.vlgmr.msra.gmra.mrb[12].mxu0 %vm478_vm1, %v9374_v52 }
  0xca   : > { %8086 = vmatpush3.bf16.msra.mxu1 %v9570_v16  ;;  %8150 = vmatpush3.bf16.msra.mxu0 %v9275_v39 }
  0xcb   : > { %8087 = vmatprep.mubr.msk.bf16.mxu1 %vm1189_vm0, %v9589_v18  ;;  %8151 = vmatprep.subr.bf16.mxu0 %v9255_v36 }
  0xcc   : > { %8153 = vmatprep.mubr.msk.bf16.mxu0 %vm478_vm1, %v9334_v47  ;;  %8091 = vmatprep.subr.bf16.mxu1 %v8930_v19 }
  0xce   : > { %8152 = vmatpush3.bf16.msra.mxu0 %v9255_v36  ;;  %v9040_v36 = vld [vmem:[%s9245_s10 + $0x38] sm:$0xff]   ;;  %s9067_s10 = smov 127  }
  0xcf   : > { %8157 = vmatprep.subr.bf16.mxu0 %v9311_v44 }
  0xd5   : > { %8088 = vmatmul.mubr.msk.bf16.vlgmr.msra.gmra.mrb[4].mxu1 %vm1189_vm0, %v9605_v20  ;;  %8154 = vmatmul.mubr.msk.bf16.vlgmr.msra.gmra.mrb[12].mxu0 %vm478_vm1, %v9348_v49 }
  0xd6   : > { %8092 = vmatpush3.bf16.msra.mxu1 %v8930_v19  ;;  %8158 = vmatpush3.bf16.msra.mxu0 %v9311_v44 }
  0xd7   : > { %8093 = vmatprep.mubr.msk.bf16.mxu1 %vm1189_vm0, %v9607_v21  ;;  %8159 = vmatprep.subr.bf16.mxu0 %v9278_v40 }
  0xd8   : > { %8161 = vmatprep.mubr.msk.bf16.mxu0 %vm478_vm1, %v9380_v53  ;;  %8097 = vmatprep.subr.bf16.mxu1 %v8931_v22 }
  0xda   : > { %8160 = vmatpush3.bf16.msra.mxu0 %v9278_v40 }
  0xdb   : > { %8165 = vmatprep.subr.bf16.mxu0 %v9364_v51 }
  0xe1   : > { %8094 = vmatmul.mubr.msk.bf16.vlgmr.msra.gmra.mrb[4].mxu1 %vm1189_vm0, %v1994_v23  ;;  %8162 = vmatmul.mubr.msk.bf16.vlgmr.msra.gmra.mrb[12].mxu0 %vm478_vm1, %v9390_v54 }
  0xe2   : > { %8098 = vmatpush3.bf16.msra.mxu1 %v8931_v22  ;;  %8166 = vmatpush3.bf16.msra.mxu0 %v9364_v51 }
  0xe3   : > { %8099 = vmatprep.mubr.msk.bf16.mxu1 %vm1189_vm0, %v9622_v24  ;;  %8167 = vmatprep.subr.bf16.mxu0 %v9296_v42 }
  0xe4   : > { %8169 = vmatprep.mubr.msk.bf16.mxu0 %vm478_vm1, %v9396_v55  ;;  %8103 = vmatprep.subr.bf16.mxu1 %v8932_v25 }
  0xe6   : > { %8168 = vmatpush3.bf16.msra.mxu0 %v9296_v42  ;;  %v9744_v42 = vpop.permute.xlu0 %1161 }
  0xe7   : > { %8197 = vmatprep.subr.bf16.mxu0 %v8930_v19 }
  0xed   : > { %8100 = vmatmul.mubr.msk.bf16.vlgmr.msra.gmra.mrb[4].mxu1 %vm1189_vm0, %v9635_v26  ;;  %8170 = vmatmul.mubr.msk.bf16.vlgmr.msra.gmra.mrb[12].mxu0 %vm478_vm1, %v9410_v57 }
  0xee   : > { %8104 = vmatpush3.bf16.msra.mxu1 %v8932_v25  ;;  %8199 = vmatprep.mubr.msk.bf16.mxu0 %vm1189_vm0, %v9521_v7 }
  0xef   : > { %8198 = vmatpush3.bf16.msra.mxu0 %v8930_v19  ;;  %8105 = vmatprep.mubr.msk.bf16.mxu1 %vm1189_vm0, %v9639_v27 }
  0xf0   : > { %8173 = vmatprep.subr.bf16.mxu1 %v9399_v56  ;;  %8203 = vmatprep.subr.bf16.mxu0 %v9570_v16 }
  0xf5   : > { %8200 = vmatmul.mubr.msk.bf16.vlgmr.msra.gmra.mrb[16].mxu0 %vm1189_vm0, %v9532_v10 }
  0xf6   : > { %8205 = vmatprep.mubr.msk.bf16.mxu0 %vm1189_vm0, %v9527_v8  ;;  %8204 = vmatpush3.bf16.msra.mxu0 %v9570_v16  ;;  %v8934_v16 = vld [vmem:[%s10609_s3 + $0x60] sm:$0xff]  }
  0xf7   : > { %8209 = vmatprep.subr.bf16.mxu0 %v8931_v22 }
  0xf9   : > { %8106 = vmatmul.mubr.msk.bf16.vlgmr.msra.gmra.mrb[4].mxu1 %vm1189_vm0, %v9651_v28 }
  0xfa   : > { %8174 = vmatpush3.bf16.msra.mxu1 %v9399_v56  ;;  %8175 = vmatprep.mubr.msk.bf16.mxu1 %vm1189_vm0, %v9033_v29 }
  0xfb   : > { %8179 = vmatprep.subr.bf16.mxu1 %v9337_v48 }
 0x101   : > { %8176 = vmatmul.mubr.msk.bf16.vlgmr.msra.gmra.mrb[8].mxu1 %vm1189_vm0, %v9034_v30  ;;  %8206 = vmatmul.mubr.msk.bf16.vlgmr.msra.gmra.mrb[16].mxu0 %vm1189_vm0, %v9545_v11 }
 0x102   : > { %8180 = vmatpush3.bf16.msra.mxu1 %v9337_v48  ;;  %8211 = vmatprep.mubr.msk.bf16.mxu0 %vm1189_vm0, %v9548_v12 }
 0x103   : > { %8210 = vmatpush3.bf16.msra.mxu0 %v8931_v22  ;;  %8181 = vmatprep.mubr.msk.bf16.mxu1 %vm1189_vm0, %v9035_v31 }
 0x104   : > { %8185 = vmatprep.subr.bf16.mxu1 %v9429_v59  ;;  %8215 = vmatprep.subr.bf16.mxu0 %v8932_v25 }
 0x10d   : > { %8182 = vmatmul.mubr.msk.bf16.vlgmr.msra.gmra.mrb[8].mxu1 %vm1189_vm0, %v9036_v32  ;;  %8212 = vmatmul.mubr.msk.bf16.vlgmr.msra.gmra.mrb[16].mxu0 %vm1189_vm0, %v9564_v14 }
 0x10e   : > { %8186 = vmatpush3.bf16.msra.mxu1 %v9429_v59  ;;  %8217 = vmatprep.mubr.msk.bf16.mxu0 %vm1189_vm0, %v9567_v15  ;;  %v8933_v15 = vld [vmem:[%s10609_s3 + $0x20] sm:$0xff]  }
 0x10f   : > { %8216 = vmatpush3.bf16.msra.mxu0 %v8932_v25  ;;  %8187 = vmatprep.mubr.msk.bf16.mxu1 %vm1189_vm0, %v9285_v41  ;;  %v9742_v41 = vpop.permute.xlu1 %1166 }
 0x110   : > { %8245 = vmatprep.subr.bf16.mxu0 %v9475_v4  ;;  %8191 = vmatprep.subr.bf16.mxu1 %v9459_v2 }
 0x119   : > { %8188 = vmatmul.mubr.msk.bf16.vlgmr.msra.gmra.mrb[8].mxu1 %vm1189_vm0, %v9303_v43  ;;  %8218 = vmatmul.mubr.msk.bf16.vlgmr.msra.gmra.mrb[16].mxu0 %vm1189_vm0, %v9585_v17  ;;  %v9746_v43 = vpop.permute.xlu1 %1171 }
 0x11a   : > { %8192 = vmatpush3.bf16.msra.mxu1 %v9459_v2  ;;  %8247 = vmatprep.mubr.msk.bf16.mxu0 %vm1189_vm0, %v9607_v21 }
 0x11b   : > { %8246 = vmatpush3.bf16.msra.mxu0 %v9475_v4  ;;  %8193 = vmatprep.mubr.msk.bf16.mxu1 %vm1189_vm0, %v9318_v45  ;;  %v9748_v45 = vpop.permute.xlu0 %1176 }
 0x11c   : > { %8221 = vmatprep.subr.bf16.mxu1 %v9037_v33  ;;  %8251 = vmatprep.subr.bf16.mxu0 %v9491_v6 }
 0x121   : > { %8248 = vmatmul.mubr.msk.bf16.vlgmr.msra.gmra.mrb[20].mxu0 %vm1189_vm0, %v1994_v23 }
 0x122   : > { %8253 = vmatprep.mubr.msk.bf16.mxu0 %vm1189_vm0, %v9589_v18  ;;  %8252 = vmatpush3.bf16.msra.mxu0 %v9491_v6 }
 0x123   : > { %8257 = vmatprep.subr.bf16.mxu0 %v9530_v9 }
 0x125   : > { %8194 = vmatmul.mubr.msk.bf16.vlgmr.msra.gmra.mrb[8].mxu1 %vm1189_vm0, %v9328_v46 }
 0x126   : > { %8222 = vmatpush3.bf16.msra.mxu1 %v9037_v33  ;;  %8223 = vmatprep.mubr.msk.bf16.mxu1 %vm1189_vm0, %v9356_v50  ;;  %v5451_v33 = vld [vmem:[%s10610_s4] sm:$0xff] }
 0x127   : > { %8227 = vmatprep.subr.bf16.mxu1 %v9038_v34 }
 0x12d   : > { %8224 = vmatmul.mubr.msk.bf16.vlgmr.msra.gmra.mrb[12].mxu1 %vm1189_vm0, %v9374_v52  ;;  %8254 = vmatmul.mubr.msk.bf16.vlgmr.msra.gmra.mrb[20].mxu0 %vm1189_vm0, %v9605_v20 }
 0x12e   : > { %8228 = vmatpush3.bf16.msra.mxu1 %v9038_v34  ;;  %8259 = vmatprep.mubr.msk.bf16.mxu0 %vm1189_vm0, %v9622_v24  ;;  %v5452_v34 = vld [vmem:[%s10610_s4 + $0x8] sm:$0xff] }
 0x12f   : > { %8258 = vmatpush3.bf16.msra.mxu0 %v9530_v9  ;;  %8229 = vmatprep.mubr.msk.bf16.mxu1 %vm1189_vm0, %v9334_v47 }
 0x130   : > { %8233 = vmatprep.subr.bf16.mxu1 %v9039_v35  ;;  %8263 = vmatprep.subr.bf16.mxu0 %v9551_v13 }
 0x139   : > { %8230 = vmatmul.mubr.msk.bf16.vlgmr.msra.gmra.mrb[12].mxu1 %vm1189_vm0, %v9348_v49  ;;  %8260 = vmatmul.mubr.msk.bf16.vlgmr.msra.gmra.mrb[20].mxu0 %vm1189_vm0, %v9635_v26 }
 0x13a   : > { %8234 = vmatpush3.bf16.msra.mxu1 %v9039_v35  ;;  %8265 = vmatprep.mubr.msk.bf16.mxu0 %vm1189_vm0, %v9639_v27  ;;  %v5453_v35 = vld [vmem:[%s10610_s4 + $0x10] sm:$0xff] }
 0x13b   : > { %8264 = vmatpush3.bf16.msra.mxu0 %v9551_v13  ;;  %8235 = vmatprep.mubr.msk.bf16.mxu1 %vm1189_vm0, %v9380_v53 }
 0x13c   : > { %8239 = vmatprep.subr.bf16.mxu1 %v9040_v36 }
 0x145   : > { %8236 = vmatmul.mubr.msk.bf16.vlgmr.msra.gmra.mrb[12].mxu1 %vm1189_vm0, %v9390_v54  ;;  %8266 = vmatmul.mubr.msk.bf16.vlgmr.msra.gmra.mrb[20].mxu0 %vm1189_vm0, %v9651_v28 }
 0x146   : > { %8240 = vmatpush3.bf16.msra.mxu1 %v9040_v36  ;;  %8241 = vmatprep.mubr.msk.bf16.mxu1 %vm1189_vm0, %v9396_v55  ;;  %v5454_v36 = vld [vmem:[%s10610_s4 + $0x18] sm:$0xff] }
 0x147   : > { %8321 = vmatprep.mubr.msk.bf16.mxu0 %vm478_vm1, %v8934_v16  ;;  %v8935_v16 = vld [vmem:[%s10609_s3 + $0x28] sm:$0xff]  }
 0x151   : > { %8242 = vmatmul.mubr.msk.bf16.vlgmr.msra.gmra.mrb[12].mxu1 %vm1189_vm0, %v9410_v57  ;;  %v8059_v37 = vpop.f32.mrb[0].mxu1 }
 0x152   : > { %v1619_v38 = vpop.f32.mrb[1].mxu1  ;;  %8273 = vmatprep.mubr.msk.bf16.mxu1 %vm478_vm1, %v8933_v15 }
 0x153   : > { %v8060_v39 = vpop.f32.mrb[2].mxu1 }
 0x154   : > { %v1622_v40 = vpop.f32.mrb[3].mxu1 }
 0x160   : > { %v8011_v44 = vpop.f32.mrb[0].mxu0 }
 0x161   : > { %v1181_v46 = vadd.f32 %v8011_v44, %v9746_v43  ;;  %v1132_v47 = vpop.f32.mrb[1].mxu0 }
 0x162   : > { %v1179_v48 = vadd.f32 %v9744_v42, %v1132_v47  ;;  %v8012_v49 = vpop.f32.mrb[2].mxu0 }
 0x163   : > { %v1182_v50 = vadd.f32 %v8012_v49, %v9748_v45  ;;  %v1135_v51 = vpop.f32.mrb[3].mxu0  ;;  %v1185_v53 = vmax.f32 %v1181_v46, 0.0 }
 0x164   : > { %v1180_v52 = vadd.f32 %v9742_v41, %v1135_v51  ;;  %v1183_v55 = vmax.f32 %v1179_v48, 0.0 }
 0x165   : > { %v1186_v54 = vmax.f32 %v1182_v50, 0.0 }
 0x166   : > { %v1184_v56 = vmax.f32 %v1180_v52, 0.0 }
 0x167   : > { %v9754_v57 = vpack.c.bf16 %v1186_v54, %v1185_v53 }
 0x168   : > { %v9756_v58 = vpack.c.bf16 %v1184_v56, %v1183_v55  ;;  %v8017_v59 = vpop.f32.mrb[4].mxu0 }
 0x169   : > { %v9758_v60 = vadd.f32 %v8059_v37, %v8017_v59  ;;  %v1228_v61 = vpop.f32.mrb[5].mxu0  ;;  %v5455_v37 = vld [vmem:[%s10610_s4 + $0x20] sm:$0xff] }
 0x16a   : > { %v9760_v62 = vadd.f32 %v1619_v38, %v1228_v61  ;;  %v8018_v63 = vpop.f32.mrb[6].mxu0  ;;  %v5456_v38 = vld [vmem:[%s10610_s4 + $0x28] sm:$0xff] }
 0x16b   : > { %v9762_v0 = vadd.f32 %v8060_v39, %v8018_v63  ;;  %v1231_v1 = vpop.f32.mrb[7].mxu0  ;;  %v5457_v39 = vld [vmem:[%s10610_s4 + $0x30] sm:$0xff] }
 0x16c   : > { %v9764_v2 = vadd.f32 %v1622_v40, %v1231_v1  ;;  %v5458_v40 = vld [vmem:[%s10610_s4 + $0x38] sm:$0xff] }
 0x194   : > { %v9766_v3 = vpop.f32.mrb[8].mxu0 }
 0x195   : > { %v9768_v4 = vpop.f32.mrb[9].mxu0 }
 0x196   : > { %v9770_v5 = vpop.f32.mrb[10].mxu0 }
 0x197   : > { %v9772_v6 = vpop.f32.mrb[11].mxu0 }
 0x1c0   : > { %v8171_v7 = vpop.f32.mrb[12].mxu0 }
 0x1c1   : > { %v2625_v8 = vpop.f32.mrb[13].mxu0 }
 0x1c2   : > { %v8172_v9 = vpop.f32.mrb[14].mxu0 }
 0x1c3   : > { %v2628_v10 = vpop.f32.mrb[15].mxu0 }
 0x1cc   : > { %v8107_v11 = vpop.f32.mrb[4].mxu1 }
 0x1cd   : > { %v2183_v12 = vpop.f32.mrb[5].mxu1 }
 0x1ce   : > { %2206 = vrot.lane.b32.xlu1 %v2183_v12, %s9067_s10  ;;  %v8108_v13 = vpop.f32.mrb[6].mxu1 }
 0x1cf   : > { %v2186_v14 = vpop.f32.mrb[7].mxu1 }
 0x1d0   : > { %2208 = vrot.lane.b32.xlu0 %v2186_v14, %s9067_s10 }
 0x1d2   : > { %2210 = vrot.lane.b32.xlu1 %v8107_v11, %s9067_s10 }
 0x1d4   : > { %2212 = vrot.lane.b32.xlu0 %v8108_v13, %s9067_s10 }
 0x1d6   : > { %2648 = vrot.lane.b32.xlu1 %v2625_v8, %s9068_s16 }
 0x1d8   : > { %2650 = vrot.lane.b32.xlu0 %v2628_v10, %s9068_s16 }
 0x1da   : > { %2652 = vrot.lane.b32.xlu1 %v8171_v7, %s9068_s16 }
 0x1dc   : > { %2654 = vrot.lane.b32.xlu0 %v8172_v9, %s9068_s16 }
 0x1ec   : > { %v8219_v17 = vpop.f32.mrb[16].mxu0 }
 0x1ed   : > { %3094 = vrot.lane.b32.xlu1 %v8219_v17, %s9067_s10  ;;  %v3067_v18 = vpop.f32.mrb[17].mxu0  ;;  %v8936_v17 = vld [vmem:[%s10609_s3 + $0x68] sm:$0xff]  }
 0x1ee   : > { %v8220_v19 = vpop.f32.mrb[18].mxu0 }
 0x1ef   : > { %3096 = vrot.lane.b32.xlu0 %v8220_v19, %s9067_s10  ;;  %v3070_v20 = vpop.f32.mrb[19].mxu0  ;;  %v8938_v19 = vld [vmem:[%s10609_s3 + $0x70] sm:$0xff]  }
 0x1f1   : > { %3090 = vrot.lane.b32.xlu1 %v3067_v18, %s9067_s10  ;;  %v8937_v18 = vld [vmem:[%s10609_s3 + $0x30] sm:$0xff]  }
 0x1f3   : > { %3092 = vrot.lane.b32.xlu0 %v3070_v20, %s9067_s10 }
 0x1f8   : > { %v9794_v21 = vpop.f32.mrb[8].mxu1 }
 0x1f9   : > { %v9796_v22 = vpop.f32.mrb[9].mxu1 }
 0x1fa   : > { %v9798_v23 = vpop.f32.mrb[10].mxu1 }
 0x1fb   : > { %v9800_v24 = vpop.f32.mrb[11].mxu1 }
 0x218   : > { %v8267_v25 = vpop.f32.mrb[20].mxu0 }
 0x219   : > { %v3515_v26 = vpop.f32.mrb[21].mxu0 }
 0x21a   : > { %3538 = vrot.lane.b32.xlu1 %v3515_v26, %s9069_s17  ;;  %v8268_v27 = vpop.f32.mrb[22].mxu0 }
 0x21b   : > { %v3518_v28 = vpop.f32.mrb[23].mxu0 }
 0x21c   : > { %3540 = vrot.lane.b32.xlu0 %v3518_v28, %s9069_s17  ;;  %v8940_v28 = vld [vmem:[%s10609_s3 + $0x78] sm:$0xff]  }
 0x224   : > { %v8243_v29 = vpop.f32.mrb[12].mxu1 }
 0x225   : > { %v3291_v30 = vpop.f32.mrb[13].mxu1 }
 0x226   : > { %v8244_v31 = vpop.f32.mrb[14].mxu1  ;;  %3314 = vrot.lane.b32.xlu1 %v3291_v30, %s9068_s16  ;;  %v8942_v30 = vld [vmem:[%s10609_s3 + $0x40] sm:$0xff]  }
 0x227   : > { %v3294_v32 = vpop.f32.mrb[15].mxu1 }
 0x228   : > { %3316 = vrot.lane.b32.xlu0 %v3294_v32, %s9068_s16  ;;  %v8944_v32 = vld [vmem:[%s10609_s3 + $0x48] sm:$0xff]  }
 0x22a   : > { %3318 = vrot.lane.b32.xlu1 %v8243_v29, %s9068_s16  ;;  %v8941_v29 = vld [vmem:[%s10609_s3] sm:$0xff]  }
 0x22c   : > { %3320 = vrot.lane.b32.xlu0 %v8244_v31, %s9068_s16  ;;  %v8943_v31 = vld [vmem:[%s10609_s3 + $0x8] sm:$0xff]  }
 0x22e   : > { %3542 = vrot.lane.b32.xlu1 %v8267_v25, %s9069_s17 }
 0x230   : > { %3544 = vrot.lane.b32.xlu0 %v8268_v27, %s9069_s17  ;;  %v8939_v27 = vld [vmem:[%s10609_s3 + $0x38] sm:$0xff]  }
 0x232   : > { %5461 = vperm.xlu1 %8892, %v5451_v33   ;;  %v8945_v33 = vld [vmem:[%s10609_s3 + $0x10] sm:$0xff]  }
 0x234   : > { %5466 = vperm.xlu0 %8891, %v5452_v34   ;;  %v8946_v34 = vld [vmem:[%s10609_s3 + $0x50] sm:$0xff]  }
 0x236   : > { %5471 = vperm.xlu1 %8892, %v5453_v35   ;;  %v8947_v35 = vld [vmem:[%s10609_s3 + $0x18] sm:$0xff]  }
 0x238   : > { %5476 = vperm.xlu0 %8891, %v5454_v36   ;;  %v8948_v36 = vld [vmem:[%s10609_s3 + $0x58] sm:$0xff]  }
 0x23a   : > { %5481 = vperm.xlu1 %8892, %v5455_v37   ;;  %v8949_v37 = vld [vmem:[%s10609_s3 + $0x80] sm:$0xff]  }
 0x23c   : > { %5486 = vperm.xlu0 %8891, %v5456_v38   ;;  %v8950_v38 = vld [vmem:[%s10609_s3 + $0xc0] sm:$0xff]  }
 0x23e   : > { %5491 = vperm.xlu1 %8892, %v5457_v39   ;;  %v8951_v39 = vld [vmem:[%s10609_s3 + $0x88] sm:$0xff]  }
 0x240   : > { %v2207_v44 = vpop.permute.xlu1 %2206  ;;  %5496 = vperm.xlu0 %8891, %v5458_v40   ;;  %v8952_v40 = vld [vmem:[%s10609_s3 + $0xc8] sm:$0xff]  }
 0x241   : > { %v2218_v46 = vadd.f32 %v9760_v62, %v2207_v44  ;;  %v8953_v44 = vld [vmem:[%s10609_s3 + $0x90] sm:$0xff]  }
 0x242   : > { %v2209_v47 = vpop.permute.xlu0 %2208 }
 0x243   : > { %v2222_v48 = vadd.f32 %v2218_v46, %v9744_v42  ;;  %v2219_v49 = vadd.f32 %v9764_v2, %v2209_v47  ;;  %v8954_v46 = vld [vmem:[%s10609_s3 + $0xd0] sm:$0xff]   ;;  %v8955_v47 = vld [vmem:[%s10609_s3 + $0x98] sm:$0xff]  }
 0x244   : > { %v2211_v50 = vpop.permute.xlu1 %2210 }
 0x245   : > { %v2223_v51 = vadd.f32 %v2219_v49, %v9742_v41  ;;  %v2220_v52 = vadd.f32 %v9758_v60, %v2211_v50  ;;  %v2226_v54 = vmax.f32 %v2222_v48, 0.0  ;;  %v8956_v48 = vld [vmem:[%s10609_s3 + $0xd8] sm:$0xff]   ;;  %v8957_v49 = vld [vmem:[%s10609_s3 + $0xa0] sm:$0xff]  }
 0x246   : > { %v2213_v53 = vpop.permute.xlu0 %2212  ;;  %v8958_v50 = vld [vmem:[%s10609_s3 + $0xe0] sm:$0xff]  }
 0x247   : > { %v2227_v55 = vmax.f32 %v2223_v51, 0.0  ;;  %v2224_v56 = vadd.f32 %v2220_v52, %v9746_v43  ;;  %v2221_v59 = vadd.f32 %v9762_v0, %v2213_v53 }
 0x248   : > { %v2649_v61 = vpop.permute.xlu1 %2648 }
 0x249   : > { %v9841_v63 = vpack.c.bf16 %v2227_v55, %v2226_v54  ;;  %v2225_v62 = vadd.f32 %v2221_v59, %v9748_v45  ;;  %v2660_v1 = vadd.f32 %v2649_v61, %v9768_v4  ;;  %v2228_v7 = vmax.f32 %v2224_v56, 0.0 }
 0x24a   : > { %v2651_v2 = vpop.permute.xlu0 %2650 }
 0x24b   : > { %v2229_v8 = vmax.f32 %v2225_v62, 0.0  ;;  %v2664_v9 = vadd.f32 %v2660_v1, %v9744_v42  ;;  %v2661_v60 = vadd.f32 %v2651_v2, %v9772_v6  ;;  %8269 = vmatprep.subr.bf16.mxu1 %v9841_v63  ;;  %8317 = vmatprep.subr.bf16.mxu0 %v9841_v63 }
 0x24c   : > { %v2653_v10 = vpop.permute.xlu1 %2652  ;;  %8270 = vmatpush3.bf16.msra.mxu1 %v9841_v63  ;;  %8318 = vmatpush3.bf16.msra.mxu0 %v9841_v63 }
 0x24d   : > { %v9851_v0 = vpack.c.bf16 %v2229_v8, %v2228_v7  ;;  %v2665_v4 = vadd.f32 %v2661_v60, %v9742_v41  ;;  %v2662_v11 = vadd.f32 %v9766_v3, %v2653_v10  ;;  %v2668_v13 = vmax.f32 %v2664_v9, 0.0 }
 0x24e   : > { %v2655_v12 = vpop.permute.xlu0 %2654 }
 0x24f   : > { %v2669_v14 = vmax.f32 %v2665_v4, 0.0  ;;  %v2666_v6 = vadd.f32 %v2662_v11, %v9746_v43  ;;  %v2663_v15 = vadd.f32 %v9770_v5, %v2655_v12  ;;  %8271 = vmatprep.subr.bf16.mxu1 %v9851_v0  ;;  %8319 = vmatprep.subr.bf16.mxu0 %v9851_v0 }
 0x250   : > { %8272 = vmatpush3.bf16.msra.mxu1 %v9851_v0  ;;  %8320 = vmatpush3.bf16.msra.mxu0 %v9851_v0 }
 0x251   : > { %v9867_v3 = vpack.c.bf16 %v2669_v14, %v2668_v13  ;;  %v2667_v5 = vadd.f32 %v2663_v15, %v9748_v45  ;;  %8281 = vmatprep.subr.bf16.mxu1 %v9756_v58  ;;  %8329 = vmatprep.subr.bf16.mxu0 %v9756_v58  ;;  %v2670_v20 = vmax.f32 %v2666_v6, 0.0 }
 0x253   : > { %v2671_v25 = vmax.f32 %v2667_v5, 0.0  ;;  %8274 = vmatmul.mubr.msk.bf16.vlgmr.msra.gmra.mrb[16].mxu1 %vm478_vm1, %v8935_v16  ;;  %8322 = vmatmul.mubr.msk.bf16.vlgmr.msra.gmra.mrb[24].mxu0 %vm478_vm1, %v8936_v17 }
 0x254   : > { %8282 = vmatpush3.bf16.msra.mxu1 %v9756_v58  ;;  %8330 = vmatpush3.bf16.msra.mxu0 %v9756_v58 }
 0x255   : > { %v9882_v26 = vpack.c.bf16 %v2671_v25, %v2670_v20  ;;  %8283 = vmatprep.subr.bf16.mxu1 %v9754_v57  ;;  %8331 = vmatprep.subr.bf16.mxu0 %v9754_v57  ;;  %v8961_v20 = vld [vmem:[%s10609_s3 + $0xb0] sm:$0xff]  }
 0x256   : > { %8277 = vmatprep.mubr.msk.bf16.mxu1 %vm478_vm1, %v8937_v18  ;;  %8325 = vmatprep.mubr.msk.bf16.mxu0 %vm478_vm1, %v8938_v19  ;;  %v8962_v25 = vld [vmem:[%s10609_s3 + $0xf0] sm:$0xff]  }
 0x258   : > { %8284 = vmatpush3.bf16.msra.mxu1 %v9754_v57  ;;  %8332 = vmatpush3.bf16.msra.mxu0 %v9754_v57 }
 0x259   : > { %8293 = vmatprep.subr.bf16.mxu1 %v9867_v3  ;;  %8341 = vmatprep.subr.bf16.mxu0 %v9867_v3 }
 0x25b   : > { %8278 = vmatmul.mubr.msk.bf16.gmra.mrb[20].mxu1 %vm478_vm1, %v8939_v27  ;;  %8326 = vmatmul.mubr.msk.bf16.gmra.mrb[28].mxu0 %vm478_vm1, %v8940_v28  ;;  %v8963_v27 = vld [vmem:[%s10609_s3 + $0xb8] sm:$0xff]  }
 0x25c   : > { %8285 = vmatprep.mubr.msk.bf16.mxu1 %vm478_vm1, %v8941_v29  ;;  %8333 = vmatprep.mubr.msk.bf16.mxu0 %vm478_vm1, %v8942_v30  ;;  %v8964_v28 = vld [vmem:[%s10609_s3 + $0xf8] sm:$0xff]   ;;  %v8966_v29 = vld [vmem:[%s10609_s3 + $0x160] sm:$0xff]   ;;  %v8968_v30 = vld [vmem:[%s10609_s3 + $0x168] sm:$0xff]  }
 0x25f   : > { %v3095_v51 = vpop.permute.xlu1 %3094 }
 0x260   : > { %v3104_v60 = vadd.f32 %v9794_v21, %v3095_v51  ;;  %v8989_v51 = vld [vmem:[%s10609_s3 + $0x1a0] sm:$0xff]  }
 0x261   : > { %v3097_v52 = vpop.permute.xlu0 %3096 }
 0x262   : > { %v3105_v12 = vadd.f32 %v9798_v23, %v3097_v52  ;;  %v8990_v52 = vld [vmem:[%s10609_s3 + $0x1e0] sm:$0xff]  }
 0x263   : > { %8286 = vmatmul.mubr.msk.bf16.vlgmr.msra.gmra.mrb[16].mxu1 %vm478_vm1, %v8943_v31  ;;  %8334 = vmatmul.mubr.msk.bf16.vlgmr.msra.gmra.mrb[24].mxu0 %vm478_vm1, %v8944_v32  ;;  %v3091_v53 = vpop.permute.xlu1 %3090  ;;  %v8969_v31 = vld [vmem:[%s10609_s3 + $0x130] sm:$0xff]  }
 0x264   : > { %8294 = vmatpush3.bf16.msra.mxu1 %v9867_v3  ;;  %8342 = vmatpush3.bf16.msra.mxu0 %v9867_v3  ;;  %v3102_v59 = vadd.f32 %v3091_v53, %v9796_v22  ;;  %v8970_v32 = vld [vmem:[%s10609_s3 + $0x170] sm:$0xff]   ;;  %v8991_v53 = vld [vmem:[%s10609_s3 + $0x1a8] sm:$0xff]  }
 0x265   : > { %8295 = vmatprep.subr.bf16.mxu1 %v9882_v26  ;;  %8343 = vmatprep.subr.bf16.mxu0 %v9882_v26  ;;  %v3093_v54 = vpop.permute.xlu0 %3092 }
 0x266   : > { %8289 = vmatprep.mubr.msk.bf16.mxu1 %vm478_vm1, %v8945_v33  ;;  %8337 = vmatprep.mubr.msk.bf16.mxu0 %vm478_vm1, %v8946_v34  ;;  %v3103_v62 = vadd.f32 %v3093_v54, %v9800_v24  ;;  %v8971_v33 = vld [vmem:[%s10609_s3 + $0x138] sm:$0xff]   ;;  %v8992_v54 = vld [vmem:[%s10609_s3 + $0x1e8] sm:$0xff]  }
 0x267   : > { %v8972_v34 = vld [vmem:[%s10609_s3 + $0x178] sm:$0xff]  }
 0x268   : > { %8296 = vmatpush3.bf16.msra.mxu1 %v9882_v26  ;;  %8344 = vmatpush3.bf16.msra.mxu0 %v9882_v26 }
 0x26b   : > { %8290 = vmatmul.mubr.msk.bf16.gmra.mrb[20].mxu1 %vm478_vm1, %v8947_v35  ;;  %8338 = vmatmul.mubr.msk.bf16.gmra.mrb[28].mxu0 %vm478_vm1, %v8948_v36  ;;  %v8974_v35 = vld [vmem:[%s10609_s3 + $0x140] sm:$0xff]   ;;  %v8976_v36 = vld [vmem:[%s10609_s3 + $0x148] sm:$0xff]  }
 0x26c   : > { %8297 = vmatprep.mubr.msk.bf16.mxu1 %vm478_vm1, %v8949_v37  ;;  %8345 = vmatprep.mubr.msk.bf16.mxu0 %vm478_vm1, %v8950_v38  ;;  %v8977_v37 = vld [vmem:[%s10609_s3 + $0x110] sm:$0xff]  }
 0x26d   : > { %v8978_v38 = vld [vmem:[%s10609_s3 + $0x150] sm:$0xff]  }
 0x273   : > { %8298 = vmatmul.mubr.msk.bf16.vlgmr.msra.gmra.mrb[16].mxu1 %vm478_vm1, %v8951_v39  ;;  %8346 = vmatmul.mubr.msk.bf16.vlgmr.msra.gmra.mrb[24].mxu0 %vm478_vm1, %v8952_v40  ;;  %v8979_v39 = vld [vmem:[%s10609_s3 + $0x118] sm:$0xff]  }
 0x274   : > { %8301 = vmatprep.mubr.msk.bf16.mxu1 %vm478_vm1, %v8953_v44  ;;  %8349 = vmatprep.mubr.msk.bf16.mxu0 %vm478_vm1, %v8954_v46  ;;  %v8980_v40 = vld [vmem:[%s10609_s3 + $0x158] sm:$0xff]   ;;  %v8982_v44 = vld [vmem:[%s10609_s3 + $0x1c0] sm:$0xff]   ;;  %v8984_v46 = vld [vmem:[%s10609_s3 + $0x1c8] sm:$0xff]  }
 0x27b   : > { %8302 = vmatmul.mubr.msk.bf16.gmra.mrb[20].mxu1 %vm478_vm1, %v8955_v47  ;;  %8350 = vmatmul.mubr.msk.bf16.gmra.mrb[28].mxu0 %vm478_vm1, %v8956_v48  ;;  %v8985_v47 = vld [vmem:[%s10609_s3 + $0x190] sm:$0xff]  }
 0x27c   : > { %8309 = vmatprep.mubr.msk.bf16.mxu1 %vm478_vm1, %v8957_v49  ;;  %8357 = vmatprep.mubr.msk.bf16.mxu0 %vm478_vm1, %v8958_v50  ;;  %v8986_v48 = vld [vmem:[%s10609_s3 + $0x1d0] sm:$0xff]   ;;  %v8987_v49 = vld [vmem:[%s10609_s3 + $0x198] sm:$0xff]  }
 0x27d   : > { %v8988_v50 = vld [vmem:[%s10609_s3 + $0x1d8] sm:$0xff]  }
 0x28c   : > { %v3539_v55 = vpop.permute.xlu1 %3538 }
 0x28e   : > { %v3541_v56 = vpop.permute.xlu0 %3540 }
 0x298   : > { %v3315_v61 = vpop.permute.xlu1 %3314 }
 0x299   : > { %v3326_v1 = vadd.f32 %v3315_v61, %v3102_v59  ;;  %v8995_v59 = vld [vmem:[%s10609_s3 + $0x1b8] sm:$0xff]  }
 0x29a   : > { %v3317_v2 = vpop.permute.xlu0 %3316  ;;  %v8996_v61 = vld [vmem:[%s10609_s3 + $0x1f8] sm:$0xff]  }
 0x29b   : > { %v3550_v7 = vadd.f32 %v3539_v55, %v3326_v1  ;;  %v3327_v8 = vadd.f32 %v3317_v2, %v3103_v62  ;;  %v8993_v55 = vld [vmem:[%s10609_s3 + $0x1b0] sm:$0xff]  }
 0x29c   : > { %v3319_v9 = vpop.permute.xlu1 %3318 }
 0x29d   : > { %v3554_v10 = vadd.f32 %v3550_v7, %v9744_v42  ;;  %v3551_v4 = vadd.f32 %v3541_v56, %v3327_v8  ;;  %v3328_v14 = vadd.f32 %v3319_v9, %v3104_v60  ;;  %v8994_v56 = vld [vmem:[%s10609_s3 + $0x1f0] sm:$0xff]  }
 0x29e   : > { %v3321_v11 = vpop.permute.xlu0 %3320 }
 0x29f   : > { %v3555_v13 = vadd.f32 %v3551_v4, %v9742_v41  ;;  %v3558_v6 = vmax.f32 %v3554_v10, 0.0  ;;  %v3329_v24 = vadd.f32 %v3321_v11, %v3105_v12 }
 0x2a0   : > { %v3543_v22 = vpop.permute.xlu1 %3542 }
 0x2a1   : > { %v3559_v15 = vmax.f32 %v3555_v13, 0.0  ;;  %v3552_v16 = vadd.f32 %v3543_v22, %v3328_v14 }
 0x2a2   : > { %v3545_v17 = vpop.permute.xlu0 %3544 }
 0x2a3   : > { %v9984_v5 = vpack.c.bf16 %v3559_v15, %v3558_v6  ;;  %v3556_v18 = vadd.f32 %v3552_v16, %v9746_v43  ;;  %v3553_v21 = vadd.f32 %v3545_v17, %v3329_v24  ;;  %v8959_v43 = vld [vmem:[%s10609_s3 + $0xa8] sm:$0xff]  }
 0x2a5   : > { %v3557_v42 = vadd.f32 %v3553_v21, %v9748_v45  ;;  %8305 = vmatprep.subr.bf16.mxu1 %v9984_v5  ;;  %8353 = vmatprep.subr.bf16.mxu0 %v9984_v5  ;;  %v3560_v41 = vmax.f32 %v3556_v18, 0.0  ;;  %v8960_v45 = vld [vmem:[%s10609_s3 + $0xe8] sm:$0xff]  }
 0x2a6   : > { %8306 = vmatpush3.bf16.msra.mxu1 %v9984_v5  ;;  %8354 = vmatpush3.bf16.msra.mxu0 %v9984_v5 }
 0x2a7   : > { %v3561_v23 = vmax.f32 %v3557_v42, 0.0 }
 0x2a9   : > { %v9992_v19 = vpack.c.bf16 %v3561_v23, %v3560_v41 }
 0x2ab   : > { %8307 = vmatprep.subr.bf16.mxu1 %v9992_v19  ;;  %8355 = vmatprep.subr.bf16.mxu0 %v9992_v19 }
 0x2ac   : > { %8308 = vmatpush3.bf16.msra.mxu1 %v9992_v19  ;;  %8356 = vmatpush3.bf16.msra.mxu0 %v9992_v19 }
 0x2ad   : > { %8365 = vmatprep.subr.bf16.mxu1 %v9841_v63  ;;  %8413 = vmatprep.subr.bf16.mxu0 %v9841_v63 }
 0x2af   : > { %8310 = vmatmul.mubr.msk.bf16.vlgmr.msra.gmra.mrb[16].mxu1 %vm478_vm1, %v8959_v43  ;;  %8358 = vmatmul.mubr.msk.bf16.vlgmr.msra.gmra.mrb[24].mxu0 %vm478_vm1, %v8960_v45 }
 0x2b0   : > { %8366 = vmatpush3.bf16.msra.mxu1 %v9841_v63  ;;  %8414 = vmatpush3.bf16.msra.mxu0 %v9841_v63  ;;  %v8965_v63 = vld [vmem:[%s10609_s3 + $0x120] sm:$0xff]  }
 0x2b1   : > { %8367 = vmatprep.subr.bf16.mxu1 %v9851_v0  ;;  %8415 = vmatprep.subr.bf16.mxu0 %v9851_v0 }
 0x2b2   : > { %8313 = vmatprep.mubr.msk.bf16.mxu1 %vm478_vm1, %v8961_v20  ;;  %8361 = vmatprep.mubr.msk.bf16.mxu0 %vm478_vm1, %v8962_v25 }
 0x2b4   : > { %8368 = vmatpush3.bf16.msra.mxu1 %v9851_v0  ;;  %8416 = vmatpush3.bf16.msra.mxu0 %v9851_v0  ;;  %v8967_v0 = vld [vmem:[%s10609_s3 + $0x128] sm:$0xff]  }
 0x2b5   : > { %8377 = vmatprep.subr.bf16.mxu1 %v9756_v58  ;;  %8425 = vmatprep.subr.bf16.mxu0 %v9756_v58 }
 0x2b7   : > { %8314 = vmatmul.mubr.msk.bf16.gmra.mrb[20].mxu1 %vm478_vm1, %v8963_v27  ;;  %8362 = vmatmul.mubr.msk.bf16.gmra.mrb[28].mxu0 %vm478_vm1, %v8964_v28 }
 0x2b8   : > { %8369 = vmatprep.mubr.msk.bf16.mxu1 %vm478_vm1, %v8965_v63  ;;  %8417 = vmatprep.mubr.msk.bf16.mxu0 %vm478_vm1, %v8966_v29  ;;  %v8997_v63 = vld [vmem:[%s10611_s5 + $0x20] sm:$0xff]  }
 0x2b9   : > { %v6785_v29 = vld [vmem:[%s10612_s6] sm:$0xff] }
 0x2bf   : > { %8370 = vmatmul.mubr.msk.bf16.vlgmr.msra.gmra.mrb[24].mxu1 %vm478_vm1, %v8967_v0  ;;  %8418 = vmatmul.mubr.msk.bf16.vlgmr.msra.gmra.mrb[32].mxu0 %vm478_vm1, %v8968_v30  ;;  %v8999_v0 = vld [vmem:[%s10611_s5] sm:$0xff]   ;;  %v6786_v30 = vld [vmem:[%s10612_s6 + $0x8] sm:$0xff] }
 0x2c0   : > { %8378 = vmatpush3.bf16.msra.mxu1 %v9756_v58  ;;  %8426 = vmatpush3.bf16.msra.mxu0 %v9756_v58  ;;  %v8973_v58 = vld [vmem:[%s10609_s3 + $0x100] sm:$0xff]  }
 0x2c1   : > { %8379 = vmatprep.subr.bf16.mxu1 %v9754_v57  ;;  %8427 = vmatprep.subr.bf16.mxu0 %v9754_v57 }
 0x2c2   : > { %8373 = vmatprep.mubr.msk.bf16.mxu1 %vm478_vm1, %v8969_v31  ;;  %8421 = vmatprep.mubr.msk.bf16.mxu0 %vm478_vm1, %v8970_v32  ;;  %v6787_v31 = vld [vmem:[%s10612_s6 + $0x10] sm:$0xff]  ;;  %v6788_v32 = vld [vmem:[%s10612_s6 + $0x18] sm:$0xff] }
 0x2c4   : > { %8380 = vmatpush3.bf16.msra.mxu1 %v9754_v57  ;;  %8428 = vmatpush3.bf16.msra.mxu0 %v9754_v57  ;;  %v8975_v57 = vld [vmem:[%s10609_s3 + $0x108] sm:$0xff]  }
 0x2c5   : > { %8389 = vmatprep.subr.bf16.mxu1 %v9867_v3  ;;  %8437 = vmatprep.subr.bf16.mxu0 %v9867_v3 }
 0x2c7   : > { %8374 = vmatmul.mubr.msk.bf16.gmra.mrb[28].mxu1 %vm478_vm1, %v8971_v33  ;;  %8422 = vmatmul.mubr.msk.bf16.gmra.mrb[36].mxu0 %vm478_vm1, %v8972_v34  ;;  %v6789_v33 = vld [vmem:[%s10612_s6 + $0x20] sm:$0xff]  ;;  %v6790_v34 = vld [vmem:[%s10612_s6 + $0x28] sm:$0xff] }
 0x2c8   : > { %8381 = vmatprep.mubr.msk.bf16.mxu1 %vm478_vm1, %v8973_v58  ;;  %8429 = vmatprep.mubr.msk.bf16.mxu0 %vm478_vm1, %v8974_v35  ;;  %v6791_v58 = vld [vmem:[%s10612_s6 + $0x30] sm:$0xff]  ;;  %v6792_v35 = vld [vmem:[%s10612_s6 + $0x38] sm:$0xff] }
 0x2cf   : > { %8382 = vmatmul.mubr.msk.bf16.vlgmr.msra.gmra.mrb[24].mxu1 %vm478_vm1, %v8975_v57  ;;  %8430 = vmatmul.mubr.msk.bf16.vlgmr.msra.gmra.mrb[32].mxu0 %vm478_vm1, %v8976_v36  ;;  %v5462_v57 = vpop.permute.xlu1 %5461  ;;  %v5467_v36 = vpop.permute.xlu0 %5466 }
 0x2d0   : > { %8390 = vmatpush3.bf16.msra.mxu1 %v9867_v3  ;;  %8438 = vmatpush3.bf16.msra.mxu0 %v9867_v3  ;;  %v8981_v3 = vld [vmem:[%s10609_s3 + $0x180] sm:$0xff]  }
 0x2d1   : > { %8391 = vmatprep.subr.bf16.mxu1 %v9882_v26  ;;  %8439 = vmatprep.subr.bf16.mxu0 %v9882_v26 }
 0x2d2   : > { %8385 = vmatprep.mubr.msk.bf16.mxu1 %vm478_vm1, %v8977_v37  ;;  %8433 = vmatprep.mubr.msk.bf16.mxu0 %vm478_vm1, %v8978_v38 }
 0x2d3   : > { %v5472_v37 = vpop.permute.xlu1 %5471  ;;  %v5477_v38 = vpop.permute.xlu0 %5476 }
 0x2d4   : > { %8392 = vmatpush3.bf16.msra.mxu1 %v9882_v26  ;;  %8440 = vmatpush3.bf16.msra.mxu0 %v9882_v26  ;;  %v8983_v26 = vld [vmem:[%s10609_s3 + $0x188] sm:$0xff]  }
 0x2d5   : > { %8401 = vmatprep.subr.bf16.mxu1 %v9984_v5  ;;  %8449 = vmatprep.subr.bf16.mxu0 %v9984_v5 }
 0x2d7   : > { %8386 = vmatmul.mubr.msk.bf16.gmra.mrb[28].mxu1 %vm478_vm1, %v8979_v39  ;;  %8434 = vmatmul.mubr.msk.bf16.gmra.mrb[36].mxu0 %vm478_vm1, %v8980_v40  ;;  %v5482_v39 = vpop.permute.xlu1 %5481  ;;  %v10254_v40 = vpop.permute.xlu0 %5486 }
 0x2d8   : > { %8393 = vmatprep.mubr.msk.bf16.mxu1 %vm478_vm1, %v8981_v3  ;;  %8441 = vmatprep.mubr.msk.bf16.mxu0 %vm478_vm1, %v8982_v44 }
 0x2db   : > { %v10256_v3 = vpop.permute.xlu1 %5491  ;;  %v10258_v44 = vpop.permute.xlu0 %5496 }
 0x2df   : > { %8394 = vmatmul.mubr.msk.bf16.vlgmr.msra.gmra.mrb[24].mxu1 %vm478_vm1, %v8983_v26  ;;  %8442 = vmatmul.mubr.msk.bf16.vlgmr.msra.gmra.mrb[32].mxu0 %vm478_vm1, %v8984_v46 }
 0x2e0   : > { %8402 = vmatpush3.bf16.msra.mxu1 %v9984_v5  ;;  %8450 = vmatpush3.bf16.msra.mxu0 %v9984_v5 }
 0x2e1   : > { %8403 = vmatprep.subr.bf16.mxu1 %v9992_v19  ;;  %8451 = vmatprep.subr.bf16.mxu0 %v9992_v19 }
 0x2e2   : > { %8397 = vmatprep.mubr.msk.bf16.mxu1 %vm478_vm1, %v8985_v47  ;;  %8445 = vmatprep.mubr.msk.bf16.mxu0 %vm478_vm1, %v8986_v48 }
 0x2e4   : > { %8404 = vmatpush3.bf16.msra.mxu1 %v9992_v19  ;;  %8452 = vmatpush3.bf16.msra.mxu0 %v9992_v19 }
 0x2e7   : > { %8398 = vmatmul.mubr.msk.bf16.gmra.mrb[28].mxu1 %vm478_vm1, %v8987_v49  ;;  %8446 = vmatmul.mubr.msk.bf16.gmra.mrb[36].mxu0 %vm478_vm1, %v8988_v50 }
 0x2e8   : > { %8405 = vmatprep.mubr.msk.bf16.mxu1 %vm478_vm1, %v8989_v51  ;;  %8453 = vmatprep.mubr.msk.bf16.mxu0 %vm478_vm1, %v8990_v52 }
 0x2ef   : > { %8406 = vmatmul.mubr.msk.bf16.vlgmr.msra.gmra.mrb[24].mxu1 %vm478_vm1, %v8991_v53  ;;  %8454 = vmatmul.mubr.msk.bf16.vlgmr.msra.gmra.mrb[32].mxu0 %vm478_vm1, %v8992_v54 }
 0x2f0   : > { %8409 = vmatprep.mubr.msk.bf16.mxu1 %vm478_vm1, %v8993_v55  ;;  %8457 = vmatprep.mubr.msk.bf16.mxu0 %vm478_vm1, %v8994_v56 }
 0x2f7   : > { %8410 = vmatmul.mubr.msk.bf16.gmra.mrb[28].mxu1 %vm478_vm1, %v8995_v59  ;;  %8458 = vmatmul.mubr.msk.bf16.gmra.mrb[36].mxu0 %vm478_vm1, %v8996_v61 }
 0x2f8   : > { %8469 = vmatprep.mubr.msk.bf16.mxu1 %vm5556_vm2, %v8997_v63  ;;  %8485 = vmatprep.mubr.msk.bf16.mxu0 %vm5556_vm2, %v8999_v0 }
 0x382   : > { %v10182_v62 = vpop.f32.mrb[16].mxu1  ;;  %v8359_v1 = vpop.f32.mrb[24].mxu0 }
 0x383   : > { %4463 = vrot.lane.b32.xlu1 %v8359_v1, %s9067_s10  ;;  %v10185_v2 = vpop.f32.mrb[17].mxu1  ;;  %v4412_v7 = vpop.f32.mrb[25].mxu0 }
 0x384   : > { %v10187_v8 = vpop.f32.mrb[18].mxu1  ;;  %v8360_v9 = vpop.f32.mrb[26].mxu0 }
 0x385   : > { %4465 = vrot.lane.b32.xlu0 %v8360_v9, %s9067_s10  ;;  %v10190_v60 = vpop.f32.mrb[19].mxu1  ;;  %v4415_v10 = vpop.f32.mrb[27].mxu0 }
 0x387   : > { %4459 = vrot.lane.b32.xlu1 %v4412_v7, %s9067_s10 }
 0x389   : > { %4461 = vrot.lane.b32.xlu0 %v4415_v10, %s9067_s10 }
 0x38a   : > { %v10194_v4 = vpop.f32.mrb[20].mxu1  ;;  %v8363_v11 = vpop.f32.mrb[28].mxu0 }
 0x38b   : > { %4471 = vrot.lane.b32.xlu1 %v8363_v11, %s9067_s10  ;;  %v10197_v12 = vpop.f32.mrb[21].mxu1  ;;  %v4428_v13 = vpop.f32.mrb[29].mxu0 }
 0x38c   : > { %v10199_v14 = vpop.f32.mrb[22].mxu1  ;;  %v8364_v22 = vpop.f32.mrb[30].mxu0 }
 0x38d   : > { %4473 = vrot.lane.b32.xlu0 %v8364_v22, %s9067_s10  ;;  %v10202_v6 = vpop.f32.mrb[23].mxu1  ;;  %v4431_v15 = vpop.f32.mrb[31].mxu0 }
 0x38f   : > { %4467 = vrot.lane.b32.xlu1 %v4428_v13, %s9067_s10 }
 0x391   : > { %4469 = vrot.lane.b32.xlu0 %v4431_v15, %s9067_s10 }
 0x3c2   : > { %v8407_v24 = vpop.f32.mrb[24].mxu1  ;;  %v8455_v16 = vpop.f32.mrb[32].mxu0 }
 0x3c3   : > { %v5372_v17 = vpop.f32.mrb[33].mxu0  ;;  %4943 = vrot.lane.b32.xlu1 %v8407_v24, %s9068_s16  ;;  %v4892_v5 = vpop.f32.mrb[25].mxu1 }
 0x3c4   : > { %v8408_v18 = vpop.f32.mrb[26].mxu1  ;;  %v8456_v21 = vpop.f32.mrb[34].mxu0 }
 0x3c5   : > { %v5375_v42 = vpop.f32.mrb[35].mxu0  ;;  %4945 = vrot.lane.b32.xlu0 %v8408_v18, %s9068_s16  ;;  %v4895_v41 = vpop.f32.mrb[27].mxu1 }
 0x3c7   : > { %5423 = vrot.lane.b32.xlu1 %v8455_v16, %s9069_s17 }
 0x3c9   : > { %5425 = vrot.lane.b32.xlu0 %v8456_v21, %s9069_s17 }
 0x3ca   : > { %v8411_v23 = vpop.f32.mrb[28].mxu1  ;;  %v8459_v19 = vpop.f32.mrb[36].mxu0 }
 0x3cb   : > { %v5388_v43 = vpop.f32.mrb[37].mxu0  ;;  %4939 = vrot.lane.b32.xlu1 %v4892_v5, %s9068_s16  ;;  %v4908_v45 = vpop.f32.mrb[29].mxu1 }
 0x3cc   : > { %v8412_v20 = vpop.f32.mrb[30].mxu1  ;;  %v8460_v25 = vpop.f32.mrb[38].mxu0 }
 0x3cd   : > { %v5391_v27 = vpop.f32.mrb[39].mxu0  ;;  %4941 = vrot.lane.b32.xlu0 %v4895_v41, %s9068_s16  ;;  %v4911_v28 = vpop.f32.mrb[31].mxu1 }
 0x3cf   : > { %5419 = vrot.lane.b32.xlu1 %v5372_v17, %s9069_s17 }
 0x3d1   : > { %5421 = vrot.lane.b32.xlu0 %v5375_v42, %s9069_s17 }
 0x3d3   : > { %4951 = vrot.lane.b32.xlu1 %v8411_v23, %s9068_s16 }
 0x3d5   : > { %4953 = vrot.lane.b32.xlu0 %v8412_v20, %s9068_s16 }
 0x3d7   : > { %4947 = vrot.lane.b32.xlu1 %v4908_v45, %s9068_s16 }
 0x3d9   : > { %4949 = vrot.lane.b32.xlu0 %v4911_v28, %s9068_s16 }
 0x3db   : > { %5427 = vrot.lane.b32.xlu1 %v5388_v43, %s9069_s17 }
 0x3dd   : > { %5429 = vrot.lane.b32.xlu0 %v5391_v27, %s9069_s17 }
 0x3df   : > { %5431 = vrot.lane.b32.xlu1 %v8459_v19, %s9069_s17 }
 0x3e1   : > { %5433 = vrot.lane.b32.xlu0 %v8460_v25, %s9069_s17 }
 0x3e3   : > { %6795 = vperm.xlu1 %8892, %v6785_v29  }
 0x3e5   : > { %6800 = vperm.xlu0 %8891, %v6786_v30  }
 0x3e7   : > { %6805 = vperm.xlu1 %8892, %v6787_v31  }
 0x3e9   : > { %6810 = vperm.xlu0 %8891, %v6788_v32  }
 0x3eb   : > { %6815 = vperm.xlu1 %8892, %v6789_v33  }
 0x3ed   : > { %6820 = vperm.xlu0 %8891, %v6790_v34  }
 0x3ef   : > { %6825 = vperm.xlu1 %8892, %v6791_v58  }
 0x3f1   : > { %6830 = vperm.xlu0 %8891, %v6792_v35  }
 0x3f5   : > { %v4464_v26 = vpop.permute.xlu1 %4463 }
 0x3f6   : > { %v4485_v54 = vadd.f32 %v10182_v62, %v4464_v26 }
 0x3f7   : > { %v4466_v46 = vpop.permute.xlu0 %4465 }
 0x3f8   : > { %v4486_v56 = vadd.f32 %v10187_v8, %v4466_v46 }
 0x3f9   : > { %v4460_v47 = vpop.permute.xlu1 %4459 }
 0x3fa   : > { %v4483_v22 = vadd.f32 %v4460_v47, %v10185_v2 }
 0x3fb   : > { %v4462_v48 = vpop.permute.xlu0 %4461 }
 0x3fc   : > { %v4484_v16 = vadd.f32 %v4462_v48, %v10190_v60 }
 0x3fd   : > { %v4472_v49 = vpop.permute.xlu1 %4471 }
 0x3fe   : > { %v4489_v31 = vadd.f32 %v10194_v4, %v4472_v49 }
 0x3ff   : > { %v4474_v50 = vpop.permute.xlu0 %4473 }
 0x401   : > { %v4468_v51 = vpop.permute.xlu1 %4467 }
 0x402   : > { %v4487_v28 = vadd.f32 %v4468_v51, %v10197_v12  ;;  %v9001_v51 = vld [vmem:[%s10611_s5 + $0x30] sm:$0xff]  }
 0x403   : > { %v4470_v52 = vpop.permute.xlu0 %4469 }
 0x404   : > { %v4488_v29 = vadd.f32 %v4470_v52, %v10202_v6  ;;  %v4490_v6 = vadd.f32 %v10199_v14, %v4474_v50  ;;  %v9003_v52 = vld [vmem:[%s10611_s5 + $0x10] sm:$0xff]  }
 0x435   : > { %v4944_v53 = vpop.permute.xlu1 %4943 }
 0x436   : > { %v4965_v59 = vadd.f32 %v4944_v53, %v4485_v54  ;;  %v9002_v53 = vld [vmem:[%s10611_s5 + $0x38] sm:$0xff]  }
 0x437   : > { %v4946_v55 = vpop.permute.xlu0 %4945  ;;  %v9004_v54 = vld [vmem:[%s10611_s5 + $0x18] sm:$0xff]  }
 0x438   : > { %v4966_v1 = vadd.f32 %v4946_v55, %v4486_v56  ;;  %v9005_v55 = vld [vmem:[%s10611_s5 + $0x40] sm:$0xff]  }
 0x439   : > { %v5424_v61 = vpop.permute.xlu1 %5423  ;;  %v9007_v56 = vld [vmem:[%s10611_s5 + $0x60] sm:$0xff]  }
 0x43a   : > { %v5445_v7 = vadd.f32 %v5424_v61, %v4965_v59  ;;  %v9006_v59 = vld [vmem:[%s10611_s5 + $0x48] sm:$0xff]  }
 0x43b   : > { %v5426_v9 = vpop.permute.xlu0 %5425  ;;  %v9008_v61 = vld [vmem:[%s10611_s5 + $0x68] sm:$0xff]  }
 0x43c   : > { %v5501_v10 = vadd.f32 %v5472_v37, %v5445_v7  ;;  %v5446_v11 = vadd.f32 %v5426_v9, %v4966_v1  ;;  %v9009_v1 = vld [vmem:[%s10611_s5 + $0x50] sm:$0xff]   ;;  %v9011_v9 = vld [vmem:[%s10611_s5 + $0x58] sm:$0xff]  }
 0x43d   : > { %v4940_v13 = vpop.permute.xlu1 %4939  ;;  %v9010_v7 = vld [vmem:[%s10611_s5 + $0x70] sm:$0xff]  }
 0x43e   : > { %v5502_v15 = vadd.f32 %v5477_v38, %v5446_v11  ;;  %v5509_v17 = vmax.f32 %v5501_v10, 0.0  ;;  %v4963_v62 = vadd.f32 %v4940_v13, %v4483_v22  ;;  %v9012_v10 = vld [vmem:[%s10611_s5 + $0x78] sm:$0xff]   ;;  %v9013_v11 = vld [vmem:[%s10611_s5 + $0x80] sm:$0xff]   ;;  %v9015_v22 = vld [vmem:[%s10611_s5 + $0x88] sm:$0xff]  }
 0x43f   : > { %v4942_v24 = vpop.permute.xlu0 %4941  ;;  %v9014_v13 = vld [vmem:[%s10611_s5 + $0xa0] sm:$0xff]  }
 0x440   : > { %v5510_v5 = vmax.f32 %v5502_v15, 0.0  ;;  %v4964_v8 = vadd.f32 %v4942_v24, %v4484_v16  ;;  %v9016_v15 = vld [vmem:[%s10611_s5 + $0xa8] sm:$0xff]   ;;  %v9017_v24 = vld [vmem:[%s10611_s5 + $0x90] sm:$0xff]  }
 0x441   : > { %v5420_v18 = vpop.permute.xlu1 %5419  ;;  %v9021_v16 = vld [vmem:[%s10611_s5 + $0xb0] sm:$0xff]  }
 0x442   : > { %v10264_v21 = vpack.c.bf16 %v5510_v5, %v5509_v17  ;;  %v5443_v42 = vadd.f32 %v5420_v18, %v4963_v62  ;;  %v9018_v17 = vld [vmem:[%s10611_s5 + $0x98] sm:$0xff]   ;;  %v9019_v62 = vld [vmem:[%s10611_s5 + $0xc0] sm:$0xff]  }
 0x443   : > { %v5422_v41 = vpop.permute.xlu0 %5421  ;;  %v9022_v5 = vld [vmem:[%s10611_s5 + $0xb8] sm:$0xff]   ;;  %v9023_v18 = vld [vmem:[%s10611_s5 + $0xe0] sm:$0xff]  }
 0x444   : > { %v5499_v23 = vadd.f32 %v5462_v57, %v5443_v42  ;;  %v5444_v19 = vadd.f32 %v5422_v41, %v4964_v8  ;;  %v9020_v8 = vld [vmem:[%s10611_s5 + $0xc8] sm:$0xff]   ;;  %v9025_v41 = vld [vmem:[%s10611_s5 + $0xd0] sm:$0xff]  }
 0x445   : > { %v4952_v43 = vpop.permute.xlu1 %4951  ;;  %v9024_v42 = vld [vmem:[%s10611_s5 + $0xe8] sm:$0xff]  }
 0x446   : > { %v5500_v45 = vadd.f32 %v5467_v36, %v5444_v19  ;;  %v5507_v25 = vmax.f32 %v5499_v23, 0.0  ;;  %v4969_v34 = vadd.f32 %v4952_v43, %v4489_v31  ;;  %v9027_v23 = vld [vmem:[%s10611_s5 + $0xf0] sm:$0xff]   ;;  %v9026_v19 = vld [vmem:[%s10611_s5 + $0xd8] sm:$0xff]  }
 0x447   : > { %v4954_v20 = vpop.permute.xlu0 %4953  ;;  %v9028_v43 = vld [vmem:[%s10611_s5 + $0xf8] sm:$0xff]  }
 0x448   : > { %v5508_v2 = vmax.f32 %v5500_v45, 0.0  ;;  %v4970_v36 = vadd.f32 %v4954_v20, %v4490_v6  ;;  %v9029_v45 = vld [vmem:[%s10611_s5 + $0x100] sm:$0xff]   ;;  %v9031_v20 = vld [vmem:[%s10611_s5 + $0x110] sm:$0xff]  }
 0x449   : > { %v4948_v27 = vpop.permute.xlu1 %4947 }
 0x44a   : > { %v10267_v60 = vpack.c.bf16 %v5508_v2, %v5507_v25  ;;  %v4967_v0 = vadd.f32 %v4948_v27, %v4487_v28  ;;  %v9032_v25 = vld [vmem:[%s10611_s5 + $0x118] sm:$0xff]  }
 0x44b   : > { %v4950_v63 = vpop.permute.xlu0 %4949 }
 0x44c   : > { %8461 = vmatprep.subr.bf16.mxu1 %v10267_v60  ;;  %8477 = vmatprep.subr.bf16.mxu0 %v10267_v60  ;;  %v4968_v32 = vadd.f32 %v4950_v63, %v4488_v29 }
 0x44d   : > { %8462 = vmatpush3.bf16.msra.mxu1 %v10267_v60  ;;  %8478 = vmatpush3.bf16.msra.mxu0 %v10267_v60  ;;  %v5428_v30 = vpop.permute.xlu1 %5427 }
 0x44e   : > { %v5447_v33 = vadd.f32 %v5428_v30, %v4967_v0  ;;  %8463 = vmatprep.subr.bf16.mxu1 %v10264_v21  ;;  %8479 = vmatprep.subr.bf16.mxu0 %v10264_v21 }
 0x44f   : > { %v5430_v12 = vpop.permute.xlu0 %5429 }
 0x450   : > { %v5503_v58 = vadd.f32 %v5482_v39, %v5447_v33  ;;  %v5448_v35 = vadd.f32 %v5430_v12, %v4968_v32 }
 0x451   : > { %8464 = vmatpush3.bf16.msra.mxu1 %v10264_v21  ;;  %8480 = vmatpush3.bf16.msra.mxu0 %v10264_v21  ;;  %v5432_v57 = vpop.permute.xlu1 %5431 }
 0x452   : > { %v5504_v4 = vadd.f32 %v10254_v40, %v5448_v35  ;;  %v5449_v37 = vadd.f32 %v5432_v57, %v4969_v34  ;;  %v5511_v26 = vmax.f32 %v5503_v58, 0.0 }
 0x453   : > { %v5434_v38 = vpop.permute.xlu0 %5433 }
 0x454   : > { %v5512_v46 = vmax.f32 %v5504_v4, 0.0  ;;  %v5505_v47 = vadd.f32 %v10256_v3, %v5449_v37  ;;  %v5450_v48 = vadd.f32 %v5434_v38, %v4970_v36  ;;  %v8998_v3 = vld [vmem:[%s10611_s5 + $0x28] sm:$0xff]  }
 0x456   : > { %v10282_v49 = vpack.c.bf16 %v5512_v46, %v5511_v26  ;;  %v5506_v14 = vadd.f32 %v10258_v44, %v5450_v48  ;;  %v5513_v39 = vmax.f32 %v5505_v47, 0.0  ;;  %v9000_v44 = vld [vmem:[%s10611_s5 + $0x8] sm:$0xff]  }
 0x458   : > { %v5514_v50 = vmax.f32 %v5506_v14, 0.0  ;;  %8465 = vmatprep.subr.bf16.mxu1 %v10282_v49  ;;  %8481 = vmatprep.subr.bf16.mxu0 %v10282_v49 }
 0x459   : > { %8466 = vmatpush3.bf16.msra.mxu1 %v10282_v49  ;;  %8482 = vmatpush3.bf16.msra.mxu0 %v10282_v49 }
 0x45a   : > { %v10289_v40 = vpack.c.bf16 %v5514_v50, %v5513_v39 }
 0x45c   : > { %8467 = vmatprep.subr.bf16.mxu1 %v10289_v40  ;;  %8483 = vmatprep.subr.bf16.mxu0 %v10289_v40 }
 0x45d   : > { %8468 = vmatpush3.bf16.msra.mxu1 %v10289_v40  ;;  %8484 = vmatpush3.bf16.msra.mxu0 %v10289_v40 }
 0x45e   : > { %8493 = vmatprep.subr.bf16.mxu1 %v10267_v60  ;;  %8509 = vmatprep.subr.bf16.mxu0 %v10267_v60 }
 0x460   : > { %8470 = vmatmul.mubr.msk.bf16.vlgmr.msra.gmra.mrb[32].mxu1 %vm5556_vm2, %v8998_v3  ;;  %8486 = vmatmul.mubr.msk.bf16.vlgmr.msra.gmra.mrb[40].mxu0 %vm5556_vm2, %v9000_v44 }
 0x461   : > { %8494 = vmatpush3.bf16.msra.mxu1 %v10267_v60  ;;  %8510 = vmatpush3.bf16.msra.mxu0 %v10267_v60 }
 0x462   : > { %8495 = vmatprep.subr.bf16.mxu1 %v10264_v21  ;;  %8511 = vmatprep.subr.bf16.mxu0 %v10264_v21 }
 0x463   : > { %8473 = vmatprep.mubr.msk.bf16.mxu1 %vm5556_vm2, %v9001_v51  ;;  %8489 = vmatprep.mubr.msk.bf16.mxu0 %vm5556_vm2, %v9003_v52 }
 0x465   : > { %8496 = vmatpush3.bf16.msra.mxu1 %v10264_v21  ;;  %8512 = vmatpush3.bf16.msra.mxu0 %v10264_v21 }
 0x466   : > { %8497 = vmatprep.subr.bf16.mxu1 %v10282_v49  ;;  %8513 = vmatprep.subr.bf16.mxu0 %v10282_v49 }
 0x468   : > { %8474 = vmatmul.mubr.msk.bf16.gmra.mrb[36].mxu1 %vm5556_vm2, %v9002_v53  ;;  %8490 = vmatmul.mubr.msk.bf16.gmra.mrb[44].mxu0 %vm5556_vm2, %v9004_v54 }
 0x469   : > { %8498 = vmatpush3.bf16.msra.mxu1 %v10282_v49  ;;  %8514 = vmatpush3.bf16.msra.mxu0 %v10282_v49 }
 0x46a   : > { %8499 = vmatprep.subr.bf16.mxu1 %v10289_v40  ;;  %8515 = vmatprep.subr.bf16.mxu0 %v10289_v40 }
 0x46b   : > { %8501 = vmatprep.mubr.msk.bf16.mxu1 %vm5556_vm2, %v9005_v55  ;;  %8517 = vmatprep.mubr.msk.bf16.mxu0 %vm5556_vm2, %v9007_v56 }
 0x46d   : > { %8500 = vmatpush3.bf16.msra.mxu1 %v10289_v40  ;;  %8516 = vmatpush3.bf16.msra.mxu0 %v10289_v40 }
 0x46e   : > { %8525 = vmatprep.subr.bf16.mxu1 %v10267_v60  ;;  %8541 = vmatprep.subr.bf16.mxu0 %v10267_v60 }
 0x470   : > { %8502 = vmatmul.mubr.msk.bf16.vlgmr.msra.gmra.mrb[40].mxu1 %vm5556_vm2, %v9006_v59  ;;  %8518 = vmatmul.mubr.msk.bf16.vlgmr.msra.gmra.mrb[48].mxu0 %vm5556_vm2, %v9008_v61 }
 0x471   : > { %8526 = vmatpush3.bf16.msra.mxu1 %v10267_v60  ;;  %8542 = vmatpush3.bf16.msra.mxu0 %v10267_v60 }
 0x472   : > { %8527 = vmatprep.subr.bf16.mxu1 %v10264_v21  ;;  %8543 = vmatprep.subr.bf16.mxu0 %v10264_v21 }
 0x473   : > { %8505 = vmatprep.mubr.msk.bf16.mxu1 %vm5556_vm2, %v9009_v1  ;;  %8521 = vmatprep.mubr.msk.bf16.mxu0 %vm5556_vm2, %v9010_v7 }
 0x475   : > { %8528 = vmatpush3.bf16.msra.mxu1 %v10264_v21  ;;  %8544 = vmatpush3.bf16.msra.mxu0 %v10264_v21 }
 0x476   : > { %8529 = vmatprep.subr.bf16.mxu1 %v10282_v49  ;;  %8545 = vmatprep.subr.bf16.mxu0 %v10282_v49 }
 0x478   : > { %8506 = vmatmul.mubr.msk.bf16.gmra.mrb[44].mxu1 %vm5556_vm2, %v9011_v9  ;;  %8522 = vmatmul.mubr.msk.bf16.gmra.mrb[52].mxu0 %vm5556_vm2, %v9012_v10 }
 0x479   : > { %8530 = vmatpush3.bf16.msra.mxu1 %v10282_v49  ;;  %8546 = vmatpush3.bf16.msra.mxu0 %v10282_v49 }
 0x47a   : > { %8531 = vmatprep.subr.bf16.mxu1 %v10289_v40  ;;  %8547 = vmatprep.subr.bf16.mxu0 %v10289_v40 }
 0x47b   : > { %8533 = vmatprep.mubr.msk.bf16.mxu1 %vm5556_vm2, %v9013_v11  ;;  %8549 = vmatprep.mubr.msk.bf16.mxu0 %vm5556_vm2, %v9014_v13 }
 0x47d   : > { %8532 = vmatpush3.bf16.msra.mxu1 %v10289_v40  ;;  %8548 = vmatpush3.bf16.msra.mxu0 %v10289_v40 }
 0x47e   : > { %8557 = vmatprep.subr.bf16.mxu1 %v10267_v60  ;;  %8573 = vmatprep.subr.bf16.mxu0 %v10267_v60 }
 0x480   : > { %8534 = vmatmul.mubr.msk.bf16.vlgmr.msra.gmra.mrb[48].mxu1 %vm5556_vm2, %v9015_v22  ;;  %8550 = vmatmul.mubr.msk.bf16.vlgmr.msra.gmra.mrb[56].mxu0 %vm5556_vm2, %v9016_v15 }
 0x481   : > { %8558 = vmatpush3.bf16.msra.mxu1 %v10267_v60  ;;  %8574 = vmatpush3.bf16.msra.mxu0 %v10267_v60 }
 0x482   : > { %8559 = vmatprep.subr.bf16.mxu1 %v10264_v21  ;;  %8575 = vmatprep.subr.bf16.mxu0 %v10264_v21 }
 0x483   : > { %8537 = vmatprep.mubr.msk.bf16.mxu1 %vm5556_vm2, %v9017_v24  ;;  %8553 = vmatprep.mubr.msk.bf16.mxu0 %vm5556_vm2, %v9021_v16 }
 0x485   : > { %8560 = vmatpush3.bf16.msra.mxu1 %v10264_v21  ;;  %8576 = vmatpush3.bf16.msra.mxu0 %v10264_v21 }
 0x486   : > { %8561 = vmatprep.subr.bf16.mxu1 %v10282_v49  ;;  %8577 = vmatprep.subr.bf16.mxu0 %v10282_v49 }
 0x488   : > { %8538 = vmatmul.mubr.msk.bf16.gmra.mrb[52].mxu1 %vm5556_vm2, %v9018_v17  ;;  %8554 = vmatmul.mubr.msk.bf16.gmra.mrb[60].mxu0 %vm5556_vm2, %v9022_v5 }
 0x489   : > { %8562 = vmatpush3.bf16.msra.mxu1 %v10282_v49  ;;  %8578 = vmatpush3.bf16.msra.mxu0 %v10282_v49 }
 0x48a   : > { %8563 = vmatprep.subr.bf16.mxu1 %v10289_v40  ;;  %8579 = vmatprep.subr.bf16.mxu0 %v10289_v40 }
 0x48b   : > { %8565 = vmatprep.mubr.msk.bf16.mxu1 %vm5556_vm2, %v9019_v62  ;;  %8581 = vmatprep.mubr.msk.bf16.mxu0 %vm5556_vm2, %v9023_v18 }
 0x48d   : > { %8564 = vmatpush3.bf16.msra.mxu1 %v10289_v40  ;;  %8580 = vmatpush3.bf16.msra.mxu0 %v10289_v40 }
 0x48e   : > { %8589 = vmatprep.subr.bf16.mxu1 %v10267_v60 }
 0x490   : > { %8566 = vmatmul.mubr.msk.bf16.vlgmr.msra.gmra.mrb[56].mxu1 %vm5556_vm2, %v9020_v8  ;;  %8582 = vmatmul.mubr.msk.bf16.vlgmr.msra.gmra.mrb[64].mxu0 %vm5556_vm2, %v9024_v42 }
 0x491   : > { %8590 = vmatpush3.bf16.msra.mxu1 %v10267_v60  ;;  %8569 = vmatprep.mubr.msk.bf16.mxu1 %vm5556_vm2, %v9025_v41 }
 0x492   : > { %8591 = vmatprep.subr.bf16.mxu1 %v10264_v21  ;;  %8585 = vmatprep.mubr.msk.bf16.mxu0 %vm5556_vm2, %v9027_v23 }
 0x495   : > { %8592 = vmatpush3.bf16.msra.mxu1 %v10264_v21  ;;  %v9030_v21 = vld [vmem:[%s10611_s5 + $0x108] sm:$0xff]  }
 0x496   : > { %8593 = vmatprep.subr.bf16.mxu1 %v10282_v49 }
 0x498   : > { %8570 = vmatmul.mubr.msk.bf16.gmra.mrb[60].mxu1 %vm5556_vm2, %v9026_v19  ;;  %8586 = vmatmul.mubr.msk.bf16.gmra.mrb[68].mxu0 %vm5556_vm2, %v9028_v43 }
 0x499   : > { %8594 = vmatpush3.bf16.msra.mxu1 %v10282_v49  ;;  %8597 = vmatprep.mubr.msk.bf16.mxu1 %vm5556_vm2, %v9029_v45 }
 0x49a   : > { %8595 = vmatprep.subr.bf16.mxu1 %v10289_v40 }
 0x49d   : > { %8596 = vmatpush3.bf16.msra.mxu1 %v10289_v40 }
 0x4a0   : > { %8598 = vmatmul.mubr.msk.bf16.vlgmr.msra.gmra.mrb[64].mxu1 %vm5556_vm2, %v9030_v21 }
 0x4a1   : > { %8601 = vmatprep.mubr.msk.bf16.mxu1 %vm5556_vm2, %v9031_v20 }
 0x4a8   : > { %8602 = vmatmul.mubr.msk.bf16.gmra.mrb[68].mxu1 %vm5556_vm2, %v9032_v25 }
 0x533   : > { %v8471_v2 = vpop.f32.mrb[32].mxu1  ;;  %v10487_v27 = vpop.f32.mrb[40].mxu0 }
 0x534   : > { %5646 = vrot.lane.b32.xlu1 %v8471_v2, %s9067_s10  ;;  %v5603_v28 = vpop.f32.mrb[33].mxu1  ;;  %v10490_v60 = vpop.f32.mrb[41].mxu0 }
 0x535   : > { %v8472_v63 = vpop.f32.mrb[34].mxu1  ;;  %v10492_v29 = vpop.f32.mrb[42].mxu0 }
 0x536   : > { %5648 = vrot.lane.b32.xlu0 %v8472_v63, %s9067_s10  ;;  %v5606_v0 = vpop.f32.mrb[35].mxu1  ;;  %v10495_v30 = vpop.f32.mrb[43].mxu0 }
 0x538   : > { %5642 = vrot.lane.b32.xlu1 %v5603_v28, %s9067_s10 }
 0x53a   : > { %5644 = vrot.lane.b32.xlu0 %v5606_v0, %s9067_s10 }
 0x53b   : > { %v8475_v31 = vpop.f32.mrb[36].mxu1  ;;  %v10499_v32 = vpop.f32.mrb[44].mxu0 }
 0x53c   : > { %5654 = vrot.lane.b32.xlu1 %v8475_v31, %s9067_s10  ;;  %v5619_v33 = vpop.f32.mrb[37].mxu1  ;;  %v10502_v12 = vpop.f32.mrb[45].mxu0 }
 0x53d   : > { %v8476_v6 = vpop.f32.mrb[38].mxu1  ;;  %v10504_v34 = vpop.f32.mrb[46].mxu0 }
 0x53e   : > { %5656 = vrot.lane.b32.xlu0 %v8476_v6, %s9067_s10  ;;  %v5622_v58 = vpop.f32.mrb[39].mxu1  ;;  %v10507_v35 = vpop.f32.mrb[47].mxu0 }
 0x540   : > { %5650 = vrot.lane.b32.xlu1 %v5619_v33, %s9067_s10 }
 0x542   : > { %5652 = vrot.lane.b32.xlu0 %v5622_v58, %s9067_s10  ;;  %s9071_s10 = smov 115  }
 0x543   : > { %v8503_v57 = vpop.f32.mrb[40].mxu1  ;;  %v8519_v36 = vpop.f32.mrb[48].mxu0 }
 0x544   : > { %5881 = vrot.lane.b32.xlu1 %v8503_v57, %s9070_s18  ;;  %v5838_v4 = vpop.f32.mrb[41].mxu1  ;;  %v5984_v37 = vpop.f32.mrb[49].mxu0 }
 0x545   : > { %v8504_v38 = vpop.f32.mrb[42].mxu1  ;;  %v8520_v26 = vpop.f32.mrb[50].mxu0 }
 0x546   : > { %5883 = vrot.lane.b32.xlu0 %v8504_v38, %s9070_s18  ;;  %v5841_v46 = vpop.f32.mrb[43].mxu1  ;;  %v5987_v47 = vpop.f32.mrb[51].mxu0 }
 0x547   : > { %v10535_v57 = vpop.permute.xlu1 %6795 }
 0x548   : > { %6027 = vrot.lane.b32.xlu1 %v8519_v36, %s9068_s16  ;;  %v10537_v36 = vpop.permute.xlu0 %6800 }
 0x54a   : > { %6029 = vrot.lane.b32.xlu0 %v8520_v26, %s9068_s16 }
 0x54b   : > { %v8507_v48 = vpop.f32.mrb[44].mxu1  ;;  %v8523_v49 = vpop.f32.mrb[52].mxu0 }
 0x54c   : > { %5877 = vrot.lane.b32.xlu1 %v5838_v4, %s9070_s18  ;;  %v5854_v14 = vpop.f32.mrb[45].mxu1  ;;  %v6000_v39 = vpop.f32.mrb[53].mxu0 }
 0x54d   : > { %v8508_v50 = vpop.f32.mrb[46].mxu1  ;;  %v8524_v40 = vpop.f32.mrb[54].mxu0 }
 0x54e   : > { %5879 = vrot.lane.b32.xlu0 %v5841_v46, %s9070_s18  ;;  %v5857_v3 = vpop.f32.mrb[47].mxu1  ;;  %v6003_v44 = vpop.f32.mrb[55].mxu0 }
 0x54f   : > { %v10539_v4 = vpop.permute.xlu1 %6805 }
 0x550   : > { %6023 = vrot.lane.b32.xlu1 %v5984_v37, %s9068_s16  ;;  %v10541_v37 = vpop.permute.xlu0 %6810 }
 0x552   : > { %6025 = vrot.lane.b32.xlu0 %v5987_v47, %s9068_s16 }
 0x553   : > { %v8535_v51 = vpop.f32.mrb[48].mxu1  ;;  %v8551_v52 = vpop.f32.mrb[56].mxu0 }
 0x554   : > { %5889 = vrot.lane.b32.xlu1 %v8507_v48, %s9070_s18  ;;  %v6130_v53 = vpop.f32.mrb[49].mxu1  ;;  %v6276_v54 = vpop.f32.mrb[57].mxu0 }
 0x555   : > { %v8536_v55 = vpop.f32.mrb[50].mxu1  ;;  %v8552_v56 = vpop.f32.mrb[58].mxu0 }
 0x556   : > { %5891 = vrot.lane.b32.xlu0 %v8508_v50, %s9070_s18  ;;  %v6133_v59 = vpop.f32.mrb[51].mxu1  ;;  %v6279_v61 = vpop.f32.mrb[59].mxu0 }
 0x557   : > { %v10543_v38 = vpop.permute.xlu1 %6815  ;;  %v10545_v26 = vpop.permute.xlu0 %6820 }
 0x558   : > { %6035 = vrot.lane.b32.xlu1 %v8523_v49, %s9068_s16 }
 0x55a   : > { %6037 = vrot.lane.b32.xlu0 %v8524_v40, %s9068_s16 }
 0x55b   : > { %v8539_v1 = vpop.f32.mrb[52].mxu1  ;;  %v8555_v7 = vpop.f32.mrb[60].mxu0 }
 0x55c   : > { %5885 = vrot.lane.b32.xlu1 %v5854_v14, %s9070_s18  ;;  %v6146_v9 = vpop.f32.mrb[53].mxu1  ;;  %v6292_v10 = vpop.f32.mrb[61].mxu0 }
 0x55d   : > { %v8540_v11 = vpop.f32.mrb[54].mxu1  ;;  %v8556_v13 = vpop.f32.mrb[62].mxu0 }
 0x55e   : > { %5887 = vrot.lane.b32.xlu0 %v5857_v3, %s9070_s18  ;;  %v6149_v22 = vpop.f32.mrb[55].mxu1  ;;  %v6295_v15 = vpop.f32.mrb[63].mxu0 }
 0x55f   : > { %v10547_v46 = vpop.permute.xlu1 %6825  ;;  %v10549_v47 = vpop.permute.xlu0 %6830 }
 0x560   : > { %6031 = vrot.lane.b32.xlu1 %v6000_v39, %s9068_s16 }
 0x562   : > { %6033 = vrot.lane.b32.xlu0 %v6003_v44, %s9068_s16  ;;  %s9072_s16 = smov 106  }
 0x563   : > { %v8567_v24 = vpop.f32.mrb[56].mxu1  ;;  %v8583_v16 = vpop.f32.mrb[64].mxu0 }
 0x564   : > { %6173 = vrot.lane.b32.xlu1 %v8535_v51, %s9069_s17  ;;  %v6422_v17 = vpop.f32.mrb[57].mxu1  ;;  %v6568_v5 = vpop.f32.mrb[65].mxu0 }
 0x565   : > { %v8568_v62 = vpop.f32.mrb[58].mxu1  ;;  %v8584_v18 = vpop.f32.mrb[66].mxu0 }
 0x566   : > { %6175 = vrot.lane.b32.xlu0 %v8536_v55, %s9069_s17  ;;  %v6425_v8 = vpop.f32.mrb[59].mxu1  ;;  %v6571_v42 = vpop.f32.mrb[67].mxu0 }
 0x568   : > { %6319 = vrot.lane.b32.xlu1 %v8551_v52, %s9071_s10 }
 0x56a   : > { %6321 = vrot.lane.b32.xlu0 %v8552_v56, %s9071_s10 }
 0x56b   : > { %v8571_v41 = vpop.f32.mrb[60].mxu1  ;;  %v8587_v23 = vpop.f32.mrb[68].mxu0 }
 0x56c   : > { %6169 = vrot.lane.b32.xlu1 %v6130_v53, %s9069_s17  ;;  %v6438_v19 = vpop.f32.mrb[61].mxu1  ;;  %v6584_v43 = vpop.f32.mrb[69].mxu0 }
 0x56d   : > { %v8572_v45 = vpop.f32.mrb[62].mxu1  ;;  %v8588_v21 = vpop.f32.mrb[70].mxu0 }
 0x56e   : > { %6171 = vrot.lane.b32.xlu0 %v6133_v59, %s9069_s17  ;;  %v6441_v20 = vpop.f32.mrb[63].mxu1  ;;  %v6587_v25 = vpop.f32.mrb[71].mxu0 }
 0x570   : > { %6315 = vrot.lane.b32.xlu1 %v6276_v54, %s9071_s10 }
 0x572   : > { %6317 = vrot.lane.b32.xlu0 %v6279_v61, %s9071_s10 }
 0x573   : > { %v8599_v2 = vpop.f32.mrb[64].mxu1 }
 0x574   : > { %6181 = vrot.lane.b32.xlu1 %v8539_v1, %s9069_s17  ;;  %v6714_v28 = vpop.f32.mrb[65].mxu1 }
 0x575   : > { %v8600_v63 = vpop.f32.mrb[66].mxu1 }
 0x576   : > { %6183 = vrot.lane.b32.xlu0 %v8540_v11, %s9069_s17  ;;  %v6717_v0 = vpop.f32.mrb[67].mxu1 }
 0x578   : > { %6327 = vrot.lane.b32.xlu1 %v8555_v7, %s9071_s10 }
 0x57a   : > { %6329 = vrot.lane.b32.xlu0 %v8556_v13, %s9071_s10 }
 0x57b   : > { %v8603_v31 = vpop.f32.mrb[68].mxu1 }
 0x57c   : > { %6177 = vrot.lane.b32.xlu1 %v6146_v9, %s9069_s17  ;;  %v6730_v33 = vpop.f32.mrb[69].mxu1 }
 0x57d   : > { %v8604_v6 = vpop.f32.mrb[70].mxu1 }
 0x57e   : > { %6179 = vrot.lane.b32.xlu0 %v6149_v22, %s9069_s17  ;;  %v6733_v58 = vpop.f32.mrb[71].mxu1  ;;  %s9074_s17 = smov 104  }
 0x580   : > { %6323 = vrot.lane.b32.xlu1 %v6292_v10, %s9071_s10 }
 0x582   : > { %6325 = vrot.lane.b32.xlu0 %v6295_v15, %s9071_s10 }
 0x584   : > { %6465 = vrot.lane.b32.xlu1 %v8567_v24, %s9072_s16 }
 0x586   : > { %6467 = vrot.lane.b32.xlu0 %v8568_v62, %s9072_s16 }
 0x588   : > { %6611 = vrot.lane.b32.xlu1 %v8583_v16, %s9073_s20 }
 0x58a   : > { %6613 = vrot.lane.b32.xlu0 %v8584_v18, %s9073_s20 }
 0x58c   : > { %6461 = vrot.lane.b32.xlu1 %v6422_v17, %s9072_s16 }
 0x58e   : > { %6463 = vrot.lane.b32.xlu0 %v6425_v8, %s9072_s16 }
 0x590   : > { %6607 = vrot.lane.b32.xlu1 %v6568_v5, %s9073_s20 }
 0x592   : > { %6609 = vrot.lane.b32.xlu0 %v6571_v42, %s9073_s20 }
 0x594   : > { %6473 = vrot.lane.b32.xlu1 %v8571_v41, %s9072_s16 }
 0x596   : > { %6475 = vrot.lane.b32.xlu0 %v8572_v45, %s9072_s16 }
 0x598   : > { %6619 = vrot.lane.b32.xlu1 %v8587_v23, %s9073_s20 }
 0x59a   : > { %6621 = vrot.lane.b32.xlu0 %v8588_v21, %s9073_s20 }
 0x59c   : > { %6469 = vrot.lane.b32.xlu1 %v6438_v19, %s9072_s16 }
 0x59e   : > { %6471 = vrot.lane.b32.xlu0 %v6441_v20, %s9072_s16 }
 0x5a0   : > { %6615 = vrot.lane.b32.xlu1 %v6584_v43, %s9073_s20 }
 0x5a2   : > { %6617 = vrot.lane.b32.xlu0 %v6587_v25, %s9073_s20 }
 0x5a4   : > { %6757 = vrot.lane.b32.xlu1 %v8599_v2, %s9074_s17 }
 0x5a6   : > { %v5647_v48 = vpop.permute.xlu1 %5646  ;;  %6759 = vrot.lane.b32.xlu0 %v8600_v63, %s9074_s17 }
 0x5a7   : > { %v5741_v49 = vadd.f32 %v10487_v27, %v5647_v48 }
 0x5a8   : > { %v5649_v14 = vpop.permute.xlu0 %5648  ;;  %6753 = vrot.lane.b32.xlu1 %v6714_v28, %s9074_s17 }
 0x5a9   : > { %v5744_v39 = vadd.f32 %v10492_v29, %v5649_v14 }
 0x5aa   : > { %v5643_v50 = vpop.permute.xlu1 %5642  ;;  %6755 = vrot.lane.b32.xlu0 %v6717_v0, %s9074_s17 }
 0x5ab   : > { %v5733_v40 = vadd.f32 %v10490_v60, %v5643_v50 }
 0x5ac   : > { %v5645_v3 = vpop.permute.xlu0 %5644  ;;  %6761 = vrot.lane.b32.xlu1 %v6730_v33, %s9074_s17 }
 0x5ad   : > { %v5736_v44 = vadd.f32 %v10495_v30, %v5645_v3 }
 0x5ae   : > { %v5655_v51 = vpop.permute.xlu1 %5654  ;;  %6763 = vrot.lane.b32.xlu0 %v6733_v58, %s9074_s17 }
 0x5af   : > { %v5757_v52 = vadd.f32 %v10499_v32, %v5655_v51 }
 0x5b0   : > { %v5657_v53 = vpop.permute.xlu0 %5656  ;;  %6765 = vrot.lane.b32.xlu1 %v8603_v31, %s9074_s17 }
 0x5b1   : > { %v5760_v27 = vadd.f32 %v10504_v34, %v5657_v53 }
 0x5b2   : > { %v5651_v54 = vpop.permute.xlu1 %5650  ;;  %6767 = vrot.lane.b32.xlu0 %v8604_v6, %s9074_s17 }
 0x5b3   : > { %v5749_v29 = vadd.f32 %v10502_v12, %v5651_v54 }
 0x5b4   : > { %v5653_v55 = vpop.permute.xlu0 %5652 }
 0x5b5   : > { %v5752_v56 = vadd.f32 %v10507_v35, %v5653_v55 }
 0x5b6   : > { %v5882_v60 = vpop.permute.xlu1 %5881 }
 0x5b7   : > { %v5903_v59 = vadd.f32 %v5882_v60, %v5741_v49 }
 0x5b8   : > { %v5884_v61 = vpop.permute.xlu0 %5883 }
 0x5b9   : > { %v5904_v1 = vadd.f32 %v5884_v61, %v5744_v39 }
 0x5ba   : > { %v6028_v30 = vpop.permute.xlu1 %6027 }
 0x5bb   : > { %v6049_v7 = vadd.f32 %v6028_v30, %v5903_v59 }
 0x5bc   : > { %v6030_v9 = vpop.permute.xlu0 %6029 }
 0x5bd   : > { %v6050_v10 = vadd.f32 %v6030_v9, %v5904_v1 }
 0x5be   : > { %v5878_v32 = vpop.permute.xlu1 %5877 }
 0x5bf   : > { %v5901_v11 = vadd.f32 %v5878_v32, %v5733_v40 }
 0x5c0   : > { %v5880_v13 = vpop.permute.xlu0 %5879 }
 0x5c1   : > { %v5902_v22 = vadd.f32 %v5880_v13, %v5736_v44 }
 0x5c2   : > { %v6024_v34 = vpop.permute.xlu1 %6023 }
 0x5c3   : > { %v6047_v15 = vadd.f32 %v6024_v34, %v5901_v11 }
 0x5c4   : > { %v6026_v24 = vpop.permute.xlu0 %6025 }
 0x5c5   : > { %v6048_v16 = vadd.f32 %v6026_v24, %v5902_v22 }
 0x5c6   : > { %v5890_v12 = vpop.permute.xlu1 %5889 }
 0x5c7   : > { %v5907_v17 = vadd.f32 %v5890_v12, %v5757_v52 }
 0x5c8   : > { %v5892_v5 = vpop.permute.xlu0 %5891 }
 0x5c9   : > { %v5908_v35 = vadd.f32 %v5892_v5, %v5760_v27 }
 0x5ca   : > { %v6036_v62 = vpop.permute.xlu1 %6035 }
 0x5cb   : > { %v10559_v18 = vadd.f32 %v6036_v62, %v5907_v17 }
 0x5cc   : > { %v6038_v8 = vpop.permute.xlu0 %6037 }
 0x5cd   : > { %v10561_v42 = vadd.f32 %v6038_v8, %v5908_v35 }
 0x5ce   : > { %v5886_v41 = vpop.permute.xlu1 %5885 }
 0x5cf   : > { %v5905_v23 = vadd.f32 %v5886_v41, %v5749_v29 }
 0x5d0   : > { %v5888_v19 = vpop.permute.xlu0 %5887 }
 0x5d1   : > { %v5906_v43 = vadd.f32 %v5888_v19, %v5752_v56 }
 0x5d2   : > { %v6032_v45 = vpop.permute.xlu1 %6031 }
 0x5d3   : > { %v6051_v21 = vadd.f32 %v6032_v45, %v5905_v23 }
 0x5d4   : > { %v6034_v20 = vpop.permute.xlu0 %6033 }
 0x5d5   : > { %v6052_v25 = vadd.f32 %v6034_v20, %v5906_v43 }
 0x5d6   : > { %v6174_v2 = vpop.permute.xlu1 %6173 }
 0x5d7   : > { %v6195_v9 = vadd.f32 %v6174_v2, %v6049_v7 }
 0x5d8   : > { %v6176_v28 = vpop.permute.xlu0 %6175 }
 0x5d9   : > { %v6196_v11 = vadd.f32 %v6176_v28, %v6050_v10 }
 0x5da   : > { %v6320_v63 = vpop.permute.xlu1 %6319 }
 0x5db   : > { %v6341_v13 = vadd.f32 %v6320_v63, %v6195_v9 }
 0x5dc   : > { %v6322_v0 = vpop.permute.xlu0 %6321 }
 0x5dd   : > { %v6342_v34 = vadd.f32 %v6322_v0, %v6196_v11 }
 0x5de   : > { %v6170_v31 = vpop.permute.xlu1 %6169 }
 0x5df   : > { %v6193_v24 = vadd.f32 %v6170_v31, %v6047_v15 }
 0x5e0   : > { %v6172_v33 = vpop.permute.xlu0 %6171 }
 0x5e1   : > { %v6194_v5 = vadd.f32 %v6172_v33, %v6048_v16 }
 0x5e2   : > { %v6316_v6 = vpop.permute.xlu1 %6315 }
 0x5e3   : > { %v6339_v35 = vadd.f32 %v6316_v6, %v6193_v24 }
 0x5e4   : > { %v6318_v58 = vpop.permute.xlu0 %6317 }
 0x5e5   : > { %v6340_v19 = vadd.f32 %v6318_v58, %v6194_v5 }
 0x5e6   : > { %v6182_v48 = vpop.permute.xlu1 %6181 }
 0x5e7   : > { %v6199_v16 = vadd.f32 %v6182_v48, %v10559_v18 }
 0x5e8   : > { %v6184_v49 = vpop.permute.xlu0 %6183 }
 0x5ea   : > { %v6328_v14 = vpop.permute.xlu1 %6327 }
 0x5ec   : > { %v6330_v39 = vpop.permute.xlu0 %6329 }
 0x5ee   : > { %v6178_v50 = vpop.permute.xlu1 %6177 }
 0x5ef   : > { %v6197_v41 = vadd.f32 %v6178_v50, %v6051_v21 }
 0x5f0   : > { %v6180_v40 = vpop.permute.xlu0 %6179 }
 0x5f1   : > { %v6198_v7 = vadd.f32 %v6180_v40, %v6052_v25  ;;  %v6200_v25 = vadd.f32 %v6184_v49, %v10561_v42  ;;  %v6345_v40 = vadd.f32 %v6328_v14, %v6199_v16 }
 0x5f2   : > { %v6324_v3 = vpop.permute.xlu1 %6323 }
 0x5f3   : > { %v6343_v2 = vadd.f32 %v6324_v3, %v6197_v41  ;;  %v6346_v48 = vadd.f32 %v6330_v39, %v6200_v25 }
 0x5f4   : > { %v6326_v44 = vpop.permute.xlu0 %6325 }
 0x5f5   : > { %v6344_v31 = vadd.f32 %v6326_v44, %v6198_v7 }
 0x5f6   : > { %v6466_v51 = vpop.permute.xlu1 %6465 }
 0x5f7   : > { %v6487_v12 = vadd.f32 %v6466_v51, %v6341_v13 }
 0x5f8   : > { %v6468_v52 = vpop.permute.xlu0 %6467 }
 0x5f9   : > { %v6488_v62 = vadd.f32 %v6468_v52, %v6342_v34 }
 0x5fa   : > { %v6612_v53 = vpop.permute.xlu1 %6611 }
 0x5fb   : > { %v6633_v8 = vadd.f32 %v6612_v53, %v6487_v12 }
 0x5fc   : > { %v6614_v27 = vpop.permute.xlu0 %6613 }
 0x5fd   : > { %v6634_v43 = vadd.f32 %v6614_v27, %v6488_v62 }
 0x5fe   : > { %v6462_v54 = vpop.permute.xlu1 %6461 }
 0x5ff   : > { %v6485_v45 = vadd.f32 %v6462_v54, %v6339_v35 }
 0x600   : > { %v6464_v29 = vpop.permute.xlu0 %6463 }
 0x601   : > { %v6486_v28 = vadd.f32 %v6464_v29, %v6340_v19 }
 0x602   : > { %v6608_v55 = vpop.permute.xlu1 %6607 }
 0x603   : > { %v6631_v63 = vadd.f32 %v6608_v55, %v6485_v45 }
 0x604   : > { %v6610_v56 = vpop.permute.xlu0 %6609 }
 0x605   : > { %v6632_v21 = vadd.f32 %v6610_v56, %v6486_v28 }
 0x606   : > { %v6474_v60 = vpop.permute.xlu1 %6473 }
 0x607   : > { %v6491_v44 = vadd.f32 %v6474_v60, %v6345_v40 }
 0x608   : > { %v6476_v59 = vpop.permute.xlu0 %6475 }
 0x60a   : > { %v6620_v61 = vpop.permute.xlu1 %6619 }
 0x60b   : > { %v6637_v9 = vadd.f32 %v6620_v61, %v6491_v44 }
 0x60c   : > { %v6622_v1 = vpop.permute.xlu0 %6621 }
 0x60e   : > { %v6470_v30 = vpop.permute.xlu1 %6469 }
 0x60f   : > { %v6489_v33 = vadd.f32 %v6470_v30, %v6343_v2  ;;  %v6492_v30 = vadd.f32 %v6476_v59, %v6346_v48 }
 0x610   : > { %v6472_v32 = vpop.permute.xlu0 %6471 }
 0x611   : > { %v6490_v3 = vadd.f32 %v6472_v32, %v6344_v31  ;;  %v6638_v32 = vadd.f32 %v6622_v1, %v6492_v30 }
 0x612   : > { %v6616_v22 = vpop.permute.xlu1 %6615 }
 0x613   : > { %v6635_v51 = vadd.f32 %v6616_v22, %v6489_v33 }
 0x614   : > { %v6618_v17 = vpop.permute.xlu0 %6617 }
 0x615   : > { %v6636_v29 = vadd.f32 %v6618_v17, %v6490_v3 }
 0x616   : > { %v6758_v23 = vpop.permute.xlu1 %6757 }
 0x617   : > { %v6779_v20 = vadd.f32 %v6758_v23, %v6633_v8 }
 0x618   : > { %v6760_v10 = vpop.permute.xlu0 %6759 }
 0x619   : > { %v6835_v15 = vadd.f32 %v10539_v4, %v6779_v20  ;;  %v6780_v0 = vadd.f32 %v6760_v10, %v6634_v43 }
 0x61a   : > { %v6754_v6 = vpop.permute.xlu1 %6753 }
 0x61b   : > { %v6836_v58 = vadd.f32 %v10541_v37, %v6780_v0  ;;  %v6777_v50 = vadd.f32 %v6754_v6, %v6631_v63  ;;  %v6843_v53 = vmax.f32 %v6835_v15, 0.0 }
 0x61c   : > { %v6756_v52 = vpop.permute.xlu0 %6755 }
 0x61d   : > { %v6844_v4 = vmax.f32 %v6836_v58, 0.0  ;;  %v6833_v27 = vadd.f32 %v10535_v57, %v6777_v50  ;;  %v6778_v18 = vadd.f32 %v6756_v52, %v6632_v21 }
 0x61e   : > { %v6762_v54 = vpop.permute.xlu1 %6761 }
 0x61f   : > { %v7606_v55 = vpack.c.bf16 %v6844_v4, %v6843_v53  ;;  %v6834_v56 = vadd.f32 %v10537_v36, %v6778_v18  ;;  %v6781_v37 = vadd.f32 %v6762_v54, %v6635_v51  ;;  %v6841_v49 = vmax.f32 %v6833_v27, 0.0 }
 0x620   : > { %v6764_v42 = vpop.permute.xlu0 %6763 }
 0x621   : > { %7618 = vst [vmem:[%s10571_s24 + $0x8] sm:$0xff] %v7606_v55   ;;  %v6842_v14 = vmax.f32 %v6834_v56, 0.0  ;;  %v6837_v57 = vadd.f32 %v10543_v38, %v6781_v37  ;;  %v6782_v39 = vadd.f32 %v6764_v42, %v6636_v29 }
 0x622   : > { %v6766_v60 = vpop.permute.xlu1 %6765 }
 0x623   : > { %v7601_v11 = vpack.c.bf16 %v6842_v14, %v6841_v49  ;;  %v6838_v36 = vadd.f32 %v10545_v26, %v6782_v39  ;;  %v6783_v59 = vadd.f32 %v6766_v60, %v6637_v9  ;;  %v6845_v13 = vmax.f32 %v6837_v57, 0.0 }
 0x624   : > { %v6768_v61 = vpop.permute.xlu0 %6767 }
 0x625   : > { %7602 = vst [vmem:[%s10571_s24] sm:$0xff] %v7601_v11   ;;  %v6846_v22 = vmax.f32 %v6838_v36, 0.0  ;;  %v6839_v34 = vadd.f32 %v10547_v46, %v6783_v59  ;;  %v6784_v24 = vadd.f32 %v6768_v61, %v6638_v32 }
 0x627   : > { %v7611_v12 = vpack.c.bf16 %v6846_v22, %v6845_v13  ;;  %v6840_v17 = vadd.f32 %v10549_v47, %v6784_v24  ;;  %v6847_v38 = vmax.f32 %v6839_v34, 0.0  ;;  %6895 = sbr.rel (!%p9145_p5) target bundleno = 1590 (0x636), region = 93 }
 0x628   : > { %v6917_v47 = vld [vmem:[%s10571_s24 + $0x8] sm:$0xf] (%p9145_p5)  ;;  %v6919_v1 = vld [vmem:[%s10571_s24 + $0xc] sm:$0xf] (%p9145_p5) }
 0x629   : > { %7619 = vst [vmem:[%s10571_s24 + $0x10] sm:$0xff] %v7611_v12   ;;  %v6848_v5 = vmax.f32 %v6840_v17, 0.0  ;;  %6918 = vst [vmem:[%s6897_s30 + $0x10] sm:$0xf] (%p9145_p5), %v6917_v47 }
 0x62a   : > { %6920 = vst [vmem:[%s6897_s30 + $0x18] sm:$0xf] (%p9145_p5), %v6919_v1 }
 0x62b   : > { %v7616_v35 = vpack.c.bf16 %v6848_v5, %v6847_v38 }
 0x62c   : > { %v6913_v26 = vld [vmem:[%s10571_s24] sm:$0xf] (%p9145_p5)  ;;  %v6915_v46 = vld [vmem:[%s10571_s24 + $0x4] sm:$0xf] (%p9145_p5) }
 0x62d   : > { %7620 = vst [vmem:[%s10571_s24 + $0x18] sm:$0xff] %v7616_v35   ;;  %6914 = vst [vmem:[%s6897_s30] sm:$0xf] (%p9145_p5), %v6913_v26 }
 0x62e   : > { %6916 = vst [vmem:[%s6897_s30 + $0x8] sm:$0xf] %v6915_v46 }
 0x630   : > { %v6921_v62 = vld [vmem:[%s10571_s24 + $0x10] sm:$0xf]  ;;  %v6923_v8 = vld [vmem:[%s10571_s24 + $0x14] sm:$0xf] }
 0x631   : > { %6922 = vst [vmem:[%s6897_s30 + $0x20] sm:$0xf] %v6921_v62  ;;  %6924 = vst [vmem:[%s6897_s30 + $0x28] sm:$0xf] %v6923_v8 }
 0x634   : > { %v6925_v41 = vld [vmem:[%s10571_s24 + $0x18] sm:$0xf]  ;;  %v6927_v23 = vld [vmem:[%s10571_s24 + $0x1c] sm:$0xf] }
 0x635   : > { %6926 = vst [vmem:[%s6897_s30 + $0x30] sm:$0xf] %v6925_v41  ;;  %6928 = vst [vmem:[%s6897_s30 + $0x38] sm:$0xf] %v6927_v23 }
 0x636 PF: > { %p14_p10 = scmp.ge.s32.totalorder %s9132_s28, 4   ;;  %s10615_s24 = smov %s9059_s25 }
 0x637   : > { %s10616_s25 = smov %s9143_s8  ;;  %s10617_s26 = smov %s9132_s28 }
 0x638   :  { %16 = sbr.rel (!%p14_p10) target bundleno = 2 (0x2), region = 195 }

// kernel: mario_forward.3
= control target key start
LH: loop header
LB: loop body
LE: loop exit
PB: predicated region body
PF: predicated region fallthrough
CT: control target
= control target key end

     0   :  { %vm4898_vm0 = vcmask 523264   ;;  %s11187_s1 = inlined_call_operand.vmem [shape: bf16[3136,512], index: 1, kind: input, shape index: {}]   ;;  %s11188_s0 = inlined_call_operand.vmem [shape: bf16[16,3136], index: 0, kind: input, shape index: {}]   ;;  %s11189_s3 = inlined_call_operand.vmem [shape: bf16[512,128], index: 3, kind: input, shape index: {}]   ;;  %s11190_s2 = inlined_call_operand.vmem [shape: f32[1,512], index: 2, kind: input, shape index: {}]   ;;  %s11191_s4 = inlined_call_operand.vmem [shape: f32[1,128], index: 4, kind: input, shape index: {}]   ;;  %s11192_s5 = inlined_call_operand.vmem [shape: f32[16,128], index: 5, kind: output, shape index: {}]  }
   0x1   :  { %v7376_v0 = vld [vmem:[%s11187_s1 + $0x4] ss:$16 sps:$4 sm:$0xff]   ;;  %v7378_v1 = vld [vmem:[%s11187_s1 + $0xc] ss:$16 sps:$4 sm:$0xff]   ;;  %v7380_v2 = vld [vmem:[%s11187_s1] ss:$16 sps:$4 sm:$0xff]  }
   0x2   :  { %4902 = vmatprep.subr.bf16.mxu0 %v7376_v0  ;;  %v7381_v3 = vld [vmem:[%s11187_s1 + $0x8] ss:$16 sps:$4 sm:$0xff]   ;;  %5461 = vmatprep.subr.bf16.mxu1 %v7378_v1  ;;  %v7382_v4 = vld [vmem:[%s11187_s1 + $0x24] ss:$16 sps:$4 sm:$0xff]   ;;  %v7384_v5 = vld [vmem:[%s11187_s1 + $0x2c] ss:$16 sps:$4 sm:$0xff]  }
   0x3   :  { %4903 = vmatpush1.bf16.msra.mxu0 %v7380_v2  ;;  %5462 = vmatpush1.bf16.msra.mxu1 %v7381_v3  ;;  %v7386_v6 = vld [vmem:[%s11187_s1 + $0x20] ss:$16 sps:$4 sm:$0xff]   ;;  %v7387_v7 = vld [vmem:[%s11187_s1 + $0x28] ss:$16 sps:$4 sm:$0xff]   ;;  %v7388_v8 = vld [vmem:[%s11187_s1 + $0x44] ss:$16 sps:$4 sm:$0xff]  }
   0x4   :  { %4904 = vmatprep.subr.bf16.mxu0 %v7382_v4  ;;  %5463 = vmatprep.subr.bf16.mxu1 %v7384_v5  ;;  %v7390_v9 = vld [vmem:[%s11187_s1 + $0x4c] ss:$16 sps:$4 sm:$0xff]   ;;  %v7392_v10 = vld [vmem:[%s11187_s1 + $0x40] ss:$16 sps:$4 sm:$0xff]   ;;  %v7393_v11 = vld [vmem:[%s11187_s1 + $0x48] ss:$16 sps:$4 sm:$0xff]  }
   0x5   :  { %v7394_v12 = vld [vmem:[%s11187_s1 + $0x64] ss:$16 sps:$4 sm:$0xff]   ;;  %v7396_v13 = vld [vmem:[%s11187_s1 + $0x6c] ss:$16 sps:$4 sm:$0xff]   ;;  %v7398_v14 = vld [vmem:[%s11187_s1 + $0x60] ss:$16 sps:$4 sm:$0xff]  }
   0x6   :  { %v7399_v15 = vld [vmem:[%s11187_s1 + $0x68] ss:$16 sps:$4 sm:$0xff]   ;;  %v7400_v16 = vld [vmem:[%s11187_s1 + $0x84] ss:$16 sps:$4 sm:$0xff]   ;;  %v7402_v17 = vld [vmem:[%s11187_s1 + $0x8c] ss:$16 sps:$4 sm:$0xff]  }
   0x7   :  { %4905 = vmatpush1.bf16.msra.mxu0 %v7386_v6  ;;  %5464 = vmatpush1.bf16.msra.mxu1 %v7387_v7  ;;  %v7404_v18 = vld [vmem:[%s11187_s1 + $0x80] ss:$16 sps:$4 sm:$0xff]   ;;  %v7405_v19 = vld [vmem:[%s11187_s1 + $0x88] ss:$16 sps:$4 sm:$0xff]   ;;  %v7406_v20 = vld [vmem:[%s11187_s1 + $0xa4] ss:$16 sps:$4 sm:$0xff]  }
   0x8   :  { %4906 = vmatprep.subr.bf16.mxu0 %v7388_v8  ;;  %5465 = vmatprep.subr.bf16.mxu1 %v7390_v9  ;;  %v7408_v21 = vld [vmem:[%s11187_s1 + $0xac] ss:$16 sps:$4 sm:$0xff]   ;;  %v7410_v22 = vld [vmem:[%s11187_s1 + $0xa0] ss:$16 sps:$4 sm:$0xff]   ;;  %v7411_v23 = vld [vmem:[%s11187_s1 + $0xa8] ss:$16 sps:$4 sm:$0xff]  }
   0x9   :  { %v7412_v24 = vld [vmem:[%s11187_s1 + $0xc4] ss:$16 sps:$4 sm:$0xff]   ;;  %v7414_v25 = vld [vmem:[%s11187_s1 + $0xcc] ss:$16 sps:$4 sm:$0xff]   ;;  %v7416_v26 = vld [vmem:[%s11187_s1 + $0xc0] ss:$16 sps:$4 sm:$0xff]  }
   0xa   :  { %v7417_v27 = vld [vmem:[%s11187_s1 + $0xc8] ss:$16 sps:$4 sm:$0xff]   ;;  %v7418_v28 = vld [vmem:[%s11187_s1 + $0xe4] ss:$16 sps:$4 sm:$0xff]   ;;  %v7420_v29 = vld [vmem:[%s11187_s1 + $0xec] ss:$16 sps:$4 sm:$0xff]  }
   0xb   :  { %4907 = vmatpush1.bf16.msra.mxu0 %v7392_v10  ;;  %5466 = vmatpush1.bf16.msra.mxu1 %v7393_v11  ;;  %v7422_v30 = vld [vmem:[%s11187_s1 + $0xe0] ss:$16 sps:$4 sm:$0xff]   ;;  %v7423_v31 = vld [vmem:[%s11187_s1 + $0xe8] ss:$16 sps:$4 sm:$0xff]   ;;  %v7424_v32 = vld [vmem:[%s11187_s1 + $0x104] ss:$16 sps:$4 sm:$0xff]  }
   0xc   :  { %4908 = vmatprep.subr.bf16.mxu0 %v7394_v12  ;;  %5467 = vmatprep.subr.bf16.mxu1 %v7396_v13  ;;  %v7426_v33 = vld [vmem:[%s11187_s1 + $0x10c] ss:$16 sps:$4 sm:$0xff]   ;;  %v7428_v34 = vld [vmem:[%s11187_s1 + $0x100] ss:$16 sps:$4 sm:$0xff]   ;;  %v7429_v35 = vld [vmem:[%s11187_s1 + $0x108] ss:$16 sps:$4 sm:$0xff]  }
   0xd   :  { %v7430_v36 = vld [vmem:[%s11187_s1 + $0x124] ss:$16 sps:$4 sm:$0xff]   ;;  %v7432_v37 = vld [vmem:[%s11187_s1 + $0x12c] ss:$16 sps:$4 sm:$0xff]   ;;  %v7434_v38 = vld [vmem:[%s11187_s1 + $0x120] ss:$16 sps:$4 sm:$0xff]  }
   0xe   :  { %v7435_v39 = vld [vmem:[%s11187_s1 + $0x128] ss:$16 sps:$4 sm:$0xff]   ;;  %v7436_v40 = vld [vmem:[%s11187_s1 + $0x144] ss:$16 sps:$4 sm:$0xff]   ;;  %v7438_v41 = vld [vmem:[%s11187_s1 + $0x14c] ss:$16 sps:$4 sm:$0xff]  }
   0xf   :  { %4909 = vmatpush1.bf16.msra.mxu0 %v7398_v14  ;;  %5468 = vmatpush1.bf16.msra.mxu1 %v7399_v15  ;;  %v7440_v42 = vld [vmem:[%s11187_s1 + $0x140] ss:$16 sps:$4 sm:$0xff]   ;;  %v7441_v43 = vld [vmem:[%s11187_s1 + $0x148] ss:$16 sps:$4 sm:$0xff]   ;;  %v7442_v44 = vld [vmem:[%s11187_s1 + $0x164] ss:$16 sps:$4 sm:$0xff]  }
  0x10   :  { %4910 = vmatprep.subr.bf16.mxu0 %v7400_v16  ;;  %5469 = vmatprep.subr.bf16.mxu1 %v7402_v17  ;;  %v7444_v45 = vld [vmem:[%s11187_s1 + $0x16c] ss:$16 sps:$4 sm:$0xff]   ;;  %v7446_v46 = vld [vmem:[%s11187_s1 + $0x160] ss:$16 sps:$4 sm:$0xff]   ;;  %v7447_v47 = vld [vmem:[%s11187_s1 + $0x168] ss:$16 sps:$4 sm:$0xff]  }
  0x11   :  { %v7474_v48 = vld [vmem:[%s11188_s0 + $0x4] ss:$100 sps:$4 sm:$0xff]   ;;  %v7450_v50 = vld [vmem:[%s11187_s1 + $0x18c] ss:$16 sps:$4 sm:$0xff]   ;;  %v7452_v51 = vld [vmem:[%s11187_s1 + $0x180] ss:$16 sps:$4 sm:$0xff]  }
  0x12   :  { %v7448_v49 = vld [vmem:[%s11187_s1 + $0x184] ss:$16 sps:$4 sm:$0xff]   ;;  %4934 = vmatprep.mubr.bf16.mxu0 %v7474_v48  ;;  %5493 = vmatprep.mubr.bf16.mxu1 %v7474_v48  ;;  %v7453_v52 = vld [vmem:[%s11187_s1 + $0x188] ss:$16 sps:$4 sm:$0xff]   ;;  %v7456_v54 = vld [vmem:[%s11187_s1 + $0x1ac] ss:$16 sps:$4 sm:$0xff]  }
  0x13   :  { %4911 = vmatpush1.bf16.msra.mxu0 %v7404_v18  ;;  %5470 = vmatpush1.bf16.msra.mxu1 %v7405_v19  ;;  %v7454_v53 = vld [vmem:[%s11187_s1 + $0x1a4] ss:$16 sps:$4 sm:$0xff]   ;;  %v7458_v55 = vld [vmem:[%s11187_s1 + $0x1a0] ss:$16 sps:$4 sm:$0xff]   ;;  %v7459_v56 = vld [vmem:[%s11187_s1 + $0x1a8] ss:$16 sps:$4 sm:$0xff]  }
  0x14   :  { %4912 = vmatprep.subr.bf16.mxu0 %v7406_v20  ;;  %5471 = vmatprep.subr.bf16.mxu1 %v7408_v21  ;;  %v7460_v57 = vld [vmem:[%s11187_s1 + $0x1c4] ss:$16 sps:$4 sm:$0xff]   ;;  %v7462_v58 = vld [vmem:[%s11187_s1 + $0x1cc] ss:$16 sps:$4 sm:$0xff]   ;;  %v7464_v59 = vld [vmem:[%s11187_s1 + $0x1c0] ss:$16 sps:$4 sm:$0xff]  }
  0x15   :  { %v7465_v60 = vld [vmem:[%s11187_s1 + $0x1c8] ss:$16 sps:$4 sm:$0xff]   ;;  %v7466_v61 = vld [vmem:[%s11187_s1 + $0x1e4] ss:$16 sps:$4 sm:$0xff]   ;;  %v7468_v62 = vld [vmem:[%s11187_s1 + $0x1ec] ss:$16 sps:$4 sm:$0xff]  }
  0x16   :  { %v7470_v63 = vld [vmem:[%s11187_s1 + $0x1e0] ss:$16 sps:$4 sm:$0xff]   ;;  %v7471_v0 = vld [vmem:[%s11187_s1 + $0x1e8] ss:$16 sps:$4 sm:$0xff]   ;;  %v7477_v1 = vld [vmem:[%s11187_s1 + $0x204] ss:$16 sps:$4 sm:$0xff]  }
  0x17   :  { %4913 = vmatpush1.bf16.msra.mxu0 %v7410_v22  ;;  %5472 = vmatpush1.bf16.msra.mxu1 %v7411_v23  ;;  %v7480_v2 = vld [vmem:[%s11187_s1 + $0x20c] ss:$16 sps:$4 sm:$0xff]   ;;  %v7472_v3 = vld [vmem:[%s11188_s0] ss:$100 sps:$4 sm:$0xff]   ;;  %v7478_v5 = vld [vmem:[%s11187_s1 + $0x208] ss:$16 sps:$4 sm:$0xff]  }
  0x18   :  { %4914 = vmatprep.subr.bf16.mxu0 %v7412_v24  ;;  %5473 = vmatprep.subr.bf16.mxu1 %v7414_v25  ;;  %v7475_v4 = vld [vmem:[%s11187_s1 + $0x200] ss:$16 sps:$4 sm:$0xff]   ;;  %v7483_v6 = vld [vmem:[%s11187_s1 + $0x224] ss:$16 sps:$4 sm:$0xff]   ;;  %v7486_v7 = vld [vmem:[%s11187_s1 + $0x22c] ss:$16 sps:$4 sm:$0xff]  }
  0x19   :  { %v7481_v8 = vld [vmem:[%s11187_s1 + $0x220] ss:$16 sps:$4 sm:$0xff]   ;;  %v7484_v9 = vld [vmem:[%s11187_s1 + $0x228] ss:$16 sps:$4 sm:$0xff]   ;;  %v7489_v10 = vld [vmem:[%s11187_s1 + $0x244] ss:$16 sps:$4 sm:$0xff]  }
  0x1a   :  { %v7492_v11 = vld [vmem:[%s11187_s1 + $0x24c] ss:$16 sps:$4 sm:$0xff]   ;;  %v7487_v12 = vld [vmem:[%s11187_s1 + $0x240] ss:$16 sps:$4 sm:$0xff]   ;;  %v7490_v13 = vld [vmem:[%s11187_s1 + $0x248] ss:$16 sps:$4 sm:$0xff]  }
  0x1b   :  { %4915 = vmatpush1.bf16.msra.mxu0 %v7416_v26  ;;  %5474 = vmatpush1.bf16.msra.mxu1 %v7417_v27  ;;  %v7495_v14 = vld [vmem:[%s11187_s1 + $0x264] ss:$16 sps:$4 sm:$0xff]   ;;  %v7498_v15 = vld [vmem:[%s11187_s1 + $0x26c] ss:$16 sps:$4 sm:$0xff]   ;;  %v7493_v16 = vld [vmem:[%s11187_s1 + $0x260] ss:$16 sps:$4 sm:$0xff]  }
  0x1c   :  { %4916 = vmatprep.subr.bf16.mxu0 %v7418_v28  ;;  %5475 = vmatprep.subr.bf16.mxu1 %v7420_v29  ;;  %v7496_v17 = vld [vmem:[%s11187_s1 + $0x268] ss:$16 sps:$4 sm:$0xff]   ;;  %v7501_v18 = vld [vmem:[%s11187_s1 + $0x284] ss:$16 sps:$4 sm:$0xff]   ;;  %v7504_v19 = vld [vmem:[%s11187_s1 + $0x28c] ss:$16 sps:$4 sm:$0xff]  }
  0x1d   :  { %v7499_v20 = vld [vmem:[%s11187_s1 + $0x280] ss:$16 sps:$4 sm:$0xff]   ;;  %v7502_v21 = vld [vmem:[%s11187_s1 + $0x288] ss:$16 sps:$4 sm:$0xff]   ;;  %v7507_v22 = vld [vmem:[%s11187_s1 + $0x2a4] ss:$16 sps:$4 sm:$0xff]  }
  0x1e   :  { %v7510_v23 = vld [vmem:[%s11187_s1 + $0x2ac] ss:$16 sps:$4 sm:$0xff]   ;;  %v7505_v24 = vld [vmem:[%s11187_s1 + $0x2a0] ss:$16 sps:$4 sm:$0xff]   ;;  %v7508_v25 = vld [vmem:[%s11187_s1 + $0x2a8] ss:$16 sps:$4 sm:$0xff]  }
  0x1f   :  { %4917 = vmatpush1.bf16.msra.mxu0 %v7422_v30  ;;  %5476 = vmatpush1.bf16.msra.mxu1 %v7423_v31  ;;  %v7513_v26 = vld [vmem:[%s11187_s1 + $0x2c4] ss:$16 sps:$4 sm:$0xff]   ;;  %v7516_v27 = vld [vmem:[%s11187_s1 + $0x2cc] ss:$16 sps:$4 sm:$0xff]   ;;  %v7511_v28 = vld [vmem:[%s11187_s1 + $0x2c0] ss:$16 sps:$4 sm:$0xff]  }
  0x20   :  { %4918 = vmatprep.subr.bf16.mxu0 %v7424_v32  ;;  %5477 = vmatprep.subr.bf16.mxu1 %v7426_v33  ;;  %v7514_v29 = vld [vmem:[%s11187_s1 + $0x2c8] ss:$16 sps:$4 sm:$0xff]   ;;  %v7573_v30 = vld [vmem:[%s11188_s0 + $0xc] ss:$100 sps:$4 sm:$0xff]   ;;  %v7519_v31 = vld [vmem:[%s11187_s1 + $0x2e4] ss:$16 sps:$4 sm:$0xff]  }
  0x21   :  { %v7522_v32 = vld [vmem:[%s11187_s1 + $0x2ec] ss:$16 sps:$4 sm:$0xff]   ;;  %v7517_v33 = vld [vmem:[%s11187_s1 + $0x2e0] ss:$16 sps:$4 sm:$0xff]  }
  0x22   :  { %v7546_v48 = vld [vmem:[%s11187_s1 + $0x36c] ss:$16 sps:$4 sm:$0xff]  }
  0x23   :  { %4919 = vmatpush1.bf16.msra.mxu0 %v7428_v34  ;;  %5478 = vmatpush1.bf16.msra.mxu1 %v7429_v35  ;;  %v7520_v34 = vld [vmem:[%s11187_s1 + $0x2e8] ss:$16 sps:$4 sm:$0xff]   ;;  %v7525_v35 = vld [vmem:[%s11187_s1 + $0x304] ss:$16 sps:$4 sm:$0xff]  }
  0x24   :  { %4920 = vmatprep.subr.bf16.mxu0 %v7430_v36  ;;  %5479 = vmatprep.subr.bf16.mxu1 %v7432_v37  ;;  %v7528_v36 = vld [vmem:[%s11187_s1 + $0x30c] ss:$16 sps:$4 sm:$0xff]   ;;  %v7523_v37 = vld [vmem:[%s11187_s1 + $0x300] ss:$16 sps:$4 sm:$0xff]  }
  0x27   :  { %4921 = vmatpush1.bf16.msra.mxu0 %v7434_v38  ;;  %5480 = vmatpush1.bf16.msra.mxu1 %v7435_v39  ;;  %v7526_v38 = vld [vmem:[%s11187_s1 + $0x308] ss:$16 sps:$4 sm:$0xff]   ;;  %v7531_v39 = vld [vmem:[%s11187_s1 + $0x324] ss:$16 sps:$4 sm:$0xff]  }
  0x28   :  { %4922 = vmatprep.subr.bf16.mxu0 %v7436_v40  ;;  %5481 = vmatprep.subr.bf16.mxu1 %v7438_v41  ;;  %v7534_v40 = vld [vmem:[%s11187_s1 + $0x32c] ss:$16 sps:$4 sm:$0xff]   ;;  %v7529_v41 = vld [vmem:[%s11187_s1 + $0x320] ss:$16 sps:$4 sm:$0xff]  }
  0x2b   :  { %4923 = vmatpush1.bf16.msra.mxu0 %v7440_v42  ;;  %5482 = vmatpush1.bf16.msra.mxu1 %v7441_v43  ;;  %v7532_v42 = vld [vmem:[%s11187_s1 + $0x328] ss:$16 sps:$4 sm:$0xff]   ;;  %v7537_v43 = vld [vmem:[%s11187_s1 + $0x344] ss:$16 sps:$4 sm:$0xff]  }
  0x2c   :  { %4924 = vmatprep.subr.bf16.mxu0 %v7442_v44  ;;  %5483 = vmatprep.subr.bf16.mxu1 %v7444_v45  ;;  %v7540_v44 = vld [vmem:[%s11187_s1 + $0x34c] ss:$16 sps:$4 sm:$0xff]   ;;  %v7535_v45 = vld [vmem:[%s11187_s1 + $0x340] ss:$16 sps:$4 sm:$0xff]  }
  0x2f   :  { %4925 = vmatpush1.bf16.msra.mxu0 %v7446_v46  ;;  %5484 = vmatpush1.bf16.msra.mxu1 %v7447_v47  ;;  %v7538_v46 = vld [vmem:[%s11187_s1 + $0x348] ss:$16 sps:$4 sm:$0xff]   ;;  %v7543_v47 = vld [vmem:[%s11187_s1 + $0x364] ss:$16 sps:$4 sm:$0xff]  }
  0x30   :  { %4926 = vmatprep.subr.bf16.mxu0 %v7448_v49  ;;  %5485 = vmatprep.subr.bf16.mxu1 %v7450_v50  ;;  %v7541_v49 = vld [vmem:[%s11187_s1 + $0x360] ss:$16 sps:$4 sm:$0xff]   ;;  %v7544_v50 = vld [vmem:[%s11187_s1 + $0x368] ss:$16 sps:$4 sm:$0xff]  }
  0x33   :  { %4927 = vmatpush1.bf16.msra.mxu0 %v7452_v51  ;;  %5486 = vmatpush1.bf16.msra.mxu1 %v7453_v52  ;;  %v7549_v51 = vld [vmem:[%s11187_s1 + $0x384] ss:$16 sps:$4 sm:$0xff]   ;;  %v7552_v52 = vld [vmem:[%s11187_s1 + $0x38c] ss:$16 sps:$4 sm:$0xff]  }
  0x34   :  { %4928 = vmatprep.subr.bf16.mxu0 %v7454_v53  ;;  %5487 = vmatprep.subr.bf16.mxu1 %v7456_v54  ;;  %v7547_v53 = vld [vmem:[%s11187_s1 + $0x380] ss:$16 sps:$4 sm:$0xff]   ;;  %v7550_v54 = vld [vmem:[%s11187_s1 + $0x388] ss:$16 sps:$4 sm:$0xff]  }
  0x37   :  { %4929 = vmatpush1.bf16.msra.mxu0 %v7458_v55  ;;  %5488 = vmatpush1.bf16.msra.mxu1 %v7459_v56  ;;  %v7555_v55 = vld [vmem:[%s11187_s1 + $0x3a4] ss:$16 sps:$4 sm:$0xff]   ;;  %v7558_v56 = vld [vmem:[%s11187_s1 + $0x3ac] ss:$16 sps:$4 sm:$0xff]  }
  0x38   :  { %4930 = vmatprep.subr.bf16.mxu0 %v7460_v57  ;;  %5489 = vmatprep.subr.bf16.mxu1 %v7462_v58  ;;  %v7553_v57 = vld [vmem:[%s11187_s1 + $0x3a0] ss:$16 sps:$4 sm:$0xff]   ;;  %v7556_v58 = vld [vmem:[%s11187_s1 + $0x3a8] ss:$16 sps:$4 sm:$0xff]  }
  0x3b   :  { %4931 = vmatpush1.bf16.msra.mxu0 %v7464_v59  ;;  %5490 = vmatpush1.bf16.msra.mxu1 %v7465_v60  ;;  %v7561_v59 = vld [vmem:[%s11187_s1 + $0x3c4] ss:$16 sps:$4 sm:$0xff]   ;;  %v7564_v60 = vld [vmem:[%s11187_s1 + $0x3cc] ss:$16 sps:$4 sm:$0xff]  }
  0x3c   :  { %4932 = vmatprep.subr.bf16.mxu0 %v7466_v61  ;;  %5491 = vmatprep.subr.bf16.mxu1 %v7468_v62  ;;  %v7559_v61 = vld [vmem:[%s11187_s1 + $0x3c0] ss:$16 sps:$4 sm:$0xff]   ;;  %v7562_v62 = vld [vmem:[%s11187_s1 + $0x3c8] ss:$16 sps:$4 sm:$0xff]  }
  0x3f   :  { %4933 = vmatpush1.bf16.msra.mxu0 %v7470_v63  ;;  %5492 = vmatpush1.bf16.msra.mxu1 %v7471_v0  ;;  %v7567_v63 = vld [vmem:[%s11187_s1 + $0x3e4] ss:$16 sps:$4 sm:$0xff]   ;;  %v7570_v0 = vld [vmem:[%s11187_s1 + $0x3ec] ss:$16 sps:$4 sm:$0xff]  }
  0x40   :  { %4945 = vmatprep.subr.bf16.mxu0 %v7477_v1  ;;  %5504 = vmatprep.subr.bf16.mxu1 %v7480_v2  ;;  %v7565_v1 = vld [vmem:[%s11187_s1 + $0x3e0] ss:$16 sps:$4 sm:$0xff]   ;;  %v7568_v2 = vld [vmem:[%s11187_s1 + $0x3e8] ss:$16 sps:$4 sm:$0xff]  }
  0x42   :  { %4935 = vmatmul.mubr.bf16.vlgmr.msra.gmra.mrb[0].mxu0 %v7472_v3  ;;  %5494 = vmatmul.mubr.bf16.vlgmr.msra.gmra.mrb[0].mxu1 %v7472_v3  ;;  %v7576_v3 = vld [vmem:[%s11187_s1 + $0x404] ss:$16 sps:$4 sm:$0xff]  }
  0x43   :  { %4946 = vmatpush1.bf16.msra.mxu0 %v7475_v4  ;;  %5505 = vmatpush1.bf16.msra.mxu1 %v7478_v5  ;;  %v7579_v4 = vld [vmem:[%s11187_s1 + $0x40c] ss:$16 sps:$4 sm:$0xff]  }
  0x44   :  { %4947 = vmatprep.subr.bf16.mxu0 %v7483_v6  ;;  %5506 = vmatprep.subr.bf16.mxu1 %v7486_v7  ;;  %v7571_v5 = vld [vmem:[%s11188_s0 + $0x8] ss:$100 sps:$4 sm:$0xff]   ;;  %v7574_v6 = vld [vmem:[%s11187_s1 + $0x400] ss:$16 sps:$4 sm:$0xff]  }
  0x45   :  { %4977 = vmatprep.mubr.bf16.mxu0 %v7573_v30  ;;  %5536 = vmatprep.mubr.bf16.mxu1 %v7573_v30  ;;  %v7577_v7 = vld [vmem:[%s11187_s1 + $0x408] ss:$16 sps:$4 sm:$0xff]   ;;  %v7615_v30 = vld [vmem:[%s11187_s1 + $0x4cc] ss:$16 sps:$4 sm:$0xff]  }
  0x47   :  { %4948 = vmatpush1.bf16.msra.mxu0 %v7481_v8  ;;  %5507 = vmatpush1.bf16.msra.mxu1 %v7484_v9  ;;  %v7582_v8 = vld [vmem:[%s11187_s1 + $0x424] ss:$16 sps:$4 sm:$0xff]   ;;  %v7585_v9 = vld [vmem:[%s11187_s1 + $0x42c] ss:$16 sps:$4 sm:$0xff]  }
  0x48   :  { %4949 = vmatprep.subr.bf16.mxu0 %v7489_v10  ;;  %5508 = vmatprep.subr.bf16.mxu1 %v7492_v11  ;;  %v7580_v10 = vld [vmem:[%s11187_s1 + $0x420] ss:$16 sps:$4 sm:$0xff]   ;;  %v7583_v11 = vld [vmem:[%s11187_s1 + $0x428] ss:$16 sps:$4 sm:$0xff]  }
  0x4b   :  { %4950 = vmatpush1.bf16.msra.mxu0 %v7487_v12  ;;  %5509 = vmatpush1.bf16.msra.mxu1 %v7490_v13  ;;  %v7672_v12 = vld [vmem:[%s11188_s0 + $0x14] ss:$100 sps:$4 sm:$0xff]  }
  0x4c   :  { %4951 = vmatprep.subr.bf16.mxu0 %v7495_v14  ;;  %5510 = vmatprep.subr.bf16.mxu1 %v7498_v15  ;;  %v7588_v13 = vld [vmem:[%s11187_s1 + $0x444] ss:$16 sps:$4 sm:$0xff]   ;;  %v7591_v14 = vld [vmem:[%s11187_s1 + $0x44c] ss:$16 sps:$4 sm:$0xff]   ;;  %v7586_v15 = vld [vmem:[%s11187_s1 + $0x440] ss:$16 sps:$4 sm:$0xff]  }
  0x4f   :  { %4952 = vmatpush1.bf16.msra.mxu0 %v7493_v16  ;;  %5511 = vmatpush1.bf16.msra.mxu1 %v7496_v17  ;;  %v7589_v16 = vld [vmem:[%s11187_s1 + $0x448] ss:$16 sps:$4 sm:$0xff]   ;;  %v7594_v17 = vld [vmem:[%s11187_s1 + $0x464] ss:$16 sps:$4 sm:$0xff]  }
  0x50   :  { %4953 = vmatprep.subr.bf16.mxu0 %v7501_v18  ;;  %5512 = vmatprep.subr.bf16.mxu1 %v7504_v19  ;;  %v7597_v18 = vld [vmem:[%s11187_s1 + $0x46c] ss:$16 sps:$4 sm:$0xff]   ;;  %v7592_v19 = vld [vmem:[%s11187_s1 + $0x460] ss:$16 sps:$4 sm:$0xff]  }
  0x53   :  { %4954 = vmatpush1.bf16.msra.mxu0 %v7499_v20  ;;  %5513 = vmatpush1.bf16.msra.mxu1 %v7502_v21  ;;  %v7595_v20 = vld [vmem:[%s11187_s1 + $0x468] ss:$16 sps:$4 sm:$0xff]   ;;  %v7600_v21 = vld [vmem:[%s11187_s1 + $0x484] ss:$16 sps:$4 sm:$0xff]  }
  0x54   :  { %4955 = vmatprep.subr.bf16.mxu0 %v7507_v22  ;;  %5514 = vmatprep.subr.bf16.mxu1 %v7510_v23  ;;  %v7603_v22 = vld [vmem:[%s11187_s1 + $0x48c] ss:$16 sps:$4 sm:$0xff]   ;;  %v7598_v23 = vld [vmem:[%s11187_s1 + $0x480] ss:$16 sps:$4 sm:$0xff]  }
  0x57   :  { %4956 = vmatpush1.bf16.msra.mxu0 %v7505_v24  ;;  %5515 = vmatpush1.bf16.msra.mxu1 %v7508_v25  ;;  %v7601_v24 = vld [vmem:[%s11187_s1 + $0x488] ss:$16 sps:$4 sm:$0xff]   ;;  %v7606_v25 = vld [vmem:[%s11187_s1 + $0x4a4] ss:$16 sps:$4 sm:$0xff]  }
  0x58   :  { %4957 = vmatprep.subr.bf16.mxu0 %v7513_v26  ;;  %5516 = vmatprep.subr.bf16.mxu1 %v7516_v27  ;;  %v7609_v26 = vld [vmem:[%s11187_s1 + $0x4ac] ss:$16 sps:$4 sm:$0xff]   ;;  %v7604_v27 = vld [vmem:[%s11187_s1 + $0x4a0] ss:$16 sps:$4 sm:$0xff]  }
  0x5b   :  { %4958 = vmatpush1.bf16.msra.mxu0 %v7511_v28  ;;  %5517 = vmatpush1.bf16.msra.mxu1 %v7514_v29  ;;  %v7607_v28 = vld [vmem:[%s11187_s1 + $0x4a8] ss:$16 sps:$4 sm:$0xff]   ;;  %v7612_v29 = vld [vmem:[%s11187_s1 + $0x4c4] ss:$16 sps:$4 sm:$0xff]  }
  0x5c   :  { %4959 = vmatprep.subr.bf16.mxu0 %v7519_v31  ;;  %5518 = vmatprep.subr.bf16.mxu1 %v7522_v32  ;;  %v7610_v31 = vld [vmem:[%s11187_s1 + $0x4c0] ss:$16 sps:$4 sm:$0xff]   ;;  %v7613_v32 = vld [vmem:[%s11187_s1 + $0x4c8] ss:$16 sps:$4 sm:$0xff]  }
  0x5f   :  { %4960 = vmatpush1.bf16.msra.mxu0 %v7517_v33  ;;  %5519 = vmatpush1.bf16.msra.mxu1 %v7520_v34  ;;  %v7618_v33 = vld [vmem:[%s11187_s1 + $0x4e4] ss:$16 sps:$4 sm:$0xff]   ;;  %v7621_v34 = vld [vmem:[%s11187_s1 + $0x4ec] ss:$16 sps:$4 sm:$0xff]  }
  0x60   :  { %4961 = vmatprep.subr.bf16.mxu0 %v7525_v35  ;;  %5520 = vmatprep.subr.bf16.mxu1 %v7528_v36  ;;  %v7616_v35 = vld [vmem:[%s11187_s1 + $0x4e0] ss:$16 sps:$4 sm:$0xff]   ;;  %v7619_v36 = vld [vmem:[%s11187_s1 + $0x4e8] ss:$16 sps:$4 sm:$0xff]  }
  0x63   :  { %4962 = vmatpush1.bf16.msra.mxu0 %v7523_v37  ;;  %5521 = vmatpush1.bf16.msra.mxu1 %v7526_v38  ;;  %v7624_v37 = vld [vmem:[%s11187_s1 + $0x504] ss:$16 sps:$4 sm:$0xff]   ;;  %v7627_v38 = vld [vmem:[%s11187_s1 + $0x50c] ss:$16 sps:$4 sm:$0xff]  }
  0x64   :  { %4963 = vmatprep.subr.bf16.mxu0 %v7531_v39  ;;  %5522 = vmatprep.subr.bf16.mxu1 %v7534_v40  ;;  %v7622_v39 = vld [vmem:[%s11187_s1 + $0x500] ss:$16 sps:$4 sm:$0xff]   ;;  %v7625_v40 = vld [vmem:[%s11187_s1 + $0x508] ss:$16 sps:$4 sm:$0xff]  }
  0x67   :  { %4964 = vmatpush1.bf16.msra.mxu0 %v7529_v41  ;;  %5523 = vmatpush1.bf16.msra.mxu1 %v7532_v42  ;;  %v7630_v41 = vld [vmem:[%s11187_s1 + $0x524] ss:$16 sps:$4 sm:$0xff]   ;;  %v7633_v42 = vld [vmem:[%s11187_s1 + $0x52c] ss:$16 sps:$4 sm:$0xff]  }
  0x68   :  { %4965 = vmatprep.subr.bf16.mxu0 %v7537_v43  ;;  %5524 = vmatprep.subr.bf16.mxu1 %v7540_v44  ;;  %v7628_v43 = vld [vmem:[%s11187_s1 + $0x520] ss:$16 sps:$4 sm:$0xff]   ;;  %v7631_v44 = vld [vmem:[%s11187_s1 + $0x528] ss:$16 sps:$4 sm:$0xff]  }
  0x6b   :  { %4966 = vmatpush1.bf16.msra.mxu0 %v7535_v45  ;;  %5525 = vmatpush1.bf16.msra.mxu1 %v7538_v46  ;;  %v7636_v45 = vld [vmem:[%s11187_s1 + $0x544] ss:$16 sps:$4 sm:$0xff]   ;;  %v7639_v46 = vld [vmem:[%s11187_s1 + $0x54c] ss:$16 sps:$4 sm:$0xff]  }
  0x6c   :  { %4967 = vmatprep.subr.bf16.mxu0 %v7543_v47  ;;  %5526 = vmatprep.subr.bf16.mxu1 %v7546_v48  ;;  %v7634_v47 = vld [vmem:[%s11187_s1 + $0x540] ss:$16 sps:$4 sm:$0xff]   ;;  %v7637_v48 = vld [vmem:[%s11187_s1 + $0x548] ss:$16 sps:$4 sm:$0xff]  }
  0x6f   :  { %4968 = vmatpush1.bf16.msra.mxu0 %v7541_v49  ;;  %5527 = vmatpush1.bf16.msra.mxu1 %v7544_v50  ;;  %v7642_v49 = vld [vmem:[%s11187_s1 + $0x564] ss:$16 sps:$4 sm:$0xff]   ;;  %v7645_v50 = vld [vmem:[%s11187_s1 + $0x56c] ss:$16 sps:$4 sm:$0xff]  }
  0x70   :  { %4969 = vmatprep.subr.bf16.mxu0 %v7549_v51  ;;  %5528 = vmatprep.subr.bf16.mxu1 %v7552_v52  ;;  %v7640_v51 = vld [vmem:[%s11187_s1 + $0x560] ss:$16 sps:$4 sm:$0xff]   ;;  %v7643_v52 = vld [vmem:[%s11187_s1 + $0x568] ss:$16 sps:$4 sm:$0xff]  }
  0x73   :  { %4970 = vmatpush1.bf16.msra.mxu0 %v7547_v53  ;;  %5529 = vmatpush1.bf16.msra.mxu1 %v7550_v54  ;;  %v7648_v53 = vld [vmem:[%s11187_s1 + $0x584] ss:$16 sps:$4 sm:$0xff]   ;;  %v7651_v54 = vld [vmem:[%s11187_s1 + $0x58c] ss:$16 sps:$4 sm:$0xff]  }
  0x74   :  { %4971 = vmatprep.subr.bf16.mxu0 %v7555_v55  ;;  %5530 = vmatprep.subr.bf16.mxu1 %v7558_v56  ;;  %v7646_v55 = vld [vmem:[%s11187_s1 + $0x580] ss:$16 sps:$4 sm:$0xff]   ;;  %v7649_v56 = vld [vmem:[%s11187_s1 + $0x588] ss:$16 sps:$4 sm:$0xff]  }
  0x77   :  { %4972 = vmatpush1.bf16.msra.mxu0 %v7553_v57  ;;  %5531 = vmatpush1.bf16.msra.mxu1 %v7556_v58  ;;  %v7654_v57 = vld [vmem:[%s11187_s1 + $0x5a4] ss:$16 sps:$4 sm:$0xff]   ;;  %v7657_v58 = vld [vmem:[%s11187_s1 + $0x5ac] ss:$16 sps:$4 sm:$0xff]  }
  0x78   :  { %4973 = vmatprep.subr.bf16.mxu0 %v7561_v59  ;;  %5532 = vmatprep.subr.bf16.mxu1 %v7564_v60  ;;  %v7652_v59 = vld [vmem:[%s11187_s1 + $0x5a0] ss:$16 sps:$4 sm:$0xff]   ;;  %v7655_v60 = vld [vmem:[%s11187_s1 + $0x5a8] ss:$16 sps:$4 sm:$0xff]  }
  0x7b   :  { %4974 = vmatpush1.bf16.msra.mxu0 %v7559_v61  ;;  %5533 = vmatpush1.bf16.msra.mxu1 %v7562_v62  ;;  %v7660_v61 = vld [vmem:[%s11187_s1 + $0x5c4] ss:$16 sps:$4 sm:$0xff]   ;;  %v7663_v62 = vld [vmem:[%s11187_s1 + $0x5cc] ss:$16 sps:$4 sm:$0xff]  }
  0x7c   :  { %4975 = vmatprep.subr.bf16.mxu0 %v7567_v63  ;;  %5534 = vmatprep.subr.bf16.mxu1 %v7570_v0  ;;  %v7658_v63 = vld [vmem:[%s11187_s1 + $0x5c0] ss:$16 sps:$4 sm:$0xff]   ;;  %v7661_v0 = vld [vmem:[%s11187_s1 + $0x5c8] ss:$16 sps:$4 sm:$0xff]  }
  0x7f   :  { %4976 = vmatpush1.bf16.msra.mxu0 %v7565_v1  ;;  %5535 = vmatpush1.bf16.msra.mxu1 %v7568_v2  ;;  %v7666_v1 = vld [vmem:[%s11187_s1 + $0x5e4] ss:$16 sps:$4 sm:$0xff]   ;;  %v7669_v2 = vld [vmem:[%s11187_s1 + $0x5ec] ss:$16 sps:$4 sm:$0xff]  }
  0x80   :  { %4988 = vmatprep.subr.bf16.mxu0 %v7576_v3  ;;  %5547 = vmatprep.subr.bf16.mxu1 %v7579_v4  ;;  %v7664_v3 = vld [vmem:[%s11187_s1 + $0x5e0] ss:$16 sps:$4 sm:$0xff]   ;;  %v7667_v4 = vld [vmem:[%s11187_s1 + $0x5e8] ss:$16 sps:$4 sm:$0xff]  }
  0x82   :  { %4978 = vmatmul.mubr.bf16.vlgmr.msra.gmra.mrb[0].mxu0 %v7571_v5  ;;  %5537 = vmatmul.mubr.bf16.vlgmr.msra.gmra.mrb[0].mxu1 %v7571_v5  ;;  %v7675_v5 = vld [vmem:[%s11187_s1 + $0x604] ss:$16 sps:$4 sm:$0xff]  }
  0x83   :  { %4989 = vmatpush1.bf16.msra.mxu0 %v7574_v6  ;;  %5548 = vmatpush1.bf16.msra.mxu1 %v7577_v7  ;;  %v7678_v6 = vld [vmem:[%s11187_s1 + $0x60c] ss:$16 sps:$4 sm:$0xff]   ;;  %v7670_v7 = vld [vmem:[%s11188_s0 + $0x10] ss:$100 sps:$4 sm:$0xff]  }
  0x84   :  { %4990 = vmatprep.subr.bf16.mxu0 %v7582_v8  ;;  %5549 = vmatprep.subr.bf16.mxu1 %v7585_v9  ;;  %v7673_v8 = vld [vmem:[%s11187_s1 + $0x600] ss:$16 sps:$4 sm:$0xff]   ;;  %v7676_v9 = vld [vmem:[%s11187_s1 + $0x608] ss:$16 sps:$4 sm:$0xff]  }
  0x85   :  { %5020 = vmatprep.mubr.bf16.mxu0 %v7672_v12  ;;  %5579 = vmatprep.mubr.bf16.mxu1 %v7672_v12  ;;  %v7771_v12 = vld [vmem:[%s11188_s0 + $0x1c] ss:$100 sps:$4 sm:$0xff]  }
  0x87   :  { %4991 = vmatpush1.bf16.msra.mxu0 %v7580_v10  ;;  %5550 = vmatpush1.bf16.msra.mxu1 %v7583_v11  ;;  %v7681_v10 = vld [vmem:[%s11187_s1 + $0x624] ss:$16 sps:$4 sm:$0xff]   ;;  %v7684_v11 = vld [vmem:[%s11187_s1 + $0x62c] ss:$16 sps:$4 sm:$0xff]  }
  0x88   :  { %4992 = vmatprep.subr.bf16.mxu0 %v7588_v13  ;;  %5551 = vmatprep.subr.bf16.mxu1 %v7591_v14  ;;  %v7679_v13 = vld [vmem:[%s11187_s1 + $0x620] ss:$16 sps:$4 sm:$0xff]   ;;  %v7682_v14 = vld [vmem:[%s11187_s1 + $0x628] ss:$16 sps:$4 sm:$0xff]  }
  0x8b   :  { %4993 = vmatpush1.bf16.msra.mxu0 %v7586_v15  ;;  %5552 = vmatpush1.bf16.msra.mxu1 %v7589_v16  ;;  %v7687_v15 = vld [vmem:[%s11187_s1 + $0x644] ss:$16 sps:$4 sm:$0xff]   ;;  %v7690_v16 = vld [vmem:[%s11187_s1 + $0x64c] ss:$16 sps:$4 sm:$0xff]  }
  0x8c   :  { %4994 = vmatprep.subr.bf16.mxu0 %v7594_v17  ;;  %5553 = vmatprep.subr.bf16.mxu1 %v7597_v18  ;;  %v7685_v17 = vld [vmem:[%s11187_s1 + $0x640] ss:$16 sps:$4 sm:$0xff]   ;;  %v7688_v18 = vld [vmem:[%s11187_s1 + $0x648] ss:$16 sps:$4 sm:$0xff]  }
  0x8f   :  { %4995 = vmatpush1.bf16.msra.mxu0 %v7592_v19  ;;  %5554 = vmatpush1.bf16.msra.mxu1 %v7595_v20  ;;  %v7693_v19 = vld [vmem:[%s11187_s1 + $0x664] ss:$16 sps:$4 sm:$0xff]   ;;  %v7696_v20 = vld [vmem:[%s11187_s1 + $0x66c] ss:$16 sps:$4 sm:$0xff]  }
  0x90   :  { %4996 = vmatprep.subr.bf16.mxu0 %v7600_v21  ;;  %5555 = vmatprep.subr.bf16.mxu1 %v7603_v22  ;;  %v7691_v21 = vld [vmem:[%s11187_s1 + $0x660] ss:$16 sps:$4 sm:$0xff]   ;;  %v7694_v22 = vld [vmem:[%s11187_s1 + $0x668] ss:$16 sps:$4 sm:$0xff]  }
  0x93   :  { %4997 = vmatpush1.bf16.msra.mxu0 %v7598_v23  ;;  %5556 = vmatpush1.bf16.msra.mxu1 %v7601_v24  ;;  %v7699_v23 = vld [vmem:[%s11187_s1 + $0x684] ss:$16 sps:$4 sm:$0xff]   ;;  %v7702_v24 = vld [vmem:[%s11187_s1 + $0x68c] ss:$16 sps:$4 sm:$0xff]  }
  0x94   :  { %4998 = vmatprep.subr.bf16.mxu0 %v7606_v25  ;;  %5557 = vmatprep.subr.bf16.mxu1 %v7609_v26  ;;  %v7697_v25 = vld [vmem:[%s11187_s1 + $0x680] ss:$16 sps:$4 sm:$0xff]   ;;  %v7700_v26 = vld [vmem:[%s11187_s1 + $0x688] ss:$16 sps:$4 sm:$0xff]  }
  0x97   :  { %4999 = vmatpush1.bf16.msra.mxu0 %v7604_v27  ;;  %5558 = vmatpush1.bf16.msra.mxu1 %v7607_v28  ;;  %v7705_v27 = vld [vmem:[%s11187_s1 + $0x6a4] ss:$16 sps:$4 sm:$0xff]   ;;  %v7708_v28 = vld [vmem:[%s11187_s1 + $0x6ac] ss:$16 sps:$4 sm:$0xff]  }
  0x98   :  { %5000 = vmatprep.subr.bf16.mxu0 %v7612_v29  ;;  %5559 = vmatprep.subr.bf16.mxu1 %v7615_v30  ;;  %v7703_v29 = vld [vmem:[%s11187_s1 + $0x6a0] ss:$16 sps:$4 sm:$0xff]   ;;  %v7706_v30 = vld [vmem:[%s11187_s1 + $0x6a8] ss:$16 sps:$4 sm:$0xff]  }
  0x9b   :  { %5001 = vmatpush1.bf16.msra.mxu0 %v7610_v31  ;;  %5560 = vmatpush1.bf16.msra.mxu1 %v7613_v32  ;;  %v7711_v31 = vld [vmem:[%s11187_s1 + $0x6c4] ss:$16 sps:$4 sm:$0xff]   ;;  %v7714_v32 = vld [vmem:[%s11187_s1 + $0x6cc] ss:$16 sps:$4 sm:$0xff]  }
  0x9c   :  { %5002 = vmatprep.subr.bf16.mxu0 %v7618_v33  ;;  %5561 = vmatprep.subr.bf16.mxu1 %v7621_v34  ;;  %v7709_v33 = vld [vmem:[%s11187_s1 + $0x6c0] ss:$16 sps:$4 sm:$0xff]   ;;  %v7712_v34 = vld [vmem:[%s11187_s1 + $0x6c8] ss:$16 sps:$4 sm:$0xff]  }
  0x9f   :  { %5003 = vmatpush1.bf16.msra.mxu0 %v7616_v35  ;;  %5562 = vmatpush1.bf16.msra.mxu1 %v7619_v36  ;;  %v7717_v35 = vld [vmem:[%s11187_s1 + $0x6e4] ss:$16 sps:$4 sm:$0xff]   ;;  %v7720_v36 = vld [vmem:[%s11187_s1 + $0x6ec] ss:$16 sps:$4 sm:$0xff]  }
  0xa0   :  { %5004 = vmatprep.subr.bf16.mxu0 %v7624_v37  ;;  %5563 = vmatprep.subr.bf16.mxu1 %v7627_v38  ;;  %v7715_v37 = vld [vmem:[%s11187_s1 + $0x6e0] ss:$16 sps:$4 sm:$0xff]   ;;  %v7718_v38 = vld [vmem:[%s11187_s1 + $0x6e8] ss:$16 sps:$4 sm:$0xff]  }
  0xa3   :  { %5005 = vmatpush1.bf16.msra.mxu0 %v7622_v39  ;;  %5564 = vmatpush1.bf16.msra.mxu1 %v7625_v40  ;;  %v7723_v39 = vld [vmem:[%s11187_s1 + $0x704] ss:$16 sps:$4 sm:$0xff]   ;;  %v7726_v40 = vld [vmem:[%s11187_s1 + $0x70c] ss:$16 sps:$4 sm:$0xff]  }
  0xa4   :  { %5006 = vmatprep.subr.bf16.mxu0 %v7630_v41  ;;  %5565 = vmatprep.subr.bf16.mxu1 %v7633_v42  ;;  %v7721_v41 = vld [vmem:[%s11187_s1 + $0x700] ss:$16 sps:$4 sm:$0xff]   ;;  %v7724_v42 = vld [vmem:[%s11187_s1 + $0x708] ss:$16 sps:$4 sm:$0xff]  }
  0xa7   :  { %5007 = vmatpush1.bf16.msra.mxu0 %v7628_v43  ;;  %5566 = vmatpush1.bf16.msra.mxu1 %v7631_v44  ;;  %v7729_v43 = vld [vmem:[%s11187_s1 + $0x724] ss:$16 sps:$4 sm:$0xff]   ;;  %v7732_v44 = vld [vmem:[%s11187_s1 + $0x72c] ss:$16 sps:$4 sm:$0xff]  }
  0xa8   :  { %5008 = vmatprep.subr.bf16.mxu0 %v7636_v45  ;;  %5567 = vmatprep.subr.bf16.mxu1 %v7639_v46  ;;  %v7727_v45 = vld [vmem:[%s11187_s1 + $0x720] ss:$16 sps:$4 sm:$0xff]   ;;  %v7730_v46 = vld [vmem:[%s11187_s1 + $0x728] ss:$16 sps:$4 sm:$0xff]  }
  0xab   :  { %5009 = vmatpush1.bf16.msra.mxu0 %v7634_v47  ;;  %5568 = vmatpush1.bf16.msra.mxu1 %v7637_v48  ;;  %v7735_v47 = vld [vmem:[%s11187_s1 + $0x744] ss:$16 sps:$4 sm:$0xff]   ;;  %v7738_v48 = vld [vmem:[%s11187_s1 + $0x74c] ss:$16 sps:$4 sm:$0xff]  }
  0xac   :  { %5010 = vmatprep.subr.bf16.mxu0 %v7642_v49  ;;  %5569 = vmatprep.subr.bf16.mxu1 %v7645_v50  ;;  %v7733_v49 = vld [vmem:[%s11187_s1 + $0x740] ss:$16 sps:$4 sm:$0xff]   ;;  %v7736_v50 = vld [vmem:[%s11187_s1 + $0x748] ss:$16 sps:$4 sm:$0xff]  }
  0xaf   :  { %5011 = vmatpush1.bf16.msra.mxu0 %v7640_v51  ;;  %5570 = vmatpush1.bf16.msra.mxu1 %v7643_v52  ;;  %v7741_v51 = vld [vmem:[%s11187_s1 + $0x764] ss:$16 sps:$4 sm:$0xff]   ;;  %v7744_v52 = vld [vmem:[%s11187_s1 + $0x76c] ss:$16 sps:$4 sm:$0xff]  }
  0xb0   :  { %5012 = vmatprep.subr.bf16.mxu0 %v7648_v53  ;;  %5571 = vmatprep.subr.bf16.mxu1 %v7651_v54  ;;  %v7739_v53 = vld [vmem:[%s11187_s1 + $0x760] ss:$16 sps:$4 sm:$0xff]   ;;  %v7742_v54 = vld [vmem:[%s11187_s1 + $0x768] ss:$16 sps:$4 sm:$0xff]  }
  0xb3   :  { %5013 = vmatpush1.bf16.msra.mxu0 %v7646_v55  ;;  %5572 = vmatpush1.bf16.msra.mxu1 %v7649_v56  ;;  %v7747_v55 = vld [vmem:[%s11187_s1 + $0x784] ss:$16 sps:$4 sm:$0xff]   ;;  %v7750_v56 = vld [vmem:[%s11187_s1 + $0x78c] ss:$16 sps:$4 sm:$0xff]  }
  0xb4   :  { %5014 = vmatprep.subr.bf16.mxu0 %v7654_v57  ;;  %5573 = vmatprep.subr.bf16.mxu1 %v7657_v58  ;;  %v7745_v57 = vld [vmem:[%s11187_s1 + $0x780] ss:$16 sps:$4 sm:$0xff]   ;;  %v7748_v58 = vld [vmem:[%s11187_s1 + $0x788] ss:$16 sps:$4 sm:$0xff]  }
  0xb7   :  { %5015 = vmatpush1.bf16.msra.mxu0 %v7652_v59  ;;  %5574 = vmatpush1.bf16.msra.mxu1 %v7655_v60  ;;  %v7753_v59 = vld [vmem:[%s11187_s1 + $0x7a4] ss:$16 sps:$4 sm:$0xff]   ;;  %v7756_v60 = vld [vmem:[%s11187_s1 + $0x7ac] ss:$16 sps:$4 sm:$0xff]  }
  0xb8   :  { %5016 = vmatprep.subr.bf16.mxu0 %v7660_v61  ;;  %5575 = vmatprep.subr.bf16.mxu1 %v7663_v62  ;;  %v7751_v61 = vld [vmem:[%s11187_s1 + $0x7a0] ss:$16 sps:$4 sm:$0xff]   ;;  %v7754_v62 = vld [vmem:[%s11187_s1 + $0x7a8] ss:$16 sps:$4 sm:$0xff]  }
  0xbb   :  { %5017 = vmatpush1.bf16.msra.mxu0 %v7658_v63  ;;  %5576 = vmatpush1.bf16.msra.mxu1 %v7661_v0  ;;  %v7759_v63 = vld [vmem:[%s11187_s1 + $0x7c4] ss:$16 sps:$4 sm:$0xff]   ;;  %v7762_v0 = vld [vmem:[%s11187_s1 + $0x7cc] ss:$16 sps:$4 sm:$0xff]  }
  0xbc   :  { %5018 = vmatprep.subr.bf16.mxu0 %v7666_v1  ;;  %5577 = vmatprep.subr.bf16.mxu1 %v7669_v2  ;;  %v7757_v1 = vld [vmem:[%s11187_s1 + $0x7c0] ss:$16 sps:$4 sm:$0xff]   ;;  %v7760_v2 = vld [vmem:[%s11187_s1 + $0x7c8] ss:$16 sps:$4 sm:$0xff]  }
  0xbf   :  { %5019 = vmatpush1.bf16.msra.mxu0 %v7664_v3  ;;  %5578 = vmatpush1.bf16.msra.mxu1 %v7667_v4  ;;  %v7765_v3 = vld [vmem:[%s11187_s1 + $0x7e4] ss:$16 sps:$4 sm:$0xff]   ;;  %v7768_v4 = vld [vmem:[%s11187_s1 + $0x7ec] ss:$16 sps:$4 sm:$0xff]  }
  0xc0   :  { %5031 = vmatprep.subr.bf16.mxu0 %v7675_v5  ;;  %5590 = vmatprep.subr.bf16.mxu1 %v7678_v6  ;;  %v7763_v5 = vld [vmem:[%s11187_s1 + $0x7e0] ss:$16 sps:$4 sm:$0xff]   ;;  %v7766_v6 = vld [vmem:[%s11187_s1 + $0x7e8] ss:$16 sps:$4 sm:$0xff]  }
  0xc2   :  { %5021 = vmatmul.mubr.bf16.vlgmr.msra.gmra.mrb[0].mxu0 %v7670_v7  ;;  %5580 = vmatmul.mubr.bf16.vlgmr.msra.gmra.mrb[0].mxu1 %v7670_v7  ;;  %v7774_v7 = vld [vmem:[%s11187_s1 + $0x804] ss:$16 sps:$4 sm:$0xff]  }
  0xc3   :  { %5032 = vmatpush1.bf16.msra.mxu0 %v7673_v8  ;;  %5591 = vmatpush1.bf16.msra.mxu1 %v7676_v9  ;;  %v7777_v8 = vld [vmem:[%s11187_s1 + $0x80c] ss:$16 sps:$4 sm:$0xff]  }
  0xc4   :  { %5033 = vmatprep.subr.bf16.mxu0 %v7681_v10  ;;  %5592 = vmatprep.subr.bf16.mxu1 %v7684_v11  ;;  %v7769_v9 = vld [vmem:[%s11188_s0 + $0x18] ss:$100 sps:$4 sm:$0xff]   ;;  %v7772_v10 = vld [vmem:[%s11187_s1 + $0x800] ss:$16 sps:$4 sm:$0xff]  }
  0xc5   :  { %5063 = vmatprep.mubr.bf16.mxu0 %v7771_v12  ;;  %5622 = vmatprep.mubr.bf16.mxu1 %v7771_v12  ;;  %v7775_v11 = vld [vmem:[%s11187_s1 + $0x808] ss:$16 sps:$4 sm:$0xff]   ;;  %v7780_v12 = vld [vmem:[%s11187_s1 + $0x824] ss:$16 sps:$4 sm:$0xff]  }
  0xc7   :  { %5034 = vmatpush1.bf16.msra.mxu0 %v7679_v13  ;;  %5593 = vmatpush1.bf16.msra.mxu1 %v7682_v14  ;;  %v7783_v13 = vld [vmem:[%s11187_s1 + $0x82c] ss:$16 sps:$4 sm:$0xff]   ;;  %v7870_v14 = vld [vmem:[%s11188_s0 + $0x24] ss:$100 sps:$4 sm:$0xff]  }
  0xc8   :  { %5035 = vmatprep.subr.bf16.mxu0 %v7687_v15  ;;  %5594 = vmatprep.subr.bf16.mxu1 %v7690_v16  ;;  %v7778_v15 = vld [vmem:[%s11187_s1 + $0x820] ss:$16 sps:$4 sm:$0xff]   ;;  %v7781_v16 = vld [vmem:[%s11187_s1 + $0x828] ss:$16 sps:$4 sm:$0xff]  }
  0xcb   :  { %5036 = vmatpush1.bf16.msra.mxu0 %v7685_v17  ;;  %5595 = vmatpush1.bf16.msra.mxu1 %v7688_v18  ;;  %v7786_v17 = vld [vmem:[%s11187_s1 + $0x844] ss:$16 sps:$4 sm:$0xff]   ;;  %v7789_v18 = vld [vmem:[%s11187_s1 + $0x84c] ss:$16 sps:$4 sm:$0xff]  }
  0xcc   :  { %5037 = vmatprep.subr.bf16.mxu0 %v7693_v19  ;;  %5596 = vmatprep.subr.bf16.mxu1 %v7696_v20  ;;  %v7784_v19 = vld [vmem:[%s11187_s1 + $0x840] ss:$16 sps:$4 sm:$0xff]   ;;  %v7787_v20 = vld [vmem:[%s11187_s1 + $0x848] ss:$16 sps:$4 sm:$0xff]  }
  0xcf   :  { %5038 = vmatpush1.bf16.msra.mxu0 %v7691_v21  ;;  %5597 = vmatpush1.bf16.msra.mxu1 %v7694_v22  ;;  %v7792_v21 = vld [vmem:[%s11187_s1 + $0x864] ss:$16 sps:$4 sm:$0xff]   ;;  %v7795_v22 = vld [vmem:[%s11187_s1 + $0x86c] ss:$16 sps:$4 sm:$0xff]  }
  0xd0   :  { %5039 = vmatprep.subr.bf16.mxu0 %v7699_v23  ;;  %5598 = vmatprep.subr.bf16.mxu1 %v7702_v24  ;;  %v7790_v23 = vld [vmem:[%s11187_s1 + $0x860] ss:$16 sps:$4 sm:$0xff]   ;;  %v7793_v24 = vld [vmem:[%s11187_s1 + $0x868] ss:$16 sps:$4 sm:$0xff]  }
  0xd3   :  { %5040 = vmatpush1.bf16.msra.mxu0 %v7697_v25  ;;  %5599 = vmatpush1.bf16.msra.mxu1 %v7700_v26  ;;  %v7798_v25 = vld [vmem:[%s11187_s1 + $0x884] ss:$16 sps:$4 sm:$0xff]   ;;  %v7801_v26 = vld [vmem:[%s11187_s1 + $0x88c] ss:$16 sps:$4 sm:$0xff]  }
  0xd4   :  { %5041 = vmatprep.subr.bf16.mxu0 %v7705_v27  ;;  %5600 = vmatprep.subr.bf16.mxu1 %v7708_v28  ;;  %v7796_v27 = vld [vmem:[%s11187_s1 + $0x880] ss:$16 sps:$4 sm:$0xff]   ;;  %v7799_v28 = vld [vmem:[%s11187_s1 + $0x888] ss:$16 sps:$4 sm:$0xff]  }
  0xd7   :  { %5042 = vmatpush1.bf16.msra.mxu0 %v7703_v29  ;;  %5601 = vmatpush1.bf16.msra.mxu1 %v7706_v30  ;;  %v7804_v29 = vld [vmem:[%s11187_s1 + $0x8a4] ss:$16 sps:$4 sm:$0xff]   ;;  %v7807_v30 = vld [vmem:[%s11187_s1 + $0x8ac] ss:$16 sps:$4 sm:$0xff]  }
  0xd8   :  { %5043 = vmatprep.subr.bf16.mxu0 %v7711_v31  ;;  %5602 = vmatprep.subr.bf16.mxu1 %v7714_v32  ;;  %v7802_v31 = vld [vmem:[%s11187_s1 + $0x8a0] ss:$16 sps:$4 sm:$0xff]   ;;  %v7805_v32 = vld [vmem:[%s11187_s1 + $0x8a8] ss:$16 sps:$4 sm:$0xff]  }
  0xdb   :  { %5044 = vmatpush1.bf16.msra.mxu0 %v7709_v33  ;;  %5603 = vmatpush1.bf16.msra.mxu1 %v7712_v34  ;;  %v7810_v33 = vld [vmem:[%s11187_s1 + $0x8c4] ss:$16 sps:$4 sm:$0xff]   ;;  %v7813_v34 = vld [vmem:[%s11187_s1 + $0x8cc] ss:$16 sps:$4 sm:$0xff]  }
  0xdc   :  { %5045 = vmatprep.subr.bf16.mxu0 %v7717_v35  ;;  %5604 = vmatprep.subr.bf16.mxu1 %v7720_v36  ;;  %v7808_v35 = vld [vmem:[%s11187_s1 + $0x8c0] ss:$16 sps:$4 sm:$0xff]   ;;  %v7811_v36 = vld [vmem:[%s11187_s1 + $0x8c8] ss:$16 sps:$4 sm:$0xff]  }
  0xdf   :  { %5046 = vmatpush1.bf16.msra.mxu0 %v7715_v37  ;;  %5605 = vmatpush1.bf16.msra.mxu1 %v7718_v38  ;;  %v7816_v37 = vld [vmem:[%s11187_s1 + $0x8e4] ss:$16 sps:$4 sm:$0xff]   ;;  %v7819_v38 = vld [vmem:[%s11187_s1 + $0x8ec] ss:$16 sps:$4 sm:$0xff]  }
  0xe0   :  { %5047 = vmatprep.subr.bf16.mxu0 %v7723_v39  ;;  %5606 = vmatprep.subr.bf16.mxu1 %v7726_v40  ;;  %v7814_v39 = vld [vmem:[%s11187_s1 + $0x8e0] ss:$16 sps:$4 sm:$0xff]   ;;  %v7817_v40 = vld [vmem:[%s11187_s1 + $0x8e8] ss:$16 sps:$4 sm:$0xff]  }
  0xe3   :  { %5048 = vmatpush1.bf16.msra.mxu0 %v7721_v41  ;;  %5607 = vmatpush1.bf16.msra.mxu1 %v7724_v42  ;;  %v7822_v41 = vld [vmem:[%s11187_s1 + $0x904] ss:$16 sps:$4 sm:$0xff]   ;;  %v7825_v42 = vld [vmem:[%s11187_s1 + $0x90c] ss:$16 sps:$4 sm:$0xff]  }
  0xe4   :  { %5049 = vmatprep.subr.bf16.mxu0 %v7729_v43  ;;  %5608 = vmatprep.subr.bf16.mxu1 %v7732_v44  ;;  %v7820_v43 = vld [vmem:[%s11187_s1 + $0x900] ss:$16 sps:$4 sm:$0xff]   ;;  %v7823_v44 = vld [vmem:[%s11187_s1 + $0x908] ss:$16 sps:$4 sm:$0xff]  }
  0xe7   :  { %5050 = vmatpush1.bf16.msra.mxu0 %v7727_v45  ;;  %5609 = vmatpush1.bf16.msra.mxu1 %v7730_v46  ;;  %v7828_v45 = vld [vmem:[%s11187_s1 + $0x924] ss:$16 sps:$4 sm:$0xff]   ;;  %v7831_v46 = vld [vmem:[%s11187_s1 + $0x92c] ss:$16 sps:$4 sm:$0xff]  }
  0xe8   :  { %5051 = vmatprep.subr.bf16.mxu0 %v7735_v47  ;;  %5610 = vmatprep.subr.bf16.mxu1 %v7738_v48  ;;  %v7826_v47 = vld [vmem:[%s11187_s1 + $0x920] ss:$16 sps:$4 sm:$0xff]   ;;  %v7829_v48 = vld [vmem:[%s11187_s1 + $0x928] ss:$16 sps:$4 sm:$0xff]  }
  0xeb   :  { %5052 = vmatpush1.bf16.msra.mxu0 %v7733_v49  ;;  %5611 = vmatpush1.bf16.msra.mxu1 %v7736_v50  ;;  %v7834_v49 = vld [vmem:[%s11187_s1 + $0x944] ss:$16 sps:$4 sm:$0xff]   ;;  %v7837_v50 = vld [vmem:[%s11187_s1 + $0x94c] ss:$16 sps:$4 sm:$0xff]  }
  0xec   :  { %5053 = vmatprep.subr.bf16.mxu0 %v7741_v51  ;;  %5612 = vmatprep.subr.bf16.mxu1 %v7744_v52  ;;  %v7832_v51 = vld [vmem:[%s11187_s1 + $0x940] ss:$16 sps:$4 sm:$0xff]   ;;  %v7835_v52 = vld [vmem:[%s11187_s1 + $0x948] ss:$16 sps:$4 sm:$0xff]  }
  0xef   :  { %5054 = vmatpush1.bf16.msra.mxu0 %v7739_v53  ;;  %5613 = vmatpush1.bf16.msra.mxu1 %v7742_v54  ;;  %v7840_v53 = vld [vmem:[%s11187_s1 + $0x964] ss:$16 sps:$4 sm:$0xff]   ;;  %v7843_v54 = vld [vmem:[%s11187_s1 + $0x96c] ss:$16 sps:$4 sm:$0xff]  }
  0xf0   :  { %5055 = vmatprep.subr.bf16.mxu0 %v7747_v55  ;;  %5614 = vmatprep.subr.bf16.mxu1 %v7750_v56  ;;  %v7838_v55 = vld [vmem:[%s11187_s1 + $0x960] ss:$16 sps:$4 sm:$0xff]   ;;  %v7841_v56 = vld [vmem:[%s11187_s1 + $0x968] ss:$16 sps:$4 sm:$0xff]  }
  0xf3   :  { %5056 = vmatpush1.bf16.msra.mxu0 %v7745_v57  ;;  %5615 = vmatpush1.bf16.msra.mxu1 %v7748_v58  ;;  %v7846_v57 = vld [vmem:[%s11187_s1 + $0x984] ss:$16 sps:$4 sm:$0xff]   ;;  %v7849_v58 = vld [vmem:[%s11187_s1 + $0x98c] ss:$16 sps:$4 sm:$0xff]  }
  0xf4   :  { %5057 = vmatprep.subr.bf16.mxu0 %v7753_v59  ;;  %5616 = vmatprep.subr.bf16.mxu1 %v7756_v60  ;;  %v7844_v59 = vld [vmem:[%s11187_s1 + $0x980] ss:$16 sps:$4 sm:$0xff]   ;;  %v7847_v60 = vld [vmem:[%s11187_s1 + $0x988] ss:$16 sps:$4 sm:$0xff]  }
  0xf7   :  { %5058 = vmatpush1.bf16.msra.mxu0 %v7751_v61  ;;  %5617 = vmatpush1.bf16.msra.mxu1 %v7754_v62  ;;  %v7852_v61 = vld [vmem:[%s11187_s1 + $0x9a4] ss:$16 sps:$4 sm:$0xff]   ;;  %v7855_v62 = vld [vmem:[%s11187_s1 + $0x9ac] ss:$16 sps:$4 sm:$0xff]  }
  0xf8   :  { %5059 = vmatprep.subr.bf16.mxu0 %v7759_v63  ;;  %5618 = vmatprep.subr.bf16.mxu1 %v7762_v0  ;;  %v7850_v63 = vld [vmem:[%s11187_s1 + $0x9a0] ss:$16 sps:$4 sm:$0xff]   ;;  %v7853_v0 = vld [vmem:[%s11187_s1 + $0x9a8] ss:$16 sps:$4 sm:$0xff]  }
  0xfb   :  { %5060 = vmatpush1.bf16.msra.mxu0 %v7757_v1  ;;  %5619 = vmatpush1.bf16.msra.mxu1 %v7760_v2  ;;  %v7858_v1 = vld [vmem:[%s11187_s1 + $0x9c4] ss:$16 sps:$4 sm:$0xff]   ;;  %v7861_v2 = vld [vmem:[%s11187_s1 + $0x9cc] ss:$16 sps:$4 sm:$0xff]  }
  0xfc   :  { %5061 = vmatprep.subr.bf16.mxu0 %v7765_v3  ;;  %5620 = vmatprep.subr.bf16.mxu1 %v7768_v4  ;;  %v7856_v3 = vld [vmem:[%s11187_s1 + $0x9c0] ss:$16 sps:$4 sm:$0xff]   ;;  %v7859_v4 = vld [vmem:[%s11187_s1 + $0x9c8] ss:$16 sps:$4 sm:$0xff]  }
  0xff   :  { %5062 = vmatpush1.bf16.msra.mxu0 %v7763_v5  ;;  %5621 = vmatpush1.bf16.msra.mxu1 %v7766_v6  ;;  %v7864_v5 = vld [vmem:[%s11187_s1 + $0x9e4] ss:$16 sps:$4 sm:$0xff]   ;;  %v7867_v6 = vld [vmem:[%s11187_s1 + $0x9ec] ss:$16 sps:$4 sm:$0xff]  }
 0x100   :  { %5074 = vmatprep.subr.bf16.mxu0 %v7774_v7  ;;  %5633 = vmatprep.subr.bf16.mxu1 %v7777_v8  ;;  %v7862_v7 = vld [vmem:[%s11187_s1 + $0x9e0] ss:$16 sps:$4 sm:$0xff]   ;;  %v7865_v8 = vld [vmem:[%s11187_s1 + $0x9e8] ss:$16 sps:$4 sm:$0xff]  }
 0x102   :  { %5064 = vmatmul.mubr.bf16.vlgmr.msra.gmra.mrb[0].mxu0 %v7769_v9  ;;  %5623 = vmatmul.mubr.bf16.vlgmr.msra.gmra.mrb[0].mxu1 %v7769_v9  ;;  %v7868_v9 = vld [vmem:[%s11188_s0 + $0x20] ss:$100 sps:$4 sm:$0xff]  }
 0x103   :  { %5075 = vmatpush1.bf16.msra.mxu0 %v7772_v10  ;;  %5634 = vmatpush1.bf16.msra.mxu1 %v7775_v11  ;;  %v7873_v10 = vld [vmem:[%s11187_s1 + $0xa04] ss:$16 sps:$4 sm:$0xff]   ;;  %v7876_v11 = vld [vmem:[%s11187_s1 + $0xa0c] ss:$16 sps:$4 sm:$0xff]  }
 0x104   :  { %5076 = vmatprep.subr.bf16.mxu0 %v7780_v12  ;;  %5635 = vmatprep.subr.bf16.mxu1 %v7783_v13  ;;  %v7871_v12 = vld [vmem:[%s11187_s1 + $0xa00] ss:$16 sps:$4 sm:$0xff]   ;;  %v7874_v13 = vld [vmem:[%s11187_s1 + $0xa08] ss:$16 sps:$4 sm:$0xff]  }
 0x105   :  { %5106 = vmatprep.mubr.bf16.mxu0 %v7870_v14  ;;  %5665 = vmatprep.mubr.bf16.mxu1 %v7870_v14  ;;  %v7879_v14 = vld [vmem:[%s11187_s1 + $0xa24] ss:$16 sps:$4 sm:$0xff]  }
 0x107   :  { %5077 = vmatpush1.bf16.msra.mxu0 %v7778_v15  ;;  %5636 = vmatpush1.bf16.msra.mxu1 %v7781_v16  ;;  %v7882_v15 = vld [vmem:[%s11187_s1 + $0xa2c] ss:$16 sps:$4 sm:$0xff]  }
 0x108   :  { %5078 = vmatprep.subr.bf16.mxu0 %v7786_v17  ;;  %5637 = vmatprep.subr.bf16.mxu1 %v7789_v18  ;;  %v7969_v16 = vld [vmem:[%s11188_s0 + $0x2c] ss:$100 sps:$4 sm:$0xff]   ;;  %v7880_v18 = vld [vmem:[%s11187_s1 + $0xa28] ss:$16 sps:$4 sm:$0xff]  }
 0x109   :  { %v7877_v17 = vld [vmem:[%s11187_s1 + $0xa20] ss:$16 sps:$4 sm:$0xff]  }
 0x10b   :  { %5079 = vmatpush1.bf16.msra.mxu0 %v7784_v19  ;;  %5638 = vmatpush1.bf16.msra.mxu1 %v7787_v20  ;;  %v7885_v19 = vld [vmem:[%s11187_s1 + $0xa44] ss:$16 sps:$4 sm:$0xff]   ;;  %v7888_v20 = vld [vmem:[%s11187_s1 + $0xa4c] ss:$16 sps:$4 sm:$0xff]  }
 0x10c   :  { %5080 = vmatprep.subr.bf16.mxu0 %v7792_v21  ;;  %5639 = vmatprep.subr.bf16.mxu1 %v7795_v22  ;;  %v7883_v21 = vld [vmem:[%s11187_s1 + $0xa40] ss:$16 sps:$4 sm:$0xff]   ;;  %v7886_v22 = vld [vmem:[%s11187_s1 + $0xa48] ss:$16 sps:$4 sm:$0xff]  }
 0x10f   :  { %5081 = vmatpush1.bf16.msra.mxu0 %v7790_v23  ;;  %5640 = vmatpush1.bf16.msra.mxu1 %v7793_v24  ;;  %v7891_v23 = vld [vmem:[%s11187_s1 + $0xa64] ss:$16 sps:$4 sm:$0xff]   ;;  %v7894_v24 = vld [vmem:[%s11187_s1 + $0xa6c] ss:$16 sps:$4 sm:$0xff]  }
 0x110   :  { %5082 = vmatprep.subr.bf16.mxu0 %v7798_v25  ;;  %5641 = vmatprep.subr.bf16.mxu1 %v7801_v26  ;;  %v7889_v25 = vld [vmem:[%s11187_s1 + $0xa60] ss:$16 sps:$4 sm:$0xff]   ;;  %v7892_v26 = vld [vmem:[%s11187_s1 + $0xa68] ss:$16 sps:$4 sm:$0xff]  }
 0x113   :  { %5083 = vmatpush1.bf16.msra.mxu0 %v7796_v27  ;;  %5642 = vmatpush1.bf16.msra.mxu1 %v7799_v28  ;;  %v7897_v27 = vld [vmem:[%s11187_s1 + $0xa84] ss:$16 sps:$4 sm:$0xff]   ;;  %v7900_v28 = vld [vmem:[%s11187_s1 + $0xa8c] ss:$16 sps:$4 sm:$0xff]  }
 0x114   :  { %5084 = vmatprep.subr.bf16.mxu0 %v7804_v29  ;;  %5643 = vmatprep.subr.bf16.mxu1 %v7807_v30  ;;  %v7895_v29 = vld [vmem:[%s11187_s1 + $0xa80] ss:$16 sps:$4 sm:$0xff]   ;;  %v7898_v30 = vld [vmem:[%s11187_s1 + $0xa88] ss:$16 sps:$4 sm:$0xff]  }
 0x117   :  { %5085 = vmatpush1.bf16.msra.mxu0 %v7802_v31  ;;  %5644 = vmatpush1.bf16.msra.mxu1 %v7805_v32  ;;  %v7903_v31 = vld [vmem:[%s11187_s1 + $0xaa4] ss:$16 sps:$4 sm:$0xff]   ;;  %v7906_v32 = vld [vmem:[%s11187_s1 + $0xaac] ss:$16 sps:$4 sm:$0xff]  }
 0x118   :  { %5086 = vmatprep.subr.bf16.mxu0 %v7810_v33  ;;  %5645 = vmatprep.subr.bf16.mxu1 %v7813_v34  ;;  %v7901_v33 = vld [vmem:[%s11187_s1 + $0xaa0] ss:$16 sps:$4 sm:$0xff]   ;;  %v7904_v34 = vld [vmem:[%s11187_s1 + $0xaa8] ss:$16 sps:$4 sm:$0xff]  }
 0x11b   :  { %5087 = vmatpush1.bf16.msra.mxu0 %v7808_v35  ;;  %5646 = vmatpush1.bf16.msra.mxu1 %v7811_v36  ;;  %v7909_v35 = vld [vmem:[%s11187_s1 + $0xac4] ss:$16 sps:$4 sm:$0xff]   ;;  %v7912_v36 = vld [vmem:[%s11187_s1 + $0xacc] ss:$16 sps:$4 sm:$0xff]  }
 0x11c   :  { %5088 = vmatprep.subr.bf16.mxu0 %v7816_v37  ;;  %5647 = vmatprep.subr.bf16.mxu1 %v7819_v38  ;;  %v7907_v37 = vld [vmem:[%s11187_s1 + $0xac0] ss:$16 sps:$4 sm:$0xff]   ;;  %v7910_v38 = vld [vmem:[%s11187_s1 + $0xac8] ss:$16 sps:$4 sm:$0xff]  }
 0x11f   :  { %5089 = vmatpush1.bf16.msra.mxu0 %v7814_v39  ;;  %5648 = vmatpush1.bf16.msra.mxu1 %v7817_v40  ;;  %v7915_v39 = vld [vmem:[%s11187_s1 + $0xae4] ss:$16 sps:$4 sm:$0xff]   ;;  %v7918_v40 = vld [vmem:[%s11187_s1 + $0xaec] ss:$16 sps:$4 sm:$0xff]  }
 0x120   :  { %5090 = vmatprep.subr.bf16.mxu0 %v7822_v41  ;;  %5649 = vmatprep.subr.bf16.mxu1 %v7825_v42  ;;  %v7913_v41 = vld [vmem:[%s11187_s1 + $0xae0] ss:$16 sps:$4 sm:$0xff]   ;;  %v7916_v42 = vld [vmem:[%s11187_s1 + $0xae8] ss:$16 sps:$4 sm:$0xff]  }
 0x123   :  { %5091 = vmatpush1.bf16.msra.mxu0 %v7820_v43  ;;  %5650 = vmatpush1.bf16.msra.mxu1 %v7823_v44  ;;  %v7921_v43 = vld [vmem:[%s11187_s1 + $0xb04] ss:$16 sps:$4 sm:$0xff]   ;;  %v7924_v44 = vld [vmem:[%s11187_s1 + $0xb0c] ss:$16 sps:$4 sm:$0xff]  }
 0x124   :  { %5092 = vmatprep.subr.bf16.mxu0 %v7828_v45  ;;  %5651 = vmatprep.subr.bf16.mxu1 %v7831_v46  ;;  %v7919_v45 = vld [vmem:[%s11187_s1 + $0xb00] ss:$16 sps:$4 sm:$0xff]   ;;  %v7922_v46 = vld [vmem:[%s11187_s1 + $0xb08] ss:$16 sps:$4 sm:$0xff]  }
 0x127   :  { %5093 = vmatpush1.bf16.msra.mxu0 %v7826_v47  ;;  %5652 = vmatpush1.bf16.msra.mxu1 %v7829_v48  ;;  %v7927_v47 = vld [vmem:[%s11187_s1 + $0xb24] ss:$16 sps:$4 sm:$0xff]   ;;  %v7930_v48 = vld [vmem:[%s11187_s1 + $0xb2c] ss:$16 sps:$4 sm:$0xff]  }
 0x128   :  { %5094 = vmatprep.subr.bf16.mxu0 %v7834_v49  ;;  %5653 = vmatprep.subr.bf16.mxu1 %v7837_v50  ;;  %v7925_v49 = vld [vmem:[%s11187_s1 + $0xb20] ss:$16 sps:$4 sm:$0xff]   ;;  %v7928_v50 = vld [vmem:[%s11187_s1 + $0xb28] ss:$16 sps:$4 sm:$0xff]  }
 0x12b   :  { %5095 = vmatpush1.bf16.msra.mxu0 %v7832_v51  ;;  %5654 = vmatpush1.bf16.msra.mxu1 %v7835_v52  ;;  %v7933_v51 = vld [vmem:[%s11187_s1 + $0xb44] ss:$16 sps:$4 sm:$0xff]   ;;  %v7936_v52 = vld [vmem:[%s11187_s1 + $0xb4c] ss:$16 sps:$4 sm:$0xff]  }
 0x12c   :  { %5096 = vmatprep.subr.bf16.mxu0 %v7840_v53  ;;  %5655 = vmatprep.subr.bf16.mxu1 %v7843_v54  ;;  %v7931_v53 = vld [vmem:[%s11187_s1 + $0xb40] ss:$16 sps:$4 sm:$0xff]   ;;  %v7934_v54 = vld [vmem:[%s11187_s1 + $0xb48] ss:$16 sps:$4 sm:$0xff]  }
 0x12f   :  { %5097 = vmatpush1.bf16.msra.mxu0 %v7838_v55  ;;  %5656 = vmatpush1.bf16.msra.mxu1 %v7841_v56  ;;  %v7939_v55 = vld [vmem:[%s11187_s1 + $0xb64] ss:$16 sps:$4 sm:$0xff]   ;;  %v7942_v56 = vld [vmem:[%s11187_s1 + $0xb6c] ss:$16 sps:$4 sm:$0xff]  }
 0x130   :  { %5098 = vmatprep.subr.bf16.mxu0 %v7846_v57  ;;  %5657 = vmatprep.subr.bf16.mxu1 %v7849_v58  ;;  %v7937_v57 = vld [vmem:[%s11187_s1 + $0xb60] ss:$16 sps:$4 sm:$0xff]   ;;  %v7940_v58 = vld [vmem:[%s11187_s1 + $0xb68] ss:$16 sps:$4 sm:$0xff]  }
 0x133   :  { %5099 = vmatpush1.bf16.msra.mxu0 %v7844_v59  ;;  %5658 = vmatpush1.bf16.msra.mxu1 %v7847_v60  ;;  %v7945_v59 = vld [vmem:[%s11187_s1 + $0xb84] ss:$16 sps:$4 sm:$0xff]   ;;  %v7948_v60 = vld [vmem:[%s11187_s1 + $0xb8c] ss:$16 sps:$4 sm:$0xff]  }
 0x134   :  { %5100 = vmatprep.subr.bf16.mxu0 %v7852_v61  ;;  %5659 = vmatprep.subr.bf16.mxu1 %v7855_v62  ;;  %v7943_v61 = vld [vmem:[%s11187_s1 + $0xb80] ss:$16 sps:$4 sm:$0xff]   ;;  %v7946_v62 = vld [vmem:[%s11187_s1 + $0xb88] ss:$16 sps:$4 sm:$0xff]  }
 0x137   :  { %5101 = vmatpush1.bf16.msra.mxu0 %v7850_v63  ;;  %5660 = vmatpush1.bf16.msra.mxu1 %v7853_v0  ;;  %v7951_v63 = vld [vmem:[%s11187_s1 + $0xba4] ss:$16 sps:$4 sm:$0xff]   ;;  %v7954_v0 = vld [vmem:[%s11187_s1 + $0xbac] ss:$16 sps:$4 sm:$0xff]  }
 0x138   :  { %5102 = vmatprep.subr.bf16.mxu0 %v7858_v1  ;;  %5661 = vmatprep.subr.bf16.mxu1 %v7861_v2  ;;  %v7949_v1 = vld [vmem:[%s11187_s1 + $0xba0] ss:$16 sps:$4 sm:$0xff]   ;;  %v7952_v2 = vld [vmem:[%s11187_s1 + $0xba8] ss:$16 sps:$4 sm:$0xff]  }
 0x13b   :  { %5103 = vmatpush1.bf16.msra.mxu0 %v7856_v3  ;;  %5662 = vmatpush1.bf16.msra.mxu1 %v7859_v4  ;;  %v7957_v3 = vld [vmem:[%s11187_s1 + $0xbc4] ss:$16 sps:$4 sm:$0xff]   ;;  %v7960_v4 = vld [vmem:[%s11187_s1 + $0xbcc] ss:$16 sps:$4 sm:$0xff]  }
 0x13c   :  { %5104 = vmatprep.subr.bf16.mxu0 %v7864_v5  ;;  %5663 = vmatprep.subr.bf16.mxu1 %v7867_v6  ;;  %v7955_v5 = vld [vmem:[%s11187_s1 + $0xbc0] ss:$16 sps:$4 sm:$0xff]   ;;  %v7958_v6 = vld [vmem:[%s11187_s1 + $0xbc8] ss:$16 sps:$4 sm:$0xff]  }
 0x13f   :  { %5105 = vmatpush1.bf16.msra.mxu0 %v7862_v7  ;;  %5664 = vmatpush1.bf16.msra.mxu1 %v7865_v8  ;;  %v7963_v7 = vld [vmem:[%s11187_s1 + $0xbe4] ss:$16 sps:$4 sm:$0xff]   ;;  %v7966_v8 = vld [vmem:[%s11187_s1 + $0xbec] ss:$16 sps:$4 sm:$0xff]  }
 0x140   :  { %5117 = vmatprep.subr.bf16.mxu0 %v7873_v10  ;;  %5676 = vmatprep.subr.bf16.mxu1 %v7876_v11  ;;  %v7964_v10 = vld [vmem:[%s11187_s1 + $0xbe8] ss:$16 sps:$4 sm:$0xff]  }
 0x141   :  { %v7967_v11 = vld [vmem:[%s11188_s0 + $0x28] ss:$100 sps:$4 sm:$0xff]  }
 0x142   :  { %5107 = vmatmul.mubr.bf16.vlgmr.msra.gmra.mrb[0].mxu0 %v7868_v9  ;;  %5666 = vmatmul.mubr.bf16.vlgmr.msra.gmra.mrb[0].mxu1 %v7868_v9  ;;  %v7961_v9 = vld [vmem:[%s11187_s1 + $0xbe0] ss:$16 sps:$4 sm:$0xff]  }
 0x143   :  { %5118 = vmatpush1.bf16.msra.mxu0 %v7871_v12  ;;  %5677 = vmatpush1.bf16.msra.mxu1 %v7874_v13  ;;  %v7972_v12 = vld [vmem:[%s11187_s1 + $0xc04] ss:$16 sps:$4 sm:$0xff]   ;;  %v7975_v13 = vld [vmem:[%s11187_s1 + $0xc0c] ss:$16 sps:$4 sm:$0xff]  }
 0x144   :  { %5119 = vmatprep.subr.bf16.mxu0 %v7879_v14  ;;  %5678 = vmatprep.subr.bf16.mxu1 %v7882_v15  ;;  %v7970_v14 = vld [vmem:[%s11187_s1 + $0xc00] ss:$16 sps:$4 sm:$0xff]   ;;  %v7973_v15 = vld [vmem:[%s11187_s1 + $0xc08] ss:$16 sps:$4 sm:$0xff]  }
 0x145   :  { %5149 = vmatprep.mubr.bf16.mxu0 %v7969_v16  ;;  %5708 = vmatprep.mubr.bf16.mxu1 %v7969_v16  ;;  %v7978_v16 = vld [vmem:[%s11187_s1 + $0xc24] ss:$16 sps:$4 sm:$0xff]  }
 0x147   :  { %5120 = vmatpush1.bf16.msra.mxu0 %v7877_v17  ;;  %5679 = vmatpush1.bf16.msra.mxu1 %v7880_v18  ;;  %v7981_v17 = vld [vmem:[%s11187_s1 + $0xc2c] ss:$16 sps:$4 sm:$0xff]   ;;  %v8068_v18 = vld [vmem:[%s11188_s0 + $0x34] ss:$100 sps:$4 sm:$0xff]  }
 0x148   :  { %5121 = vmatprep.subr.bf16.mxu0 %v7885_v19  ;;  %5680 = vmatprep.subr.bf16.mxu1 %v7888_v20  ;;  %v7976_v19 = vld [vmem:[%s11187_s1 + $0xc20] ss:$16 sps:$4 sm:$0xff]   ;;  %v7979_v20 = vld [vmem:[%s11187_s1 + $0xc28] ss:$16 sps:$4 sm:$0xff]  }
 0x14b   :  { %5122 = vmatpush1.bf16.msra.mxu0 %v7883_v21  ;;  %5681 = vmatpush1.bf16.msra.mxu1 %v7886_v22  ;;  %v7984_v21 = vld [vmem:[%s11187_s1 + $0xc44] ss:$16 sps:$4 sm:$0xff]   ;;  %v7987_v22 = vld [vmem:[%s11187_s1 + $0xc4c] ss:$16 sps:$4 sm:$0xff]  }
 0x14c   :  { %5123 = vmatprep.subr.bf16.mxu0 %v7891_v23  ;;  %5682 = vmatprep.subr.bf16.mxu1 %v7894_v24  ;;  %v7982_v23 = vld [vmem:[%s11187_s1 + $0xc40] ss:$16 sps:$4 sm:$0xff]   ;;  %v7985_v24 = vld [vmem:[%s11187_s1 + $0xc48] ss:$16 sps:$4 sm:$0xff]  }
 0x14f   :  { %5124 = vmatpush1.bf16.msra.mxu0 %v7889_v25  ;;  %5683 = vmatpush1.bf16.msra.mxu1 %v7892_v26  ;;  %v7990_v25 = vld [vmem:[%s11187_s1 + $0xc64] ss:$16 sps:$4 sm:$0xff]   ;;  %v7993_v26 = vld [vmem:[%s11187_s1 + $0xc6c] ss:$16 sps:$4 sm:$0xff]  }
 0x150   :  { %5125 = vmatprep.subr.bf16.mxu0 %v7897_v27  ;;  %5684 = vmatprep.subr.bf16.mxu1 %v7900_v28  ;;  %v7988_v27 = vld [vmem:[%s11187_s1 + $0xc60] ss:$16 sps:$4 sm:$0xff]   ;;  %v7991_v28 = vld [vmem:[%s11187_s1 + $0xc68] ss:$16 sps:$4 sm:$0xff]  }
 0x153   :  { %5126 = vmatpush1.bf16.msra.mxu0 %v7895_v29  ;;  %5685 = vmatpush1.bf16.msra.mxu1 %v7898_v30  ;;  %v7996_v29 = vld [vmem:[%s11187_s1 + $0xc84] ss:$16 sps:$4 sm:$0xff]   ;;  %v7999_v30 = vld [vmem:[%s11187_s1 + $0xc8c] ss:$16 sps:$4 sm:$0xff]  }
 0x154   :  { %5127 = vmatprep.subr.bf16.mxu0 %v7903_v31  ;;  %5686 = vmatprep.subr.bf16.mxu1 %v7906_v32  ;;  %v7994_v31 = vld [vmem:[%s11187_s1 + $0xc80] ss:$16 sps:$4 sm:$0xff]   ;;  %v7997_v32 = vld [vmem:[%s11187_s1 + $0xc88] ss:$16 sps:$4 sm:$0xff]  }
 0x157   :  { %5128 = vmatpush1.bf16.msra.mxu0 %v7901_v33  ;;  %5687 = vmatpush1.bf16.msra.mxu1 %v7904_v34  ;;  %v8002_v33 = vld [vmem:[%s11187_s1 + $0xca4] ss:$16 sps:$4 sm:$0xff]   ;;  %v8005_v34 = vld [vmem:[%s11187_s1 + $0xcac] ss:$16 sps:$4 sm:$0xff]  }
 0x158   :  { %5129 = vmatprep.subr.bf16.mxu0 %v7909_v35  ;;  %5688 = vmatprep.subr.bf16.mxu1 %v7912_v36  ;;  %v8000_v35 = vld [vmem:[%s11187_s1 + $0xca0] ss:$16 sps:$4 sm:$0xff]   ;;  %v8003_v36 = vld [vmem:[%s11187_s1 + $0xca8] ss:$16 sps:$4 sm:$0xff]  }
 0x15b   :  { %5130 = vmatpush1.bf16.msra.mxu0 %v7907_v37  ;;  %5689 = vmatpush1.bf16.msra.mxu1 %v7910_v38  ;;  %v8008_v37 = vld [vmem:[%s11187_s1 + $0xcc4] ss:$16 sps:$4 sm:$0xff]   ;;  %v8011_v38 = vld [vmem:[%s11187_s1 + $0xccc] ss:$16 sps:$4 sm:$0xff]  }
 0x15c   :  { %5131 = vmatprep.subr.bf16.mxu0 %v7915_v39  ;;  %5690 = vmatprep.subr.bf16.mxu1 %v7918_v40  ;;  %v8006_v39 = vld [vmem:[%s11187_s1 + $0xcc0] ss:$16 sps:$4 sm:$0xff]   ;;  %v8009_v40 = vld [vmem:[%s11187_s1 + $0xcc8] ss:$16 sps:$4 sm:$0xff]  }
 0x15f   :  { %5132 = vmatpush1.bf16.msra.mxu0 %v7913_v41  ;;  %5691 = vmatpush1.bf16.msra.mxu1 %v7916_v42  ;;  %v8014_v41 = vld [vmem:[%s11187_s1 + $0xce4] ss:$16 sps:$4 sm:$0xff]   ;;  %v8017_v42 = vld [vmem:[%s11187_s1 + $0xcec] ss:$16 sps:$4 sm:$0xff]  }
 0x160   :  { %5133 = vmatprep.subr.bf16.mxu0 %v7921_v43  ;;  %5692 = vmatprep.subr.bf16.mxu1 %v7924_v44  ;;  %v8012_v43 = vld [vmem:[%s11187_s1 + $0xce0] ss:$16 sps:$4 sm:$0xff]   ;;  %v8015_v44 = vld [vmem:[%s11187_s1 + $0xce8] ss:$16 sps:$4 sm:$0xff]  }
 0x163   :  { %5134 = vmatpush1.bf16.msra.mxu0 %v7919_v45  ;;  %5693 = vmatpush1.bf16.msra.mxu1 %v7922_v46  ;;  %v8020_v45 = vld [vmem:[%s11187_s1 + $0xd04] ss:$16 sps:$4 sm:$0xff]   ;;  %v8023_v46 = vld [vmem:[%s11187_s1 + $0xd0c] ss:$16 sps:$4 sm:$0xff]  }
 0x164   :  { %5135 = vmatprep.subr.bf16.mxu0 %v7927_v47  ;;  %5694 = vmatprep.subr.bf16.mxu1 %v7930_v48  ;;  %v8018_v47 = vld [vmem:[%s11187_s1 + $0xd00] ss:$16 sps:$4 sm:$0xff]   ;;  %v8021_v48 = vld [vmem:[%s11187_s1 + $0xd08] ss:$16 sps:$4 sm:$0xff]  }
 0x167   :  { %5136 = vmatpush1.bf16.msra.mxu0 %v7925_v49  ;;  %5695 = vmatpush1.bf16.msra.mxu1 %v7928_v50  ;;  %v8026_v49 = vld [vmem:[%s11187_s1 + $0xd24] ss:$16 sps:$4 sm:$0xff]   ;;  %v8029_v50 = vld [vmem:[%s11187_s1 + $0xd2c] ss:$16 sps:$4 sm:$0xff]  }
 0x168   :  { %5137 = vmatprep.subr.bf16.mxu0 %v7933_v51  ;;  %5696 = vmatprep.subr.bf16.mxu1 %v7936_v52  ;;  %v8024_v51 = vld [vmem:[%s11187_s1 + $0xd20] ss:$16 sps:$4 sm:$0xff]   ;;  %v8027_v52 = vld [vmem:[%s11187_s1 + $0xd28] ss:$16 sps:$4 sm:$0xff]  }
 0x16b   :  { %5138 = vmatpush1.bf16.msra.mxu0 %v7931_v53  ;;  %5697 = vmatpush1.bf16.msra.mxu1 %v7934_v54  ;;  %v8032_v53 = vld [vmem:[%s11187_s1 + $0xd44] ss:$16 sps:$4 sm:$0xff]   ;;  %v8035_v54 = vld [vmem:[%s11187_s1 + $0xd4c] ss:$16 sps:$4 sm:$0xff]  }
 0x16c   :  { %5139 = vmatprep.subr.bf16.mxu0 %v7939_v55  ;;  %5698 = vmatprep.subr.bf16.mxu1 %v7942_v56  ;;  %v8030_v55 = vld [vmem:[%s11187_s1 + $0xd40] ss:$16 sps:$4 sm:$0xff]   ;;  %v8033_v56 = vld [vmem:[%s11187_s1 + $0xd48] ss:$16 sps:$4 sm:$0xff]  }
 0x16f   :  { %5140 = vmatpush1.bf16.msra.mxu0 %v7937_v57  ;;  %5699 = vmatpush1.bf16.msra.mxu1 %v7940_v58  ;;  %v8038_v57 = vld [vmem:[%s11187_s1 + $0xd64] ss:$16 sps:$4 sm:$0xff]   ;;  %v8041_v58 = vld [vmem:[%s11187_s1 + $0xd6c] ss:$16 sps:$4 sm:$0xff]  }
 0x170   :  { %5141 = vmatprep.subr.bf16.mxu0 %v7945_v59  ;;  %5700 = vmatprep.subr.bf16.mxu1 %v7948_v60  ;;  %v8036_v59 = vld [vmem:[%s11187_s1 + $0xd60] ss:$16 sps:$4 sm:$0xff]   ;;  %v8039_v60 = vld [vmem:[%s11187_s1 + $0xd68] ss:$16 sps:$4 sm:$0xff]  }
 0x173   :  { %5142 = vmatpush1.bf16.msra.mxu0 %v7943_v61  ;;  %5701 = vmatpush1.bf16.msra.mxu1 %v7946_v62  ;;  %v8044_v61 = vld [vmem:[%s11187_s1 + $0xd84] ss:$16 sps:$4 sm:$0xff]   ;;  %v8047_v62 = vld [vmem:[%s11187_s1 + $0xd8c] ss:$16 sps:$4 sm:$0xff]  }
 0x174   :  { %5143 = vmatprep.subr.bf16.mxu0 %v7951_v63  ;;  %5702 = vmatprep.subr.bf16.mxu1 %v7954_v0  ;;  %v8042_v63 = vld [vmem:[%s11187_s1 + $0xd80] ss:$16 sps:$4 sm:$0xff]   ;;  %v8045_v0 = vld [vmem:[%s11187_s1 + $0xd88] ss:$16 sps:$4 sm:$0xff]  }
 0x177   :  { %5144 = vmatpush1.bf16.msra.mxu0 %v7949_v1  ;;  %5703 = vmatpush1.bf16.msra.mxu1 %v7952_v2  ;;  %v8050_v1 = vld [vmem:[%s11187_s1 + $0xda4] ss:$16 sps:$4 sm:$0xff]   ;;  %v8053_v2 = vld [vmem:[%s11187_s1 + $0xdac] ss:$16 sps:$4 sm:$0xff]  }
 0x178   :  { %5145 = vmatprep.subr.bf16.mxu0 %v7957_v3  ;;  %5704 = vmatprep.subr.bf16.mxu1 %v7960_v4  ;;  %v8048_v3 = vld [vmem:[%s11187_s1 + $0xda0] ss:$16 sps:$4 sm:$0xff]   ;;  %v8051_v4 = vld [vmem:[%s11187_s1 + $0xda8] ss:$16 sps:$4 sm:$0xff]  }
 0x17b   :  { %5146 = vmatpush1.bf16.msra.mxu0 %v7955_v5  ;;  %5705 = vmatpush1.bf16.msra.mxu1 %v7958_v6  ;;  %v8056_v5 = vld [vmem:[%s11187_s1 + $0xdc4] ss:$16 sps:$4 sm:$0xff]   ;;  %v8059_v6 = vld [vmem:[%s11187_s1 + $0xdcc] ss:$16 sps:$4 sm:$0xff]  }
 0x17c   :  { %5147 = vmatprep.subr.bf16.mxu0 %v7963_v7  ;;  %5706 = vmatprep.subr.bf16.mxu1 %v7966_v8  ;;  %v8054_v7 = vld [vmem:[%s11187_s1 + $0xdc0] ss:$16 sps:$4 sm:$0xff]   ;;  %v8057_v8 = vld [vmem:[%s11187_s1 + $0xdc8] ss:$16 sps:$4 sm:$0xff]  }
 0x17f   :  { %5148 = vmatpush1.bf16.msra.mxu0 %v7961_v9  ;;  %5707 = vmatpush1.bf16.msra.mxu1 %v7964_v10  ;;  %v8062_v9 = vld [vmem:[%s11187_s1 + $0xde4] ss:$16 sps:$4 sm:$0xff]   ;;  %v8065_v10 = vld [vmem:[%s11187_s1 + $0xdec] ss:$16 sps:$4 sm:$0xff]  }
 0x180   :  { %5160 = vmatprep.subr.bf16.mxu0 %v7972_v12  ;;  %5719 = vmatprep.subr.bf16.mxu1 %v7975_v13  ;;  %v8063_v12 = vld [vmem:[%s11187_s1 + $0xde8] ss:$16 sps:$4 sm:$0xff]   ;;  %v8066_v13 = vld [vmem:[%s11188_s0 + $0x30] ss:$100 sps:$4 sm:$0xff]  }
 0x182   :  { %5150 = vmatmul.mubr.bf16.vlgmr.msra.gmra.mrb[0].mxu0 %v7967_v11  ;;  %5709 = vmatmul.mubr.bf16.vlgmr.msra.gmra.mrb[0].mxu1 %v7967_v11  ;;  %v8060_v11 = vld [vmem:[%s11187_s1 + $0xde0] ss:$16 sps:$4 sm:$0xff]  }
 0x183   :  { %5161 = vmatpush1.bf16.msra.mxu0 %v7970_v14  ;;  %5720 = vmatpush1.bf16.msra.mxu1 %v7973_v15  ;;  %v8071_v14 = vld [vmem:[%s11187_s1 + $0xe04] ss:$16 sps:$4 sm:$0xff]   ;;  %v8074_v15 = vld [vmem:[%s11187_s1 + $0xe0c] ss:$16 sps:$4 sm:$0xff]  }
 0x184   :  { %5162 = vmatprep.subr.bf16.mxu0 %v7978_v16  ;;  %5721 = vmatprep.subr.bf16.mxu1 %v7981_v17  ;;  %v8069_v16 = vld [vmem:[%s11187_s1 + $0xe00] ss:$16 sps:$4 sm:$0xff]   ;;  %v8072_v17 = vld [vmem:[%s11187_s1 + $0xe08] ss:$16 sps:$4 sm:$0xff]  }
 0x185   :  { %5192 = vmatprep.mubr.bf16.mxu0 %v8068_v18  ;;  %5751 = vmatprep.mubr.bf16.mxu1 %v8068_v18  ;;  %v8077_v18 = vld [vmem:[%s11187_s1 + $0xe24] ss:$16 sps:$4 sm:$0xff]  }
 0x187   :  { %5163 = vmatpush1.bf16.msra.mxu0 %v7976_v19  ;;  %5722 = vmatpush1.bf16.msra.mxu1 %v7979_v20  ;;  %v8080_v19 = vld [vmem:[%s11187_s1 + $0xe2c] ss:$16 sps:$4 sm:$0xff]  }
 0x188   :  { %5164 = vmatprep.subr.bf16.mxu0 %v7984_v21  ;;  %5723 = vmatprep.subr.bf16.mxu1 %v7987_v22  ;;  %v8167_v20 = vld [vmem:[%s11188_s0 + $0x3c] ss:$100 sps:$4 sm:$0xff]   ;;  %v8078_v22 = vld [vmem:[%s11187_s1 + $0xe28] ss:$16 sps:$4 sm:$0xff]  }
 0x189   :  { %v8075_v21 = vld [vmem:[%s11187_s1 + $0xe20] ss:$16 sps:$4 sm:$0xff]  }
 0x18b   :  { %5165 = vmatpush1.bf16.msra.mxu0 %v7982_v23  ;;  %5724 = vmatpush1.bf16.msra.mxu1 %v7985_v24  ;;  %v8083_v23 = vld [vmem:[%s11187_s1 + $0xe44] ss:$16 sps:$4 sm:$0xff]   ;;  %v8086_v24 = vld [vmem:[%s11187_s1 + $0xe4c] ss:$16 sps:$4 sm:$0xff]  }
 0x18c   :  { %5166 = vmatprep.subr.bf16.mxu0 %v7990_v25  ;;  %5725 = vmatprep.subr.bf16.mxu1 %v7993_v26  ;;  %v8081_v25 = vld [vmem:[%s11187_s1 + $0xe40] ss:$16 sps:$4 sm:$0xff]   ;;  %v8084_v26 = vld [vmem:[%s11187_s1 + $0xe48] ss:$16 sps:$4 sm:$0xff]  }
 0x18f   :  { %5167 = vmatpush1.bf16.msra.mxu0 %v7988_v27  ;;  %5726 = vmatpush1.bf16.msra.mxu1 %v7991_v28  ;;  %v8089_v27 = vld [vmem:[%s11187_s1 + $0xe64] ss:$16 sps:$4 sm:$0xff]   ;;  %v8092_v28 = vld [vmem:[%s11187_s1 + $0xe6c] ss:$16 sps:$4 sm:$0xff]  }
 0x190   :  { %5168 = vmatprep.subr.bf16.mxu0 %v7996_v29  ;;  %5727 = vmatprep.subr.bf16.mxu1 %v7999_v30  ;;  %v8087_v29 = vld [vmem:[%s11187_s1 + $0xe60] ss:$16 sps:$4 sm:$0xff]   ;;  %v8090_v30 = vld [vmem:[%s11187_s1 + $0xe68] ss:$16 sps:$4 sm:$0xff]  }
 0x193   :  { %5169 = vmatpush1.bf16.msra.mxu0 %v7994_v31  ;;  %5728 = vmatpush1.bf16.msra.mxu1 %v7997_v32  ;;  %v8095_v31 = vld [vmem:[%s11187_s1 + $0xe84] ss:$16 sps:$4 sm:$0xff]   ;;  %v8098_v32 = vld [vmem:[%s11187_s1 + $0xe8c] ss:$16 sps:$4 sm:$0xff]  }
 0x194   :  { %5170 = vmatprep.subr.bf16.mxu0 %v8002_v33  ;;  %5729 = vmatprep.subr.bf16.mxu1 %v8005_v34  ;;  %v8093_v33 = vld [vmem:[%s11187_s1 + $0xe80] ss:$16 sps:$4 sm:$0xff]   ;;  %v8096_v34 = vld [vmem:[%s11187_s1 + $0xe88] ss:$16 sps:$4 sm:$0xff]  }
 0x197   :  { %5171 = vmatpush1.bf16.msra.mxu0 %v8000_v35  ;;  %5730 = vmatpush1.bf16.msra.mxu1 %v8003_v36  ;;  %v8101_v35 = vld [vmem:[%s11187_s1 + $0xea4] ss:$16 sps:$4 sm:$0xff]   ;;  %v8104_v36 = vld [vmem:[%s11187_s1 + $0xeac] ss:$16 sps:$4 sm:$0xff]  }
 0x198   :  { %5172 = vmatprep.subr.bf16.mxu0 %v8008_v37  ;;  %5731 = vmatprep.subr.bf16.mxu1 %v8011_v38  ;;  %v8099_v37 = vld [vmem:[%s11187_s1 + $0xea0] ss:$16 sps:$4 sm:$0xff]   ;;  %v8102_v38 = vld [vmem:[%s11187_s1 + $0xea8] ss:$16 sps:$4 sm:$0xff]  }
 0x19b   :  { %5173 = vmatpush1.bf16.msra.mxu0 %v8006_v39  ;;  %5732 = vmatpush1.bf16.msra.mxu1 %v8009_v40  ;;  %v8107_v39 = vld [vmem:[%s11187_s1 + $0xec4] ss:$16 sps:$4 sm:$0xff]   ;;  %v8110_v40 = vld [vmem:[%s11187_s1 + $0xecc] ss:$16 sps:$4 sm:$0xff]  }
 0x19c   :  { %5174 = vmatprep.subr.bf16.mxu0 %v8014_v41  ;;  %5733 = vmatprep.subr.bf16.mxu1 %v8017_v42  ;;  %v8105_v41 = vld [vmem:[%s11187_s1 + $0xec0] ss:$16 sps:$4 sm:$0xff]   ;;  %v8108_v42 = vld [vmem:[%s11187_s1 + $0xec8] ss:$16 sps:$4 sm:$0xff]  }
 0x19f   :  { %5175 = vmatpush1.bf16.msra.mxu0 %v8012_v43  ;;  %5734 = vmatpush1.bf16.msra.mxu1 %v8015_v44  ;;  %v8113_v43 = vld [vmem:[%s11187_s1 + $0xee4] ss:$16 sps:$4 sm:$0xff]   ;;  %v8116_v44 = vld [vmem:[%s11187_s1 + $0xeec] ss:$16 sps:$4 sm:$0xff]  }
 0x1a0   :  { %5176 = vmatprep.subr.bf16.mxu0 %v8020_v45  ;;  %5735 = vmatprep.subr.bf16.mxu1 %v8023_v46  ;;  %v8111_v45 = vld [vmem:[%s11187_s1 + $0xee0] ss:$16 sps:$4 sm:$0xff]   ;;  %v8114_v46 = vld [vmem:[%s11187_s1 + $0xee8] ss:$16 sps:$4 sm:$0xff]  }
 0x1a3   :  { %5177 = vmatpush1.bf16.msra.mxu0 %v8018_v47  ;;  %5736 = vmatpush1.bf16.msra.mxu1 %v8021_v48  ;;  %v8119_v47 = vld [vmem:[%s11187_s1 + $0xf04] ss:$16 sps:$4 sm:$0xff]   ;;  %v8122_v48 = vld [vmem:[%s11187_s1 + $0xf0c] ss:$16 sps:$4 sm:$0xff]  }
 0x1a4   :  { %5178 = vmatprep.subr.bf16.mxu0 %v8026_v49  ;;  %5737 = vmatprep.subr.bf16.mxu1 %v8029_v50  ;;  %v8117_v49 = vld [vmem:[%s11187_s1 + $0xf00] ss:$16 sps:$4 sm:$0xff]   ;;  %v8120_v50 = vld [vmem:[%s11187_s1 + $0xf08] ss:$16 sps:$4 sm:$0xff]  }
 0x1a7   :  { %5179 = vmatpush1.bf16.msra.mxu0 %v8024_v51  ;;  %5738 = vmatpush1.bf16.msra.mxu1 %v8027_v52  ;;  %v8125_v51 = vld [vmem:[%s11187_s1 + $0xf24] ss:$16 sps:$4 sm:$0xff]   ;;  %v8128_v52 = vld [vmem:[%s11187_s1 + $0xf2c] ss:$16 sps:$4 sm:$0xff]  }
 0x1a8   :  { %5180 = vmatprep.subr.bf16.mxu0 %v8032_v53  ;;  %5739 = vmatprep.subr.bf16.mxu1 %v8035_v54  ;;  %v8123_v53 = vld [vmem:[%s11187_s1 + $0xf20] ss:$16 sps:$4 sm:$0xff]   ;;  %v8126_v54 = vld [vmem:[%s11187_s1 + $0xf28] ss:$16 sps:$4 sm:$0xff]  }
 0x1ab   :  { %5181 = vmatpush1.bf16.msra.mxu0 %v8030_v55  ;;  %5740 = vmatpush1.bf16.msra.mxu1 %v8033_v56  ;;  %v8131_v55 = vld [vmem:[%s11187_s1 + $0xf44] ss:$16 sps:$4 sm:$0xff]   ;;  %v8134_v56 = vld [vmem:[%s11187_s1 + $0xf4c] ss:$16 sps:$4 sm:$0xff]  }
 0x1ac   :  { %5182 = vmatprep.subr.bf16.mxu0 %v8038_v57  ;;  %5741 = vmatprep.subr.bf16.mxu1 %v8041_v58  ;;  %v8129_v57 = vld [vmem:[%s11187_s1 + $0xf40] ss:$16 sps:$4 sm:$0xff]   ;;  %v8132_v58 = vld [vmem:[%s11187_s1 + $0xf48] ss:$16 sps:$4 sm:$0xff]  }
 0x1af   :  { %5183 = vmatpush1.bf16.msra.mxu0 %v8036_v59  ;;  %5742 = vmatpush1.bf16.msra.mxu1 %v8039_v60  ;;  %v8137_v59 = vld [vmem:[%s11187_s1 + $0xf64] ss:$16 sps:$4 sm:$0xff]   ;;  %v8140_v60 = vld [vmem:[%s11187_s1 + $0xf6c] ss:$16 sps:$4 sm:$0xff]  }
 0x1b0   :  { %5184 = vmatprep.subr.bf16.mxu0 %v8044_v61  ;;  %5743 = vmatprep.subr.bf16.mxu1 %v8047_v62  ;;  %v8135_v61 = vld [vmem:[%s11187_s1 + $0xf60] ss:$16 sps:$4 sm:$0xff]   ;;  %v8138_v62 = vld [vmem:[%s11187_s1 + $0xf68] ss:$16 sps:$4 sm:$0xff]  }
 0x1b3   :  { %5185 = vmatpush1.bf16.msra.mxu0 %v8042_v63  ;;  %5744 = vmatpush1.bf16.msra.mxu1 %v8045_v0  ;;  %v8143_v63 = vld [vmem:[%s11187_s1 + $0xf84] ss:$16 sps:$4 sm:$0xff]   ;;  %v8146_v0 = vld [vmem:[%s11187_s1 + $0xf8c] ss:$16 sps:$4 sm:$0xff]  }
 0x1b4   :  { %5186 = vmatprep.subr.bf16.mxu0 %v8050_v1  ;;  %5745 = vmatprep.subr.bf16.mxu1 %v8053_v2  ;;  %v8141_v1 = vld [vmem:[%s11187_s1 + $0xf80] ss:$16 sps:$4 sm:$0xff]   ;;  %v8144_v2 = vld [vmem:[%s11187_s1 + $0xf88] ss:$16 sps:$4 sm:$0xff]  }
 0x1b7   :  { %5187 = vmatpush1.bf16.msra.mxu0 %v8048_v3  ;;  %5746 = vmatpush1.bf16.msra.mxu1 %v8051_v4  ;;  %v8149_v3 = vld [vmem:[%s11187_s1 + $0xfa4] ss:$16 sps:$4 sm:$0xff]   ;;  %v8152_v4 = vld [vmem:[%s11187_s1 + $0xfac] ss:$16 sps:$4 sm:$0xff]  }
 0x1b8   :  { %5188 = vmatprep.subr.bf16.mxu0 %v8056_v5  ;;  %5747 = vmatprep.subr.bf16.mxu1 %v8059_v6  ;;  %v8147_v5 = vld [vmem:[%s11187_s1 + $0xfa0] ss:$16 sps:$4 sm:$0xff]   ;;  %v8150_v6 = vld [vmem:[%s11187_s1 + $0xfa8] ss:$16 sps:$4 sm:$0xff]  }
 0x1bb   :  { %5189 = vmatpush1.bf16.msra.mxu0 %v8054_v7  ;;  %5748 = vmatpush1.bf16.msra.mxu1 %v8057_v8  ;;  %v8155_v7 = vld [vmem:[%s11187_s1 + $0xfc4] ss:$16 sps:$4 sm:$0xff]   ;;  %v8158_v8 = vld [vmem:[%s11187_s1 + $0xfcc] ss:$16 sps:$4 sm:$0xff]  }
 0x1bc   :  { %5190 = vmatprep.subr.bf16.mxu0 %v8062_v9  ;;  %5749 = vmatprep.subr.bf16.mxu1 %v8065_v10  ;;  %v8153_v9 = vld [vmem:[%s11187_s1 + $0xfc0] ss:$16 sps:$4 sm:$0xff]   ;;  %v8156_v10 = vld [vmem:[%s11187_s1 + $0xfc8] ss:$16 sps:$4 sm:$0xff]  }
 0x1bf   :  { %5191 = vmatpush1.bf16.msra.mxu0 %v8060_v11  ;;  %5750 = vmatpush1.bf16.msra.mxu1 %v8063_v12  ;;  %v8161_v11 = vld [vmem:[%s11187_s1 + $0xfe4] ss:$16 sps:$4 sm:$0xff]   ;;  %v8164_v12 = vld [vmem:[%s11187_s1 + $0xfec] ss:$16 sps:$4 sm:$0xff]  }
 0x1c0   :  { %5203 = vmatprep.subr.bf16.mxu0 %v8071_v14  ;;  %5762 = vmatprep.subr.bf16.mxu1 %v8074_v15  ;;  %v8162_v14 = vld [vmem:[%s11187_s1 + $0xfe8] ss:$16 sps:$4 sm:$0xff]   ;;  %v8170_v15 = vld [vmem:[%s11187_s1 + $0x1004] ss:$16 sps:$4 sm:$0xff]  }
 0x1c2   :  { %5193 = vmatmul.mubr.bf16.vlgmr.msra.gmra.mrb[0].mxu0 %v8066_v13  ;;  %5752 = vmatmul.mubr.bf16.vlgmr.msra.gmra.mrb[0].mxu1 %v8066_v13  ;;  %v8159_v13 = vld [vmem:[%s11187_s1 + $0xfe0] ss:$16 sps:$4 sm:$0xff]  }
 0x1c3   :  { %5204 = vmatpush1.bf16.msra.mxu0 %v8069_v16  ;;  %5763 = vmatpush1.bf16.msra.mxu1 %v8072_v17  ;;  %v8173_v16 = vld [vmem:[%s11187_s1 + $0x100c] ss:$16 sps:$4 sm:$0xff]  }
 0x1c4   :  { %5205 = vmatprep.subr.bf16.mxu0 %v8077_v18  ;;  %5764 = vmatprep.subr.bf16.mxu1 %v8080_v19  ;;  %v8165_v17 = vld [vmem:[%s11188_s0 + $0x38] ss:$100 sps:$4 sm:$0xff]   ;;  %v8168_v18 = vld [vmem:[%s11187_s1 + $0x1000] ss:$16 sps:$4 sm:$0xff]  }
 0x1c5   :  { %5235 = vmatprep.mubr.bf16.mxu0 %v8167_v20  ;;  %5794 = vmatprep.mubr.bf16.mxu1 %v8167_v20  ;;  %v8171_v19 = vld [vmem:[%s11187_s1 + $0x1008] ss:$16 sps:$4 sm:$0xff]   ;;  %v8176_v20 = vld [vmem:[%s11187_s1 + $0x1024] ss:$16 sps:$4 sm:$0xff]  }
 0x1c7   :  { %5206 = vmatpush1.bf16.msra.mxu0 %v8075_v21  ;;  %5765 = vmatpush1.bf16.msra.mxu1 %v8078_v22  ;;  %v8179_v21 = vld [vmem:[%s11187_s1 + $0x102c] ss:$16 sps:$4 sm:$0xff]   ;;  %v8266_v22 = vld [vmem:[%s11188_s0 + $0x44] ss:$100 sps:$4 sm:$0xff]  }
 0x1c8   :  { %5207 = vmatprep.subr.bf16.mxu0 %v8083_v23  ;;  %5766 = vmatprep.subr.bf16.mxu1 %v8086_v24  ;;  %v8174_v23 = vld [vmem:[%s11187_s1 + $0x1020] ss:$16 sps:$4 sm:$0xff]   ;;  %v8177_v24 = vld [vmem:[%s11187_s1 + $0x1028] ss:$16 sps:$4 sm:$0xff]  }
 0x1cb   :  { %5208 = vmatpush1.bf16.msra.mxu0 %v8081_v25  ;;  %5767 = vmatpush1.bf16.msra.mxu1 %v8084_v26  ;;  %v8182_v25 = vld [vmem:[%s11187_s1 + $0x1044] ss:$16 sps:$4 sm:$0xff]   ;;  %v8185_v26 = vld [vmem:[%s11187_s1 + $0x104c] ss:$16 sps:$4 sm:$0xff]  }
 0x1cc   :  { %5209 = vmatprep.subr.bf16.mxu0 %v8089_v27  ;;  %5768 = vmatprep.subr.bf16.mxu1 %v8092_v28  ;;  %v8180_v27 = vld [vmem:[%s11187_s1 + $0x1040] ss:$16 sps:$4 sm:$0xff]   ;;  %v8183_v28 = vld [vmem:[%s11187_s1 + $0x1048] ss:$16 sps:$4 sm:$0xff]  }
 0x1cf   :  { %5210 = vmatpush1.bf16.msra.mxu0 %v8087_v29  ;;  %5769 = vmatpush1.bf16.msra.mxu1 %v8090_v30  ;;  %v8188_v29 = vld [vmem:[%s11187_s1 + $0x1064] ss:$16 sps:$4 sm:$0xff]   ;;  %v8191_v30 = vld [vmem:[%s11187_s1 + $0x106c] ss:$16 sps:$4 sm:$0xff]  }
 0x1d0   :  { %5211 = vmatprep.subr.bf16.mxu0 %v8095_v31  ;;  %5770 = vmatprep.subr.bf16.mxu1 %v8098_v32  ;;  %v8186_v31 = vld [vmem:[%s11187_s1 + $0x1060] ss:$16 sps:$4 sm:$0xff]   ;;  %v8189_v32 = vld [vmem:[%s11187_s1 + $0x1068] ss:$16 sps:$4 sm:$0xff]  }
 0x1d3   :  { %5212 = vmatpush1.bf16.msra.mxu0 %v8093_v33  ;;  %5771 = vmatpush1.bf16.msra.mxu1 %v8096_v34  ;;  %v8194_v33 = vld [vmem:[%s11187_s1 + $0x1084] ss:$16 sps:$4 sm:$0xff]   ;;  %v8197_v34 = vld [vmem:[%s11187_s1 + $0x108c] ss:$16 sps:$4 sm:$0xff]  }
 0x1d4   :  { %5213 = vmatprep.subr.bf16.mxu0 %v8101_v35  ;;  %5772 = vmatprep.subr.bf16.mxu1 %v8104_v36  ;;  %v8192_v35 = vld [vmem:[%s11187_s1 + $0x1080] ss:$16 sps:$4 sm:$0xff]   ;;  %v8195_v36 = vld [vmem:[%s11187_s1 + $0x1088] ss:$16 sps:$4 sm:$0xff]  }
 0x1d7   :  { %5214 = vmatpush1.bf16.msra.mxu0 %v8099_v37  ;;  %5773 = vmatpush1.bf16.msra.mxu1 %v8102_v38  ;;  %v8200_v37 = vld [vmem:[%s11187_s1 + $0x10a4] ss:$16 sps:$4 sm:$0xff]   ;;  %v8203_v38 = vld [vmem:[%s11187_s1 + $0x10ac] ss:$16 sps:$4 sm:$0xff]  }
 0x1d8   :  { %5215 = vmatprep.subr.bf16.mxu0 %v8107_v39  ;;  %5774 = vmatprep.subr.bf16.mxu1 %v8110_v40  ;;  %v8198_v39 = vld [vmem:[%s11187_s1 + $0x10a0] ss:$16 sps:$4 sm:$0xff]   ;;  %v8201_v40 = vld [vmem:[%s11187_s1 + $0x10a8] ss:$16 sps:$4 sm:$0xff]  }
 0x1db   :  { %5216 = vmatpush1.bf16.msra.mxu0 %v8105_v41  ;;  %5775 = vmatpush1.bf16.msra.mxu1 %v8108_v42  ;;  %v8206_v41 = vld [vmem:[%s11187_s1 + $0x10c4] ss:$16 sps:$4 sm:$0xff]   ;;  %v8209_v42 = vld [vmem:[%s11187_s1 + $0x10cc] ss:$16 sps:$4 sm:$0xff]  }
 0x1dc   :  { %5217 = vmatprep.subr.bf16.mxu0 %v8113_v43  ;;  %5776 = vmatprep.subr.bf16.mxu1 %v8116_v44  ;;  %v8204_v43 = vld [vmem:[%s11187_s1 + $0x10c0] ss:$16 sps:$4 sm:$0xff]   ;;  %v8207_v44 = vld [vmem:[%s11187_s1 + $0x10c8] ss:$16 sps:$4 sm:$0xff]  }
 0x1df   :  { %5218 = vmatpush1.bf16.msra.mxu0 %v8111_v45  ;;  %5777 = vmatpush1.bf16.msra.mxu1 %v8114_v46  ;;  %v8212_v45 = vld [vmem:[%s11187_s1 + $0x10e4] ss:$16 sps:$4 sm:$0xff]   ;;  %v8215_v46 = vld [vmem:[%s11187_s1 + $0x10ec] ss:$16 sps:$4 sm:$0xff]  }
 0x1e0   :  { %5219 = vmatprep.subr.bf16.mxu0 %v8119_v47  ;;  %5778 = vmatprep.subr.bf16.mxu1 %v8122_v48  ;;  %v8210_v47 = vld [vmem:[%s11187_s1 + $0x10e0] ss:$16 sps:$4 sm:$0xff]   ;;  %v8213_v48 = vld [vmem:[%s11187_s1 + $0x10e8] ss:$16 sps:$4 sm:$0xff]  }
 0x1e3   :  { %5220 = vmatpush1.bf16.msra.mxu0 %v8117_v49  ;;  %5779 = vmatpush1.bf16.msra.mxu1 %v8120_v50  ;;  %v8218_v49 = vld [vmem:[%s11187_s1 + $0x1104] ss:$16 sps:$4 sm:$0xff]   ;;  %v8221_v50 = vld [vmem:[%s11187_s1 + $0x110c] ss:$16 sps:$4 sm:$0xff]  }
 0x1e4   :  { %5221 = vmatprep.subr.bf16.mxu0 %v8125_v51  ;;  %5780 = vmatprep.subr.bf16.mxu1 %v8128_v52  ;;  %v8216_v51 = vld [vmem:[%s11187_s1 + $0x1100] ss:$16 sps:$4 sm:$0xff]   ;;  %v8219_v52 = vld [vmem:[%s11187_s1 + $0x1108] ss:$16 sps:$4 sm:$0xff]  }
 0x1e7   :  { %5222 = vmatpush1.bf16.msra.mxu0 %v8123_v53  ;;  %5781 = vmatpush1.bf16.msra.mxu1 %v8126_v54  ;;  %v8224_v53 = vld [vmem:[%s11187_s1 + $0x1124] ss:$16 sps:$4 sm:$0xff]   ;;  %v8227_v54 = vld [vmem:[%s11187_s1 + $0x112c] ss:$16 sps:$4 sm:$0xff]  }
 0x1e8   :  { %5223 = vmatprep.subr.bf16.mxu0 %v8131_v55  ;;  %5782 = vmatprep.subr.bf16.mxu1 %v8134_v56  ;;  %v8222_v55 = vld [vmem:[%s11187_s1 + $0x1120] ss:$16 sps:$4 sm:$0xff]   ;;  %v8225_v56 = vld [vmem:[%s11187_s1 + $0x1128] ss:$16 sps:$4 sm:$0xff]  }
 0x1eb   :  { %5224 = vmatpush1.bf16.msra.mxu0 %v8129_v57  ;;  %5783 = vmatpush1.bf16.msra.mxu1 %v8132_v58  ;;  %v8230_v57 = vld [vmem:[%s11187_s1 + $0x1144] ss:$16 sps:$4 sm:$0xff]   ;;  %v8233_v58 = vld [vmem:[%s11187_s1 + $0x114c] ss:$16 sps:$4 sm:$0xff]  }
 0x1ec   :  { %5225 = vmatprep.subr.bf16.mxu0 %v8137_v59  ;;  %5784 = vmatprep.subr.bf16.mxu1 %v8140_v60  ;;  %v8228_v59 = vld [vmem:[%s11187_s1 + $0x1140] ss:$16 sps:$4 sm:$0xff]   ;;  %v8231_v60 = vld [vmem:[%s11187_s1 + $0x1148] ss:$16 sps:$4 sm:$0xff]  }
 0x1ef   :  { %5226 = vmatpush1.bf16.msra.mxu0 %v8135_v61  ;;  %5785 = vmatpush1.bf16.msra.mxu1 %v8138_v62  ;;  %v8236_v61 = vld [vmem:[%s11187_s1 + $0x1164] ss:$16 sps:$4 sm:$0xff]   ;;  %v8239_v62 = vld [vmem:[%s11187_s1 + $0x116c] ss:$16 sps:$4 sm:$0xff]  }
 0x1f0   :  { %5227 = vmatprep.subr.bf16.mxu0 %v8143_v63  ;;  %5786 = vmatprep.subr.bf16.mxu1 %v8146_v0  ;;  %v8234_v63 = vld [vmem:[%s11187_s1 + $0x1160] ss:$16 sps:$4 sm:$0xff]   ;;  %v8237_v0 = vld [vmem:[%s11187_s1 + $0x1168] ss:$16 sps:$4 sm:$0xff]  }
 0x1f3   :  { %5228 = vmatpush1.bf16.msra.mxu0 %v8141_v1  ;;  %5787 = vmatpush1.bf16.msra.mxu1 %v8144_v2  ;;  %v8242_v1 = vld [vmem:[%s11187_s1 + $0x1184] ss:$16 sps:$4 sm:$0xff]   ;;  %v8245_v2 = vld [vmem:[%s11187_s1 + $0x118c] ss:$16 sps:$4 sm:$0xff]  }
 0x1f4   :  { %5229 = vmatprep.subr.bf16.mxu0 %v8149_v3  ;;  %5788 = vmatprep.subr.bf16.mxu1 %v8152_v4  ;;  %v8240_v3 = vld [vmem:[%s11187_s1 + $0x1180] ss:$16 sps:$4 sm:$0xff]   ;;  %v8243_v4 = vld [vmem:[%s11187_s1 + $0x1188] ss:$16 sps:$4 sm:$0xff]  }
 0x1f7   :  { %5230 = vmatpush1.bf16.msra.mxu0 %v8147_v5  ;;  %5789 = vmatpush1.bf16.msra.mxu1 %v8150_v6  ;;  %v8248_v5 = vld [vmem:[%s11187_s1 + $0x11a4] ss:$16 sps:$4 sm:$0xff]   ;;  %v8251_v6 = vld [vmem:[%s11187_s1 + $0x11ac] ss:$16 sps:$4 sm:$0xff]  }
 0x1f8   :  { %5231 = vmatprep.subr.bf16.mxu0 %v8155_v7  ;;  %5790 = vmatprep.subr.bf16.mxu1 %v8158_v8  ;;  %v8246_v7 = vld [vmem:[%s11187_s1 + $0x11a0] ss:$16 sps:$4 sm:$0xff]   ;;  %v8249_v8 = vld [vmem:[%s11187_s1 + $0x11a8] ss:$16 sps:$4 sm:$0xff]  }
 0x1fb   :  { %5232 = vmatpush1.bf16.msra.mxu0 %v8153_v9  ;;  %5791 = vmatpush1.bf16.msra.mxu1 %v8156_v10  ;;  %v8254_v9 = vld [vmem:[%s11187_s1 + $0x11c4] ss:$16 sps:$4 sm:$0xff]   ;;  %v8257_v10 = vld [vmem:[%s11187_s1 + $0x11cc] ss:$16 sps:$4 sm:$0xff]  }
 0x1fc   :  { %5233 = vmatprep.subr.bf16.mxu0 %v8161_v11  ;;  %5792 = vmatprep.subr.bf16.mxu1 %v8164_v12  ;;  %v8252_v11 = vld [vmem:[%s11187_s1 + $0x11c0] ss:$16 sps:$4 sm:$0xff]   ;;  %v8255_v12 = vld [vmem:[%s11187_s1 + $0x11c8] ss:$16 sps:$4 sm:$0xff]  }
 0x1ff   :  { %5234 = vmatpush1.bf16.msra.mxu0 %v8159_v13  ;;  %5793 = vmatpush1.bf16.msra.mxu1 %v8162_v14  ;;  %v8260_v13 = vld [vmem:[%s11187_s1 + $0x11e4] ss:$16 sps:$4 sm:$0xff]   ;;  %v8263_v14 = vld [vmem:[%s11187_s1 + $0x11ec] ss:$16 sps:$4 sm:$0xff]  }
 0x200   :  { %5246 = vmatprep.subr.bf16.mxu0 %v8170_v15  ;;  %5805 = vmatprep.subr.bf16.mxu1 %v8173_v16  ;;  %v8258_v15 = vld [vmem:[%s11187_s1 + $0x11e0] ss:$16 sps:$4 sm:$0xff]   ;;  %v8261_v16 = vld [vmem:[%s11187_s1 + $0x11e8] ss:$16 sps:$4 sm:$0xff]  }
 0x202   :  { %5236 = vmatmul.mubr.bf16.vlgmr.msra.gmra.mrb[0].mxu0 %v8165_v17  ;;  %5795 = vmatmul.mubr.bf16.vlgmr.msra.gmra.mrb[0].mxu1 %v8165_v17  ;;  %v8269_v17 = vld [vmem:[%s11187_s1 + $0x1204] ss:$16 sps:$4 sm:$0xff]  }
 0x203   :  { %5247 = vmatpush1.bf16.msra.mxu0 %v8168_v18  ;;  %5806 = vmatpush1.bf16.msra.mxu1 %v8171_v19  ;;  %v8272_v18 = vld [vmem:[%s11187_s1 + $0x120c] ss:$16 sps:$4 sm:$0xff]   ;;  %v8264_v19 = vld [vmem:[%s11188_s0 + $0x40] ss:$100 sps:$4 sm:$0xff]  }
 0x204   :  { %5248 = vmatprep.subr.bf16.mxu0 %v8176_v20  ;;  %5807 = vmatprep.subr.bf16.mxu1 %v8179_v21  ;;  %v8267_v20 = vld [vmem:[%s11187_s1 + $0x1200] ss:$16 sps:$4 sm:$0xff]   ;;  %v8270_v21 = vld [vmem:[%s11187_s1 + $0x1208] ss:$16 sps:$4 sm:$0xff]  }
 0x205   :  { %5278 = vmatprep.mubr.bf16.mxu0 %v8266_v22  ;;  %5837 = vmatprep.mubr.bf16.mxu1 %v8266_v22  ;;  %v8275_v22 = vld [vmem:[%s11187_s1 + $0x1224] ss:$16 sps:$4 sm:$0xff]  }
 0x207   :  { %5249 = vmatpush1.bf16.msra.mxu0 %v8174_v23  ;;  %5808 = vmatpush1.bf16.msra.mxu1 %v8177_v24  ;;  %v8278_v23 = vld [vmem:[%s11187_s1 + $0x122c] ss:$16 sps:$4 sm:$0xff]  }
 0x208   :  { %5250 = vmatprep.subr.bf16.mxu0 %v8182_v25  ;;  %5809 = vmatprep.subr.bf16.mxu1 %v8185_v26  ;;  %v8365_v24 = vld [vmem:[%s11188_s0 + $0x4c] ss:$100 sps:$4 sm:$0xff]   ;;  %v8276_v26 = vld [vmem:[%s11187_s1 + $0x1228] ss:$16 sps:$4 sm:$0xff]  }
 0x209   :  { %v8273_v25 = vld [vmem:[%s11187_s1 + $0x1220] ss:$16 sps:$4 sm:$0xff]  }
 0x20b   :  { %5251 = vmatpush1.bf16.msra.mxu0 %v8180_v27  ;;  %5810 = vmatpush1.bf16.msra.mxu1 %v8183_v28  ;;  %v8281_v27 = vld [vmem:[%s11187_s1 + $0x1244] ss:$16 sps:$4 sm:$0xff]   ;;  %v8284_v28 = vld [vmem:[%s11187_s1 + $0x124c] ss:$16 sps:$4 sm:$0xff]  }
 0x20c   :  { %5252 = vmatprep.subr.bf16.mxu0 %v8188_v29  ;;  %5811 = vmatprep.subr.bf16.mxu1 %v8191_v30  ;;  %v8279_v29 = vld [vmem:[%s11187_s1 + $0x1240] ss:$16 sps:$4 sm:$0xff]   ;;  %v8282_v30 = vld [vmem:[%s11187_s1 + $0x1248] ss:$16 sps:$4 sm:$0xff]  }
 0x20f   :  { %5253 = vmatpush1.bf16.msra.mxu0 %v8186_v31  ;;  %5812 = vmatpush1.bf16.msra.mxu1 %v8189_v32  ;;  %v8287_v31 = vld [vmem:[%s11187_s1 + $0x1264] ss:$16 sps:$4 sm:$0xff]   ;;  %v8290_v32 = vld [vmem:[%s11187_s1 + $0x126c] ss:$16 sps:$4 sm:$0xff]  }
 0x210   :  { %5254 = vmatprep.subr.bf16.mxu0 %v8194_v33  ;;  %5813 = vmatprep.subr.bf16.mxu1 %v8197_v34  ;;  %v8285_v33 = vld [vmem:[%s11187_s1 + $0x1260] ss:$16 sps:$4 sm:$0xff]   ;;  %v8288_v34 = vld [vmem:[%s11187_s1 + $0x1268] ss:$16 sps:$4 sm:$0xff]  }
 0x213   :  { %5255 = vmatpush1.bf16.msra.mxu0 %v8192_v35  ;;  %5814 = vmatpush1.bf16.msra.mxu1 %v8195_v36  ;;  %v8293_v35 = vld [vmem:[%s11187_s1 + $0x1284] ss:$16 sps:$4 sm:$0xff]   ;;  %v8296_v36 = vld [vmem:[%s11187_s1 + $0x128c] ss:$16 sps:$4 sm:$0xff]  }
 0x214   :  { %5256 = vmatprep.subr.bf16.mxu0 %v8200_v37  ;;  %5815 = vmatprep.subr.bf16.mxu1 %v8203_v38  ;;  %v8291_v37 = vld [vmem:[%s11187_s1 + $0x1280] ss:$16 sps:$4 sm:$0xff]   ;;  %v8294_v38 = vld [vmem:[%s11187_s1 + $0x1288] ss:$16 sps:$4 sm:$0xff]  }
 0x217   :  { %5257 = vmatpush1.bf16.msra.mxu0 %v8198_v39  ;;  %5816 = vmatpush1.bf16.msra.mxu1 %v8201_v40  ;;  %v8299_v39 = vld [vmem:[%s11187_s1 + $0x12a4] ss:$16 sps:$4 sm:$0xff]   ;;  %v8302_v40 = vld [vmem:[%s11187_s1 + $0x12ac] ss:$16 sps:$4 sm:$0xff]  }
 0x218   :  { %5258 = vmatprep.subr.bf16.mxu0 %v8206_v41  ;;  %5817 = vmatprep.subr.bf16.mxu1 %v8209_v42  ;;  %v8297_v41 = vld [vmem:[%s11187_s1 + $0x12a0] ss:$16 sps:$4 sm:$0xff]   ;;  %v8300_v42 = vld [vmem:[%s11187_s1 + $0x12a8] ss:$16 sps:$4 sm:$0xff]  }
 0x21b   :  { %5259 = vmatpush1.bf16.msra.mxu0 %v8204_v43  ;;  %5818 = vmatpush1.bf16.msra.mxu1 %v8207_v44  ;;  %v8305_v43 = vld [vmem:[%s11187_s1 + $0x12c4] ss:$16 sps:$4 sm:$0xff]   ;;  %v8308_v44 = vld [vmem:[%s11187_s1 + $0x12cc] ss:$16 sps:$4 sm:$0xff]  }
 0x21c   :  { %5260 = vmatprep.subr.bf16.mxu0 %v8212_v45  ;;  %5819 = vmatprep.subr.bf16.mxu1 %v8215_v46  ;;  %v8303_v45 = vld [vmem:[%s11187_s1 + $0x12c0] ss:$16 sps:$4 sm:$0xff]   ;;  %v8306_v46 = vld [vmem:[%s11187_s1 + $0x12c8] ss:$16 sps:$4 sm:$0xff]  }
 0x21f   :  { %5261 = vmatpush1.bf16.msra.mxu0 %v8210_v47  ;;  %5820 = vmatpush1.bf16.msra.mxu1 %v8213_v48  ;;  %v8311_v47 = vld [vmem:[%s11187_s1 + $0x12e4] ss:$16 sps:$4 sm:$0xff]   ;;  %v8314_v48 = vld [vmem:[%s11187_s1 + $0x12ec] ss:$16 sps:$4 sm:$0xff]  }
 0x220   :  { %5262 = vmatprep.subr.bf16.mxu0 %v8218_v49  ;;  %5821 = vmatprep.subr.bf16.mxu1 %v8221_v50  ;;  %v8309_v49 = vld [vmem:[%s11187_s1 + $0x12e0] ss:$16 sps:$4 sm:$0xff]   ;;  %v8312_v50 = vld [vmem:[%s11187_s1 + $0x12e8] ss:$16 sps:$4 sm:$0xff]  }
 0x223   :  { %5263 = vmatpush1.bf16.msra.mxu0 %v8216_v51  ;;  %5822 = vmatpush1.bf16.msra.mxu1 %v8219_v52  ;;  %v8317_v51 = vld [vmem:[%s11187_s1 + $0x1304] ss:$16 sps:$4 sm:$0xff]   ;;  %v8320_v52 = vld [vmem:[%s11187_s1 + $0x130c] ss:$16 sps:$4 sm:$0xff]  }
 0x224   :  { %5264 = vmatprep.subr.bf16.mxu0 %v8224_v53  ;;  %5823 = vmatprep.subr.bf16.mxu1 %v8227_v54  ;;  %v8315_v53 = vld [vmem:[%s11187_s1 + $0x1300] ss:$16 sps:$4 sm:$0xff]   ;;  %v8318_v54 = vld [vmem:[%s11187_s1 + $0x1308] ss:$16 sps:$4 sm:$0xff]  }
 0x227   :  { %5265 = vmatpush1.bf16.msra.mxu0 %v8222_v55  ;;  %5824 = vmatpush1.bf16.msra.mxu1 %v8225_v56  ;;  %v8323_v55 = vld [vmem:[%s11187_s1 + $0x1324] ss:$16 sps:$4 sm:$0xff]   ;;  %v8326_v56 = vld [vmem:[%s11187_s1 + $0x132c] ss:$16 sps:$4 sm:$0xff]  }
 0x228   :  { %5266 = vmatprep.subr.bf16.mxu0 %v8230_v57  ;;  %5825 = vmatprep.subr.bf16.mxu1 %v8233_v58  ;;  %v8321_v57 = vld [vmem:[%s11187_s1 + $0x1320] ss:$16 sps:$4 sm:$0xff]   ;;  %v8324_v58 = vld [vmem:[%s11187_s1 + $0x1328] ss:$16 sps:$4 sm:$0xff]  }
 0x22b   :  { %5267 = vmatpush1.bf16.msra.mxu0 %v8228_v59  ;;  %5826 = vmatpush1.bf16.msra.mxu1 %v8231_v60  ;;  %v8329_v59 = vld [vmem:[%s11187_s1 + $0x1344] ss:$16 sps:$4 sm:$0xff]   ;;  %v8332_v60 = vld [vmem:[%s11187_s1 + $0x134c] ss:$16 sps:$4 sm:$0xff]  }
 0x22c   :  { %5268 = vmatprep.subr.bf16.mxu0 %v8236_v61  ;;  %5827 = vmatprep.subr.bf16.mxu1 %v8239_v62  ;;  %v8327_v61 = vld [vmem:[%s11187_s1 + $0x1340] ss:$16 sps:$4 sm:$0xff]   ;;  %v8330_v62 = vld [vmem:[%s11187_s1 + $0x1348] ss:$16 sps:$4 sm:$0xff]  }
 0x22f   :  { %5269 = vmatpush1.bf16.msra.mxu0 %v8234_v63  ;;  %5828 = vmatpush1.bf16.msra.mxu1 %v8237_v0  ;;  %v8335_v63 = vld [vmem:[%s11187_s1 + $0x1364] ss:$16 sps:$4 sm:$0xff]   ;;  %v8338_v0 = vld [vmem:[%s11187_s1 + $0x136c] ss:$16 sps:$4 sm:$0xff]  }
 0x230   :  { %5270 = vmatprep.subr.bf16.mxu0 %v8242_v1  ;;  %5829 = vmatprep.subr.bf16.mxu1 %v8245_v2  ;;  %v8333_v1 = vld [vmem:[%s11187_s1 + $0x1360] ss:$16 sps:$4 sm:$0xff]   ;;  %v8336_v2 = vld [vmem:[%s11187_s1 + $0x1368] ss:$16 sps:$4 sm:$0xff]  }
 0x233   :  { %5271 = vmatpush1.bf16.msra.mxu0 %v8240_v3  ;;  %5830 = vmatpush1.bf16.msra.mxu1 %v8243_v4  ;;  %v8341_v3 = vld [vmem:[%s11187_s1 + $0x1384] ss:$16 sps:$4 sm:$0xff]   ;;  %v8344_v4 = vld [vmem:[%s11187_s1 + $0x138c] ss:$16 sps:$4 sm:$0xff]  }
 0x234   :  { %5272 = vmatprep.subr.bf16.mxu0 %v8248_v5  ;;  %5831 = vmatprep.subr.bf16.mxu1 %v8251_v6  ;;  %v8339_v5 = vld [vmem:[%s11187_s1 + $0x1380] ss:$16 sps:$4 sm:$0xff]   ;;  %v8342_v6 = vld [vmem:[%s11187_s1 + $0x1388] ss:$16 sps:$4 sm:$0xff]  }
 0x237   :  { %5273 = vmatpush1.bf16.msra.mxu0 %v8246_v7  ;;  %5832 = vmatpush1.bf16.msra.mxu1 %v8249_v8  ;;  %v8347_v7 = vld [vmem:[%s11187_s1 + $0x13a4] ss:$16 sps:$4 sm:$0xff]   ;;  %v8350_v8 = vld [vmem:[%s11187_s1 + $0x13ac] ss:$16 sps:$4 sm:$0xff]  }
 0x238   :  { %5274 = vmatprep.subr.bf16.mxu0 %v8254_v9  ;;  %5833 = vmatprep.subr.bf16.mxu1 %v8257_v10  ;;  %v8345_v9 = vld [vmem:[%s11187_s1 + $0x13a0] ss:$16 sps:$4 sm:$0xff]   ;;  %v8348_v10 = vld [vmem:[%s11187_s1 + $0x13a8] ss:$16 sps:$4 sm:$0xff]  }
 0x23b   :  { %5275 = vmatpush1.bf16.msra.mxu0 %v8252_v11  ;;  %5834 = vmatpush1.bf16.msra.mxu1 %v8255_v12  ;;  %v8353_v11 = vld [vmem:[%s11187_s1 + $0x13c4] ss:$16 sps:$4 sm:$0xff]   ;;  %v8356_v12 = vld [vmem:[%s11187_s1 + $0x13cc] ss:$16 sps:$4 sm:$0xff]  }
 0x23c   :  { %5276 = vmatprep.subr.bf16.mxu0 %v8260_v13  ;;  %5835 = vmatprep.subr.bf16.mxu1 %v8263_v14  ;;  %v8351_v13 = vld [vmem:[%s11187_s1 + $0x13c0] ss:$16 sps:$4 sm:$0xff]   ;;  %v8354_v14 = vld [vmem:[%s11187_s1 + $0x13c8] ss:$16 sps:$4 sm:$0xff]  }
 0x23f   :  { %5277 = vmatpush1.bf16.msra.mxu0 %v8258_v15  ;;  %5836 = vmatpush1.bf16.msra.mxu1 %v8261_v16  ;;  %v8359_v15 = vld [vmem:[%s11187_s1 + $0x13e4] ss:$16 sps:$4 sm:$0xff]   ;;  %v8362_v16 = vld [vmem:[%s11187_s1 + $0x13ec] ss:$16 sps:$4 sm:$0xff]  }
 0x240   :  { %5289 = vmatprep.subr.bf16.mxu0 %v8269_v17  ;;  %5848 = vmatprep.subr.bf16.mxu1 %v8272_v18  ;;  %v8357_v17 = vld [vmem:[%s11187_s1 + $0x13e0] ss:$16 sps:$4 sm:$0xff]   ;;  %v8360_v18 = vld [vmem:[%s11187_s1 + $0x13e8] ss:$16 sps:$4 sm:$0xff]  }
 0x242   :  { %5279 = vmatmul.mubr.bf16.vlgmr.msra.gmra.mrb[0].mxu0 %v8264_v19  ;;  %5838 = vmatmul.mubr.bf16.vlgmr.msra.gmra.mrb[0].mxu1 %v8264_v19  ;;  %v8368_v19 = vld [vmem:[%s11187_s1 + $0x1404] ss:$16 sps:$4 sm:$0xff]  }
 0x243   :  { %5290 = vmatpush1.bf16.msra.mxu0 %v8267_v20  ;;  %5849 = vmatpush1.bf16.msra.mxu1 %v8270_v21  ;;  %v8371_v20 = vld [vmem:[%s11187_s1 + $0x140c] ss:$16 sps:$4 sm:$0xff]  }
 0x244   :  { %5291 = vmatprep.subr.bf16.mxu0 %v8275_v22  ;;  %5850 = vmatprep.subr.bf16.mxu1 %v8278_v23  ;;  %v8363_v21 = vld [vmem:[%s11188_s0 + $0x48] ss:$100 sps:$4 sm:$0xff]   ;;  %v8366_v22 = vld [vmem:[%s11187_s1 + $0x1400] ss:$16 sps:$4 sm:$0xff]  }
 0x245   :  { %5321 = vmatprep.mubr.bf16.mxu0 %v8365_v24  ;;  %5880 = vmatprep.mubr.bf16.mxu1 %v8365_v24  ;;  %v8369_v23 = vld [vmem:[%s11187_s1 + $0x1408] ss:$16 sps:$4 sm:$0xff]   ;;  %v8374_v24 = vld [vmem:[%s11187_s1 + $0x1424] ss:$16 sps:$4 sm:$0xff]  }
 0x247   :  { %5292 = vmatpush1.bf16.msra.mxu0 %v8273_v25  ;;  %5851 = vmatpush1.bf16.msra.mxu1 %v8276_v26  ;;  %v8377_v25 = vld [vmem:[%s11187_s1 + $0x142c] ss:$16 sps:$4 sm:$0xff]   ;;  %v8464_v26 = vld [vmem:[%s11188_s0 + $0x54] ss:$100 sps:$4 sm:$0xff]  }
 0x248   :  { %5293 = vmatprep.subr.bf16.mxu0 %v8281_v27  ;;  %5852 = vmatprep.subr.bf16.mxu1 %v8284_v28  ;;  %v8372_v27 = vld [vmem:[%s11187_s1 + $0x1420] ss:$16 sps:$4 sm:$0xff]   ;;  %v8375_v28 = vld [vmem:[%s11187_s1 + $0x1428] ss:$16 sps:$4 sm:$0xff]  }
 0x24b   :  { %5294 = vmatpush1.bf16.msra.mxu0 %v8279_v29  ;;  %5853 = vmatpush1.bf16.msra.mxu1 %v8282_v30  ;;  %v8380_v29 = vld [vmem:[%s11187_s1 + $0x1444] ss:$16 sps:$4 sm:$0xff]   ;;  %v8383_v30 = vld [vmem:[%s11187_s1 + $0x144c] ss:$16 sps:$4 sm:$0xff]  }
 0x24c   :  { %5295 = vmatprep.subr.bf16.mxu0 %v8287_v31  ;;  %5854 = vmatprep.subr.bf16.mxu1 %v8290_v32  ;;  %v8378_v31 = vld [vmem:[%s11187_s1 + $0x1440] ss:$16 sps:$4 sm:$0xff]   ;;  %v8381_v32 = vld [vmem:[%s11187_s1 + $0x1448] ss:$16 sps:$4 sm:$0xff]  }
 0x24f   :  { %5296 = vmatpush1.bf16.msra.mxu0 %v8285_v33  ;;  %5855 = vmatpush1.bf16.msra.mxu1 %v8288_v34  ;;  %v8386_v33 = vld [vmem:[%s11187_s1 + $0x1464] ss:$16 sps:$4 sm:$0xff]   ;;  %v8389_v34 = vld [vmem:[%s11187_s1 + $0x146c] ss:$16 sps:$4 sm:$0xff]  }
 0x250   :  { %5297 = vmatprep.subr.bf16.mxu0 %v8293_v35  ;;  %5856 = vmatprep.subr.bf16.mxu1 %v8296_v36  ;;  %v8384_v35 = vld [vmem:[%s11187_s1 + $0x1460] ss:$16 sps:$4 sm:$0xff]   ;;  %v8387_v36 = vld [vmem:[%s11187_s1 + $0x1468] ss:$16 sps:$4 sm:$0xff]  }
 0x253   :  { %5298 = vmatpush1.bf16.msra.mxu0 %v8291_v37  ;;  %5857 = vmatpush1.bf16.msra.mxu1 %v8294_v38  ;;  %v8392_v37 = vld [vmem:[%s11187_s1 + $0x1484] ss:$16 sps:$4 sm:$0xff]   ;;  %v8395_v38 = vld [vmem:[%s11187_s1 + $0x148c] ss:$16 sps:$4 sm:$0xff]  }
 0x254   :  { %5299 = vmatprep.subr.bf16.mxu0 %v8299_v39  ;;  %5858 = vmatprep.subr.bf16.mxu1 %v8302_v40  ;;  %v8390_v39 = vld [vmem:[%s11187_s1 + $0x1480] ss:$16 sps:$4 sm:$0xff]   ;;  %v8393_v40 = vld [vmem:[%s11187_s1 + $0x1488] ss:$16 sps:$4 sm:$0xff]  }
 0x257   :  { %5300 = vmatpush1.bf16.msra.mxu0 %v8297_v41  ;;  %5859 = vmatpush1.bf16.msra.mxu1 %v8300_v42  ;;  %v8398_v41 = vld [vmem:[%s11187_s1 + $0x14a4] ss:$16 sps:$4 sm:$0xff]   ;;  %v8401_v42 = vld [vmem:[%s11187_s1 + $0x14ac] ss:$16 sps:$4 sm:$0xff]  }
 0x258   :  { %5301 = vmatprep.subr.bf16.mxu0 %v8305_v43  ;;  %5860 = vmatprep.subr.bf16.mxu1 %v8308_v44  ;;  %v8396_v43 = vld [vmem:[%s11187_s1 + $0x14a0] ss:$16 sps:$4 sm:$0xff]   ;;  %v8399_v44 = vld [vmem:[%s11187_s1 + $0x14a8] ss:$16 sps:$4 sm:$0xff]  }
 0x25b   :  { %5302 = vmatpush1.bf16.msra.mxu0 %v8303_v45  ;;  %5861 = vmatpush1.bf16.msra.mxu1 %v8306_v46  ;;  %v8404_v45 = vld [vmem:[%s11187_s1 + $0x14c4] ss:$16 sps:$4 sm:$0xff]   ;;  %v8407_v46 = vld [vmem:[%s11187_s1 + $0x14cc] ss:$16 sps:$4 sm:$0xff]  }
 0x25c   :  { %5303 = vmatprep.subr.bf16.mxu0 %v8311_v47  ;;  %5862 = vmatprep.subr.bf16.mxu1 %v8314_v48  ;;  %v8402_v47 = vld [vmem:[%s11187_s1 + $0x14c0] ss:$16 sps:$4 sm:$0xff]   ;;  %v8405_v48 = vld [vmem:[%s11187_s1 + $0x14c8] ss:$16 sps:$4 sm:$0xff]  }
 0x25f   :  { %5304 = vmatpush1.bf16.msra.mxu0 %v8309_v49  ;;  %5863 = vmatpush1.bf16.msra.mxu1 %v8312_v50  ;;  %v8410_v49 = vld [vmem:[%s11187_s1 + $0x14e4] ss:$16 sps:$4 sm:$0xff]   ;;  %v8413_v50 = vld [vmem:[%s11187_s1 + $0x14ec] ss:$16 sps:$4 sm:$0xff]  }
 0x260   :  { %5305 = vmatprep.subr.bf16.mxu0 %v8317_v51  ;;  %5864 = vmatprep.subr.bf16.mxu1 %v8320_v52  ;;  %v8408_v51 = vld [vmem:[%s11187_s1 + $0x14e0] ss:$16 sps:$4 sm:$0xff]   ;;  %v8411_v52 = vld [vmem:[%s11187_s1 + $0x14e8] ss:$16 sps:$4 sm:$0xff]  }
 0x263   :  { %5306 = vmatpush1.bf16.msra.mxu0 %v8315_v53  ;;  %5865 = vmatpush1.bf16.msra.mxu1 %v8318_v54  ;;  %v8416_v53 = vld [vmem:[%s11187_s1 + $0x1504] ss:$16 sps:$4 sm:$0xff]   ;;  %v8419_v54 = vld [vmem:[%s11187_s1 + $0x150c] ss:$16 sps:$4 sm:$0xff]  }
 0x264   :  { %5307 = vmatprep.subr.bf16.mxu0 %v8323_v55  ;;  %5866 = vmatprep.subr.bf16.mxu1 %v8326_v56  ;;  %v8414_v55 = vld [vmem:[%s11187_s1 + $0x1500] ss:$16 sps:$4 sm:$0xff]   ;;  %v8417_v56 = vld [vmem:[%s11187_s1 + $0x1508] ss:$16 sps:$4 sm:$0xff]  }
 0x267   :  { %5308 = vmatpush1.bf16.msra.mxu0 %v8321_v57  ;;  %5867 = vmatpush1.bf16.msra.mxu1 %v8324_v58  ;;  %v8422_v57 = vld [vmem:[%s11187_s1 + $0x1524] ss:$16 sps:$4 sm:$0xff]   ;;  %v8425_v58 = vld [vmem:[%s11187_s1 + $0x152c] ss:$16 sps:$4 sm:$0xff]  }
 0x268   :  { %5309 = vmatprep.subr.bf16.mxu0 %v8329_v59  ;;  %5868 = vmatprep.subr.bf16.mxu1 %v8332_v60  ;;  %v8420_v59 = vld [vmem:[%s11187_s1 + $0x1520] ss:$16 sps:$4 sm:$0xff]   ;;  %v8423_v60 = vld [vmem:[%s11187_s1 + $0x1528] ss:$16 sps:$4 sm:$0xff]  }
 0x26b   :  { %5310 = vmatpush1.bf16.msra.mxu0 %v8327_v61  ;;  %5869 = vmatpush1.bf16.msra.mxu1 %v8330_v62  ;;  %v8428_v61 = vld [vmem:[%s11187_s1 + $0x1544] ss:$16 sps:$4 sm:$0xff]   ;;  %v8431_v62 = vld [vmem:[%s11187_s1 + $0x154c] ss:$16 sps:$4 sm:$0xff]  }
 0x26c   :  { %5311 = vmatprep.subr.bf16.mxu0 %v8335_v63  ;;  %5870 = vmatprep.subr.bf16.mxu1 %v8338_v0  ;;  %v8426_v63 = vld [vmem:[%s11187_s1 + $0x1540] ss:$16 sps:$4 sm:$0xff]   ;;  %v8429_v0 = vld [vmem:[%s11187_s1 + $0x1548] ss:$16 sps:$4 sm:$0xff]  }
 0x26f   :  { %5312 = vmatpush1.bf16.msra.mxu0 %v8333_v1  ;;  %5871 = vmatpush1.bf16.msra.mxu1 %v8336_v2  ;;  %v8434_v1 = vld [vmem:[%s11187_s1 + $0x1564] ss:$16 sps:$4 sm:$0xff]   ;;  %v8437_v2 = vld [vmem:[%s11187_s1 + $0x156c] ss:$16 sps:$4 sm:$0xff]  }
 0x270   :  { %5313 = vmatprep.subr.bf16.mxu0 %v8341_v3  ;;  %5872 = vmatprep.subr.bf16.mxu1 %v8344_v4  ;;  %v8432_v3 = vld [vmem:[%s11187_s1 + $0x1560] ss:$16 sps:$4 sm:$0xff]   ;;  %v8435_v4 = vld [vmem:[%s11187_s1 + $0x1568] ss:$16 sps:$4 sm:$0xff]  }
 0x273   :  { %5314 = vmatpush1.bf16.msra.mxu0 %v8339_v5  ;;  %5873 = vmatpush1.bf16.msra.mxu1 %v8342_v6  ;;  %v8440_v5 = vld [vmem:[%s11187_s1 + $0x1584] ss:$16 sps:$4 sm:$0xff]   ;;  %v8443_v6 = vld [vmem:[%s11187_s1 + $0x158c] ss:$16 sps:$4 sm:$0xff]  }
 0x274   :  { %5315 = vmatprep.subr.bf16.mxu0 %v8347_v7  ;;  %5874 = vmatprep.subr.bf16.mxu1 %v8350_v8  ;;  %v8438_v7 = vld [vmem:[%s11187_s1 + $0x1580] ss:$16 sps:$4 sm:$0xff]   ;;  %v8441_v8 = vld [vmem:[%s11187_s1 + $0x1588] ss:$16 sps:$4 sm:$0xff]  }
 0x277   :  { %5316 = vmatpush1.bf16.msra.mxu0 %v8345_v9  ;;  %5875 = vmatpush1.bf16.msra.mxu1 %v8348_v10  ;;  %v8446_v9 = vld [vmem:[%s11187_s1 + $0x15a4] ss:$16 sps:$4 sm:$0xff]   ;;  %v8449_v10 = vld [vmem:[%s11187_s1 + $0x15ac] ss:$16 sps:$4 sm:$0xff]  }
 0x278   :  { %5317 = vmatprep.subr.bf16.mxu0 %v8353_v11  ;;  %5876 = vmatprep.subr.bf16.mxu1 %v8356_v12  ;;  %v8444_v11 = vld [vmem:[%s11187_s1 + $0x15a0] ss:$16 sps:$4 sm:$0xff]   ;;  %v8447_v12 = vld [vmem:[%s11187_s1 + $0x15a8] ss:$16 sps:$4 sm:$0xff]  }
 0x27b   :  { %5318 = vmatpush1.bf16.msra.mxu0 %v8351_v13  ;;  %5877 = vmatpush1.bf16.msra.mxu1 %v8354_v14  ;;  %v8452_v13 = vld [vmem:[%s11187_s1 + $0x15c4] ss:$16 sps:$4 sm:$0xff]   ;;  %v8455_v14 = vld [vmem:[%s11187_s1 + $0x15cc] ss:$16 sps:$4 sm:$0xff]  }
 0x27c   :  { %5319 = vmatprep.subr.bf16.mxu0 %v8359_v15  ;;  %5878 = vmatprep.subr.bf16.mxu1 %v8362_v16  ;;  %v8450_v15 = vld [vmem:[%s11187_s1 + $0x15c0] ss:$16 sps:$4 sm:$0xff]   ;;  %v8453_v16 = vld [vmem:[%s11187_s1 + $0x15c8] ss:$16 sps:$4 sm:$0xff]  }
 0x27f   :  { %5320 = vmatpush1.bf16.msra.mxu0 %v8357_v17  ;;  %5879 = vmatpush1.bf16.msra.mxu1 %v8360_v18  ;;  %v8458_v17 = vld [vmem:[%s11187_s1 + $0x15e4] ss:$16 sps:$4 sm:$0xff]   ;;  %v8461_v18 = vld [vmem:[%s11187_s1 + $0x15ec] ss:$16 sps:$4 sm:$0xff]  }
 0x280   :  { %5332 = vmatprep.subr.bf16.mxu0 %v8368_v19  ;;  %5891 = vmatprep.subr.bf16.mxu1 %v8371_v20  ;;  %v8456_v19 = vld [vmem:[%s11187_s1 + $0x15e0] ss:$16 sps:$4 sm:$0xff]   ;;  %v8459_v20 = vld [vmem:[%s11187_s1 + $0x15e8] ss:$16 sps:$4 sm:$0xff]  }
 0x282   :  { %5322 = vmatmul.mubr.bf16.vlgmr.msra.gmra.mrb[0].mxu0 %v8363_v21  ;;  %5881 = vmatmul.mubr.bf16.vlgmr.msra.gmra.mrb[0].mxu1 %v8363_v21  ;;  %v8467_v21 = vld [vmem:[%s11187_s1 + $0x1604] ss:$16 sps:$4 sm:$0xff]  }
 0x283   :  { %5333 = vmatpush1.bf16.msra.mxu0 %v8366_v22  ;;  %5892 = vmatpush1.bf16.msra.mxu1 %v8369_v23  ;;  %v8470_v22 = vld [vmem:[%s11187_s1 + $0x160c] ss:$16 sps:$4 sm:$0xff]   ;;  %v8462_v23 = vld [vmem:[%s11188_s0 + $0x50] ss:$100 sps:$4 sm:$0xff]  }
 0x284   :  { %5334 = vmatprep.subr.bf16.mxu0 %v8374_v24  ;;  %5893 = vmatprep.subr.bf16.mxu1 %v8377_v25  ;;  %v8465_v24 = vld [vmem:[%s11187_s1 + $0x1600] ss:$16 sps:$4 sm:$0xff]   ;;  %v8468_v25 = vld [vmem:[%s11187_s1 + $0x1608] ss:$16 sps:$4 sm:$0xff]  }
 0x285   :  { %5364 = vmatprep.mubr.bf16.mxu0 %v8464_v26  ;;  %5923 = vmatprep.mubr.bf16.mxu1 %v8464_v26  ;;  %v8473_v26 = vld [vmem:[%s11187_s1 + $0x1624] ss:$16 sps:$4 sm:$0xff]  }
 0x287   :  { %5335 = vmatpush1.bf16.msra.mxu0 %v8372_v27  ;;  %5894 = vmatpush1.bf16.msra.mxu1 %v8375_v28  ;;  %v8476_v27 = vld [vmem:[%s11187_s1 + $0x162c] ss:$16 sps:$4 sm:$0xff]  }
 0x288   :  { %5336 = vmatprep.subr.bf16.mxu0 %v8380_v29  ;;  %5895 = vmatprep.subr.bf16.mxu1 %v8383_v30  ;;  %v8563_v28 = vld [vmem:[%s11188_s0 + $0x5c] ss:$100 sps:$4 sm:$0xff]   ;;  %v8474_v30 = vld [vmem:[%s11187_s1 + $0x1628] ss:$16 sps:$4 sm:$0xff]  }
 0x289   :  { %v8471_v29 = vld [vmem:[%s11187_s1 + $0x1620] ss:$16 sps:$4 sm:$0xff]  }
 0x28b   :  { %5337 = vmatpush1.bf16.msra.mxu0 %v8378_v31  ;;  %5896 = vmatpush1.bf16.msra.mxu1 %v8381_v32  ;;  %v8479_v31 = vld [vmem:[%s11187_s1 + $0x1644] ss:$16 sps:$4 sm:$0xff]   ;;  %v8482_v32 = vld [vmem:[%s11187_s1 + $0x164c] ss:$16 sps:$4 sm:$0xff]  }
 0x28c   :  { %5338 = vmatprep.subr.bf16.mxu0 %v8386_v33  ;;  %5897 = vmatprep.subr.bf16.mxu1 %v8389_v34  ;;  %v8477_v33 = vld [vmem:[%s11187_s1 + $0x1640] ss:$16 sps:$4 sm:$0xff]   ;;  %v8480_v34 = vld [vmem:[%s11187_s1 + $0x1648] ss:$16 sps:$4 sm:$0xff]  }
 0x28f   :  { %5339 = vmatpush1.bf16.msra.mxu0 %v8384_v35  ;;  %5898 = vmatpush1.bf16.msra.mxu1 %v8387_v36  ;;  %v8485_v35 = vld [vmem:[%s11187_s1 + $0x1664] ss:$16 sps:$4 sm:$0xff]   ;;  %v8488_v36 = vld [vmem:[%s11187_s1 + $0x166c] ss:$16 sps:$4 sm:$0xff]  }
 0x290   :  { %5340 = vmatprep.subr.bf16.mxu0 %v8392_v37  ;;  %5899 = vmatprep.subr.bf16.mxu1 %v8395_v38  ;;  %v8483_v37 = vld [vmem:[%s11187_s1 + $0x1660] ss:$16 sps:$4 sm:$0xff]   ;;  %v8486_v38 = vld [vmem:[%s11187_s1 + $0x1668] ss:$16 sps:$4 sm:$0xff]  }
 0x293   :  { %5341 = vmatpush1.bf16.msra.mxu0 %v8390_v39  ;;  %5900 = vmatpush1.bf16.msra.mxu1 %v8393_v40  ;;  %v8491_v39 = vld [vmem:[%s11187_s1 + $0x1684] ss:$16 sps:$4 sm:$0xff]   ;;  %v8494_v40 = vld [vmem:[%s11187_s1 + $0x168c] ss:$16 sps:$4 sm:$0xff]  }
 0x294   :  { %5342 = vmatprep.subr.bf16.mxu0 %v8398_v41  ;;  %5901 = vmatprep.subr.bf16.mxu1 %v8401_v42  ;;  %v8489_v41 = vld [vmem:[%s11187_s1 + $0x1680] ss:$16 sps:$4 sm:$0xff]   ;;  %v8492_v42 = vld [vmem:[%s11187_s1 + $0x1688] ss:$16 sps:$4 sm:$0xff]  }
 0x297   :  { %5343 = vmatpush1.bf16.msra.mxu0 %v8396_v43  ;;  %5902 = vmatpush1.bf16.msra.mxu1 %v8399_v44  ;;  %v8497_v43 = vld [vmem:[%s11187_s1 + $0x16a4] ss:$16 sps:$4 sm:$0xff]   ;;  %v8500_v44 = vld [vmem:[%s11187_s1 + $0x16ac] ss:$16 sps:$4 sm:$0xff]  }
 0x298   :  { %5344 = vmatprep.subr.bf16.mxu0 %v8404_v45  ;;  %5903 = vmatprep.subr.bf16.mxu1 %v8407_v46  ;;  %v8495_v45 = vld [vmem:[%s11187_s1 + $0x16a0] ss:$16 sps:$4 sm:$0xff]   ;;  %v8498_v46 = vld [vmem:[%s11187_s1 + $0x16a8] ss:$16 sps:$4 sm:$0xff]  }
 0x29b   :  { %5345 = vmatpush1.bf16.msra.mxu0 %v8402_v47  ;;  %5904 = vmatpush1.bf16.msra.mxu1 %v8405_v48  ;;  %v8503_v47 = vld [vmem:[%s11187_s1 + $0x16c4] ss:$16 sps:$4 sm:$0xff]   ;;  %v8506_v48 = vld [vmem:[%s11187_s1 + $0x16cc] ss:$16 sps:$4 sm:$0xff]  }
 0x29c   :  { %5346 = vmatprep.subr.bf16.mxu0 %v8410_v49  ;;  %5905 = vmatprep.subr.bf16.mxu1 %v8413_v50  ;;  %v8501_v49 = vld [vmem:[%s11187_s1 + $0x16c0] ss:$16 sps:$4 sm:$0xff]   ;;  %v8504_v50 = vld [vmem:[%s11187_s1 + $0x16c8] ss:$16 sps:$4 sm:$0xff]  }
 0x29f   :  { %5347 = vmatpush1.bf16.msra.mxu0 %v8408_v51  ;;  %5906 = vmatpush1.bf16.msra.mxu1 %v8411_v52  ;;  %v8509_v51 = vld [vmem:[%s11187_s1 + $0x16e4] ss:$16 sps:$4 sm:$0xff]   ;;  %v8512_v52 = vld [vmem:[%s11187_s1 + $0x16ec] ss:$16 sps:$4 sm:$0xff]  }
 0x2a0   :  { %5348 = vmatprep.subr.bf16.mxu0 %v8416_v53  ;;  %5907 = vmatprep.subr.bf16.mxu1 %v8419_v54  ;;  %v8507_v53 = vld [vmem:[%s11187_s1 + $0x16e0] ss:$16 sps:$4 sm:$0xff]   ;;  %v8510_v54 = vld [vmem:[%s11187_s1 + $0x16e8] ss:$16 sps:$4 sm:$0xff]  }
 0x2a3   :  { %5349 = vmatpush1.bf16.msra.mxu0 %v8414_v55  ;;  %5908 = vmatpush1.bf16.msra.mxu1 %v8417_v56  ;;  %v8515_v55 = vld [vmem:[%s11187_s1 + $0x1704] ss:$16 sps:$4 sm:$0xff]   ;;  %v8518_v56 = vld [vmem:[%s11187_s1 + $0x170c] ss:$16 sps:$4 sm:$0xff]  }
 0x2a4   :  { %5350 = vmatprep.subr.bf16.mxu0 %v8422_v57  ;;  %5909 = vmatprep.subr.bf16.mxu1 %v8425_v58  ;;  %v8513_v57 = vld [vmem:[%s11187_s1 + $0x1700] ss:$16 sps:$4 sm:$0xff]   ;;  %v8516_v58 = vld [vmem:[%s11187_s1 + $0x1708] ss:$16 sps:$4 sm:$0xff]  }
 0x2a7   :  { %5351 = vmatpush1.bf16.msra.mxu0 %v8420_v59  ;;  %5910 = vmatpush1.bf16.msra.mxu1 %v8423_v60  ;;  %v8521_v59 = vld [vmem:[%s11187_s1 + $0x1724] ss:$16 sps:$4 sm:$0xff]   ;;  %v8524_v60 = vld [vmem:[%s11187_s1 + $0x172c] ss:$16 sps:$4 sm:$0xff]  }
 0x2a8   :  { %5352 = vmatprep.subr.bf16.mxu0 %v8428_v61  ;;  %5911 = vmatprep.subr.bf16.mxu1 %v8431_v62  ;;  %v8519_v61 = vld [vmem:[%s11187_s1 + $0x1720] ss:$16 sps:$4 sm:$0xff]   ;;  %v8522_v62 = vld [vmem:[%s11187_s1 + $0x1728] ss:$16 sps:$4 sm:$0xff]  }
 0x2ab   :  { %5353 = vmatpush1.bf16.msra.mxu0 %v8426_v63  ;;  %5912 = vmatpush1.bf16.msra.mxu1 %v8429_v0  ;;  %v8527_v63 = vld [vmem:[%s11187_s1 + $0x1744] ss:$16 sps:$4 sm:$0xff]   ;;  %v8530_v0 = vld [vmem:[%s11187_s1 + $0x174c] ss:$16 sps:$4 sm:$0xff]  }
 0x2ac   :  { %5354 = vmatprep.subr.bf16.mxu0 %v8434_v1  ;;  %5913 = vmatprep.subr.bf16.mxu1 %v8437_v2  ;;  %v8525_v1 = vld [vmem:[%s11187_s1 + $0x1740] ss:$16 sps:$4 sm:$0xff]   ;;  %v8528_v2 = vld [vmem:[%s11187_s1 + $0x1748] ss:$16 sps:$4 sm:$0xff]  }
 0x2af   :  { %5355 = vmatpush1.bf16.msra.mxu0 %v8432_v3  ;;  %5914 = vmatpush1.bf16.msra.mxu1 %v8435_v4  ;;  %v8533_v3 = vld [vmem:[%s11187_s1 + $0x1764] ss:$16 sps:$4 sm:$0xff]   ;;  %v8536_v4 = vld [vmem:[%s11187_s1 + $0x176c] ss:$16 sps:$4 sm:$0xff]  }
 0x2b0   :  { %5356 = vmatprep.subr.bf16.mxu0 %v8440_v5  ;;  %5915 = vmatprep.subr.bf16.mxu1 %v8443_v6  ;;  %v8531_v5 = vld [vmem:[%s11187_s1 + $0x1760] ss:$16 sps:$4 sm:$0xff]   ;;  %v8534_v6 = vld [vmem:[%s11187_s1 + $0x1768] ss:$16 sps:$4 sm:$0xff]  }
 0x2b3   :  { %5357 = vmatpush1.bf16.msra.mxu0 %v8438_v7  ;;  %5916 = vmatpush1.bf16.msra.mxu1 %v8441_v8  ;;  %v8539_v7 = vld [vmem:[%s11187_s1 + $0x1784] ss:$16 sps:$4 sm:$0xff]   ;;  %v8542_v8 = vld [vmem:[%s11187_s1 + $0x178c] ss:$16 sps:$4 sm:$0xff]  }
 0x2b4   :  { %5358 = vmatprep.subr.bf16.mxu0 %v8446_v9  ;;  %5917 = vmatprep.subr.bf16.mxu1 %v8449_v10  ;;  %v8537_v9 = vld [vmem:[%s11187_s1 + $0x1780] ss:$16 sps:$4 sm:$0xff]   ;;  %v8540_v10 = vld [vmem:[%s11187_s1 + $0x1788] ss:$16 sps:$4 sm:$0xff]  }
 0x2b7   :  { %5359 = vmatpush1.bf16.msra.mxu0 %v8444_v11  ;;  %5918 = vmatpush1.bf16.msra.mxu1 %v8447_v12  ;;  %v8545_v11 = vld [vmem:[%s11187_s1 + $0x17a4] ss:$16 sps:$4 sm:$0xff]   ;;  %v8548_v12 = vld [vmem:[%s11187_s1 + $0x17ac] ss:$16 sps:$4 sm:$0xff]  }
 0x2b8   :  { %5360 = vmatprep.subr.bf16.mxu0 %v8452_v13  ;;  %5919 = vmatprep.subr.bf16.mxu1 %v8455_v14  ;;  %v8543_v13 = vld [vmem:[%s11187_s1 + $0x17a0] ss:$16 sps:$4 sm:$0xff]   ;;  %v8546_v14 = vld [vmem:[%s11187_s1 + $0x17a8] ss:$16 sps:$4 sm:$0xff]  }
 0x2bb   :  { %5361 = vmatpush1.bf16.msra.mxu0 %v8450_v15  ;;  %5920 = vmatpush1.bf16.msra.mxu1 %v8453_v16  ;;  %v8551_v15 = vld [vmem:[%s11187_s1 + $0x17c4] ss:$16 sps:$4 sm:$0xff]   ;;  %v8554_v16 = vld [vmem:[%s11187_s1 + $0x17cc] ss:$16 sps:$4 sm:$0xff]  }
 0x2bc   :  { %5362 = vmatprep.subr.bf16.mxu0 %v8458_v17  ;;  %5921 = vmatprep.subr.bf16.mxu1 %v8461_v18  ;;  %v8549_v17 = vld [vmem:[%s11187_s1 + $0x17c0] ss:$16 sps:$4 sm:$0xff]   ;;  %v8552_v18 = vld [vmem:[%s11187_s1 + $0x17c8] ss:$16 sps:$4 sm:$0xff]  }
 0x2bf   :  { %5363 = vmatpush1.bf16.msra.mxu0 %v8456_v19  ;;  %5922 = vmatpush1.bf16.msra.mxu1 %v8459_v20  ;;  %v8557_v19 = vld [vmem:[%s11187_s1 + $0x17e4] ss:$16 sps:$4 sm:$0xff]   ;;  %v8560_v20 = vld [vmem:[%s11187_s1 + $0x17ec] ss:$16 sps:$4 sm:$0xff]  }
 0x2c0   :  { %5375 = vmatprep.subr.bf16.mxu0 %v8467_v21  ;;  %5934 = vmatprep.subr.bf16.mxu1 %v8470_v22  ;;  %v8555_v21 = vld [vmem:[%s11187_s1 + $0x17e0] ss:$16 sps:$4 sm:$0xff]   ;;  %v8558_v22 = vld [vmem:[%s11187_s1 + $0x17e8] ss:$16 sps:$4 sm:$0xff]  }
 0x2c2   :  { %5365 = vmatmul.mubr.bf16.vlgmr.msra.gmra.mrb[0].mxu0 %v8462_v23  ;;  %5924 = vmatmul.mubr.bf16.vlgmr.msra.gmra.mrb[0].mxu1 %v8462_v23  ;;  %v8566_v23 = vld [vmem:[%s11187_s1 + $0x1804] ss:$16 sps:$4 sm:$0xff]  }
 0x2c3   :  { %5376 = vmatpush1.bf16.msra.mxu0 %v8465_v24  ;;  %5935 = vmatpush1.bf16.msra.mxu1 %v8468_v25  ;;  %v8569_v24 = vld [vmem:[%s11187_s1 + $0x180c] ss:$16 sps:$4 sm:$0xff]  }
 0x2c4   :  { %5377 = vmatprep.subr.bf16.mxu0 %v8473_v26  ;;  %5936 = vmatprep.subr.bf16.mxu1 %v8476_v27  ;;  %v8561_v25 = vld [vmem:[%s11188_s0 + $0x58] ss:$100 sps:$4 sm:$0xff]   ;;  %v8564_v26 = vld [vmem:[%s11187_s1 + $0x1800] ss:$16 sps:$4 sm:$0xff]  }
 0x2c5   :  { %5407 = vmatprep.mubr.bf16.mxu0 %v8563_v28  ;;  %5966 = vmatprep.mubr.bf16.mxu1 %v8563_v28  ;;  %v8567_v27 = vld [vmem:[%s11187_s1 + $0x1808] ss:$16 sps:$4 sm:$0xff]   ;;  %v8572_v28 = vld [vmem:[%s11187_s1 + $0x1824] ss:$16 sps:$4 sm:$0xff]  }
 0x2c7   :  { %5378 = vmatpush1.bf16.msra.mxu0 %v8471_v29  ;;  %5937 = vmatpush1.bf16.msra.mxu1 %v8474_v30  ;;  %v8575_v29 = vld [vmem:[%s11187_s1 + $0x182c] ss:$16 sps:$4 sm:$0xff]   ;;  %v8570_v30 = vld [vmem:[%s11187_s1 + $0x1820] ss:$16 sps:$4 sm:$0xff]  }
 0x2c8   :  { %5379 = vmatprep.subr.bf16.mxu0 %v8479_v31  ;;  %5938 = vmatprep.subr.bf16.mxu1 %v8482_v32  ;;  %v8573_v31 = vld [vmem:[%s11187_s1 + $0x1828] ss:$16 sps:$4 sm:$0xff]   ;;  %v8578_v32 = vld [vmem:[%s11187_s1 + $0x1844] ss:$16 sps:$4 sm:$0xff]  }
 0x2cb   :  { %5380 = vmatpush1.bf16.msra.mxu0 %v8477_v33  ;;  %5939 = vmatpush1.bf16.msra.mxu1 %v8480_v34  ;;  %v8581_v33 = vld [vmem:[%s11187_s1 + $0x184c] ss:$16 sps:$4 sm:$0xff]   ;;  %v8621_v34 = vmov 0  }
 0x2cc   :  { %5381 = vmatprep.subr.bf16.mxu0 %v8485_v35  ;;  %5940 = vmatprep.subr.bf16.mxu1 %v8488_v36  ;;  %v8576_v35 = vld [vmem:[%s11187_s1 + $0x1840] ss:$16 sps:$4 sm:$0xff]   ;;  %v8579_v36 = vld [vmem:[%s11187_s1 + $0x1848] ss:$16 sps:$4 sm:$0xff]  }
 0x2cf   :  { %5382 = vmatpush1.bf16.msra.mxu0 %v8483_v37  ;;  %5941 = vmatpush1.bf16.msra.mxu1 %v8486_v38  ;;  %v8584_v37 = vld [vmem:[%s11187_s1 + $0x1864] ss:$16 sps:$4 sm:$0xff]   ;;  %v8587_v38 = vld [vmem:[%s11187_s1 + $0x186c] ss:$16 sps:$4 sm:$0xff]  }
 0x2d0   :  { %5383 = vmatprep.subr.bf16.mxu0 %v8491_v39  ;;  %5942 = vmatprep.subr.bf16.mxu1 %v8494_v40  ;;  %v8582_v39 = vld [vmem:[%s11187_s1 + $0x1860] ss:$16 sps:$4 sm:$0xff]   ;;  %v8585_v40 = vld [vmem:[%s11187_s1 + $0x1868] ss:$16 sps:$4 sm:$0xff]  }
 0x2d3   :  { %5384 = vmatpush1.bf16.msra.mxu0 %v8489_v41  ;;  %5943 = vmatpush1.bf16.msra.mxu1 %v8492_v42  ;;  %v8589_v41 = vld [vmem:[%s11189_s3 + $0x40] sm:$0xff]  }
 0x2d4   :  { %5385 = vmatprep.subr.bf16.mxu0 %v8497_v43  ;;  %5944 = vmatprep.subr.bf16.mxu1 %v8500_v44  ;;  %v8590_v42 = vld [vmem:[%s11189_s3 + $0xc0] sm:$0xff]  }
 0x2d5   :  { %v8588_v43 = vld [vmem:[%s11188_s0 + $0x60] ss:$100 sps:$4 sm:$0xff]  }
 0x2d6   :  { %v8591_v44 = vld [vmem:[%s11189_s3] sm:$0xff]  }
 0x2d7   :  { %5386 = vmatpush1.bf16.msra.mxu0 %v8495_v45  ;;  %5945 = vmatpush1.bf16.msra.mxu1 %v8498_v46  ;;  %v8592_v45 = vld [vmem:[%s11189_s3 + $0x80] sm:$0xff]   ;;  %v8593_v46 = vld [vmem:[%s11189_s3 + $0x48] sm:$0xff]  }
 0x2d8   :  { %5387 = vmatprep.subr.bf16.mxu0 %v8503_v47  ;;  %5946 = vmatprep.subr.bf16.mxu1 %v8506_v48  ;;  %v8594_v47 = vld [vmem:[%s11189_s3 + $0xc8] sm:$0xff]  }
 0x2d9   :  { %v8595_v48 = vld [vmem:[%s11189_s3 + $0x8] sm:$0xff]  }
 0x2db   :  { %5388 = vmatpush1.bf16.msra.mxu0 %v8501_v49  ;;  %5947 = vmatpush1.bf16.msra.mxu1 %v8504_v50  ;;  %v8596_v49 = vld [vmem:[%s11189_s3 + $0x88] sm:$0xff]   ;;  %v8597_v50 = vld [vmem:[%s11189_s3 + $0x50] sm:$0xff]  }
 0x2dc   :  { %5389 = vmatprep.subr.bf16.mxu0 %v8509_v51  ;;  %5948 = vmatprep.subr.bf16.mxu1 %v8512_v52  ;;  %v8598_v51 = vld [vmem:[%s11189_s3 + $0xd0] sm:$0xff]  }
 0x2dd   :  { %v8599_v52 = vld [vmem:[%s11189_s3 + $0x10] sm:$0xff]  }
 0x2df   :  { %5390 = vmatpush1.bf16.msra.mxu0 %v8507_v53  ;;  %5949 = vmatpush1.bf16.msra.mxu1 %v8510_v54  ;;  %v8600_v53 = vld [vmem:[%s11189_s3 + $0x90] sm:$0xff]   ;;  %v8601_v54 = vld [vmem:[%s11189_s3 + $0x58] sm:$0xff]  }
 0x2e0   :  { %5391 = vmatprep.subr.bf16.mxu0 %v8515_v55  ;;  %5950 = vmatprep.subr.bf16.mxu1 %v8518_v56  ;;  %v8602_v55 = vld [vmem:[%s11189_s3 + $0xd8] sm:$0xff]  }
 0x2e1   :  { %v8603_v56 = vld [vmem:[%s11189_s3 + $0x18] sm:$0xff]  }
 0x2e3   :  { %5392 = vmatpush1.bf16.msra.mxu0 %v8513_v57  ;;  %5951 = vmatpush1.bf16.msra.mxu1 %v8516_v58  ;;  %v8604_v57 = vld [vmem:[%s11189_s3 + $0x98] sm:$0xff]   ;;  %v8605_v58 = vld [vmem:[%s11189_s3 + $0x60] sm:$0xff]  }
 0x2e4   :  { %5393 = vmatprep.subr.bf16.mxu0 %v8521_v59  ;;  %5952 = vmatprep.subr.bf16.mxu1 %v8524_v60  ;;  %v8606_v59 = vld [vmem:[%s11189_s3 + $0xe0] sm:$0xff]  }
 0x2e5   :  { %v8607_v60 = vld [vmem:[%s11189_s3 + $0x20] sm:$0xff]  }
 0x2e7   :  { %5394 = vmatpush1.bf16.msra.mxu0 %v8519_v61  ;;  %5953 = vmatpush1.bf16.msra.mxu1 %v8522_v62  ;;  %v8608_v61 = vld [vmem:[%s11189_s3 + $0xa0] sm:$0xff]   ;;  %v8609_v62 = vld [vmem:[%s11189_s3 + $0x68] sm:$0xff]  }
 0x2e8   :  { %5395 = vmatprep.subr.bf16.mxu0 %v8527_v63  ;;  %5954 = vmatprep.subr.bf16.mxu1 %v8530_v0  ;;  %v8610_v63 = vld [vmem:[%s11189_s3 + $0xe8] sm:$0xff]  }
 0x2e9   :  { %v8611_v0 = vld [vmem:[%s11189_s3 + $0x28] sm:$0xff]  }
 0x2eb   :  { %5396 = vmatpush1.bf16.msra.mxu0 %v8525_v1  ;;  %5955 = vmatpush1.bf16.msra.mxu1 %v8528_v2  ;;  %v8612_v1 = vld [vmem:[%s11189_s3 + $0xa8] sm:$0xff]   ;;  %v8613_v2 = vld [vmem:[%s11189_s3 + $0x70] sm:$0xff]  }
 0x2ec   :  { %5397 = vmatprep.subr.bf16.mxu0 %v8533_v3  ;;  %5956 = vmatprep.subr.bf16.mxu1 %v8536_v4  ;;  %v8614_v3 = vld [vmem:[%s11189_s3 + $0xf0] sm:$0xff]  }
 0x2ed   :  { %v8615_v4 = vld [vmem:[%s11189_s3 + $0x30] sm:$0xff]  }
 0x2ef   :  { %5398 = vmatpush1.bf16.msra.mxu0 %v8531_v5  ;;  %5957 = vmatpush1.bf16.msra.mxu1 %v8534_v6  ;;  %v8616_v5 = vld [vmem:[%s11189_s3 + $0xb0] sm:$0xff]   ;;  %v8617_v6 = vld [vmem:[%s11189_s3 + $0x78] sm:$0xff]  }
 0x2f0   :  { %5399 = vmatprep.subr.bf16.mxu0 %v8539_v7  ;;  %5958 = vmatprep.subr.bf16.mxu1 %v8542_v8  ;;  %v8618_v7 = vld [vmem:[%s11189_s3 + $0xf8] sm:$0xff]  }
 0x2f1   :  { %v8619_v8 = vld [vmem:[%s11189_s3 + $0x38] sm:$0xff]  }
 0x2f3   :  { %5400 = vmatpush1.bf16.msra.mxu0 %v8537_v9  ;;  %5959 = vmatpush1.bf16.msra.mxu1 %v8540_v10  ;;  %v8620_v9 = vld [vmem:[%s11189_s3 + $0xb8] sm:$0xff]   ;;  %v833_v10 = vlaneseq }
 0x2f4   :  { %5401 = vmatprep.subr.bf16.mxu0 %v8545_v11  ;;  %5960 = vmatprep.subr.bf16.mxu1 %v8548_v12 }
 0x2f5   :  { %v834_v11 = vshrl.u32 %v833_v10, 7 }
 0x2f7   :  { %5402 = vmatpush1.bf16.msra.mxu0 %v8543_v13  ;;  %5961 = vmatpush1.bf16.msra.mxu1 %v8546_v14  ;;  %v835_v12 = vsub.s32 0, %v834_v11  ;;  %v843_v13 = vsub.s32 2, %v834_v11  ;;  %v831_v14 = vld [vmem:[%s11190_s2] sm:$0xf] }
 0x2f8   :  { %5403 = vmatprep.subr.bf16.mxu0 %v8551_v15  ;;  %5962 = vmatprep.subr.bf16.mxu1 %v8554_v16  ;;  %v839_v15 = vsub.s32 1, %v834_v11  ;;  %v847_v16 = vsub.s32 3, %v834_v11 }
 0x2fb   :  { %5404 = vmatpush1.bf16.msra.mxu0 %v8549_v17  ;;  %5963 = vmatpush1.bf16.msra.mxu1 %v8552_v18  ;;  %v836_v17 = vrot.slane %v831_v14, %v835_v12  ;;  %v844_v18 = vrot.slane %v831_v14, %v843_v13 }
 0x2fc   :  { %5405 = vmatprep.subr.bf16.mxu0 %v8557_v19  ;;  %5964 = vmatprep.subr.bf16.mxu1 %v8560_v20  ;;  %v840_v19 = vrot.slane %v831_v14, %v839_v15  ;;  %v848_v20 = vrot.slane %v831_v14, %v847_v16 }
 0x2ff   :  { %5406 = vmatpush1.bf16.msra.mxu0 %v8555_v21  ;;  %5965 = vmatpush1.bf16.msra.mxu1 %v8558_v22 }
 0x300   :  { %5418 = vmatprep.subr.bf16.mxu0 %v8566_v23  ;;  %5977 = vmatprep.subr.bf16.mxu1 %v8569_v24 }
 0x302   :  { %5408 = vmatmul.mubr.bf16.vlgmr.msra.gmra.mrb[0].mxu0 %v8561_v25  ;;  %5967 = vmatmul.mubr.bf16.vlgmr.msra.gmra.mrb[0].mxu1 %v8561_v25 }
 0x303   :  { %5419 = vmatpush1.bf16.msra.mxu0 %v8564_v26  ;;  %5978 = vmatpush1.bf16.msra.mxu1 %v8567_v27 }
 0x304   :  { %5420 = vmatprep.subr.bf16.mxu0 %v8572_v28  ;;  %5979 = vmatprep.subr.bf16.mxu1 %v8575_v29 }
 0x305   :  { %5450 = vmatprep.mubr.bf16.mxu0 %v8621_v34  ;;  %6009 = vmatprep.mubr.bf16.mxu1 %v8621_v34 }
 0x307   :  { %5421 = vmatpush1.bf16.msra.mxu0 %v8570_v30  ;;  %5980 = vmatpush1.bf16.msra.mxu1 %v8573_v31 }
 0x308   :  { %5422 = vmatprep.subr.bf16.mxu0 %v8578_v32  ;;  %5981 = vmatprep.subr.bf16.mxu1 %v8581_v33 }
 0x30b   :  { %5423 = vmatpush1.bf16.msra.mxu0 %v8576_v35  ;;  %5982 = vmatpush1.bf16.msra.mxu1 %v8579_v36 }
 0x30c   :  { %5424 = vmatprep.subr.bf16.mxu0 %v8584_v37  ;;  %5983 = vmatprep.subr.bf16.mxu1 %v8587_v38 }
 0x30f   :  { %5425 = vmatpush1.bf16.msra.mxu0 %v8582_v39  ;;  %5984 = vmatpush1.bf16.msra.mxu1 %v8585_v40 }
 0x310   :  { %7227 = vmatprep.subr.bf16.mxu0 %v8589_v41  ;;  %7249 = vmatprep.subr.bf16.mxu1 %v8590_v42 }
 0x312   :  { %7192 = vmatmul.mubr.msk.bf16.vlgmr.msra.gmra.mrb[0].mxu0 %vm4898_vm0, %v8588_v43  ;;  %7193 = vmatmul.mubr.msk.bf16.vlgmr.msra.gmra.mrb[0].mxu1 %vm4898_vm0, %v8588_v43 }
 0x313   :  { %7228 = vmatpush3.bf16.msra.mxu0 %v8591_v44  ;;  %7250 = vmatpush3.bf16.msra.mxu1 %v8592_v45 }
 0x314   :  { %7229 = vmatprep.subr.bf16.mxu0 %v8593_v46  ;;  %7251 = vmatprep.subr.bf16.mxu1 %v8594_v47 }
 0x317   :  { %7230 = vmatpush3.bf16.msra.mxu0 %v8595_v48  ;;  %7252 = vmatpush3.bf16.msra.mxu1 %v8596_v49 }
 0x318   :  { %7231 = vmatprep.subr.bf16.mxu0 %v8597_v50  ;;  %7253 = vmatprep.subr.bf16.mxu1 %v8598_v51  ;;  %v7194_v51 = vld [vmem:[%s11191_s4] ss:$0 sm:$0xff] }
 0x31b   :  { %7232 = vmatpush3.bf16.msra.mxu0 %v8599_v52  ;;  %7254 = vmatpush3.bf16.msra.mxu1 %v8600_v53 }
 0x31c   :  { %7233 = vmatprep.subr.bf16.mxu0 %v8601_v54  ;;  %7255 = vmatprep.subr.bf16.mxu1 %v8602_v55 }
 0x31f   :  { %7234 = vmatpush3.bf16.msra.mxu0 %v8603_v56  ;;  %7256 = vmatpush3.bf16.msra.mxu1 %v8604_v57 }
 0x320   :  { %7235 = vmatprep.subr.bf16.mxu0 %v8605_v58  ;;  %7257 = vmatprep.subr.bf16.mxu1 %v8606_v59 }
 0x323   :  { %7236 = vmatpush3.bf16.msra.mxu0 %v8607_v60  ;;  %7258 = vmatpush3.bf16.msra.mxu1 %v8608_v61 }
 0x324   :  { %7237 = vmatprep.subr.bf16.mxu0 %v8609_v62  ;;  %7259 = vmatprep.subr.bf16.mxu1 %v8610_v63 }
 0x327   :  { %7238 = vmatpush3.bf16.msra.mxu0 %v8611_v0  ;;  %7260 = vmatpush3.bf16.msra.mxu1 %v8612_v1 }
 0x328   :  { %7239 = vmatprep.subr.bf16.mxu0 %v8613_v2  ;;  %7261 = vmatprep.subr.bf16.mxu1 %v8614_v3 }
 0x32b   :  { %7240 = vmatpush3.bf16.msra.mxu0 %v8615_v4  ;;  %7262 = vmatpush3.bf16.msra.mxu1 %v8616_v5 }
 0x32c   :  { %7241 = vmatprep.subr.bf16.mxu0 %v8617_v6  ;;  %7263 = vmatprep.subr.bf16.mxu1 %v8618_v7 }
 0x32f   :  { %7242 = vmatpush3.bf16.msra.mxu0 %v8619_v8  ;;  %7264 = vmatpush3.bf16.msra.mxu1 %v8620_v9 }
 0x3e5   :  { %v5452_v21 = vpop.f32.mrb[0].mxu0  ;;  %v6011_v22 = vpop.f32.mrb[0].mxu1 }
 0x3e6   :  { %v7271_v23 = vadd.f32 %v5452_v21, %v836_v17  ;;  %v7275_v24 = vadd.f32 %v6011_v22, %v844_v18  ;;  %v5454_v25 = vpop.f32.mrb[1].mxu0  ;;  %v6013_v26 = vpop.f32.mrb[1].mxu1 }
 0x3e7   :  { %v7272_v27 = vadd.f32 %v5454_v25, %v840_v19  ;;  %v7276_v28 = vadd.f32 %v6013_v26, %v848_v20  ;;  %v5456_v29 = vpop.f32.mrb[2].mxu0  ;;  %v6015_v30 = vpop.f32.mrb[2].mxu1 }
 0x3e8   :  { %v7273_v31 = vadd.f32 %v5456_v29, %v836_v17  ;;  %v7277_v32 = vadd.f32 %v6015_v30, %v844_v18  ;;  %v5458_v33 = vpop.f32.mrb[3].mxu0  ;;  %v6017_v34 = vpop.f32.mrb[3].mxu1  ;;  %v6020_v37 = vmax.f32 %v7271_v23, 0.0  ;;  %v6022_v38 = vmax.f32 %v7275_v24, 0.0 }
 0x3e9   :  { %v7274_v35 = vadd.f32 %v5458_v33, %v840_v19  ;;  %v7278_v36 = vadd.f32 %v6017_v34, %v848_v20  ;;  %v6021_v41 = vmax.f32 %v7272_v27, 0.0  ;;  %v6023_v42 = vmax.f32 %v7276_v28, 0.0 }
 0x3ea   :  { %v6024_v39 = vmax.f32 %v7273_v31, 0.0  ;;  %v6026_v40 = vmax.f32 %v7277_v32, 0.0 }
 0x3eb   :  { %v6025_v43 = vmax.f32 %v7274_v35, 0.0  ;;  %v6027_v44 = vmax.f32 %v7278_v36, 0.0 }
 0x3ec   :  { %v6028_v45 = vpack.c.bf16 %v6024_v39, %v6020_v37  ;;  %v6030_v46 = vpack.c.bf16 %v6026_v40, %v6022_v38 }
 0x3ed   :  { %v6029_v47 = vpack.c.bf16 %v6025_v43, %v6021_v41  ;;  %v6031_v48 = vpack.c.bf16 %v6027_v44, %v6023_v42 }
 0x3ef   :  { %6327 = vmatprep.mubr.bf16.mxu0 %v6029_v47  ;;  %6368 = vmatprep.mubr.bf16.mxu1 %v6031_v48 }
 0x3f0   :  { %6328 = vmatmul.mubr.bf16.vlgmr.msra.gmra.mrb[4].mxu0 %v6028_v45  ;;  %6369 = vmatmul.mubr.bf16.vlgmr.msra.gmra.mrb[4].mxu1 %v6030_v46 }
 0x4c3   :  { %v7243_v49 = vpop.f32.mrb[4].mxu0  ;;  %v7265_v50 = vpop.f32.mrb[4].mxu1 }
 0x4c4   :  { %v7244_v52 = vpop.f32.mrb[5].mxu0  ;;  %v7266_v53 = vpop.f32.mrb[5].mxu1 }
 0x4c5   :  { %v7245_v54 = vadd.f32 %v7244_v52, %v7243_v49  ;;  %v7267_v55 = vadd.f32 %v7266_v53, %v7265_v50  ;;  %v7246_v56 = vpop.f32.mrb[6].mxu0  ;;  %v7268_v57 = vpop.f32.mrb[6].mxu1 }
 0x4c6   :  { %v7247_v58 = vpop.f32.mrb[7].mxu0  ;;  %v7269_v59 = vpop.f32.mrb[7].mxu1 }
 0x4c7   :  { %v6330_v60 = vadd.f32 %v7245_v54, %v7194_v51  ;;  %v7248_v61 = vadd.f32 %v7247_v58, %v7246_v56  ;;  %v7270_v62 = vadd.f32 %v7269_v59, %v7268_v57 }
 0x4c9   :  { %v6371_v63 = vadd.f32 %v7267_v55, %v6330_v60  ;;  %v6333_v0 = vadd.f32 %v7248_v61, %v7194_v51 }
 0x4cb   :  { %6377 = vst [vmem:[%s11192_s5] sm:$0xff] %v6371_v63  ;;  %v6374_v1 = vadd.f32 %v7270_v62, %v6333_v0 }
 0x4cd   :  { %6378 = vst [vmem:[%s11192_s5 + $0x8] sm:$0xff] %v6374_v1 }

</bundles_post_ra>
